<compile_context>
chip_gen: v7x
topology: tpu7x:2x2x1
jax: 0.10.0
libtpu: 0.0.40
codegen_flags: <defaults>
</compile_context>

<pallas_src>
import functools

import jax
import jax.numpy as jnp
from jax import lax
from jax.experimental import pallas as pl
from jax.experimental.pallas import tpu as pltpu

NUM_LAYERS = 3  # nn.LSTM(num_layers=3) — super().__init__ leaves self.num_layers at its default 3


def _sigmoid(x):
    return jax.nn.sigmoid(x)


def _lstm_layer(seq_bf16, wih_ref, whh_ref, b_ref, pre_ref, dst_ref, *, B, T, H, unroll):
    """One LSTM layer.

    seq_bf16 : (T*B, in) bf16 value, time-major flat (row index = t*B + b).
    wih_ref  : (in, 4H) bf16 fused input weights (torch gate order i, f, g, o).
    whh_ref  : (H, 4H)  bf16 fused recurrent weights.
    b_ref    : (1, 4H)  fp32 combined bias (b_ih + b_hh).
    pre_ref  : (T*B, >=4H) fp32 scratch — fused, hoisted input pre-activations.
    dst_ref  : (T*B, >=H) ref receiving h_t rows for every timestep.
    """
    G = 4 * H

    # Hoisted input projection: ONE big matmul over the whole sequence, bias folded in.
    pre = jnp.dot(seq_bf16, wih_ref[...], preferred_element_type=jnp.float32) + b_ref[...]
    pre_ref[:, 0:G] = pre

    def step(t, carry):
        h, c = carry
        row = pl.multiple_of(t * B, 8)   # B is a multiple of 8 (wrapper pads)
        # ONE fused recurrent matmul per step; gates picked out with static lane slices.
        gates = pre_ref[pl.ds(row, B), 0:G] + jnp.dot(
            h.astype(jnp.bfloat16), whh_ref[...], preferred_element_type=jnp.float32)
        act = _sigmoid(gates)                    # one EUP pass covers i, f, o
        g_t = jnp.tanh(gates[:, 2 * H:3 * H])    # cell candidate
        i_t = act[:, 0:H]
        f_t = act[:, H:2 * H]
        o_t = act[:, 3 * H:4 * H]
        c_n = f_t * c + i_t * g_t
        h_n = o_t * jnp.tanh(c_n)
        dst_ref[pl.ds(row, B), 0:H] = h_n.astype(dst_ref.dtype)
        return h_n, c_n

    h0 = jnp.zeros((B, H), jnp.float32)
    c0 = jnp.zeros((B, H), jnp.float32)
    lax.fori_loop(0, T, step, (h0, c0), unroll=unroll)


def _lstm_ae_kernel(B, T, Din, Dout, unroll, *refs):
    (x_ref, enc_in_w, enc_in_b,
     e0_wih, e0_whh, e0_b,
     e1_wih, e1_whh, e1_b,
     e2_wih, e2_whh, e2_b,
     dec_in_w, dec_in_b,
     d0_wih, d0_whh, d0_b,
     d1_wih, d1_whh, d1_b,
     d2_wih, d2_whh, d2_b,
     out_ref,
     seq_ref, pre_ref) = refs

    bf16 = jnp.bfloat16
    lyr = functools.partial(_lstm_layer, pre_ref=pre_ref, B=B, T=T, unroll=unroll)

    # ---- encode ----
    # TODO(synk): nn.Dropout is identity in eval mode; intentionally omitted.
    y = _sigmoid(jnp.dot(x_ref[...], enc_in_w[...], preferred_element_type=jnp.float32)
                 + enc_in_b[...])
    lyr(y.astype(bf16), e0_wih, e0_whh, e0_b, dst_ref=seq_ref, H=Dout)
    lyr(seq_ref[:, 0:Dout].astype(bf16), e1_wih, e1_whh, e1_b, dst_ref=seq_ref, H=Dout)
    lyr(seq_ref[:, 0:Dout].astype(bf16), e2_wih, e2_whh, e2_b, dst_ref=seq_ref, H=Dout)

    # ---- decode ----
    z = _sigmoid(jnp.dot(seq_ref[:, 0:Dout].astype(bf16), dec_in_w[...],
                         preferred_element_type=jnp.float32) + dec_in_b[...])
    lyr(z.astype(bf16), d0_wih, d0_whh, d0_b, dst_ref=seq_ref, H=Din)
    lyr(seq_ref[:, 0:Din].astype(bf16), d1_wih, d1_whh, d1_b, dst_ref=seq_ref, H=Din)
    # Last layer streams h_t straight into the (time-major flat) output block — no extra copy.
    lyr(seq_ref[:, 0:Din].astype(bf16), d2_wih, d2_whh, d2_b, dst_ref=out_ref, H=Din)


def lstm_autoencoder_forward(x, params, *, unroll=8):
    B0, T, Din = x.shape
    Dout = params["dec_in_w"].shape[0]
    Dmax = max(Din, Dout)
    bf16 = jnp.bfloat16

    # Pad batch to a multiple of 8 (sublanes) so per-step row stores are unmasked;
    # padded rows are discarded after the kernel.
    B = ((B0 + 7) // 8) * 8
    if B != B0:
        x = jnp.concatenate([x, jnp.zeros((B - B0, T, Din), x.dtype)], axis=0)

    # Weights fused in torch layout (in,4H)/(H,4H), bias (1,4H)=b_ih+b_hh; matmul operands bf16.
    flat = [params["enc_in_w"].astype(bf16), params["enc_in_b"]]
    for (wih, whh, b) in params["enc_lstm"]:
        flat += [wih.astype(bf16), whh.astype(bf16), b]
    flat += [params["dec_in_w"].astype(bf16), params["dec_in_b"]]
    for (wih, whh, b) in params["dec_lstm"]:
        flat += [wih.astype(bf16), whh.astype(bf16), b]

    # Layout plumbing stays outside the kernel (handled by XLA):
    # batch-first (B,T,Din) -> time-major flat (T*B, Din), cast to bf16 for the MXU.
    x_flat = jnp.transpose(x, (1, 0, 2)).reshape(T * B, Din).astype(bf16)

    n_in = 1 + len(flat)
    scratch = [
        pltpu.VMEM((T * B, Dmax), jnp.float32),       # shared h-sequence buffer (enc & dec)
        pltpu.VMEM((T * B, 4 * Dmax), jnp.float32),   # shared fused gate pre-activations
    ]

    # VMEM budget: inputs + weights + output + scratch, with headroom.
    def nbytes(a):
        return a.size * a.dtype.itemsize
    vmem_need = (nbytes(x_flat) + sum(nbytes(a) for a in flat)
                 + T * B * Din * 4                     # output
                 + T * B * Dmax * 4 + T * B * 4 * Dmax * 4)  # scratch
    vmem_limit = int(min(112 * 2**20, max(32 * 2**20, 2 * vmem_need + (4 << 20))))

    out_tm = pl.pallas_call(
        functools.partial(_lstm_ae_kernel, B, T, Din, Dout, max(1, min(unroll, T))),
        out_shape=jax.ShapeDtypeStruct((T * B, Din), x.dtype),
        in_specs=[pl.BlockSpec(memory_space=pltpu.MemorySpace.VMEM)] * n_in,
        out_specs=pl.BlockSpec(memory_space=pltpu.MemorySpace.VMEM),
        scratch_shapes=scratch,
        compiler_params=pltpu.CompilerParams(vmem_limit_bytes=vmem_limit),
    )(x_flat, *flat)

    # Time-major flat -> batch-first (B0, T, Din), dropping batch padding (also outside kernel).
    return jnp.transpose(out_tm.reshape(T, B, Din), (1, 0, 2))[:B0]


# ------------------------- parameter init (deterministic) -------------------------
def init_params(key, input_dim, output_dim):
    def uniform(k, shape, bound):
        return jax.random.uniform(k, shape, jnp.float32, -bound, bound)

    keys = iter(jax.random.split(key, 64))
    p = {}
    # enc_lin_in: Linear(Din, Din) — stored as (in, out), bias (1, out)
    bnd = 1.0 / (input_dim ** 0.5)
    p["enc_in_w"] = uniform(next(keys), (input_dim, input_dim), bnd)
    p["enc_in_b"] = uniform(next(keys), (1, input_dim), bnd)
    # enc_lstm: LSTM(Din -> Dout, 3 layers); bound = 1/sqrt(hidden)
    bnd = 1.0 / (output_dim ** 0.5)
    enc = []
    for layer in range(NUM_LAYERS):
        in_l = input_dim if layer == 0 else output_dim
        wih = uniform(next(keys), (in_l, 4 * output_dim), bnd)
        whh = uniform(next(keys), (output_dim, 4 * output_dim), bnd)
        b_ih = uniform(next(keys), (1, 4 * output_dim), bnd)
        b_hh = uniform(next(keys), (1, 4 * output_dim), bnd)
        enc.append((wih, whh, b_ih + b_hh))
    p["enc_lstm"] = enc
    # dec_lin_in: Linear(Dout, Dout)
    bnd = 1.0 / (output_dim ** 0.5)
    p["dec_in_w"] = uniform(next(keys), (output_dim, output_dim), bnd)
    p["dec_in_b"] = uniform(next(keys), (1, output_dim), bnd)
    # dec_lstm: LSTM(Dout -> Din, 3 layers); bound = 1/sqrt(hidden=Din)
    bnd = 1.0 / (input_dim ** 0.5)
    dec = []
    for layer in range(NUM_LAYERS):
        in_l = output_dim if layer == 0 else input_dim
        wih = uniform(next(keys), (in_l, 4 * input_dim), bnd)
        whh = uniform(next(keys), (input_dim, 4 * input_dim), bnd)
        b_ih = uniform(next(keys), (1, 4 * input_dim), bnd)
        b_hh = uniform(next(keys), (1, 4 * input_dim), bnd)
        dec.append((wih, whh, b_ih + b_hh))
    p["dec_lstm"] = dec
    return p


# ------------------------- pure-JAX fp32 reference (for correctness check) -------------------------
def reference_forward(x, params):
    def lstm_stack(xs, layers, H):
        B, T, _ = xs.shape
        seq = xs
        for (wih, whh, b) in layers:
            h = jnp.zeros((B, H), jnp.float32)
            c = jnp.zeros((B, H), jnp.float32)
            outs = []
            for t in range(T):
                g = seq[:, t, :] @ wih + h @ whh + b
                i = _sigmoid(g[:, :H])
                f = _sigmoid(g[:, H:2 * H])
                gg = jnp.tanh(g[:, 2 * H:3 * H])
                o = _sigmoid(g[:, 3 * H:])
                c = f * c + i * gg
                h = o * jnp.tanh(c)
                outs.append(h)
            seq = jnp.stack(outs, axis=1)
        return seq

    Din = params["enc_in_w"].shape[0]
    Dout = params["dec_in_w"].shape[0]
    y = _sigmoid(x @ params["enc_in_w"] + params["enc_in_b"])
    y = lstm_stack(y, params["enc_lstm"], Dout)
    z = _sigmoid(y @ params["dec_in_w"] + params["dec_in_b"])
    return lstm_stack(z, params["dec_lstm"], Din)


if __name__ == "__main__":
    B, T = 8, 8          # batch (multiple of 8 fills sublanes), sequence_length
    Din, Dout = 16, 8    # input_dim, output_dim

    root = jax.random.PRNGKey(0)
    k_param, k_data = jax.random.split(root)
    params = init_params(k_param, Din, Dout)
    x = jax.random.normal(k_data, (B, T, Din), jnp.float32)  # (batch, seq, input_dim)

    out = lstm_autoencoder_forward(x, params)
    out = jax.block_until_ready(out)
    assert out.shape == (B, T, Din), out.shape

    ref = jax.block_until_ready(reference_forward(x, params))
    err = float(jnp.max(jnp.abs(out - ref)))
    # Kernel feeds the MXU bf16 operands (fp32 accumulation / cell state / nonlinearities),
    # so allow a bf16-sized gap vs the pure-fp32 reference; real bugs show up as O(0.1+) errors.
    assert err < 5e-2, f"max abs err {err}"

    print("KERNEL_OK")
</pallas_src>

<mosaic_0001>
module attributes {stable_mosaic.version = 11 : i64} {
  func.func @_lstm_ae_kernel(%arg0: memref<64x16xbf16, #tpu.memory_space<vmem>>, %arg1: memref<16x16xbf16, #tpu.memory_space<vmem>>, %arg2: memref<1x16xf32, #tpu.memory_space<vmem>>, %arg3: memref<16x32xbf16, #tpu.memory_space<vmem>>, %arg4: memref<8x32xbf16, #tpu.memory_space<vmem>>, %arg5: memref<1x32xf32, #tpu.memory_space<vmem>>, %arg6: memref<8x32xbf16, #tpu.memory_space<vmem>>, %arg7: memref<8x32xbf16, #tpu.memory_space<vmem>>, %arg8: memref<1x32xf32, #tpu.memory_space<vmem>>, %arg9: memref<8x32xbf16, #tpu.memory_space<vmem>>, %arg10: memref<8x32xbf16, #tpu.memory_space<vmem>>, %arg11: memref<1x32xf32, #tpu.memory_space<vmem>>, %arg12: memref<8x8xbf16, #tpu.memory_space<vmem>>, %arg13: memref<1x8xf32, #tpu.memory_space<vmem>>, %arg14: memref<8x64xbf16, #tpu.memory_space<vmem>>, %arg15: memref<16x64xbf16, #tpu.memory_space<vmem>>, %arg16: memref<1x64xf32, #tpu.memory_space<vmem>>, %arg17: memref<16x64xbf16, #tpu.memory_space<vmem>>, %arg18: memref<16x64xbf16, #tpu.memory_space<vmem>>, %arg19: memref<1x64xf32, #tpu.memory_space<vmem>>, %arg20: memref<16x64xbf16, #tpu.memory_space<vmem>>, %arg21: memref<16x64xbf16, #tpu.memory_space<vmem>>, %arg22: memref<1x64xf32, #tpu.memory_space<vmem>>, %arg23: memref<64x16xf32, #tpu.memory_space<vmem>>, %arg24: memref<64x16xf32, #tpu.memory_space<vmem>>, %arg25: memref<64x64xf32, #tpu.memory_space<vmem>>) attributes {dimension_semantics = [], scalar_prefetch = 0 : i64, scratch_operands = 2 : i64, tpu.core_type = #tpu.core_type<tc>} {
    %c0 = arith.constant 0 : index
    %c0_0 = arith.constant 0 : index
    %0 = vector.load %arg0[%c0, %c0_0] : memref<64x16xbf16, #tpu.memory_space<vmem>>, vector<64x16xbf16>
    %c0_1 = arith.constant 0 : index
    %c0_2 = arith.constant 0 : index
    %1 = vector.load %arg1[%c0_1, %c0_2] : memref<16x16xbf16, #tpu.memory_space<vmem>>, vector<16x16xbf16>
    %cst = arith.constant dense<0.000000e+00> : vector<64x16xf32>
    %2 = tpu.matmul %0, %1, %cst {dimension_numbers = #tpu.dot_dimension_numbers<[1], [0], [0], [1], [0, 0, 1, 1], [], []>} : vector<64x16xbf16>, vector<16x16xbf16>, vector<64x16xf32> -> vector<64x16xf32>
    %c0_3 = arith.constant 0 : index
    %c0_4 = arith.constant 0 : index
    %3 = vector.load %arg2[%c0_3, %c0_4] : memref<1x16xf32, #tpu.memory_space<vmem>>, vector<1x16xf32>
    %4 = vector.broadcast %3 : vector<1x16xf32> to vector<64x16xf32>
    %5 = arith.addf %2, %4 : vector<64x16xf32>
    %6 = arith.negf %5 : vector<64x16xf32>
    %7 = math.exp %6 : vector<64x16xf32>
    %cst_5 = arith.constant 1.000000e+00 : f32
    %8 = vector.broadcast %cst_5 : f32 to vector<64x16xf32>
    %9 = arith.addf %8, %7 : vector<64x16xf32>
    %10 = arith.divf %8, %9 : vector<64x16xf32>
    %11 = arith.truncf %10 : vector<64x16xf32> to vector<64x16xbf16>
    %c0_6 = arith.constant 0 : index
    %c0_7 = arith.constant 0 : index
    %12 = vector.load %arg3[%c0_6, %c0_7] : memref<16x32xbf16, #tpu.memory_space<vmem>>, vector<16x32xbf16>
    %cst_8 = arith.constant dense<0.000000e+00> : vector<64x32xf32>
    %13 = tpu.matmul %11, %12, %cst_8 {dimension_numbers = #tpu.dot_dimension_numbers<[1], [0], [0], [1], [0, 0, 1, 1], [], []>} : vector<64x16xbf16>, vector<16x32xbf16>, vector<64x32xf32> -> vector<64x32xf32>
    %c0_9 = arith.constant 0 : index
    %c0_10 = arith.constant 0 : index
    %14 = vector.load %arg5[%c0_9, %c0_10] : memref<1x32xf32, #tpu.memory_space<vmem>>, vector<1x32xf32>
    %15 = vector.broadcast %14 : vector<1x32xf32> to vector<64x32xf32>
    %16 = arith.addf %13, %15 : vector<64x32xf32>
    %c0_11 = arith.constant 0 : index
    %c0_12 = arith.constant 0 : index
    %17 = vector.load %arg25[%c0_11, %c0_12] : memref<64x64xf32, #tpu.memory_space<vmem>>, vector<64x32xf32>
    tpu.vector_store %arg25[%c0_11, %c0_12], %16 {strides = array<i32>} : memref<64x64xf32, #tpu.memory_space<vmem>>, vector<64x32xf32>,
    %cst_13 = arith.constant 0.000000e+00 : f32
    %18 = vector.broadcast %cst_13 : f32 to vector<8x8xf32>
    %cst_14 = arith.constant 0.000000e+00 : f32
    %19 = vector.broadcast %cst_14 : f32 to vector<8x8xf32>
    %c0_i32 = arith.constant 0 : i32
    %c8_i32 = arith.constant 8 : i32
    %20 = arith.muli %c0_i32, %c8_i32 : i32
    %21 = tpu.assume_multiple %20, 8 : i32
    %22 = arith.index_cast %21 : i32 to index
    %c0_15 = arith.constant 0 : index
    %23 = vector.load %arg25[%22, %c0_15] : memref<64x64xf32, #tpu.memory_space<vmem>>, vector<8x32xf32>
    %24 = arith.truncf %18 : vector<8x8xf32> to vector<8x8xbf16>
    %c0_16 = arith.constant 0 : index
    %c0_17 = arith.constant 0 : index
    %25 = vector.load %arg4[%c0_16, %c0_17] : memref<8x32xbf16, #tpu.memory_space<vmem>>, vector<8x32xbf16>
    %cst_18 = arith.constant dense<0.000000e+00> : vector<8x32xf32>
    %26 = tpu.matmul %24, %25, %cst_18 {dimension_numbers = #tpu.dot_dimension_numbers<[1], [0], [0], [1], [0, 0, 1, 1], [], []>} : vector<8x8xbf16>, vector<8x32xbf16>, vector<8x32xf32> -> vector<8x32xf32>
    %27 = arith.addf %23, %26 : vector<8x32xf32>
    %28 = arith.negf %27 : vector<8x32xf32>
    %29 = math.exp %28 : vector<8x32xf32>
    %cst_19 = arith.constant 1.000000e+00 : f32
    %30 = vector.broadcast %cst_19 : f32 to vector<8x32xf32>
    %31 = arith.addf %30, %29 : vector<8x32xf32>
    %32 = arith.divf %30, %31 : vector<8x32xf32>
    %33 = vector.extract_strided_slice %27 {offsets = [0, 16], sizes = [8, 8], strides = [1, 1]} : vector<8x32xf32> to vector<8x8xf32>
    %34 = math.tanh %33 : vector<8x8xf32>
    %35 = vector.extract_strided_slice %32 {offsets = [0, 0], sizes = [8, 8], strides = [1, 1]} : vector<8x32xf32> to vector<8x8xf32>
    %36 = vector.extract_strided_slice %32 {offsets = [0, 8], sizes = [8, 8], strides = [1, 1]} : vector<8x32xf32> to vector<8x8xf32>
    %37 = vector.extract_strided_slice %32 {offsets = [0, 24], sizes = [8, 8], strides = [1, 1]} : vector<8x32xf32> to vector<8x8xf32>
    %38 = arith.mulf %36, %19 : vector<8x8xf32>
    %39 = arith.mulf %35, %34 : vector<8x8xf32>
    %40 = arith.addf %38, %39 : vector<8x8xf32>
    %41 = math.tanh %40 : vector<8x8xf32>
    %42 = arith.mulf %37, %41 : vector<8x8xf32>
    %43 = arith.index_cast %21 : i32 to index
    %c0_20 = arith.constant 0 : index
    %44 = vector.load %arg24[%43, %c0_20] : memref<64x16xf32, #tpu.memory_space<vmem>>, vector<8x8xf32>
    tpu.vector_store %arg24[%43, %c0_20], %42 {strides = array<i32>} : memref<64x16xf32, #tpu.memory_space<vmem>>, vector<8x8xf32>,
    %c1_i32 = arith.constant 1 : i32
    %c8_i32_21 = arith.constant 8 : i32
    %45 = arith.muli %c1_i32, %c8_i32_21 : i32
    %46 = tpu.assume_multiple %45, 8 : i32
    %47 = arith.index_cast %46 : i32 to index
    %c0_22 = arith.constant 0 : index
    %48 = vector.load %arg25[%47, %c0_22] : memref<64x64xf32, #tpu.memory_space<vmem>>, vector<8x32xf32>
    %49 = arith.truncf %42 : vector<8x8xf32> to vector<8x8xbf16>
    %c0_23 = arith.constant 0 : index
    %c0_24 = arith.constant 0 : index
    %50 = vector.load %arg4[%c0_23, %c0_24] : memref<8x32xbf16, #tpu.memory_space<vmem>>, vector<8x32xbf16>
    %cst_25 = arith.constant dense<0.000000e+00> : vector<8x32xf32>
    %51 = tpu.matmul %49, %50, %cst_25 {dimension_numbers = #tpu.dot_dimension_numbers<[1], [0], [0], [1], [0, 0, 1, 1], [], []>} : vector<8x8xbf16>, vector<8x32xbf16>, vector<8x32xf32> -> vector<8x32xf32>
    %52 = arith.addf %48, %51 : vector<8x32xf32>
    %53 = arith.negf %52 : vector<8x32xf32>
    %54 = math.exp %53 : vector<8x32xf32>
    %cst_26 = arith.constant 1.000000e+00 : f32
    %55 = vector.broadcast %cst_26 : f32 to vector<8x32xf32>
    %56 = arith.addf %55, %54 : vector<8x32xf32>
    %57 = arith.divf %55, %56 : vector<8x32xf32>
    %58 = vector.extract_strided_slice %52 {offsets = [0, 16], sizes = [8, 8], strides = [1, 1]} : vector<8x32xf32> to vector<8x8xf32>
    %59 = math.tanh %58 : vector<8x8xf32>
    %60 = vector.extract_strided_slice %57 {offsets = [0, 0], sizes = [8, 8], strides = [1, 1]} : vector<8x32xf32> to vector<8x8xf32>
    %61 = vector.extract_strided_slice %57 {offsets = [0, 8], sizes = [8, 8], strides = [1, 1]} : vector<8x32xf32> to vector<8x8xf32>
    %62 = vector.extract_strided_slice %57 {offsets = [0, 24], sizes = [8, 8], strides = [1, 1]} : vector<8x32xf32> to vector<8x8xf32>
    %63 = arith.mulf %61, %40 : vector<8x8xf32>
    %64 = arith.mulf %60, %59 : vector<8x8xf32>
    %65 = arith.addf %63, %64 : vector<8x8xf32>
    %66 = math.tanh %65 : vector<8x8xf32>
    %67 = arith.mulf %62, %66 : vector<8x8xf32>
    %68 = arith.index_cast %46 : i32 to index
    %c0_27 = arith.constant 0 : index
    %69 = vector.load %arg24[%68, %c0_27] : memref<64x16xf32, #tpu.memory_space<vmem>>, vector<8x8xf32>
    tpu.vector_store %arg24[%68, %c0_27], %67 {strides = array<i32>} : memref<64x16xf32, #tpu.memory_space<vmem>>, vector<8x8xf32>,
    %c2_i32 = arith.constant 2 : i32
    %c8_i32_28 = arith.constant 8 : i32
    %70 = arith.muli %c2_i32, %c8_i32_28 : i32
    %71 = tpu.assume_multiple %70, 8 : i32
    %72 = arith.index_cast %71 : i32 to index
    %c0_29 = arith.constant 0 : index
    %73 = vector.load %arg25[%72, %c0_29] : memref<64x64xf32, #tpu.memory_space<vmem>>, vector<8x32xf32>
    %74 = arith.truncf %67 : vector<8x8xf32> to vector<8x8xbf16>
    %c0_30 = arith.constant 0 : index
    %c0_31 = arith.constant 0 : index
    %75 = vector.load %arg4[%c0_30, %c0_31] : memref<8x32xbf16, #tpu.memory_space<vmem>>, vector<8x32xbf16>
    %cst_32 = arith.constant dense<0.000000e+00> : vector<8x32xf32>
    %76 = tpu.matmul %74, %75, %cst_32 {dimension_numbers = #tpu.dot_dimension_numbers<[1], [0], [0], [1], [0, 0, 1, 1], [], []>} : vector<8x8xbf16>, vector<8x32xbf16>, vector<8x32xf32> -> vector<8x32xf32>
    %77 = arith.addf %73, %76 : vector<8x32xf32>
    %78 = arith.negf %77 : vector<8x32xf32>
    %79 = math.exp %78 : vector<8x32xf32>
    %cst_33 = arith.constant 1.000000e+00 : f32
    %80 = vector.broadcast %cst_33 : f32 to vector<8x32xf32>
    %81 = arith.addf %80, %79 : vector<8x32xf32>
    %82 = arith.divf %80, %81 : vector<8x32xf32>
    %83 = vector.extract_strided_slice %77 {offsets = [0, 16], sizes = [8, 8], strides = [1, 1]} : vector<8x32xf32> to vector<8x8xf32>
    %84 = math.tanh %83 : vector<8x8xf32>
    %85 = vector.extract_strided_slice %82 {offsets = [0, 0], sizes = [8, 8], strides = [1, 1]} : vector<8x32xf32> to vector<8x8xf32>
    %86 = vector.extract_strided_slice %82 {offsets = [0, 8], sizes = [8, 8], strides = [1, 1]} : vector<8x32xf32> to vector<8x8xf32>
    %87 = vector.extract_strided_slice %82 {offsets = [0, 24], sizes = [8, 8], strides = [1, 1]} : vector<8x32xf32> to vector<8x8xf32>
    %88 = arith.mulf %86, %65 : vector<8x8xf32>
    %89 = arith.mulf %85, %84 : vector<8x8xf32>
    %90 = arith.addf %88, %89 : vector<8x8xf32>
    %91 = math.tanh %90 : vector<8x8xf32>
    %92 = arith.mulf %87, %91 : vector<8x8xf32>
    %93 = arith.index_cast %71 : i32 to index
    %c0_34 = arith.constant 0 : index
    %94 = vector.load %arg24[%93, %c0_34] : memref<64x16xf32, #tpu.memory_space<vmem>>, vector<8x8xf32>
    tpu.vector_store %arg24[%93, %c0_34], %92 {strides = array<i32>} : memref<64x16xf32, #tpu.memory_space<vmem>>, vector<8x8xf32>,
    %c3_i32 = arith.constant 3 : i32
    %c8_i32_35 = arith.constant 8 : i32
    %95 = arith.muli %c3_i32, %c8_i32_35 : i32
    %96 = tpu.assume_multiple %95, 8 : i32
    %97 = arith.index_cast %96 : i32 to index
    %c0_36 = arith.constant 0 : index
    %98 = vector.load %arg25[%97, %c0_36] : memref<64x64xf32, #tpu.memory_space<vmem>>, vector<8x32xf32>
    %99 = arith.truncf %92 : vector<8x8xf32> to vector<8x8xbf16>
    %c0_37 = arith.constant 0 : index
    %c0_38 = arith.constant 0 : index
    %100 = vector.load %arg4[%c0_37, %c0_38] : memref<8x32xbf16, #tpu.memory_space<vmem>>, vector<8x32xbf16>
    %cst_39 = arith.constant dense<0.000000e+00> : vector<8x32xf32>
    %101 = tpu.matmul %99, %100, %cst_39 {dimension_numbers = #tpu.dot_dimension_numbers<[1], [0], [0], [1], [0, 0, 1, 1], [], []>} : vector<8x8xbf16>, vector<8x32xbf16>, vector<8x32xf32> -> vector<8x32xf32>
    %102 = arith.addf %98, %101 : vector<8x32xf32>
    %103 = arith.negf %102 : vector<8x32xf32>
    %104 = math.exp %103 : vector<8x32xf32>
    %cst_40 = arith.constant 1.000000e+00 : f32
    %105 = vector.broadcast %cst_40 : f32 to vector<8x32xf32>
    %106 = arith.addf %105, %104 : vector<8x32xf32>
    %107 = arith.divf %105, %106 : vector<8x32xf32>
    %108 = vector.extract_strided_slice %102 {offsets = [0, 16], sizes = [8, 8], strides = [1, 1]} : vector<8x32xf32> to vector<8x8xf32>
    %109 = math.tanh %108 : vector<8x8xf32>
    %110 = vector.extract_strided_slice %107 {offsets = [0, 0], sizes = [8, 8], strides = [1, 1]} : vector<8x32xf32> to vector<8x8xf32>
    %111 = vector.extract_strided_slice %107 {offsets = [0, 8], sizes = [8, 8], strides = [1, 1]} : vector<8x32xf32> to vector<8x8xf32>
    %112 = vector.extract_strided_slice %107 {offsets = [0, 24], sizes = [8, 8], strides = [1, 1]} : vector<8x32xf32> to vector<8x8xf32>
    %113 = arith.mulf %111, %90 : vector<8x8xf32>
    %114 = arith.mulf %110, %109 : vector<8x8xf32>
    %115 = arith.addf %113, %114 : vector<8x8xf32>
    %116 = math.tanh %115 : vector<8x8xf32>
    %117 = arith.mulf %112, %116 : vector<8x8xf32>
    %118 = arith.index_cast %96 : i32 to index
    %c0_41 = arith.constant 0 : index
    %119 = vector.load %arg24[%118, %c0_41] : memref<64x16xf32, #tpu.memory_space<vmem>>, vector<8x8xf32>
    tpu.vector_store %arg24[%118, %c0_41], %117 {strides = array<i32>} : memref<64x16xf32, #tpu.memory_space<vmem>>, vector<8x8xf32>,
    %c4_i32 = arith.constant 4 : i32
    %c8_i32_42 = arith.constant 8 : i32
    %120 = arith.muli %c4_i32, %c8_i32_42 : i32
    %121 = tpu.assume_multiple %120, 8 : i32
    %122 = arith.index_cast %121 : i32 to index
    %c0_43 = arith.constant 0 : index
    %123 = vector.load %arg25[%122, %c0_43] : memref<64x64xf32, #tpu.memory_space<vmem>>, vector<8x32xf32>
    %124 = arith.truncf %117 : vector<8x8xf32> to vector<8x8xbf16>
    %c0_44 = arith.constant 0 : index
    %c0_45 = arith.constant 0 : index
    %125 = vector.load %arg4[%c0_44, %c0_45] : memref<8x32xbf16, #tpu.memory_space<vmem>>, vector<8x32xbf16>
    %cst_46 = arith.constant dense<0.000000e+00> : vector<8x32xf32>
    %126 = tpu.matmul %124, %125, %cst_46 {dimension_numbers = #tpu.dot_dimension_numbers<[1], [0], [0], [1], [0, 0, 1, 1], [], []>} : vector<8x8xbf16>, vector<8x32xbf16>, vector<8x32xf32> -> vector<8x32xf32>
    %127 = arith.addf %123, %126 : vector<8x32xf32>
    %128 = arith.negf %127 : vector<8x32xf32>
    %129 = math.exp %128 : vector<8x32xf32>
    %cst_47 = arith.constant 1.000000e+00 : f32
    %130 = vector.broadcast %cst_47 : f32 to vector<8x32xf32>
    %131 = arith.addf %130, %129 : vector<8x32xf32>
    %132 = arith.divf %130, %131 : vector<8x32xf32>
    %133 = vector.extract_strided_slice %127 {offsets = [0, 16], sizes = [8, 8], strides = [1, 1]} : vector<8x32xf32> to vector<8x8xf32>
    %134 = math.tanh %133 : vector<8x8xf32>
    %135 = vector.extract_strided_slice %132 {offsets = [0, 0], sizes = [8, 8], strides = [1, 1]} : vector<8x32xf32> to vector<8x8xf32>
    %136 = vector.extract_strided_slice %132 {offsets = [0, 8], sizes = [8, 8], strides = [1, 1]} : vector<8x32xf32> to vector<8x8xf32>
    %137 = vector.extract_strided_slice %132 {offsets = [0, 24], sizes = [8, 8], strides = [1, 1]} : vector<8x32xf32> to vector<8x8xf32>
    %138 = arith.mulf %136, %115 : vector<8x8xf32>
    %139 = arith.mulf %135, %134 : vector<8x8xf32>
    %140 = arith.addf %138, %139 : vector<8x8xf32>
    %141 = math.tanh %140 : vector<8x8xf32>
    %142 = arith.mulf %137, %141 : vector<8x8xf32>
    %143 = arith.index_cast %121 : i32 to index
    %c0_48 = arith.constant 0 : index
    %144 = vector.load %arg24[%143, %c0_48] : memref<64x16xf32, #tpu.memory_space<vmem>>, vector<8x8xf32>
    tpu.vector_store %arg24[%143, %c0_48], %142 {strides = array<i32>} : memref<64x16xf32, #tpu.memory_space<vmem>>, vector<8x8xf32>,
    %c5_i32 = arith.constant 5 : i32
    %c8_i32_49 = arith.constant 8 : i32
    %145 = arith.muli %c5_i32, %c8_i32_49 : i32
    %146 = tpu.assume_multiple %145, 8 : i32
    %147 = arith.index_cast %146 : i32 to index
    %c0_50 = arith.constant 0 : index
    %148 = vector.load %arg25[%147, %c0_50] : memref<64x64xf32, #tpu.memory_space<vmem>>, vector<8x32xf32>
    %149 = arith.truncf %142 : vector<8x8xf32> to vector<8x8xbf16>
    %c0_51 = arith.constant 0 : index
    %c0_52 = arith.constant 0 : index
    %150 = vector.load %arg4[%c0_51, %c0_52] : memref<8x32xbf16, #tpu.memory_space<vmem>>, vector<8x32xbf16>
    %cst_53 = arith.constant dense<0.000000e+00> : vector<8x32xf32>
    %151 = tpu.matmul %149, %150, %cst_53 {dimension_numbers = #tpu.dot_dimension_numbers<[1], [0], [0], [1], [0, 0, 1, 1], [], []>} : vector<8x8xbf16>, vector<8x32xbf16>, vector<8x32xf32> -> vector<8x32xf32>
    %152 = arith.addf %148, %151 : vector<8x32xf32>
    %153 = arith.negf %152 : vector<8x32xf32>
    %154 = math.exp %153 : vector<8x32xf32>
    %cst_54 = arith.constant 1.000000e+00 : f32
    %155 = vector.broadcast %cst_54 : f32 to vector<8x32xf32>
    %156 = arith.addf %155, %154 : vector<8x32xf32>
    %157 = arith.divf %155, %156 : vector<8x32xf32>
    %158 = vector.extract_strided_slice %152 {offsets = [0, 16], sizes = [8, 8], strides = [1, 1]} : vector<8x32xf32> to vector<8x8xf32>
    %159 = math.tanh %158 : vector<8x8xf32>
    %160 = vector.extract_strided_slice %157 {offsets = [0, 0], sizes = [8, 8], strides = [1, 1]} : vector<8x32xf32> to vector<8x8xf32>
    %161 = vector.extract_strided_slice %157 {offsets = [0, 8], sizes = [8, 8], strides = [1, 1]} : vector<8x32xf32> to vector<8x8xf32>
    %162 = vector.extract_strided_slice %157 {offsets = [0, 24], sizes = [8, 8], strides = [1, 1]} : vector<8x32xf32> to vector<8x8xf32>
    %163 = arith.mulf %161, %140 : vector<8x8xf32>
    %164 = arith.mulf %160, %159 : vector<8x8xf32>
    %165 = arith.addf %163, %164 : vector<8x8xf32>
    %166 = math.tanh %165 : vector<8x8xf32>
    %167 = arith.mulf %162, %166 : vector<8x8xf32>
    %168 = arith.index_cast %146 : i32 to index
    %c0_55 = arith.constant 0 : index
    %169 = vector.load %arg24[%168, %c0_55] : memref<64x16xf32, #tpu.memory_space<vmem>>, vector<8x8xf32>
    tpu.vector_store %arg24[%168, %c0_55], %167 {strides = array<i32>} : memref<64x16xf32, #tpu.memory_space<vmem>>, vector<8x8xf32>,
    %c6_i32 = arith.constant 6 : i32
    %c8_i32_56 = arith.constant 8 : i32
    %170 = arith.muli %c6_i32, %c8_i32_56 : i32
    %171 = tpu.assume_multiple %170, 8 : i32
    %172 = arith.index_cast %171 : i32 to index
    %c0_57 = arith.constant 0 : index
    %173 = vector.load %arg25[%172, %c0_57] : memref<64x64xf32, #tpu.memory_space<vmem>>, vector<8x32xf32>
    %174 = arith.truncf %167 : vector<8x8xf32> to vector<8x8xbf16>
    %c0_58 = arith.constant 0 : index
    %c0_59 = arith.constant 0 : index
    %175 = vector.load %arg4[%c0_58, %c0_59] : memref<8x32xbf16, #tpu.memory_space<vmem>>, vector<8x32xbf16>
    %cst_60 = arith.constant dense<0.000000e+00> : vector<8x32xf32>
    %176 = tpu.matmul %174, %175, %cst_60 {dimension_numbers = #tpu.dot_dimension_numbers<[1], [0], [0], [1], [0, 0, 1, 1], [], []>} : vector<8x8xbf16>, vector<8x32xbf16>, vector<8x32xf32> -> vector<8x32xf32>
    %177 = arith.addf %173, %176 : vector<8x32xf32>
    %178 = arith.negf %177 : vector<8x32xf32>
    %179 = math.exp %178 : vector<8x32xf32>
    %cst_61 = arith.constant 1.000000e+00 : f32
    %180 = vector.broadcast %cst_61 : f32 to vector<8x32xf32>
    %181 = arith.addf %180, %179 : vector<8x32xf32>
    %182 = arith.divf %180, %181 : vector<8x32xf32>
    %183 = vector.extract_strided_slice %177 {offsets = [0, 16], sizes = [8, 8], strides = [1, 1]} : vector<8x32xf32> to vector<8x8xf32>
    %184 = math.tanh %183 : vector<8x8xf32>
    %185 = vector.extract_strided_slice %182 {offsets = [0, 0], sizes = [8, 8], strides = [1, 1]} : vector<8x32xf32> to vector<8x8xf32>
    %186 = vector.extract_strided_slice %182 {offsets = [0, 8], sizes = [8, 8], strides = [1, 1]} : vector<8x32xf32> to vector<8x8xf32>
    %187 = vector.extract_strided_slice %182 {offsets = [0, 24], sizes = [8, 8], strides = [1, 1]} : vector<8x32xf32> to vector<8x8xf32>
    %188 = arith.mulf %186, %165 : vector<8x8xf32>
    %189 = arith.mulf %185, %184 : vector<8x8xf32>
    %190 = arith.addf %188, %189 : vector<8x8xf32>
    %191 = math.tanh %190 : vector<8x8xf32>
    %192 = arith.mulf %187, %191 : vector<8x8xf32>
    %193 = arith.index_cast %171 : i32 to index
    %c0_62 = arith.constant 0 : index
    %194 = vector.load %arg24[%193, %c0_62] : memref<64x16xf32, #tpu.memory_space<vmem>>, vector<8x8xf32>
    tpu.vector_store %arg24[%193, %c0_62], %192 {strides = array<i32>} : memref<64x16xf32, #tpu.memory_space<vmem>>, vector<8x8xf32>,
    %c7_i32 = arith.constant 7 : i32
    %c8_i32_63 = arith.constant 8 : i32
    %195 = arith.muli %c7_i32, %c8_i32_63 : i32
    %196 = tpu.assume_multiple %195, 8 : i32
    %197 = arith.index_cast %196 : i32 to index
    %c0_64 = arith.constant 0 : index
    %198 = vector.load %arg25[%197, %c0_64] : memref<64x64xf32, #tpu.memory_space<vmem>>, vector<8x32xf32>
    %199 = arith.truncf %192 : vector<8x8xf32> to vector<8x8xbf16>
    %c0_65 = arith.constant 0 : index
    %c0_66 = arith.constant 0 : index
    %200 = vector.load %arg4[%c0_65, %c0_66] : memref<8x32xbf16, #tpu.memory_space<vmem>>, vector<8x32xbf16>
    %cst_67 = arith.constant dense<0.000000e+00> : vector<8x32xf32>
    %201 = tpu.matmul %199, %200, %cst_67 {dimension_numbers = #tpu.dot_dimension_numbers<[1], [0], [0], [1], [0, 0, 1, 1], [], []>} : vector<8x8xbf16>, vector<8x32xbf16>, vector<8x32xf32> -> vector<8x32xf32>
    %202 = arith.addf %198, %201 : vector<8x32xf32>
    %203 = arith.negf %202 : vector<8x32xf32>
    %204 = math.exp %203 : vector<8x32xf32>
    %cst_68 = arith.constant 1.000000e+00 : f32
    %205 = vector.broadcast %cst_68 : f32 to vector<8x32xf32>
    %206 = arith.addf %205, %204 : vector<8x32xf32>
    %207 = arith.divf %205, %206 : vector<8x32xf32>
    %208 = vector.extract_strided_slice %202 {offsets = [0, 16], sizes = [8, 8], strides = [1, 1]} : vector<8x32xf32> to vector<8x8xf32>
    %209 = math.tanh %208 : vector<8x8xf32>
    %210 = vector.extract_strided_slice %207 {offsets = [0, 0], sizes = [8, 8], strides = [1, 1]} : vector<8x32xf32> to vector<8x8xf32>
    %211 = vector.extract_strided_slice %207 {offsets = [0, 8], sizes = [8, 8], strides = [1, 1]} : vector<8x32xf32> to vector<8x8xf32>
    %212 = vector.extract_strided_slice %207 {offsets = [0, 24], sizes = [8, 8], strides = [1, 1]} : vector<8x32xf32> to vector<8x8xf32>
    %213 = arith.mulf %211, %190 : vector<8x8xf32>
    %214 = arith.mulf %210, %209 : vector<8x8xf32>
    %215 = arith.addf %213, %214 : vector<8x8xf32>
    %216 = math.tanh %215 : vector<8x8xf32>
    %217 = arith.mulf %212, %216 : vector<8x8xf32>
    %218 = arith.index_cast %196 : i32 to index
    %c0_69 = arith.constant 0 : index
    %219 = vector.load %arg24[%218, %c0_69] : memref<64x16xf32, #tpu.memory_space<vmem>>, vector<8x8xf32>
    tpu.vector_store %arg24[%218, %c0_69], %217 {strides = array<i32>} : memref<64x16xf32, #tpu.memory_space<vmem>>, vector<8x8xf32>,
    %c8_i32_70 = arith.constant 8 : i32
    %c0_71 = arith.constant 0 : index
    %c0_72 = arith.constant 0 : index
    %220 = vector.load %arg24[%c0_71, %c0_72] : memref<64x16xf32, #tpu.memory_space<vmem>>, vector<64x8xf32>
    %221 = arith.truncf %220 : vector<64x8xf32> to vector<64x8xbf16>
    %c0_73 = arith.constant 0 : index
    %c0_74 = arith.constant 0 : index
    %222 = vector.load %arg6[%c0_73, %c0_74] : memref<8x32xbf16, #tpu.memory_space<vmem>>, vector<8x32xbf16>
    %cst_75 = arith.constant dense<0.000000e+00> : vector<64x32xf32>
    %223 = tpu.matmul %221, %222, %cst_75 {dimension_numbers = #tpu.dot_dimension_numbers<[1], [0], [0], [1], [0, 0, 1, 1], [], []>} : vector<64x8xbf16>, vector<8x32xbf16>, vector<64x32xf32> -> vector<64x32xf32>
    %c0_76 = arith.constant 0 : index
    %c0_77 = arith.constant 0 : index
    %224 = vector.load %arg8[%c0_76, %c0_77] : memref<1x32xf32, #tpu.memory_space<vmem>>, vector<1x32xf32>
    %225 = vector.broadcast %224 : vector<1x32xf32> to vector<64x32xf32>
    %226 = arith.addf %223, %225 : vector<64x32xf32>
    %c0_78 = arith.constant 0 : index
    %c0_79 = arith.constant 0 : index
    %227 = vector.load %arg25[%c0_78, %c0_79] : memref<64x64xf32, #tpu.memory_space<vmem>>, vector<64x32xf32>
    tpu.vector_store %arg25[%c0_78, %c0_79], %226 {strides = array<i32>} : memref<64x64xf32, #tpu.memory_space<vmem>>, vector<64x32xf32>,
    %cst_80 = arith.constant 0.000000e+00 : f32
    %228 = vector.broadcast %cst_80 : f32 to vector<8x8xf32>
    %cst_81 = arith.constant 0.000000e+00 : f32
    %229 = vector.broadcast %cst_81 : f32 to vector<8x8xf32>
    %c0_i32_82 = arith.constant 0 : i32
    %c8_i32_83 = arith.constant 8 : i32
    %230 = arith.muli %c0_i32_82, %c8_i32_83 : i32
    %231 = tpu.assume_multiple %230, 8 : i32
    %232 = arith.index_cast %231 : i32 to index
    %c0_84 = arith.constant 0 : index
    %233 = vector.load %arg25[%232, %c0_84] : memref<64x64xf32, #tpu.memory_space<vmem>>, vector<8x32xf32>
    %234 = arith.truncf %228 : vector<8x8xf32> to vector<8x8xbf16>
    %c0_85 = arith.constant 0 : index
    %c0_86 = arith.constant 0 : index
    %235 = vector.load %arg7[%c0_85, %c0_86] : memref<8x32xbf16, #tpu.memory_space<vmem>>, vector<8x32xbf16>
    %cst_87 = arith.constant dense<0.000000e+00> : vector<8x32xf32>
    %236 = tpu.matmul %234, %235, %cst_87 {dimension_numbers = #tpu.dot_dimension_numbers<[1], [0], [0], [1], [0, 0, 1, 1], [], []>} : vector<8x8xbf16>, vector<8x32xbf16>, vector<8x32xf32> -> vector<8x32xf32>
    %237 = arith.addf %233, %236 : vector<8x32xf32>
    %238 = arith.negf %237 : vector<8x32xf32>
    %239 = math.exp %238 : vector<8x32xf32>
    %cst_88 = arith.constant 1.000000e+00 : f32
    %240 = vector.broadcast %cst_88 : f32 to vector<8x32xf32>
    %241 = arith.addf %240, %239 : vector<8x32xf32>
    %242 = arith.divf %240, %241 : vector<8x32xf32>
    %243 = vector.extract_strided_slice %237 {offsets = [0, 16], sizes = [8, 8], strides = [1, 1]} : vector<8x32xf32> to vector<8x8xf32>
    %244 = math.tanh %243 : vector<8x8xf32>
    %245 = vector.extract_strided_slice %242 {offsets = [0, 0], sizes = [8, 8], strides = [1, 1]} : vector<8x32xf32> to vector<8x8xf32>
    %246 = vector.extract_strided_slice %242 {offsets = [0, 8], sizes = [8, 8], strides = [1, 1]} : vector<8x32xf32> to vector<8x8xf32>
    %247 = vector.extract_strided_slice %242 {offsets = [0, 24], sizes = [8, 8], strides = [1, 1]} : vector<8x32xf32> to vector<8x8xf32>
    %248 = arith.mulf %246, %229 : vector<8x8xf32>
    %249 = arith.mulf %245, %244 : vector<8x8xf32>
    %250 = arith.addf %248, %249 : vector<8x8xf32>
    %251 = math.tanh %250 : vector<8x8xf32>
    %252 = arith.mulf %247, %251 : vector<8x8xf32>
    %253 = arith.index_cast %231 : i32 to index
    %c0_89 = arith.constant 0 : index
    %254 = vector.load %arg24[%253, %c0_89] : memref<64x16xf32, #tpu.memory_space<vmem>>, vector<8x8xf32>
    tpu.vector_store %arg24[%253, %c0_89], %252 {strides = array<i32>} : memref<64x16xf32, #tpu.memory_space<vmem>>, vector<8x8xf32>,
    %c1_i32_90 = arith.constant 1 : i32
    %c8_i32_91 = arith.constant 8 : i32
    %255 = arith.muli %c1_i32_90, %c8_i32_91 : i32
    %256 = tpu.assume_multiple %255, 8 : i32
    %257 = arith.index_cast %256 : i32 to index
    %c0_92 = arith.constant 0 : index
    %258 = vector.load %arg25[%257, %c0_92] : memref<64x64xf32, #tpu.memory_space<vmem>>, vector<8x32xf32>
    %259 = arith.truncf %252 : vector<8x8xf32> to vector<8x8xbf16>
    %c0_93 = arith.constant 0 : index
    %c0_94 = arith.constant 0 : index
    %260 = vector.load %arg7[%c0_93, %c0_94] : memref<8x32xbf16, #tpu.memory_space<vmem>>, vector<8x32xbf16>
    %cst_95 = arith.constant dense<0.000000e+00> : vector<8x32xf32>
    %261 = tpu.matmul %259, %260, %cst_95 {dimension_numbers = #tpu.dot_dimension_numbers<[1], [0], [0], [1], [0, 0, 1, 1], [], []>} : vector<8x8xbf16>, vector<8x32xbf16>, vector<8x32xf32> -> vector<8x32xf32>
    %262 = arith.addf %258, %261 : vector<8x32xf32>
    %263 = arith.negf %262 : vector<8x32xf32>
    %264 = math.exp %263 : vector<8x32xf32>
    %cst_96 = arith.constant 1.000000e+00 : f32
    %265 = vector.broadcast %cst_96 : f32 to vector<8x32xf32>
    %266 = arith.addf %265, %264 : vector<8x32xf32>
    %267 = arith.divf %265, %266 : vector<8x32xf32>
    %268 = vector.extract_strided_slice %262 {offsets = [0, 16], sizes = [8, 8], strides = [1, 1]} : vector<8x32xf32> to vector<8x8xf32>
    %269 = math.tanh %268 : vector<8x8xf32>
    %270 = vector.extract_strided_slice %267 {offsets = [0, 0], sizes = [8, 8], strides = [1, 1]} : vector<8x32xf32> to vector<8x8xf32>
    %271 = vector.extract_strided_slice %267 {offsets = [0, 8], sizes = [8, 8], strides = [1, 1]} : vector<8x32xf32> to vector<8x8xf32>
    %272 = vector.extract_strided_slice %267 {offsets = [0, 24], sizes = [8, 8], strides = [1, 1]} : vector<8x32xf32> to vector<8x8xf32>
    %273 = arith.mulf %271, %250 : vector<8x8xf32>
    %274 = arith.mulf %270, %269 : vector<8x8xf32>
    %275 = arith.addf %273, %274 : vector<8x8xf32>
    %276 = math.tanh %275 : vector<8x8xf32>
    %277 = arith.mulf %272, %276 : vector<8x8xf32>
    %278 = arith.index_cast %256 : i32 to index
    %c0_97 = arith.constant 0 : index
    %279 = vector.load %arg24[%278, %c0_97] : memref<64x16xf32, #tpu.memory_space<vmem>>, vector<8x8xf32>
    tpu.vector_store %arg24[%278, %c0_97], %277 {strides = array<i32>} : memref<64x16xf32, #tpu.memory_space<vmem>>, vector<8x8xf32>,
    %c2_i32_98 = arith.constant 2 : i32
    %c8_i32_99 = arith.constant 8 : i32
    %280 = arith.muli %c2_i32_98, %c8_i32_99 : i32
    %281 = tpu.assume_multiple %280, 8 : i32
    %282 = arith.index_cast %281 : i32 to index
    %c0_100 = arith.constant 0 : index
    %283 = vector.load %arg25[%282, %c0_100] : memref<64x64xf32, #tpu.memory_space<vmem>>, vector<8x32xf32>
    %284 = arith.truncf %277 : vector<8x8xf32> to vector<8x8xbf16>
    %c0_101 = arith.constant 0 : index
    %c0_102 = arith.constant 0 : index
    %285 = vector.load %arg7[%c0_101, %c0_102] : memref<8x32xbf16, #tpu.memory_space<vmem>>, vector<8x32xbf16>
    %cst_103 = arith.constant dense<0.000000e+00> : vector<8x32xf32>
    %286 = tpu.matmul %284, %285, %cst_103 {dimension_numbers = #tpu.dot_dimension_numbers<[1], [0], [0], [1], [0, 0, 1, 1], [], []>} : vector<8x8xbf16>, vector<8x32xbf16>, vector<8x32xf32> -> vector<8x32xf32>
    %287 = arith.addf %283, %286 : vector<8x32xf32>
    %288 = arith.negf %287 : vector<8x32xf32>
    %289 = math.exp %288 : vector<8x32xf32>
    %cst_104 = arith.constant 1.000000e+00 : f32
    %290 = vector.broadcast %cst_104 : f32 to vector<8x32xf32>
    %291 = arith.addf %290, %289 : vector<8x32xf32>
    %292 = arith.divf %290, %291 : vector<8x32xf32>
    %293 = vector.extract_strided_slice %287 {offsets = [0, 16], sizes = [8, 8], strides = [1, 1]} : vector<8x32xf32> to vector<8x8xf32>
    %294 = math.tanh %293 : vector<8x8xf32>
    %295 = vector.extract_strided_slice %292 {offsets = [0, 0], sizes = [8, 8], strides = [1, 1]} : vector<8x32xf32> to vector<8x8xf32>
    %296 = vector.extract_strided_slice %292 {offsets = [0, 8], sizes = [8, 8], strides = [1, 1]} : vector<8x32xf32> to vector<8x8xf32>
    %297 = vector.extract_strided_slice %292 {offsets = [0, 24], sizes = [8, 8], strides = [1, 1]} : vector<8x32xf32> to vector<8x8xf32>
    %298 = arith.mulf %296, %275 : vector<8x8xf32>
    %299 = arith.mulf %295, %294 : vector<8x8xf32>
    %300 = arith.addf %298, %299 : vector<8x8xf32>
    %301 = math.tanh %300 : vector<8x8xf32>
    %302 = arith.mulf %297, %301 : vector<8x8xf32>
    %303 = arith.index_cast %281 : i32 to index
    %c0_105 = arith.constant 0 : index
    %304 = vector.load %arg24[%303, %c0_105] : memref<64x16xf32, #tpu.memory_space<vmem>>, vector<8x8xf32>
    tpu.vector_store %arg24[%303, %c0_105], %302 {strides = array<i32>} : memref<64x16xf32, #tpu.memory_space<vmem>>, vector<8x8xf32>,
    %c3_i32_106 = arith.constant 3 : i32
    %c8_i32_107 = arith.constant 8 : i32
    %305 = arith.muli %c3_i32_106, %c8_i32_107 : i32
    %306 = tpu.assume_multiple %305, 8 : i32
    %307 = arith.index_cast %306 : i32 to index
    %c0_108 = arith.constant 0 : index
    %308 = vector.load %arg25[%307, %c0_108] : memref<64x64xf32, #tpu.memory_space<vmem>>, vector<8x32xf32>
    %309 = arith.truncf %302 : vector<8x8xf32> to vector<8x8xbf16>
    %c0_109 = arith.constant 0 : index
    %c0_110 = arith.constant 0 : index
    %310 = vector.load %arg7[%c0_109, %c0_110] : memref<8x32xbf16, #tpu.memory_space<vmem>>, vector<8x32xbf16>
    %cst_111 = arith.constant dense<0.000000e+00> : vector<8x32xf32>
    %311 = tpu.matmul %309, %310, %cst_111 {dimension_numbers = #tpu.dot_dimension_numbers<[1], [0], [0], [1], [0, 0, 1, 1], [], []>} : vector<8x8xbf16>, vector<8x32xbf16>, vector<8x32xf32> -> vector<8x32xf32>
    %312 = arith.addf %308, %311 : vector<8x32xf32>
    %313 = arith.negf %312 : vector<8x32xf32>
    %314 = math.exp %313 : vector<8x32xf32>
    %cst_112 = arith.constant 1.000000e+00 : f32
    %315 = vector.broadcast %cst_112 : f32 to vector<8x32xf32>
    %316 = arith.addf %315, %314 : vector<8x32xf32>
    %317 = arith.divf %315, %316 : vector<8x32xf32>
    %318 = vector.extract_strided_slice %312 {offsets = [0, 16], sizes = [8, 8], strides = [1, 1]} : vector<8x32xf32> to vector<8x8xf32>
    %319 = math.tanh %318 : vector<8x8xf32>
    %320 = vector.extract_strided_slice %317 {offsets = [0, 0], sizes = [8, 8], strides = [1, 1]} : vector<8x32xf32> to vector<8x8xf32>
    %321 = vector.extract_strided_slice %317 {offsets = [0, 8], sizes = [8, 8], strides = [1, 1]} : vector<8x32xf32> to vector<8x8xf32>
    %322 = vector.extract_strided_slice %317 {offsets = [0, 24], sizes = [8, 8], strides = [1, 1]} : vector<8x32xf32> to vector<8x8xf32>
    %323 = arith.mulf %321, %300 : vector<8x8xf32>
    %324 = arith.mulf %320, %319 : vector<8x8xf32>
    %325 = arith.addf %323, %324 : vector<8x8xf32>
    %326 = math.tanh %325 : vector<8x8xf32>
    %327 = arith.mulf %322, %326 : vector<8x8xf32>
    %328 = arith.index_cast %306 : i32 to index
    %c0_113 = arith.constant 0 : index
    %329 = vector.load %arg24[%328, %c0_113] : memref<64x16xf32, #tpu.memory_space<vmem>>, vector<8x8xf32>
    tpu.vector_store %arg24[%328, %c0_113], %327 {strides = array<i32>} : memref<64x16xf32, #tpu.memory_space<vmem>>, vector<8x8xf32>,
    %c4_i32_114 = arith.constant 4 : i32
    %c8_i32_115 = arith.constant 8 : i32
    %330 = arith.muli %c4_i32_114, %c8_i32_115 : i32
    %331 = tpu.assume_multiple %330, 8 : i32
    %332 = arith.index_cast %331 : i32 to index
    %c0_116 = arith.constant 0 : index
    %333 = vector.load %arg25[%332, %c0_116] : memref<64x64xf32, #tpu.memory_space<vmem>>, vector<8x32xf32>
    %334 = arith.truncf %327 : vector<8x8xf32> to vector<8x8xbf16>
    %c0_117 = arith.constant 0 : index
    %c0_118 = arith.constant 0 : index
    %335 = vector.load %arg7[%c0_117, %c0_118] : memref<8x32xbf16, #tpu.memory_space<vmem>>, vector<8x32xbf16>
    %cst_119 = arith.constant dense<0.000000e+00> : vector<8x32xf32>
    %336 = tpu.matmul %334, %335, %cst_119 {dimension_numbers = #tpu.dot_dimension_numbers<[1], [0], [0], [1], [0, 0, 1, 1], [], []>} : vector<8x8xbf16>, vector<8x32xbf16>, vector<8x32xf32> -> vector<8x32xf32>
    %337 = arith.addf %333, %336 : vector<8x32xf32>
    %338 = arith.negf %337 : vector<8x32xf32>
    %339 = math.exp %338 : vector<8x32xf32>
    %cst_120 = arith.constant 1.000000e+00 : f32
    %340 = vector.broadcast %cst_120 : f32 to vector<8x32xf32>
    %341 = arith.addf %340, %339 : vector<8x32xf32>
    %342 = arith.divf %340, %341 : vector<8x32xf32>
    %343 = vector.extract_strided_slice %337 {offsets = [0, 16], sizes = [8, 8], strides = [1, 1]} : vector<8x32xf32> to vector<8x8xf32>
    %344 = math.tanh %343 : vector<8x8xf32>
    %345 = vector.extract_strided_slice %342 {offsets = [0, 0], sizes = [8, 8], strides = [1, 1]} : vector<8x32xf32> to vector<8x8xf32>
    %346 = vector.extract_strided_slice %342 {offsets = [0, 8], sizes = [8, 8], strides = [1, 1]} : vector<8x32xf32> to vector<8x8xf32>
    %347 = vector.extract_strided_slice %342 {offsets = [0, 24], sizes = [8, 8], strides = [1, 1]} : vector<8x32xf32> to vector<8x8xf32>
    %348 = arith.mulf %346, %325 : vector<8x8xf32>
    %349 = arith.mulf %345, %344 : vector<8x8xf32>
    %350 = arith.addf %348, %349 : vector<8x8xf32>
    %351 = math.tanh %350 : vector<8x8xf32>
    %352 = arith.mulf %347, %351 : vector<8x8xf32>
    %353 = arith.index_cast %331 : i32 to index
    %c0_121 = arith.constant 0 : index
    %354 = vector.load %arg24[%353, %c0_121] : memref<64x16xf32, #tpu.memory_space<vmem>>, vector<8x8xf32>
    tpu.vector_store %arg24[%353, %c0_121], %352 {strides = array<i32>} : memref<64x16xf32, #tpu.memory_space<vmem>>, vector<8x8xf32>,
    %c5_i32_122 = arith.constant 5 : i32
    %c8_i32_123 = arith.constant 8 : i32
    %355 = arith.muli %c5_i32_122, %c8_i32_123 : i32
    %356 = tpu.assume_multiple %355, 8 : i32
    %357 = arith.index_cast %356 : i32 to index
    %c0_124 = arith.constant 0 : index
    %358 = vector.load %arg25[%357, %c0_124] : memref<64x64xf32, #tpu.memory_space<vmem>>, vector<8x32xf32>
    %359 = arith.truncf %352 : vector<8x8xf32> to vector<8x8xbf16>
    %c0_125 = arith.constant 0 : index
    %c0_126 = arith.constant 0 : index
    %360 = vector.load %arg7[%c0_125, %c0_126] : memref<8x32xbf16, #tpu.memory_space<vmem>>, vector<8x32xbf16>
    %cst_127 = arith.constant dense<0.000000e+00> : vector<8x32xf32>
    %361 = tpu.matmul %359, %360, %cst_127 {dimension_numbers = #tpu.dot_dimension_numbers<[1], [0], [0], [1], [0, 0, 1, 1], [], []>} : vector<8x8xbf16>, vector<8x32xbf16>, vector<8x32xf32> -> vector<8x32xf32>
    %362 = arith.addf %358, %361 : vector<8x32xf32>
    %363 = arith.negf %362 : vector<8x32xf32>
    %364 = math.exp %363 : vector<8x32xf32>
    %cst_128 = arith.constant 1.000000e+00 : f32
    %365 = vector.broadcast %cst_128 : f32 to vector<8x32xf32>
    %366 = arith.addf %365, %364 : vector<8x32xf32>
    %367 = arith.divf %365, %366 : vector<8x32xf32>
    %368 = vector.extract_strided_slice %362 {offsets = [0, 16], sizes = [8, 8], strides = [1, 1]} : vector<8x32xf32> to vector<8x8xf32>
    %369 = math.tanh %368 : vector<8x8xf32>
    %370 = vector.extract_strided_slice %367 {offsets = [0, 0], sizes = [8, 8], strides = [1, 1]} : vector<8x32xf32> to vector<8x8xf32>
    %371 = vector.extract_strided_slice %367 {offsets = [0, 8], sizes = [8, 8], strides = [1, 1]} : vector<8x32xf32> to vector<8x8xf32>
    %372 = vector.extract_strided_slice %367 {offsets = [0, 24], sizes = [8, 8], strides = [1, 1]} : vector<8x32xf32> to vector<8x8xf32>
    %373 = arith.mulf %371, %350 : vector<8x8xf32>
    %374 = arith.mulf %370, %369 : vector<8x8xf32>
    %375 = arith.addf %373, %374 : vector<8x8xf32>
    %376 = math.tanh %375 : vector<8x8xf32>
    %377 = arith.mulf %372, %376 : vector<8x8xf32>
    %378 = arith.index_cast %356 : i32 to index
    %c0_129 = arith.constant 0 : index
    %379 = vector.load %arg24[%378, %c0_129] : memref<64x16xf32, #tpu.memory_space<vmem>>, vector<8x8xf32>
    tpu.vector_store %arg24[%378, %c0_129], %377 {strides = array<i32>} : memref<64x16xf32, #tpu.memory_space<vmem>>, vector<8x8xf32>,
    %c6_i32_130 = arith.constant 6 : i32
    %c8_i32_131 = arith.constant 8 : i32
    %380 = arith.muli %c6_i32_130, %c8_i32_131 : i32
    %381 = tpu.assume_multiple %380, 8 : i32
    %382 = arith.index_cast %381 : i32 to index
    %c0_132 = arith.constant 0 : index
    %383 = vector.load %arg25[%382, %c0_132] : memref<64x64xf32, #tpu.memory_space<vmem>>, vector<8x32xf32>
    %384 = arith.truncf %377 : vector<8x8xf32> to vector<8x8xbf16>
    %c0_133 = arith.constant 0 : index
    %c0_134 = arith.constant 0 : index
    %385 = vector.load %arg7[%c0_133, %c0_134] : memref<8x32xbf16, #tpu.memory_space<vmem>>, vector<8x32xbf16>
    %cst_135 = arith.constant dense<0.000000e+00> : vector<8x32xf32>
    %386 = tpu.matmul %384, %385, %cst_135 {dimension_numbers = #tpu.dot_dimension_numbers<[1], [0], [0], [1], [0, 0, 1, 1], [], []>} : vector<8x8xbf16>, vector<8x32xbf16>, vector<8x32xf32> -> vector<8x32xf32>
    %387 = arith.addf %383, %386 : vector<8x32xf32>
    %388 = arith.negf %387 : vector<8x32xf32>
    %389 = math.exp %388 : vector<8x32xf32>
    %cst_136 = arith.constant 1.000000e+00 : f32
    %390 = vector.broadcast %cst_136 : f32 to vector<8x32xf32>
    %391 = arith.addf %390, %389 : vector<8x32xf32>
    %392 = arith.divf %390, %391 : vector<8x32xf32>
    %393 = vector.extract_strided_slice %387 {offsets = [0, 16], sizes = [8, 8], strides = [1, 1]} : vector<8x32xf32> to vector<8x8xf32>
    %394 = math.tanh %393 : vector<8x8xf32>
    %395 = vector.extract_strided_slice %392 {offsets = [0, 0], sizes = [8, 8], strides = [1, 1]} : vector<8x32xf32> to vector<8x8xf32>
    %396 = vector.extract_strided_slice %392 {offsets = [0, 8], sizes = [8, 8], strides = [1, 1]} : vector<8x32xf32> to vector<8x8xf32>
    %397 = vector.extract_strided_slice %392 {offsets = [0, 24], sizes = [8, 8], strides = [1, 1]} : vector<8x32xf32> to vector<8x8xf32>
    %398 = arith.mulf %396, %375 : vector<8x8xf32>
    %399 = arith.mulf %395, %394 : vector<8x8xf32>
    %400 = arith.addf %398, %399 : vector<8x8xf32>
    %401 = math.tanh %400 : vector<8x8xf32>
    %402 = arith.mulf %397, %401 : vector<8x8xf32>
    %403 = arith.index_cast %381 : i32 to index
    %c0_137 = arith.constant 0 : index
    %404 = vector.load %arg24[%403, %c0_137] : memref<64x16xf32, #tpu.memory_space<vmem>>, vector<8x8xf32>
    tpu.vector_store %arg24[%403, %c0_137], %402 {strides = array<i32>} : memref<64x16xf32, #tpu.memory_space<vmem>>, vector<8x8xf32>,
    %c7_i32_138 = arith.constant 7 : i32
    %c8_i32_139 = arith.constant 8 : i32
    %405 = arith.muli %c7_i32_138, %c8_i32_139 : i32
    %406 = tpu.assume_multiple %405, 8 : i32
    %407 = arith.index_cast %406 : i32 to index
    %c0_140 = arith.constant 0 : index
    %408 = vector.load %arg25[%407, %c0_140] : memref<64x64xf32, #tpu.memory_space<vmem>>, vector<8x32xf32>
    %409 = arith.truncf %402 : vector<8x8xf32> to vector<8x8xbf16>
    %c0_141 = arith.constant 0 : index
    %c0_142 = arith.constant 0 : index
    %410 = vector.load %arg7[%c0_141, %c0_142] : memref<8x32xbf16, #tpu.memory_space<vmem>>, vector<8x32xbf16>
    %cst_143 = arith.constant dense<0.000000e+00> : vector<8x32xf32>
    %411 = tpu.matmul %409, %410, %cst_143 {dimension_numbers = #tpu.dot_dimension_numbers<[1], [0], [0], [1], [0, 0, 1, 1], [], []>} : vector<8x8xbf16>, vector<8x32xbf16>, vector<8x32xf32> -> vector<8x32xf32>
    %412 = arith.addf %408, %411 : vector<8x32xf32>
    %413 = arith.negf %412 : vector<8x32xf32>
    %414 = math.exp %413 : vector<8x32xf32>
    %cst_144 = arith.constant 1.000000e+00 : f32
    %415 = vector.broadcast %cst_144 : f32 to vector<8x32xf32>
    %416 = arith.addf %415, %414 : vector<8x32xf32>
    %417 = arith.divf %415, %416 : vector<8x32xf32>
    %418 = vector.extract_strided_slice %412 {offsets = [0, 16], sizes = [8, 8], strides = [1, 1]} : vector<8x32xf32> to vector<8x8xf32>
    %419 = math.tanh %418 : vector<8x8xf32>
    %420 = vector.extract_strided_slice %417 {offsets = [0, 0], sizes = [8, 8], strides = [1, 1]} : vector<8x32xf32> to vector<8x8xf32>
    %421 = vector.extract_strided_slice %417 {offsets = [0, 8], sizes = [8, 8], strides = [1, 1]} : vector<8x32xf32> to vector<8x8xf32>
    %422 = vector.extract_strided_slice %417 {offsets = [0, 24], sizes = [8, 8], strides = [1, 1]} : vector<8x32xf32> to vector<8x8xf32>
    %423 = arith.mulf %421, %400 : vector<8x8xf32>
    %424 = arith.mulf %420, %419 : vector<8x8xf32>
    %425 = arith.addf %423, %424 : vector<8x8xf32>
    %426 = math.tanh %425 : vector<8x8xf32>
    %427 = arith.mulf %422, %426 : vector<8x8xf32>
    %428 = arith.index_cast %406 : i32 to index
    %c0_145 = arith.constant 0 : index
    %429 = vector.load %arg24[%428, %c0_145] : memref<64x16xf32, #tpu.memory_space<vmem>>, vector<8x8xf32>
    tpu.vector_store %arg24[%428, %c0_145], %427 {strides = array<i32>} : memref<64x16xf32, #tpu.memory_space<vmem>>, vector<8x8xf32>,
    %c8_i32_146 = arith.constant 8 : i32
    %c0_147 = arith.constant 0 : index
    %c0_148 = arith.constant 0 : index
    %430 = vector.load %arg24[%c0_147, %c0_148] : memref<64x16xf32, #tpu.memory_space<vmem>>, vector<64x8xf32>
    %431 = arith.truncf %430 : vector<64x8xf32> to vector<64x8xbf16>
    %c0_149 = arith.constant 0 : index
    %c0_150 = arith.constant 0 : index
    %432 = vector.load %arg9[%c0_149, %c0_150] : memref<8x32xbf16, #tpu.memory_space<vmem>>, vector<8x32xbf16>
    %cst_151 = arith.constant dense<0.000000e+00> : vector<64x32xf32>
    %433 = tpu.matmul %431, %432, %cst_151 {dimension_numbers = #tpu.dot_dimension_numbers<[1], [0], [0], [1], [0, 0, 1, 1], [], []>} : vector<64x8xbf16>, vector<8x32xbf16>, vector<64x32xf32> -> vector<64x32xf32>
    %c0_152 = arith.constant 0 : index
    %c0_153 = arith.constant 0 : index
    %434 = vector.load %arg11[%c0_152, %c0_153] : memref<1x32xf32, #tpu.memory_space<vmem>>, vector<1x32xf32>
    %435 = vector.broadcast %434 : vector<1x32xf32> to vector<64x32xf32>
    %436 = arith.addf %433, %435 : vector<64x32xf32>
    %c0_154 = arith.constant 0 : index
    %c0_155 = arith.constant 0 : index
    %437 = vector.load %arg25[%c0_154, %c0_155] : memref<64x64xf32, #tpu.memory_space<vmem>>, vector<64x32xf32>
    tpu.vector_store %arg25[%c0_154, %c0_155], %436 {strides = array<i32>} : memref<64x64xf32, #tpu.memory_space<vmem>>, vector<64x32xf32>,
    %cst_156 = arith.constant 0.000000e+00 : f32
    %438 = vector.broadcast %cst_156 : f32 to vector<8x8xf32>
    %cst_157 = arith.constant 0.000000e+00 : f32
    %439 = vector.broadcast %cst_157 : f32 to vector<8x8xf32>
    %c0_i32_158 = arith.constant 0 : i32
    %c8_i32_159 = arith.constant 8 : i32
    %440 = arith.muli %c0_i32_158, %c8_i32_159 : i32
    %441 = tpu.assume_multiple %440, 8 : i32
    %442 = arith.index_cast %441 : i32 to index
    %c0_160 = arith.constant 0 : index
    %443 = vector.load %arg25[%442, %c0_160] : memref<64x64xf32, #tpu.memory_space<vmem>>, vector<8x32xf32>
    %444 = arith.truncf %438 : vector<8x8xf32> to vector<8x8xbf16>
    %c0_161 = arith.constant 0 : index
    %c0_162 = arith.constant 0 : index
    %445 = vector.load %arg10[%c0_161, %c0_162] : memref<8x32xbf16, #tpu.memory_space<vmem>>, vector<8x32xbf16>
    %cst_163 = arith.constant dense<0.000000e+00> : vector<8x32xf32>
    %446 = tpu.matmul %444, %445, %cst_163 {dimension_numbers = #tpu.dot_dimension_numbers<[1], [0], [0], [1], [0, 0, 1, 1], [], []>} : vector<8x8xbf16>, vector<8x32xbf16>, vector<8x32xf32> -> vector<8x32xf32>
    %447 = arith.addf %443, %446 : vector<8x32xf32>
    %448 = arith.negf %447 : vector<8x32xf32>
    %449 = math.exp %448 : vector<8x32xf32>
    %cst_164 = arith.constant 1.000000e+00 : f32
    %450 = vector.broadcast %cst_164 : f32 to vector<8x32xf32>
    %451 = arith.addf %450, %449 : vector<8x32xf32>
    %452 = arith.divf %450, %451 : vector<8x32xf32>
    %453 = vector.extract_strided_slice %447 {offsets = [0, 16], sizes = [8, 8], strides = [1, 1]} : vector<8x32xf32> to vector<8x8xf32>
    %454 = math.tanh %453 : vector<8x8xf32>
    %455 = vector.extract_strided_slice %452 {offsets = [0, 0], sizes = [8, 8], strides = [1, 1]} : vector<8x32xf32> to vector<8x8xf32>
    %456 = vector.extract_strided_slice %452 {offsets = [0, 8], sizes = [8, 8], strides = [1, 1]} : vector<8x32xf32> to vector<8x8xf32>
    %457 = vector.extract_strided_slice %452 {offsets = [0, 24], sizes = [8, 8], strides = [1, 1]} : vector<8x32xf32> to vector<8x8xf32>
    %458 = arith.mulf %456, %439 : vector<8x8xf32>
    %459 = arith.mulf %455, %454 : vector<8x8xf32>
    %460 = arith.addf %458, %459 : vector<8x8xf32>
    %461 = math.tanh %460 : vector<8x8xf32>
    %462 = arith.mulf %457, %461 : vector<8x8xf32>
    %463 = arith.index_cast %441 : i32 to index
    %c0_165 = arith.constant 0 : index
    %464 = vector.load %arg24[%463, %c0_165] : memref<64x16xf32, #tpu.memory_space<vmem>>, vector<8x8xf32>
    tpu.vector_store %arg24[%463, %c0_165], %462 {strides = array<i32>} : memref<64x16xf32, #tpu.memory_space<vmem>>, vector<8x8xf32>,
    %c1_i32_166 = arith.constant 1 : i32
    %c8_i32_167 = arith.constant 8 : i32
    %465 = arith.muli %c1_i32_166, %c8_i32_167 : i32
    %466 = tpu.assume_multiple %465, 8 : i32
    %467 = arith.index_cast %466 : i32 to index
    %c0_168 = arith.constant 0 : index
    %468 = vector.load %arg25[%467, %c0_168] : memref<64x64xf32, #tpu.memory_space<vmem>>, vector<8x32xf32>
    %469 = arith.truncf %462 : vector<8x8xf32> to vector<8x8xbf16>
    %c0_169 = arith.constant 0 : index
    %c0_170 = arith.constant 0 : index
    %470 = vector.load %arg10[%c0_169, %c0_170] : memref<8x32xbf16, #tpu.memory_space<vmem>>, vector<8x32xbf16>
    %cst_171 = arith.constant dense<0.000000e+00> : vector<8x32xf32>
    %471 = tpu.matmul %469, %470, %cst_171 {dimension_numbers = #tpu.dot_dimension_numbers<[1], [0], [0], [1], [0, 0, 1, 1], [], []>} : vector<8x8xbf16>, vector<8x32xbf16>, vector<8x32xf32> -> vector<8x32xf32>
    %472 = arith.addf %468, %471 : vector<8x32xf32>
    %473 = arith.negf %472 : vector<8x32xf32>
    %474 = math.exp %473 : vector<8x32xf32>
    %cst_172 = arith.constant 1.000000e+00 : f32
    %475 = vector.broadcast %cst_172 : f32 to vector<8x32xf32>
    %476 = arith.addf %475, %474 : vector<8x32xf32>
    %477 = arith.divf %475, %476 : vector<8x32xf32>
    %478 = vector.extract_strided_slice %472 {offsets = [0, 16], sizes = [8, 8], strides = [1, 1]} : vector<8x32xf32> to vector<8x8xf32>
    %479 = math.tanh %478 : vector<8x8xf32>
    %480 = vector.extract_strided_slice %477 {offsets = [0, 0], sizes = [8, 8], strides = [1, 1]} : vector<8x32xf32> to vector<8x8xf32>
    %481 = vector.extract_strided_slice %477 {offsets = [0, 8], sizes = [8, 8], strides = [1, 1]} : vector<8x32xf32> to vector<8x8xf32>
    %482 = vector.extract_strided_slice %477 {offsets = [0, 24], sizes = [8, 8], strides = [1, 1]} : vector<8x32xf32> to vector<8x8xf32>
    %483 = arith.mulf %481, %460 : vector<8x8xf32>
    %484 = arith.mulf %480, %479 : vector<8x8xf32>
    %485 = arith.addf %483, %484 : vector<8x8xf32>
    %486 = math.tanh %485 : vector<8x8xf32>
    %487 = arith.mulf %482, %486 : vector<8x8xf32>
    %488 = arith.index_cast %466 : i32 to index
    %c0_173 = arith.constant 0 : index
    %489 = vector.load %arg24[%488, %c0_173] : memref<64x16xf32, #tpu.memory_space<vmem>>, vector<8x8xf32>
    tpu.vector_store %arg24[%488, %c0_173], %487 {strides = array<i32>} : memref<64x16xf32, #tpu.memory_space<vmem>>, vector<8x8xf32>,
    %c2_i32_174 = arith.constant 2 : i32
    %c8_i32_175 = arith.constant 8 : i32
    %490 = arith.muli %c2_i32_174, %c8_i32_175 : i32
    %491 = tpu.assume_multiple %490, 8 : i32
    %492 = arith.index_cast %491 : i32 to index
    %c0_176 = arith.constant 0 : index
    %493 = vector.load %arg25[%492, %c0_176] : memref<64x64xf32, #tpu.memory_space<vmem>>, vector<8x32xf32>
    %494 = arith.truncf %487 : vector<8x8xf32> to vector<8x8xbf16>
    %c0_177 = arith.constant 0 : index
    %c0_178 = arith.constant 0 : index
    %495 = vector.load %arg10[%c0_177, %c0_178] : memref<8x32xbf16, #tpu.memory_space<vmem>>, vector<8x32xbf16>
    %cst_179 = arith.constant dense<0.000000e+00> : vector<8x32xf32>
    %496 = tpu.matmul %494, %495, %cst_179 {dimension_numbers = #tpu.dot_dimension_numbers<[1], [0], [0], [1], [0, 0, 1, 1], [], []>} : vector<8x8xbf16>, vector<8x32xbf16>, vector<8x32xf32> -> vector<8x32xf32>
    %497 = arith.addf %493, %496 : vector<8x32xf32>
    %498 = arith.negf %497 : vector<8x32xf32>
    %499 = math.exp %498 : vector<8x32xf32>
    %cst_180 = arith.constant 1.000000e+00 : f32
    %500 = vector.broadcast %cst_180 : f32 to vector<8x32xf32>
    %501 = arith.addf %500, %499 : vector<8x32xf32>
    %502 = arith.divf %500, %501 : vector<8x32xf32>
    %503 = vector.extract_strided_slice %497 {offsets = [0, 16], sizes = [8, 8], strides = [1, 1]} : vector<8x32xf32> to vector<8x8xf32>
    %504 = math.tanh %503 : vector<8x8xf32>
    %505 = vector.extract_strided_slice %502 {offsets = [0, 0], sizes = [8, 8], strides = [1, 1]} : vector<8x32xf32> to vector<8x8xf32>
    %506 = vector.extract_strided_slice %502 {offsets = [0, 8], sizes = [8, 8], strides = [1, 1]} : vector<8x32xf32> to vector<8x8xf32>
    %507 = vector.extract_strided_slice %502 {offsets = [0, 24], sizes = [8, 8], strides = [1, 1]} : vector<8x32xf32> to vector<8x8xf32>
    %508 = arith.mulf %506, %485 : vector<8x8xf32>
    %509 = arith.mulf %505, %504 : vector<8x8xf32>
    %510 = arith.addf %508, %509 : vector<8x8xf32>
    %511 = math.tanh %510 : vector<8x8xf32>
    %512 = arith.mulf %507, %511 : vector<8x8xf32>
    %513 = arith.index_cast %491 : i32 to index
    %c0_181 = arith.constant 0 : index
    %514 = vector.load %arg24[%513, %c0_181] : memref<64x16xf32, #tpu.memory_space<vmem>>, vector<8x8xf32>
    tpu.vector_store %arg24[%513, %c0_181], %512 {strides = array<i32>} : memref<64x16xf32, #tpu.memory_space<vmem>>, vector<8x8xf32>,
    %c3_i32_182 = arith.constant 3 : i32
    %c8_i32_183 = arith.constant 8 : i32
    %515 = arith.muli %c3_i32_182, %c8_i32_183 : i32
    %516 = tpu.assume_multiple %515, 8 : i32
    %517 = arith.index_cast %516 : i32 to index
    %c0_184 = arith.constant 0 : index
    %518 = vector.load %arg25[%517, %c0_184] : memref<64x64xf32, #tpu.memory_space<vmem>>, vector<8x32xf32>
    %519 = arith.truncf %512 : vector<8x8xf32> to vector<8x8xbf16>
    %c0_185 = arith.constant 0 : index
    %c0_186 = arith.constant 0 : index
    %520 = vector.load %arg10[%c0_185, %c0_186] : memref<8x32xbf16, #tpu.memory_space<vmem>>, vector<8x32xbf16>
    %cst_187 = arith.constant dense<0.000000e+00> : vector<8x32xf32>
    %521 = tpu.matmul %519, %520, %cst_187 {dimension_numbers = #tpu.dot_dimension_numbers<[1], [0], [0], [1], [0, 0, 1, 1], [], []>} : vector<8x8xbf16>, vector<8x32xbf16>, vector<8x32xf32> -> vector<8x32xf32>
    %522 = arith.addf %518, %521 : vector<8x32xf32>
    %523 = arith.negf %522 : vector<8x32xf32>
    %524 = math.exp %523 : vector<8x32xf32>
    %cst_188 = arith.constant 1.000000e+00 : f32
    %525 = vector.broadcast %cst_188 : f32 to vector<8x32xf32>
    %526 = arith.addf %525, %524 : vector<8x32xf32>
    %527 = arith.divf %525, %526 : vector<8x32xf32>
    %528 = vector.extract_strided_slice %522 {offsets = [0, 16], sizes = [8, 8], strides = [1, 1]} : vector<8x32xf32> to vector<8x8xf32>
    %529 = math.tanh %528 : vector<8x8xf32>
    %530 = vector.extract_strided_slice %527 {offsets = [0, 0], sizes = [8, 8], strides = [1, 1]} : vector<8x32xf32> to vector<8x8xf32>
    %531 = vector.extract_strided_slice %527 {offsets = [0, 8], sizes = [8, 8], strides = [1, 1]} : vector<8x32xf32> to vector<8x8xf32>
    %532 = vector.extract_strided_slice %527 {offsets = [0, 24], sizes = [8, 8], strides = [1, 1]} : vector<8x32xf32> to vector<8x8xf32>
    %533 = arith.mulf %531, %510 : vector<8x8xf32>
    %534 = arith.mulf %530, %529 : vector<8x8xf32>
    %535 = arith.addf %533, %534 : vector<8x8xf32>
    %536 = math.tanh %535 : vector<8x8xf32>
    %537 = arith.mulf %532, %536 : vector<8x8xf32>
    %538 = arith.index_cast %516 : i32 to index
    %c0_189 = arith.constant 0 : index
    %539 = vector.load %arg24[%538, %c0_189] : memref<64x16xf32, #tpu.memory_space<vmem>>, vector<8x8xf32>
    tpu.vector_store %arg24[%538, %c0_189], %537 {strides = array<i32>} : memref<64x16xf32, #tpu.memory_space<vmem>>, vector<8x8xf32>,
    %c4_i32_190 = arith.constant 4 : i32
    %c8_i32_191 = arith.constant 8 : i32
    %540 = arith.muli %c4_i32_190, %c8_i32_191 : i32
    %541 = tpu.assume_multiple %540, 8 : i32
    %542 = arith.index_cast %541 : i32 to index
    %c0_192 = arith.constant 0 : index
    %543 = vector.load %arg25[%542, %c0_192] : memref<64x64xf32, #tpu.memory_space<vmem>>, vector<8x32xf32>
    %544 = arith.truncf %537 : vector<8x8xf32> to vector<8x8xbf16>
    %c0_193 = arith.constant 0 : index
    %c0_194 = arith.constant 0 : index
    %545 = vector.load %arg10[%c0_193, %c0_194] : memref<8x32xbf16, #tpu.memory_space<vmem>>, vector<8x32xbf16>
    %cst_195 = arith.constant dense<0.000000e+00> : vector<8x32xf32>
    %546 = tpu.matmul %544, %545, %cst_195 {dimension_numbers = #tpu.dot_dimension_numbers<[1], [0], [0], [1], [0, 0, 1, 1], [], []>} : vector<8x8xbf16>, vector<8x32xbf16>, vector<8x32xf32> -> vector<8x32xf32>
    %547 = arith.addf %543, %546 : vector<8x32xf32>
    %548 = arith.negf %547 : vector<8x32xf32>
    %549 = math.exp %548 : vector<8x32xf32>
    %cst_196 = arith.constant 1.000000e+00 : f32
    %550 = vector.broadcast %cst_196 : f32 to vector<8x32xf32>
    %551 = arith.addf %550, %549 : vector<8x32xf32>
    %552 = arith.divf %550, %551 : vector<8x32xf32>
    %553 = vector.extract_strided_slice %547 {offsets = [0, 16], sizes = [8, 8], strides = [1, 1]} : vector<8x32xf32> to vector<8x8xf32>
    %554 = math.tanh %553 : vector<8x8xf32>
    %555 = vector.extract_strided_slice %552 {offsets = [0, 0], sizes = [8, 8], strides = [1, 1]} : vector<8x32xf32> to vector<8x8xf32>
    %556 = vector.extract_strided_slice %552 {offsets = [0, 8], sizes = [8, 8], strides = [1, 1]} : vector<8x32xf32> to vector<8x8xf32>
    %557 = vector.extract_strided_slice %552 {offsets = [0, 24], sizes = [8, 8], strides = [1, 1]} : vector<8x32xf32> to vector<8x8xf32>
    %558 = arith.mulf %556, %535 : vector<8x8xf32>
    %559 = arith.mulf %555, %554 : vector<8x8xf32>
    %560 = arith.addf %558, %559 : vector<8x8xf32>
    %561 = math.tanh %560 : vector<8x8xf32>
    %562 = arith.mulf %557, %561 : vector<8x8xf32>
    %563 = arith.index_cast %541 : i32 to index
    %c0_197 = arith.constant 0 : index
    %564 = vector.load %arg24[%563, %c0_197] : memref<64x16xf32, #tpu.memory_space<vmem>>, vector<8x8xf32>
    tpu.vector_store %arg24[%563, %c0_197], %562 {strides = array<i32>} : memref<64x16xf32, #tpu.memory_space<vmem>>, vector<8x8xf32>,
    %c5_i32_198 = arith.constant 5 : i32
    %c8_i32_199 = arith.constant 8 : i32
    %565 = arith.muli %c5_i32_198, %c8_i32_199 : i32
    %566 = tpu.assume_multiple %565, 8 : i32
    %567 = arith.index_cast %566 : i32 to index
    %c0_200 = arith.constant 0 : index
    %568 = vector.load %arg25[%567, %c0_200] : memref<64x64xf32, #tpu.memory_space<vmem>>, vector<8x32xf32>
    %569 = arith.truncf %562 : vector<8x8xf32> to vector<8x8xbf16>
    %c0_201 = arith.constant 0 : index
    %c0_202 = arith.constant 0 : index
    %570 = vector.load %arg10[%c0_201, %c0_202] : memref<8x32xbf16, #tpu.memory_space<vmem>>, vector<8x32xbf16>
    %cst_203 = arith.constant dense<0.000000e+00> : vector<8x32xf32>
    %571 = tpu.matmul %569, %570, %cst_203 {dimension_numbers = #tpu.dot_dimension_numbers<[1], [0], [0], [1], [0, 0, 1, 1], [], []>} : vector<8x8xbf16>, vector<8x32xbf16>, vector<8x32xf32> -> vector<8x32xf32>
    %572 = arith.addf %568, %571 : vector<8x32xf32>
    %573 = arith.negf %572 : vector<8x32xf32>
    %574 = math.exp %573 : vector<8x32xf32>
    %cst_204 = arith.constant 1.000000e+00 : f32
    %575 = vector.broadcast %cst_204 : f32 to vector<8x32xf32>
    %576 = arith.addf %575, %574 : vector<8x32xf32>
    %577 = arith.divf %575, %576 : vector<8x32xf32>
    %578 = vector.extract_strided_slice %572 {offsets = [0, 16], sizes = [8, 8], strides = [1, 1]} : vector<8x32xf32> to vector<8x8xf32>
    %579 = math.tanh %578 : vector<8x8xf32>
    %580 = vector.extract_strided_slice %577 {offsets = [0, 0], sizes = [8, 8], strides = [1, 1]} : vector<8x32xf32> to vector<8x8xf32>
    %581 = vector.extract_strided_slice %577 {offsets = [0, 8], sizes = [8, 8], strides = [1, 1]} : vector<8x32xf32> to vector<8x8xf32>
    %582 = vector.extract_strided_slice %577 {offsets = [0, 24], sizes = [8, 8], strides = [1, 1]} : vector<8x32xf32> to vector<8x8xf32>
    %583 = arith.mulf %581, %560 : vector<8x8xf32>
    %584 = arith.mulf %580, %579 : vector<8x8xf32>
    %585 = arith.addf %583, %584 : vector<8x8xf32>
    %586 = math.tanh %585 : vector<8x8xf32>
    %587 = arith.mulf %582, %586 : vector<8x8xf32>
    %588 = arith.index_cast %566 : i32 to index
    %c0_205 = arith.constant 0 : index
    %589 = vector.load %arg24[%588, %c0_205] : memref<64x16xf32, #tpu.memory_space<vmem>>, vector<8x8xf32>
    tpu.vector_store %arg24[%588, %c0_205], %587 {strides = array<i32>} : memref<64x16xf32, #tpu.memory_space<vmem>>, vector<8x8xf32>,
    %c6_i32_206 = arith.constant 6 : i32
    %c8_i32_207 = arith.constant 8 : i32
    %590 = arith.muli %c6_i32_206, %c8_i32_207 : i32
    %591 = tpu.assume_multiple %590, 8 : i32
    %592 = arith.index_cast %591 : i32 to index
    %c0_208 = arith.constant 0 : index
    %593 = vector.load %arg25[%592, %c0_208] : memref<64x64xf32, #tpu.memory_space<vmem>>, vector<8x32xf32>
    %594 = arith.truncf %587 : vector<8x8xf32> to vector<8x8xbf16>
    %c0_209 = arith.constant 0 : index
    %c0_210 = arith.constant 0 : index
    %595 = vector.load %arg10[%c0_209, %c0_210] : memref<8x32xbf16, #tpu.memory_space<vmem>>, vector<8x32xbf16>
    %cst_211 = arith.constant dense<0.000000e+00> : vector<8x32xf32>
    %596 = tpu.matmul %594, %595, %cst_211 {dimension_numbers = #tpu.dot_dimension_numbers<[1], [0], [0], [1], [0, 0, 1, 1], [], []>} : vector<8x8xbf16>, vector<8x32xbf16>, vector<8x32xf32> -> vector<8x32xf32>
    %597 = arith.addf %593, %596 : vector<8x32xf32>
    %598 = arith.negf %597 : vector<8x32xf32>
    %599 = math.exp %598 : vector<8x32xf32>
    %cst_212 = arith.constant 1.000000e+00 : f32
    %600 = vector.broadcast %cst_212 : f32 to vector<8x32xf32>
    %601 = arith.addf %600, %599 : vector<8x32xf32>
    %602 = arith.divf %600, %601 : vector<8x32xf32>
    %603 = vector.extract_strided_slice %597 {offsets = [0, 16], sizes = [8, 8], strides = [1, 1]} : vector<8x32xf32> to vector<8x8xf32>
    %604 = math.tanh %603 : vector<8x8xf32>
    %605 = vector.extract_strided_slice %602 {offsets = [0, 0], sizes = [8, 8], strides = [1, 1]} : vector<8x32xf32> to vector<8x8xf32>
    %606 = vector.extract_strided_slice %602 {offsets = [0, 8], sizes = [8, 8], strides = [1, 1]} : vector<8x32xf32> to vector<8x8xf32>
    %607 = vector.extract_strided_slice %602 {offsets = [0, 24], sizes = [8, 8], strides = [1, 1]} : vector<8x32xf32> to vector<8x8xf32>
    %608 = arith.mulf %606, %585 : vector<8x8xf32>
    %609 = arith.mulf %605, %604 : vector<8x8xf32>
    %610 = arith.addf %608, %609 : vector<8x8xf32>
    %611 = math.tanh %610 : vector<8x8xf32>
    %612 = arith.mulf %607, %611 : vector<8x8xf32>
    %613 = arith.index_cast %591 : i32 to index
    %c0_213 = arith.constant 0 : index
    %614 = vector.load %arg24[%613, %c0_213] : memref<64x16xf32, #tpu.memory_space<vmem>>, vector<8x8xf32>
    tpu.vector_store %arg24[%613, %c0_213], %612 {strides = array<i32>} : memref<64x16xf32, #tpu.memory_space<vmem>>, vector<8x8xf32>,
    %c7_i32_214 = arith.constant 7 : i32
    %c8_i32_215 = arith.constant 8 : i32
    %615 = arith.muli %c7_i32_214, %c8_i32_215 : i32
    %616 = tpu.assume_multiple %615, 8 : i32
    %617 = arith.index_cast %616 : i32 to index
    %c0_216 = arith.constant 0 : index
    %618 = vector.load %arg25[%617, %c0_216] : memref<64x64xf32, #tpu.memory_space<vmem>>, vector<8x32xf32>
    %619 = arith.truncf %612 : vector<8x8xf32> to vector<8x8xbf16>
    %c0_217 = arith.constant 0 : index
    %c0_218 = arith.constant 0 : index
    %620 = vector.load %arg10[%c0_217, %c0_218] : memref<8x32xbf16, #tpu.memory_space<vmem>>, vector<8x32xbf16>
    %cst_219 = arith.constant dense<0.000000e+00> : vector<8x32xf32>
    %621 = tpu.matmul %619, %620, %cst_219 {dimension_numbers = #tpu.dot_dimension_numbers<[1], [0], [0], [1], [0, 0, 1, 1], [], []>} : vector<8x8xbf16>, vector<8x32xbf16>, vector<8x32xf32> -> vector<8x32xf32>
    %622 = arith.addf %618, %621 : vector<8x32xf32>
    %623 = arith.negf %622 : vector<8x32xf32>
    %624 = math.exp %623 : vector<8x32xf32>
    %cst_220 = arith.constant 1.000000e+00 : f32
    %625 = vector.broadcast %cst_220 : f32 to vector<8x32xf32>
    %626 = arith.addf %625, %624 : vector<8x32xf32>
    %627 = arith.divf %625, %626 : vector<8x32xf32>
    %628 = vector.extract_strided_slice %622 {offsets = [0, 16], sizes = [8, 8], strides = [1, 1]} : vector<8x32xf32> to vector<8x8xf32>
    %629 = math.tanh %628 : vector<8x8xf32>
    %630 = vector.extract_strided_slice %627 {offsets = [0, 0], sizes = [8, 8], strides = [1, 1]} : vector<8x32xf32> to vector<8x8xf32>
    %631 = vector.extract_strided_slice %627 {offsets = [0, 8], sizes = [8, 8], strides = [1, 1]} : vector<8x32xf32> to vector<8x8xf32>
    %632 = vector.extract_strided_slice %627 {offsets = [0, 24], sizes = [8, 8], strides = [1, 1]} : vector<8x32xf32> to vector<8x8xf32>
    %633 = arith.mulf %631, %610 : vector<8x8xf32>
    %634 = arith.mulf %630, %629 : vector<8x8xf32>
    %635 = arith.addf %633, %634 : vector<8x8xf32>
    %636 = math.tanh %635 : vector<8x8xf32>
    %637 = arith.mulf %632, %636 : vector<8x8xf32>
    %638 = arith.index_cast %616 : i32 to index
    %c0_221 = arith.constant 0 : index
    %639 = vector.load %arg24[%638, %c0_221] : memref<64x16xf32, #tpu.memory_space<vmem>>, vector<8x8xf32>
    tpu.vector_store %arg24[%638, %c0_221], %637 {strides = array<i32>} : memref<64x16xf32, #tpu.memory_space<vmem>>, vector<8x8xf32>,
    %c8_i32_222 = arith.constant 8 : i32
    %c0_223 = arith.constant 0 : index
    %c0_224 = arith.constant 0 : index
    %640 = vector.load %arg24[%c0_223, %c0_224] : memref<64x16xf32, #tpu.memory_space<vmem>>, vector<64x8xf32>
    %641 = arith.truncf %640 : vector<64x8xf32> to vector<64x8xbf16>
    %c0_225 = arith.constant 0 : index
    %c0_226 = arith.constant 0 : index
    %642 = vector.load %arg12[%c0_225, %c0_226] : memref<8x8xbf16, #tpu.memory_space<vmem>>, vector<8x8xbf16>
    %cst_227 = arith.constant dense<0.000000e+00> : vector<64x8xf32>
    %643 = tpu.matmul %641, %642, %cst_227 {dimension_numbers = #tpu.dot_dimension_numbers<[1], [0], [0], [1], [0, 0, 1, 1], [], []>} : vector<64x8xbf16>, vector<8x8xbf16>, vector<64x8xf32> -> vector<64x8xf32>
    %c0_228 = arith.constant 0 : index
    %c0_229 = arith.constant 0 : index
    %644 = vector.load %arg13[%c0_228, %c0_229] : memref<1x8xf32, #tpu.memory_space<vmem>>, vector<1x8xf32>
    %645 = vector.broadcast %644 : vector<1x8xf32> to vector<64x8xf32>
    %646 = arith.addf %643, %645 : vector<64x8xf32>
    %647 = arith.negf %646 : vector<64x8xf32>
    %648 = math.exp %647 : vector<64x8xf32>
    %cst_230 = arith.constant 1.000000e+00 : f32
    %649 = vector.broadcast %cst_230 : f32 to vector<64x8xf32>
    %650 = arith.addf %649, %648 : vector<64x8xf32>
    %651 = arith.divf %649, %650 : vector<64x8xf32>
    %652 = arith.truncf %651 : vector<64x8xf32> to vector<64x8xbf16>
    %c0_231 = arith.constant 0 : index
    %c0_232 = arith.constant 0 : index
    %653 = vector.load %arg14[%c0_231, %c0_232] : memref<8x64xbf16, #tpu.memory_space<vmem>>, vector<8x64xbf16>
    %cst_233 = arith.constant dense<0.000000e+00> : vector<64x64xf32>
    %654 = tpu.matmul %652, %653, %cst_233 {dimension_numbers = #tpu.dot_dimension_numbers<[1], [0], [0], [1], [0, 0, 1, 1], [], []>} : vector<64x8xbf16>, vector<8x64xbf16>, vector<64x64xf32> -> vector<64x64xf32>
    %c0_234 = arith.constant 0 : index
    %c0_235 = arith.constant 0 : index
    %655 = vector.load %arg16[%c0_234, %c0_235] : memref<1x64xf32, #tpu.memory_space<vmem>>, vector<1x64xf32>
    %656 = vector.broadcast %655 : vector<1x64xf32> to vector<64x64xf32>
    %657 = arith.addf %654, %656 : vector<64x64xf32>
    %c0_236 = arith.constant 0 : index
    %c0_237 = arith.constant 0 : index
    %658 = vector.load %arg25[%c0_236, %c0_237] : memref<64x64xf32, #tpu.memory_space<vmem>>, vector<64x64xf32>
    tpu.vector_store %arg25[%c0_236, %c0_237], %657 {strides = array<i32>} : memref<64x64xf32, #tpu.memory_space<vmem>>, vector<64x64xf32>,
    %cst_238 = arith.constant 0.000000e+00 : f32
    %659 = vector.broadcast %cst_238 : f32 to vector<8x16xf32>
    %cst_239 = arith.constant 0.000000e+00 : f32
    %660 = vector.broadcast %cst_239 : f32 to vector<8x16xf32>
    %c0_i32_240 = arith.constant 0 : i32
    %c8_i32_241 = arith.constant 8 : i32
    %661 = arith.muli %c0_i32_240, %c8_i32_241 : i32
    %662 = tpu.assume_multiple %661, 8 : i32
    %663 = arith.index_cast %662 : i32 to index
    %c0_242 = arith.constant 0 : index
    %664 = vector.load %arg25[%663, %c0_242] : memref<64x64xf32, #tpu.memory_space<vmem>>, vector<8x64xf32>
    %665 = arith.truncf %659 : vector<8x16xf32> to vector<8x16xbf16>
    %c0_243 = arith.constant 0 : index
    %c0_244 = arith.constant 0 : index
    %666 = vector.load %arg15[%c0_243, %c0_244] : memref<16x64xbf16, #tpu.memory_space<vmem>>, vector<16x64xbf16>
    %cst_245 = arith.constant dense<0.000000e+00> : vector<8x64xf32>
    %667 = tpu.matmul %665, %666, %cst_245 {dimension_numbers = #tpu.dot_dimension_numbers<[1], [0], [0], [1], [0, 0, 1, 1], [], []>} : vector<8x16xbf16>, vector<16x64xbf16>, vector<8x64xf32> -> vector<8x64xf32>
    %668 = arith.addf %664, %667 : vector<8x64xf32>
    %669 = arith.negf %668 : vector<8x64xf32>
    %670 = math.exp %669 : vector<8x64xf32>
    %cst_246 = arith.constant 1.000000e+00 : f32
    %671 = vector.broadcast %cst_246 : f32 to vector<8x64xf32>
    %672 = arith.addf %671, %670 : vector<8x64xf32>
    %673 = arith.divf %671, %672 : vector<8x64xf32>
    %674 = vector.extract_strided_slice %668 {offsets = [0, 32], sizes = [8, 16], strides = [1, 1]} : vector<8x64xf32> to vector<8x16xf32>
    %675 = math.tanh %674 : vector<8x16xf32>
    %676 = vector.extract_strided_slice %673 {offsets = [0, 0], sizes = [8, 16], strides = [1, 1]} : vector<8x64xf32> to vector<8x16xf32>
    %677 = vector.extract_strided_slice %673 {offsets = [0, 16], sizes = [8, 16], strides = [1, 1]} : vector<8x64xf32> to vector<8x16xf32>
    %678 = vector.extract_strided_slice %673 {offsets = [0, 48], sizes = [8, 16], strides = [1, 1]} : vector<8x64xf32> to vector<8x16xf32>
    %679 = arith.mulf %677, %660 : vector<8x16xf32>
    %680 = arith.mulf %676, %675 : vector<8x16xf32>
    %681 = arith.addf %679, %680 : vector<8x16xf32>
    %682 = math.tanh %681 : vector<8x16xf32>
    %683 = arith.mulf %678, %682 : vector<8x16xf32>
    %684 = arith.index_cast %662 : i32 to index
    %c0_247 = arith.constant 0 : index
    %685 = vector.load %arg24[%684, %c0_247] : memref<64x16xf32, #tpu.memory_space<vmem>>, vector<8x16xf32>
    tpu.vector_store %arg24[%684, %c0_247], %683 {strides = array<i32>} : memref<64x16xf32, #tpu.memory_space<vmem>>, vector<8x16xf32>,
    %c1_i32_248 = arith.constant 1 : i32
    %c8_i32_249 = arith.constant 8 : i32
    %686 = arith.muli %c1_i32_248, %c8_i32_249 : i32
    %687 = tpu.assume_multiple %686, 8 : i32
    %688 = arith.index_cast %687 : i32 to index
    %c0_250 = arith.constant 0 : index
    %689 = vector.load %arg25[%688, %c0_250] : memref<64x64xf32, #tpu.memory_space<vmem>>, vector<8x64xf32>
    %690 = arith.truncf %683 : vector<8x16xf32> to vector<8x16xbf16>
    %c0_251 = arith.constant 0 : index
    %c0_252 = arith.constant 0 : index
    %691 = vector.load %arg15[%c0_251, %c0_252] : memref<16x64xbf16, #tpu.memory_space<vmem>>, vector<16x64xbf16>
    %cst_253 = arith.constant dense<0.000000e+00> : vector<8x64xf32>
    %692 = tpu.matmul %690, %691, %cst_253 {dimension_numbers = #tpu.dot_dimension_numbers<[1], [0], [0], [1], [0, 0, 1, 1], [], []>} : vector<8x16xbf16>, vector<16x64xbf16>, vector<8x64xf32> -> vector<8x64xf32>
    %693 = arith.addf %689, %692 : vector<8x64xf32>
    %694 = arith.negf %693 : vector<8x64xf32>
    %695 = math.exp %694 : vector<8x64xf32>
    %cst_254 = arith.constant 1.000000e+00 : f32
    %696 = vector.broadcast %cst_254 : f32 to vector<8x64xf32>
    %697 = arith.addf %696, %695 : vector<8x64xf32>
    %698 = arith.divf %696, %697 : vector<8x64xf32>
    %699 = vector.extract_strided_slice %693 {offsets = [0, 32], sizes = [8, 16], strides = [1, 1]} : vector<8x64xf32> to vector<8x16xf32>
    %700 = math.tanh %699 : vector<8x16xf32>
    %701 = vector.extract_strided_slice %698 {offsets = [0, 0], sizes = [8, 16], strides = [1, 1]} : vector<8x64xf32> to vector<8x16xf32>
    %702 = vector.extract_strided_slice %698 {offsets = [0, 16], sizes = [8, 16], strides = [1, 1]} : vector<8x64xf32> to vector<8x16xf32>
    %703 = vector.extract_strided_slice %698 {offsets = [0, 48], sizes = [8, 16], strides = [1, 1]} : vector<8x64xf32> to vector<8x16xf32>
    %704 = arith.mulf %702, %681 : vector<8x16xf32>
    %705 = arith.mulf %701, %700 : vector<8x16xf32>
    %706 = arith.addf %704, %705 : vector<8x16xf32>
    %707 = math.tanh %706 : vector<8x16xf32>
    %708 = arith.mulf %703, %707 : vector<8x16xf32>
    %709 = arith.index_cast %687 : i32 to index
    %c0_255 = arith.constant 0 : index
    %710 = vector.load %arg24[%709, %c0_255] : memref<64x16xf32, #tpu.memory_space<vmem>>, vector<8x16xf32>
    tpu.vector_store %arg24[%709, %c0_255], %708 {strides = array<i32>} : memref<64x16xf32, #tpu.memory_space<vmem>>, vector<8x16xf32>,
    %c2_i32_256 = arith.constant 2 : i32
    %c8_i32_257 = arith.constant 8 : i32
    %711 = arith.muli %c2_i32_256, %c8_i32_257 : i32
    %712 = tpu.assume_multiple %711, 8 : i32
    %713 = arith.index_cast %712 : i32 to index
    %c0_258 = arith.constant 0 : index
    %714 = vector.load %arg25[%713, %c0_258] : memref<64x64xf32, #tpu.memory_space<vmem>>, vector<8x64xf32>
    %715 = arith.truncf %708 : vector<8x16xf32> to vector<8x16xbf16>
    %c0_259 = arith.constant 0 : index
    %c0_260 = arith.constant 0 : index
    %716 = vector.load %arg15[%c0_259, %c0_260] : memref<16x64xbf16, #tpu.memory_space<vmem>>, vector<16x64xbf16>
    %cst_261 = arith.constant dense<0.000000e+00> : vector<8x64xf32>
    %717 = tpu.matmul %715, %716, %cst_261 {dimension_numbers = #tpu.dot_dimension_numbers<[1], [0], [0], [1], [0, 0, 1, 1], [], []>} : vector<8x16xbf16>, vector<16x64xbf16>, vector<8x64xf32> -> vector<8x64xf32>
    %718 = arith.addf %714, %717 : vector<8x64xf32>
    %719 = arith.negf %718 : vector<8x64xf32>
    %720 = math.exp %719 : vector<8x64xf32>
    %cst_262 = arith.constant 1.000000e+00 : f32
    %721 = vector.broadcast %cst_262 : f32 to vector<8x64xf32>
    %722 = arith.addf %721, %720 : vector<8x64xf32>
    %723 = arith.divf %721, %722 : vector<8x64xf32>
    %724 = vector.extract_strided_slice %718 {offsets = [0, 32], sizes = [8, 16], strides = [1, 1]} : vector<8x64xf32> to vector<8x16xf32>
    %725 = math.tanh %724 : vector<8x16xf32>
    %726 = vector.extract_strided_slice %723 {offsets = [0, 0], sizes = [8, 16], strides = [1, 1]} : vector<8x64xf32> to vector<8x16xf32>
    %727 = vector.extract_strided_slice %723 {offsets = [0, 16], sizes = [8, 16], strides = [1, 1]} : vector<8x64xf32> to vector<8x16xf32>
    %728 = vector.extract_strided_slice %723 {offsets = [0, 48], sizes = [8, 16], strides = [1, 1]} : vector<8x64xf32> to vector<8x16xf32>
    %729 = arith.mulf %727, %706 : vector<8x16xf32>
    %730 = arith.mulf %726, %725 : vector<8x16xf32>
    %731 = arith.addf %729, %730 : vector<8x16xf32>
    %732 = math.tanh %731 : vector<8x16xf32>
    %733 = arith.mulf %728, %732 : vector<8x16xf32>
    %734 = arith.index_cast %712 : i32 to index
    %c0_263 = arith.constant 0 : index
    %735 = vector.load %arg24[%734, %c0_263] : memref<64x16xf32, #tpu.memory_space<vmem>>, vector<8x16xf32>
    tpu.vector_store %arg24[%734, %c0_263], %733 {strides = array<i32>} : memref<64x16xf32, #tpu.memory_space<vmem>>, vector<8x16xf32>,
    %c3_i32_264 = arith.constant 3 : i32
    %c8_i32_265 = arith.constant 8 : i32
    %736 = arith.muli %c3_i32_264, %c8_i32_265 : i32
    %737 = tpu.assume_multiple %736, 8 : i32
    %738 = arith.index_cast %737 : i32 to index
    %c0_266 = arith.constant 0 : index
    %739 = vector.load %arg25[%738, %c0_266] : memref<64x64xf32, #tpu.memory_space<vmem>>, vector<8x64xf32>
    %740 = arith.truncf %733 : vector<8x16xf32> to vector<8x16xbf16>
    %c0_267 = arith.constant 0 : index
    %c0_268 = arith.constant 0 : index
    %741 = vector.load %arg15[%c0_267, %c0_268] : memref<16x64xbf16, #tpu.memory_space<vmem>>, vector<16x64xbf16>
    %cst_269 = arith.constant dense<0.000000e+00> : vector<8x64xf32>
    %742 = tpu.matmul %740, %741, %cst_269 {dimension_numbers = #tpu.dot_dimension_numbers<[1], [0], [0], [1], [0, 0, 1, 1], [], []>} : vector<8x16xbf16>, vector<16x64xbf16>, vector<8x64xf32> -> vector<8x64xf32>
    %743 = arith.addf %739, %742 : vector<8x64xf32>
    %744 = arith.negf %743 : vector<8x64xf32>
    %745 = math.exp %744 : vector<8x64xf32>
    %cst_270 = arith.constant 1.000000e+00 : f32
    %746 = vector.broadcast %cst_270 : f32 to vector<8x64xf32>
    %747 = arith.addf %746, %745 : vector<8x64xf32>
    %748 = arith.divf %746, %747 : vector<8x64xf32>
    %749 = vector.extract_strided_slice %743 {offsets = [0, 32], sizes = [8, 16], strides = [1, 1]} : vector<8x64xf32> to vector<8x16xf32>
    %750 = math.tanh %749 : vector<8x16xf32>
    %751 = vector.extract_strided_slice %748 {offsets = [0, 0], sizes = [8, 16], strides = [1, 1]} : vector<8x64xf32> to vector<8x16xf32>
    %752 = vector.extract_strided_slice %748 {offsets = [0, 16], sizes = [8, 16], strides = [1, 1]} : vector<8x64xf32> to vector<8x16xf32>
    %753 = vector.extract_strided_slice %748 {offsets = [0, 48], sizes = [8, 16], strides = [1, 1]} : vector<8x64xf32> to vector<8x16xf32>
    %754 = arith.mulf %752, %731 : vector<8x16xf32>
    %755 = arith.mulf %751, %750 : vector<8x16xf32>
    %756 = arith.addf %754, %755 : vector<8x16xf32>
    %757 = math.tanh %756 : vector<8x16xf32>
    %758 = arith.mulf %753, %757 : vector<8x16xf32>
    %759 = arith.index_cast %737 : i32 to index
    %c0_271 = arith.constant 0 : index
    %760 = vector.load %arg24[%759, %c0_271] : memref<64x16xf32, #tpu.memory_space<vmem>>, vector<8x16xf32>
    tpu.vector_store %arg24[%759, %c0_271], %758 {strides = array<i32>} : memref<64x16xf32, #tpu.memory_space<vmem>>, vector<8x16xf32>,
    %c4_i32_272 = arith.constant 4 : i32
    %c8_i32_273 = arith.constant 8 : i32
    %761 = arith.muli %c4_i32_272, %c8_i32_273 : i32
    %762 = tpu.assume_multiple %761, 8 : i32
    %763 = arith.index_cast %762 : i32 to index
    %c0_274 = arith.constant 0 : index
    %764 = vector.load %arg25[%763, %c0_274] : memref<64x64xf32, #tpu.memory_space<vmem>>, vector<8x64xf32>
    %765 = arith.truncf %758 : vector<8x16xf32> to vector<8x16xbf16>
    %c0_275 = arith.constant 0 : index
    %c0_276 = arith.constant 0 : index
    %766 = vector.load %arg15[%c0_275, %c0_276] : memref<16x64xbf16, #tpu.memory_space<vmem>>, vector<16x64xbf16>
    %cst_277 = arith.constant dense<0.000000e+00> : vector<8x64xf32>
    %767 = tpu.matmul %765, %766, %cst_277 {dimension_numbers = #tpu.dot_dimension_numbers<[1], [0], [0], [1], [0, 0, 1, 1], [], []>} : vector<8x16xbf16>, vector<16x64xbf16>, vector<8x64xf32> -> vector<8x64xf32>
    %768 = arith.addf %764, %767 : vector<8x64xf32>
    %769 = arith.negf %768 : vector<8x64xf32>
    %770 = math.exp %769 : vector<8x64xf32>
    %cst_278 = arith.constant 1.000000e+00 : f32
    %771 = vector.broadcast %cst_278 : f32 to vector<8x64xf32>
    %772 = arith.addf %771, %770 : vector<8x64xf32>
    %773 = arith.divf %771, %772 : vector<8x64xf32>
    %774 = vector.extract_strided_slice %768 {offsets = [0, 32], sizes = [8, 16], strides = [1, 1]} : vector<8x64xf32> to vector<8x16xf32>
    %775 = math.tanh %774 : vector<8x16xf32>
    %776 = vector.extract_strided_slice %773 {offsets = [0, 0], sizes = [8, 16], strides = [1, 1]} : vector<8x64xf32> to vector<8x16xf32>
    %777 = vector.extract_strided_slice %773 {offsets = [0, 16], sizes = [8, 16], strides = [1, 1]} : vector<8x64xf32> to vector<8x16xf32>
    %778 = vector.extract_strided_slice %773 {offsets = [0, 48], sizes = [8, 16], strides = [1, 1]} : vector<8x64xf32> to vector<8x16xf32>
    %779 = arith.mulf %777, %756 : vector<8x16xf32>
    %780 = arith.mulf %776, %775 : vector<8x16xf32>
    %781 = arith.addf %779, %780 : vector<8x16xf32>
    %782 = math.tanh %781 : vector<8x16xf32>
    %783 = arith.mulf %778, %782 : vector<8x16xf32>
    %784 = arith.index_cast %762 : i32 to index
    %c0_279 = arith.constant 0 : index
    %785 = vector.load %arg24[%784, %c0_279] : memref<64x16xf32, #tpu.memory_space<vmem>>, vector<8x16xf32>
    tpu.vector_store %arg24[%784, %c0_279], %783 {strides = array<i32>} : memref<64x16xf32, #tpu.memory_space<vmem>>, vector<8x16xf32>,
    %c5_i32_280 = arith.constant 5 : i32
    %c8_i32_281 = arith.constant 8 : i32
    %786 = arith.muli %c5_i32_280, %c8_i32_281 : i32
    %787 = tpu.assume_multiple %786, 8 : i32
    %788 = arith.index_cast %787 : i32 to index
    %c0_282 = arith.constant 0 : index
    %789 = vector.load %arg25[%788, %c0_282] : memref<64x64xf32, #tpu.memory_space<vmem>>, vector<8x64xf32>
    %790 = arith.truncf %783 : vector<8x16xf32> to vector<8x16xbf16>
    %c0_283 = arith.constant 0 : index
    %c0_284 = arith.constant 0 : index
    %791 = vector.load %arg15[%c0_283, %c0_284] : memref<16x64xbf16, #tpu.memory_space<vmem>>, vector<16x64xbf16>
    %cst_285 = arith.constant dense<0.000000e+00> : vector<8x64xf32>
    %792 = tpu.matmul %790, %791, %cst_285 {dimension_numbers = #tpu.dot_dimension_numbers<[1], [0], [0], [1], [0, 0, 1, 1], [], []>} : vector<8x16xbf16>, vector<16x64xbf16>, vector<8x64xf32> -> vector<8x64xf32>
    %793 = arith.addf %789, %792 : vector<8x64xf32>
    %794 = arith.negf %793 : vector<8x64xf32>
    %795 = math.exp %794 : vector<8x64xf32>
    %cst_286 = arith.constant 1.000000e+00 : f32
    %796 = vector.broadcast %cst_286 : f32 to vector<8x64xf32>
    %797 = arith.addf %796, %795 : vector<8x64xf32>
    %798 = arith.divf %796, %797 : vector<8x64xf32>
    %799 = vector.extract_strided_slice %793 {offsets = [0, 32], sizes = [8, 16], strides = [1, 1]} : vector<8x64xf32> to vector<8x16xf32>
    %800 = math.tanh %799 : vector<8x16xf32>
    %801 = vector.extract_strided_slice %798 {offsets = [0, 0], sizes = [8, 16], strides = [1, 1]} : vector<8x64xf32> to vector<8x16xf32>
    %802 = vector.extract_strided_slice %798 {offsets = [0, 16], sizes = [8, 16], strides = [1, 1]} : vector<8x64xf32> to vector<8x16xf32>
    %803 = vector.extract_strided_slice %798 {offsets = [0, 48], sizes = [8, 16], strides = [1, 1]} : vector<8x64xf32> to vector<8x16xf32>
    %804 = arith.mulf %802, %781 : vector<8x16xf32>
    %805 = arith.mulf %801, %800 : vector<8x16xf32>
    %806 = arith.addf %804, %805 : vector<8x16xf32>
    %807 = math.tanh %806 : vector<8x16xf32>
    %808 = arith.mulf %803, %807 : vector<8x16xf32>
    %809 = arith.index_cast %787 : i32 to index
    %c0_287 = arith.constant 0 : index
    %810 = vector.load %arg24[%809, %c0_287] : memref<64x16xf32, #tpu.memory_space<vmem>>, vector<8x16xf32>
    tpu.vector_store %arg24[%809, %c0_287], %808 {strides = array<i32>} : memref<64x16xf32, #tpu.memory_space<vmem>>, vector<8x16xf32>,
    %c6_i32_288 = arith.constant 6 : i32
    %c8_i32_289 = arith.constant 8 : i32
    %811 = arith.muli %c6_i32_288, %c8_i32_289 : i32
    %812 = tpu.assume_multiple %811, 8 : i32
    %813 = arith.index_cast %812 : i32 to index
    %c0_290 = arith.constant 0 : index
    %814 = vector.load %arg25[%813, %c0_290] : memref<64x64xf32, #tpu.memory_space<vmem>>, vector<8x64xf32>
    %815 = arith.truncf %808 : vector<8x16xf32> to vector<8x16xbf16>
    %c0_291 = arith.constant 0 : index
    %c0_292 = arith.constant 0 : index
    %816 = vector.load %arg15[%c0_291, %c0_292] : memref<16x64xbf16, #tpu.memory_space<vmem>>, vector<16x64xbf16>
    %cst_293 = arith.constant dense<0.000000e+00> : vector<8x64xf32>
    %817 = tpu.matmul %815, %816, %cst_293 {dimension_numbers = #tpu.dot_dimension_numbers<[1], [0], [0], [1], [0, 0, 1, 1], [], []>} : vector<8x16xbf16>, vector<16x64xbf16>, vector<8x64xf32> -> vector<8x64xf32>
    %818 = arith.addf %814, %817 : vector<8x64xf32>
    %819 = arith.negf %818 : vector<8x64xf32>
    %820 = math.exp %819 : vector<8x64xf32>
    %cst_294 = arith.constant 1.000000e+00 : f32
    %821 = vector.broadcast %cst_294 : f32 to vector<8x64xf32>
    %822 = arith.addf %821, %820 : vector<8x64xf32>
    %823 = arith.divf %821, %822 : vector<8x64xf32>
    %824 = vector.extract_strided_slice %818 {offsets = [0, 32], sizes = [8, 16], strides = [1, 1]} : vector<8x64xf32> to vector<8x16xf32>
    %825 = math.tanh %824 : vector<8x16xf32>
    %826 = vector.extract_strided_slice %823 {offsets = [0, 0], sizes = [8, 16], strides = [1, 1]} : vector<8x64xf32> to vector<8x16xf32>
    %827 = vector.extract_strided_slice %823 {offsets = [0, 16], sizes = [8, 16], strides = [1, 1]} : vector<8x64xf32> to vector<8x16xf32>
    %828 = vector.extract_strided_slice %823 {offsets = [0, 48], sizes = [8, 16], strides = [1, 1]} : vector<8x64xf32> to vector<8x16xf32>
    %829 = arith.mulf %827, %806 : vector<8x16xf32>
    %830 = arith.mulf %826, %825 : vector<8x16xf32>
    %831 = arith.addf %829, %830 : vector<8x16xf32>
    %832 = math.tanh %831 : vector<8x16xf32>
    %833 = arith.mulf %828, %832 : vector<8x16xf32>
    %834 = arith.index_cast %812 : i32 to index
    %c0_295 = arith.constant 0 : index
    %835 = vector.load %arg24[%834, %c0_295] : memref<64x16xf32, #tpu.memory_space<vmem>>, vector<8x16xf32>
    tpu.vector_store %arg24[%834, %c0_295], %833 {strides = array<i32>} : memref<64x16xf32, #tpu.memory_space<vmem>>, vector<8x16xf32>,
    %c7_i32_296 = arith.constant 7 : i32
    %c8_i32_297 = arith.constant 8 : i32
    %836 = arith.muli %c7_i32_296, %c8_i32_297 : i32
    %837 = tpu.assume_multiple %836, 8 : i32
    %838 = arith.index_cast %837 : i32 to index
    %c0_298 = arith.constant 0 : index
    %839 = vector.load %arg25[%838, %c0_298] : memref<64x64xf32, #tpu.memory_space<vmem>>, vector<8x64xf32>
    %840 = arith.truncf %833 : vector<8x16xf32> to vector<8x16xbf16>
    %c0_299 = arith.constant 0 : index
    %c0_300 = arith.constant 0 : index
    %841 = vector.load %arg15[%c0_299, %c0_300] : memref<16x64xbf16, #tpu.memory_space<vmem>>, vector<16x64xbf16>
    %cst_301 = arith.constant dense<0.000000e+00> : vector<8x64xf32>
    %842 = tpu.matmul %840, %841, %cst_301 {dimension_numbers = #tpu.dot_dimension_numbers<[1], [0], [0], [1], [0, 0, 1, 1], [], []>} : vector<8x16xbf16>, vector<16x64xbf16>, vector<8x64xf32> -> vector<8x64xf32>
    %843 = arith.addf %839, %842 : vector<8x64xf32>
    %844 = arith.negf %843 : vector<8x64xf32>
    %845 = math.exp %844 : vector<8x64xf32>
    %cst_302 = arith.constant 1.000000e+00 : f32
    %846 = vector.broadcast %cst_302 : f32 to vector<8x64xf32>
    %847 = arith.addf %846, %845 : vector<8x64xf32>
    %848 = arith.divf %846, %847 : vector<8x64xf32>
    %849 = vector.extract_strided_slice %843 {offsets = [0, 32], sizes = [8, 16], strides = [1, 1]} : vector<8x64xf32> to vector<8x16xf32>
    %850 = math.tanh %849 : vector<8x16xf32>
    %851 = vector.extract_strided_slice %848 {offsets = [0, 0], sizes = [8, 16], strides = [1, 1]} : vector<8x64xf32> to vector<8x16xf32>
    %852 = vector.extract_strided_slice %848 {offsets = [0, 16], sizes = [8, 16], strides = [1, 1]} : vector<8x64xf32> to vector<8x16xf32>
    %853 = vector.extract_strided_slice %848 {offsets = [0, 48], sizes = [8, 16], strides = [1, 1]} : vector<8x64xf32> to vector<8x16xf32>
    %854 = arith.mulf %852, %831 : vector<8x16xf32>
    %855 = arith.mulf %851, %850 : vector<8x16xf32>
    %856 = arith.addf %854, %855 : vector<8x16xf32>
    %857 = math.tanh %856 : vector<8x16xf32>
    %858 = arith.mulf %853, %857 : vector<8x16xf32>
    %859 = arith.index_cast %837 : i32 to index
    %c0_303 = arith.constant 0 : index
    %860 = vector.load %arg24[%859, %c0_303] : memref<64x16xf32, #tpu.memory_space<vmem>>, vector<8x16xf32>
    tpu.vector_store %arg24[%859, %c0_303], %858 {strides = array<i32>} : memref<64x16xf32, #tpu.memory_space<vmem>>, vector<8x16xf32>,
    %c8_i32_304 = arith.constant 8 : i32
    %c0_305 = arith.constant 0 : index
    %c0_306 = arith.constant 0 : index
    %861 = vector.load %arg24[%c0_305, %c0_306] : memref<64x16xf32, #tpu.memory_space<vmem>>, vector<64x16xf32>
    %862 = arith.truncf %861 : vector<64x16xf32> to vector<64x16xbf16>
    %c0_307 = arith.constant 0 : index
    %c0_308 = arith.constant 0 : index
    %863 = vector.load %arg17[%c0_307, %c0_308] : memref<16x64xbf16, #tpu.memory_space<vmem>>, vector<16x64xbf16>
    %cst_309 = arith.constant dense<0.000000e+00> : vector<64x64xf32>
    %864 = tpu.matmul %862, %863, %cst_309 {dimension_numbers = #tpu.dot_dimension_numbers<[1], [0], [0], [1], [0, 0, 1, 1], [], []>} : vector<64x16xbf16>, vector<16x64xbf16>, vector<64x64xf32> -> vector<64x64xf32>
    %c0_310 = arith.constant 0 : index
    %c0_311 = arith.constant 0 : index
    %865 = vector.load %arg19[%c0_310, %c0_311] : memref<1x64xf32, #tpu.memory_space<vmem>>, vector<1x64xf32>
    %866 = vector.broadcast %865 : vector<1x64xf32> to vector<64x64xf32>
    %867 = arith.addf %864, %866 : vector<64x64xf32>
    %c0_312 = arith.constant 0 : index
    %c0_313 = arith.constant 0 : index
    %868 = vector.load %arg25[%c0_312, %c0_313] : memref<64x64xf32, #tpu.memory_space<vmem>>, vector<64x64xf32>
    tpu.vector_store %arg25[%c0_312, %c0_313], %867 {strides = array<i32>} : memref<64x64xf32, #tpu.memory_space<vmem>>, vector<64x64xf32>,
    %cst_314 = arith.constant 0.000000e+00 : f32
    %869 = vector.broadcast %cst_314 : f32 to vector<8x16xf32>
    %cst_315 = arith.constant 0.000000e+00 : f32
    %870 = vector.broadcast %cst_315 : f32 to vector<8x16xf32>
    %c0_i32_316 = arith.constant 0 : i32
    %c8_i32_317 = arith.constant 8 : i32
    %871 = arith.muli %c0_i32_316, %c8_i32_317 : i32
    %872 = tpu.assume_multiple %871, 8 : i32
    %873 = arith.index_cast %872 : i32 to index
    %c0_318 = arith.constant 0 : index
    %874 = vector.load %arg25[%873, %c0_318] : memref<64x64xf32, #tpu.memory_space<vmem>>, vector<8x64xf32>
    %875 = arith.truncf %869 : vector<8x16xf32> to vector<8x16xbf16>
    %c0_319 = arith.constant 0 : index
    %c0_320 = arith.constant 0 : index
    %876 = vector.load %arg18[%c0_319, %c0_320] : memref<16x64xbf16, #tpu.memory_space<vmem>>, vector<16x64xbf16>
    %cst_321 = arith.constant dense<0.000000e+00> : vector<8x64xf32>
    %877 = tpu.matmul %875, %876, %cst_321 {dimension_numbers = #tpu.dot_dimension_numbers<[1], [0], [0], [1], [0, 0, 1, 1], [], []>} : vector<8x16xbf16>, vector<16x64xbf16>, vector<8x64xf32> -> vector<8x64xf32>
    %878 = arith.addf %874, %877 : vector<8x64xf32>
    %879 = arith.negf %878 : vector<8x64xf32>
    %880 = math.exp %879 : vector<8x64xf32>
    %cst_322 = arith.constant 1.000000e+00 : f32
    %881 = vector.broadcast %cst_322 : f32 to vector<8x64xf32>
    %882 = arith.addf %881, %880 : vector<8x64xf32>
    %883 = arith.divf %881, %882 : vector<8x64xf32>
    %884 = vector.extract_strided_slice %878 {offsets = [0, 32], sizes = [8, 16], strides = [1, 1]} : vector<8x64xf32> to vector<8x16xf32>
    %885 = math.tanh %884 : vector<8x16xf32>
    %886 = vector.extract_strided_slice %883 {offsets = [0, 0], sizes = [8, 16], strides = [1, 1]} : vector<8x64xf32> to vector<8x16xf32>
    %887 = vector.extract_strided_slice %883 {offsets = [0, 16], sizes = [8, 16], strides = [1, 1]} : vector<8x64xf32> to vector<8x16xf32>
    %888 = vector.extract_strided_slice %883 {offsets = [0, 48], sizes = [8, 16], strides = [1, 1]} : vector<8x64xf32> to vector<8x16xf32>
    %889 = arith.mulf %887, %870 : vector<8x16xf32>
    %890 = arith.mulf %886, %885 : vector<8x16xf32>
    %891 = arith.addf %889, %890 : vector<8x16xf32>
    %892 = math.tanh %891 : vector<8x16xf32>
    %893 = arith.mulf %888, %892 : vector<8x16xf32>
    %894 = arith.index_cast %872 : i32 to index
    %c0_323 = arith.constant 0 : index
    %895 = vector.load %arg24[%894, %c0_323] : memref<64x16xf32, #tpu.memory_space<vmem>>, vector<8x16xf32>
    tpu.vector_store %arg24[%894, %c0_323], %893 {strides = array<i32>} : memref<64x16xf32, #tpu.memory_space<vmem>>, vector<8x16xf32>,
    %c1_i32_324 = arith.constant 1 : i32
    %c8_i32_325 = arith.constant 8 : i32
    %896 = arith.muli %c1_i32_324, %c8_i32_325 : i32
    %897 = tpu.assume_multiple %896, 8 : i32
    %898 = arith.index_cast %897 : i32 to index
    %c0_326 = arith.constant 0 : index
    %899 = vector.load %arg25[%898, %c0_326] : memref<64x64xf32, #tpu.memory_space<vmem>>, vector<8x64xf32>
    %900 = arith.truncf %893 : vector<8x16xf32> to vector<8x16xbf16>
    %c0_327 = arith.constant 0 : index
    %c0_328 = arith.constant 0 : index
    %901 = vector.load %arg18[%c0_327, %c0_328] : memref<16x64xbf16, #tpu.memory_space<vmem>>, vector<16x64xbf16>
    %cst_329 = arith.constant dense<0.000000e+00> : vector<8x64xf32>
    %902 = tpu.matmul %900, %901, %cst_329 {dimension_numbers = #tpu.dot_dimension_numbers<[1], [0], [0], [1], [0, 0, 1, 1], [], []>} : vector<8x16xbf16>, vector<16x64xbf16>, vector<8x64xf32> -> vector<8x64xf32>
    %903 = arith.addf %899, %902 : vector<8x64xf32>
    %904 = arith.negf %903 : vector<8x64xf32>
    %905 = math.exp %904 : vector<8x64xf32>
    %cst_330 = arith.constant 1.000000e+00 : f32
    %906 = vector.broadcast %cst_330 : f32 to vector<8x64xf32>
    %907 = arith.addf %906, %905 : vector<8x64xf32>
    %908 = arith.divf %906, %907 : vector<8x64xf32>
    %909 = vector.extract_strided_slice %903 {offsets = [0, 32], sizes = [8, 16], strides = [1, 1]} : vector<8x64xf32> to vector<8x16xf32>
    %910 = math.tanh %909 : vector<8x16xf32>
    %911 = vector.extract_strided_slice %908 {offsets = [0, 0], sizes = [8, 16], strides = [1, 1]} : vector<8x64xf32> to vector<8x16xf32>
    %912 = vector.extract_strided_slice %908 {offsets = [0, 16], sizes = [8, 16], strides = [1, 1]} : vector<8x64xf32> to vector<8x16xf32>
    %913 = vector.extract_strided_slice %908 {offsets = [0, 48], sizes = [8, 16], strides = [1, 1]} : vector<8x64xf32> to vector<8x16xf32>
    %914 = arith.mulf %912, %891 : vector<8x16xf32>
    %915 = arith.mulf %911, %910 : vector<8x16xf32>
    %916 = arith.addf %914, %915 : vector<8x16xf32>
    %917 = math.tanh %916 : vector<8x16xf32>
    %918 = arith.mulf %913, %917 : vector<8x16xf32>
    %919 = arith.index_cast %897 : i32 to index
    %c0_331 = arith.constant 0 : index
    %920 = vector.load %arg24[%919, %c0_331] : memref<64x16xf32, #tpu.memory_space<vmem>>, vector<8x16xf32>
    tpu.vector_store %arg24[%919, %c0_331], %918 {strides = array<i32>} : memref<64x16xf32, #tpu.memory_space<vmem>>, vector<8x16xf32>,
    %c2_i32_332 = arith.constant 2 : i32
    %c8_i32_333 = arith.constant 8 : i32
    %921 = arith.muli %c2_i32_332, %c8_i32_333 : i32
    %922 = tpu.assume_multiple %921, 8 : i32
    %923 = arith.index_cast %922 : i32 to index
    %c0_334 = arith.constant 0 : index
    %924 = vector.load %arg25[%923, %c0_334] : memref<64x64xf32, #tpu.memory_space<vmem>>, vector<8x64xf32>
    %925 = arith.truncf %918 : vector<8x16xf32> to vector<8x16xbf16>
    %c0_335 = arith.constant 0 : index
    %c0_336 = arith.constant 0 : index
    %926 = vector.load %arg18[%c0_335, %c0_336] : memref<16x64xbf16, #tpu.memory_space<vmem>>, vector<16x64xbf16>
    %cst_337 = arith.constant dense<0.000000e+00> : vector<8x64xf32>
    %927 = tpu.matmul %925, %926, %cst_337 {dimension_numbers = #tpu.dot_dimension_numbers<[1], [0], [0], [1], [0, 0, 1, 1], [], []>} : vector<8x16xbf16>, vector<16x64xbf16>, vector<8x64xf32> -> vector<8x64xf32>
    %928 = arith.addf %924, %927 : vector<8x64xf32>
    %929 = arith.negf %928 : vector<8x64xf32>
    %930 = math.exp %929 : vector<8x64xf32>
    %cst_338 = arith.constant 1.000000e+00 : f32
    %931 = vector.broadcast %cst_338 : f32 to vector<8x64xf32>
    %932 = arith.addf %931, %930 : vector<8x64xf32>
    %933 = arith.divf %931, %932 : vector<8x64xf32>
    %934 = vector.extract_strided_slice %928 {offsets = [0, 32], sizes = [8, 16], strides = [1, 1]} : vector<8x64xf32> to vector<8x16xf32>
    %935 = math.tanh %934 : vector<8x16xf32>
    %936 = vector.extract_strided_slice %933 {offsets = [0, 0], sizes = [8, 16], strides = [1, 1]} : vector<8x64xf32> to vector<8x16xf32>
    %937 = vector.extract_strided_slice %933 {offsets = [0, 16], sizes = [8, 16], strides = [1, 1]} : vector<8x64xf32> to vector<8x16xf32>
    %938 = vector.extract_strided_slice %933 {offsets = [0, 48], sizes = [8, 16], strides = [1, 1]} : vector<8x64xf32> to vector<8x16xf32>
    %939 = arith.mulf %937, %916 : vector<8x16xf32>
    %940 = arith.mulf %936, %935 : vector<8x16xf32>
    %941 = arith.addf %939, %940 : vector<8x16xf32>
    %942 = math.tanh %941 : vector<8x16xf32>
    %943 = arith.mulf %938, %942 : vector<8x16xf32>
    %944 = arith.index_cast %922 : i32 to index
    %c0_339 = arith.constant 0 : index
    %945 = vector.load %arg24[%944, %c0_339] : memref<64x16xf32, #tpu.memory_space<vmem>>, vector<8x16xf32>
    tpu.vector_store %arg24[%944, %c0_339], %943 {strides = array<i32>} : memref<64x16xf32, #tpu.memory_space<vmem>>, vector<8x16xf32>,
    %c3_i32_340 = arith.constant 3 : i32
    %c8_i32_341 = arith.constant 8 : i32
    %946 = arith.muli %c3_i32_340, %c8_i32_341 : i32
    %947 = tpu.assume_multiple %946, 8 : i32
    %948 = arith.index_cast %947 : i32 to index
    %c0_342 = arith.constant 0 : index
    %949 = vector.load %arg25[%948, %c0_342] : memref<64x64xf32, #tpu.memory_space<vmem>>, vector<8x64xf32>
    %950 = arith.truncf %943 : vector<8x16xf32> to vector<8x16xbf16>
    %c0_343 = arith.constant 0 : index
    %c0_344 = arith.constant 0 : index
    %951 = vector.load %arg18[%c0_343, %c0_344] : memref<16x64xbf16, #tpu.memory_space<vmem>>, vector<16x64xbf16>
    %cst_345 = arith.constant dense<0.000000e+00> : vector<8x64xf32>
    %952 = tpu.matmul %950, %951, %cst_345 {dimension_numbers = #tpu.dot_dimension_numbers<[1], [0], [0], [1], [0, 0, 1, 1], [], []>} : vector<8x16xbf16>, vector<16x64xbf16>, vector<8x64xf32> -> vector<8x64xf32>
    %953 = arith.addf %949, %952 : vector<8x64xf32>
    %954 = arith.negf %953 : vector<8x64xf32>
    %955 = math.exp %954 : vector<8x64xf32>
    %cst_346 = arith.constant 1.000000e+00 : f32
    %956 = vector.broadcast %cst_346 : f32 to vector<8x64xf32>
    %957 = arith.addf %956, %955 : vector<8x64xf32>
    %958 = arith.divf %956, %957 : vector<8x64xf32>
    %959 = vector.extract_strided_slice %953 {offsets = [0, 32], sizes = [8, 16], strides = [1, 1]} : vector<8x64xf32> to vector<8x16xf32>
    %960 = math.tanh %959 : vector<8x16xf32>
    %961 = vector.extract_strided_slice %958 {offsets = [0, 0], sizes = [8, 16], strides = [1, 1]} : vector<8x64xf32> to vector<8x16xf32>
    %962 = vector.extract_strided_slice %958 {offsets = [0, 16], sizes = [8, 16], strides = [1, 1]} : vector<8x64xf32> to vector<8x16xf32>
    %963 = vector.extract_strided_slice %958 {offsets = [0, 48], sizes = [8, 16], strides = [1, 1]} : vector<8x64xf32> to vector<8x16xf32>
    %964 = arith.mulf %962, %941 : vector<8x16xf32>
    %965 = arith.mulf %961, %960 : vector<8x16xf32>
    %966 = arith.addf %964, %965 : vector<8x16xf32>
    %967 = math.tanh %966 : vector<8x16xf32>
    %968 = arith.mulf %963, %967 : vector<8x16xf32>
    %969 = arith.index_cast %947 : i32 to index
    %c0_347 = arith.constant 0 : index
    %970 = vector.load %arg24[%969, %c0_347] : memref<64x16xf32, #tpu.memory_space<vmem>>, vector<8x16xf32>
    tpu.vector_store %arg24[%969, %c0_347], %968 {strides = array<i32>} : memref<64x16xf32, #tpu.memory_space<vmem>>, vector<8x16xf32>,
    %c4_i32_348 = arith.constant 4 : i32
    %c8_i32_349 = arith.constant 8 : i32
    %971 = arith.muli %c4_i32_348, %c8_i32_349 : i32
    %972 = tpu.assume_multiple %971, 8 : i32
    %973 = arith.index_cast %972 : i32 to index
    %c0_350 = arith.constant 0 : index
    %974 = vector.load %arg25[%973, %c0_350] : memref<64x64xf32, #tpu.memory_space<vmem>>, vector<8x64xf32>
    %975 = arith.truncf %968 : vector<8x16xf32> to vector<8x16xbf16>
    %c0_351 = arith.constant 0 : index
    %c0_352 = arith.constant 0 : index
    %976 = vector.load %arg18[%c0_351, %c0_352] : memref<16x64xbf16, #tpu.memory_space<vmem>>, vector<16x64xbf16>
    %cst_353 = arith.constant dense<0.000000e+00> : vector<8x64xf32>
    %977 = tpu.matmul %975, %976, %cst_353 {dimension_numbers = #tpu.dot_dimension_numbers<[1], [0], [0], [1], [0, 0, 1, 1], [], []>} : vector<8x16xbf16>, vector<16x64xbf16>, vector<8x64xf32> -> vector<8x64xf32>
    %978 = arith.addf %974, %977 : vector<8x64xf32>
    %979 = arith.negf %978 : vector<8x64xf32>
    %980 = math.exp %979 : vector<8x64xf32>
    %cst_354 = arith.constant 1.000000e+00 : f32
    %981 = vector.broadcast %cst_354 : f32 to vector<8x64xf32>
    %982 = arith.addf %981, %980 : vector<8x64xf32>
    %983 = arith.divf %981, %982 : vector<8x64xf32>
    %984 = vector.extract_strided_slice %978 {offsets = [0, 32], sizes = [8, 16], strides = [1, 1]} : vector<8x64xf32> to vector<8x16xf32>
    %985 = math.tanh %984 : vector<8x16xf32>
    %986 = vector.extract_strided_slice %983 {offsets = [0, 0], sizes = [8, 16], strides = [1, 1]} : vector<8x64xf32> to vector<8x16xf32>
    %987 = vector.extract_strided_slice %983 {offsets = [0, 16], sizes = [8, 16], strides = [1, 1]} : vector<8x64xf32> to vector<8x16xf32>
    %988 = vector.extract_strided_slice %983 {offsets = [0, 48], sizes = [8, 16], strides = [1, 1]} : vector<8x64xf32> to vector<8x16xf32>
    %989 = arith.mulf %987, %966 : vector<8x16xf32>
    %990 = arith.mulf %986, %985 : vector<8x16xf32>
    %991 = arith.addf %989, %990 : vector<8x16xf32>
    %992 = math.tanh %991 : vector<8x16xf32>
    %993 = arith.mulf %988, %992 : vector<8x16xf32>
    %994 = arith.index_cast %972 : i32 to index
    %c0_355 = arith.constant 0 : index
    %995 = vector.load %arg24[%994, %c0_355] : memref<64x16xf32, #tpu.memory_space<vmem>>, vector<8x16xf32>
    tpu.vector_store %arg24[%994, %c0_355], %993 {strides = array<i32>} : memref<64x16xf32, #tpu.memory_space<vmem>>, vector<8x16xf32>,
    %c5_i32_356 = arith.constant 5 : i32
    %c8_i32_357 = arith.constant 8 : i32
    %996 = arith.muli %c5_i32_356, %c8_i32_357 : i32
    %997 = tpu.assume_multiple %996, 8 : i32
    %998 = arith.index_cast %997 : i32 to index
    %c0_358 = arith.constant 0 : index
    %999 = vector.load %arg25[%998, %c0_358] : memref<64x64xf32, #tpu.memory_space<vmem>>, vector<8x64xf32>
    %1000 = arith.truncf %993 : vector<8x16xf32> to vector<8x16xbf16>
    %c0_359 = arith.constant 0 : index
    %c0_360 = arith.constant 0 : index
    %1001 = vector.load %arg18[%c0_359, %c0_360] : memref<16x64xbf16, #tpu.memory_space<vmem>>, vector<16x64xbf16>
    %cst_361 = arith.constant dense<0.000000e+00> : vector<8x64xf32>
    %1002 = tpu.matmul %1000, %1001, %cst_361 {dimension_numbers = #tpu.dot_dimension_numbers<[1], [0], [0], [1], [0, 0, 1, 1], [], []>} : vector<8x16xbf16>, vector<16x64xbf16>, vector<8x64xf32> -> vector<8x64xf32>
    %1003 = arith.addf %999, %1002 : vector<8x64xf32>
    %1004 = arith.negf %1003 : vector<8x64xf32>
    %1005 = math.exp %1004 : vector<8x64xf32>
    %cst_362 = arith.constant 1.000000e+00 : f32
    %1006 = vector.broadcast %cst_362 : f32 to vector<8x64xf32>
    %1007 = arith.addf %1006, %1005 : vector<8x64xf32>
    %1008 = arith.divf %1006, %1007 : vector<8x64xf32>
    %1009 = vector.extract_strided_slice %1003 {offsets = [0, 32], sizes = [8, 16], strides = [1, 1]} : vector<8x64xf32> to vector<8x16xf32>
    %1010 = math.tanh %1009 : vector<8x16xf32>
    %1011 = vector.extract_strided_slice %1008 {offsets = [0, 0], sizes = [8, 16], strides = [1, 1]} : vector<8x64xf32> to vector<8x16xf32>
    %1012 = vector.extract_strided_slice %1008 {offsets = [0, 16], sizes = [8, 16], strides = [1, 1]} : vector<8x64xf32> to vector<8x16xf32>
    %1013 = vector.extract_strided_slice %1008 {offsets = [0, 48], sizes = [8, 16], strides = [1, 1]} : vector<8x64xf32> to vector<8x16xf32>
    %1014 = arith.mulf %1012, %991 : vector<8x16xf32>
    %1015 = arith.mulf %1011, %1010 : vector<8x16xf32>
    %1016 = arith.addf %1014, %1015 : vector<8x16xf32>
    %1017 = math.tanh %1016 : vector<8x16xf32>
    %1018 = arith.mulf %1013, %1017 : vector<8x16xf32>
    %1019 = arith.index_cast %997 : i32 to index
    %c0_363 = arith.constant 0 : index
    %1020 = vector.load %arg24[%1019, %c0_363] : memref<64x16xf32, #tpu.memory_space<vmem>>, vector<8x16xf32>
    tpu.vector_store %arg24[%1019, %c0_363], %1018 {strides = array<i32>} : memref<64x16xf32, #tpu.memory_space<vmem>>, vector<8x16xf32>,
    %c6_i32_364 = arith.constant 6 : i32
    %c8_i32_365 = arith.constant 8 : i32
    %1021 = arith.muli %c6_i32_364, %c8_i32_365 : i32
    %1022 = tpu.assume_multiple %1021, 8 : i32
    %1023 = arith.index_cast %1022 : i32 to index
    %c0_366 = arith.constant 0 : index
    %1024 = vector.load %arg25[%1023, %c0_366] : memref<64x64xf32, #tpu.memory_space<vmem>>, vector<8x64xf32>
    %1025 = arith.truncf %1018 : vector<8x16xf32> to vector<8x16xbf16>
    %c0_367 = arith.constant 0 : index
    %c0_368 = arith.constant 0 : index
    %1026 = vector.load %arg18[%c0_367, %c0_368] : memref<16x64xbf16, #tpu.memory_space<vmem>>, vector<16x64xbf16>
    %cst_369 = arith.constant dense<0.000000e+00> : vector<8x64xf32>
    %1027 = tpu.matmul %1025, %1026, %cst_369 {dimension_numbers = #tpu.dot_dimension_numbers<[1], [0], [0], [1], [0, 0, 1, 1], [], []>} : vector<8x16xbf16>, vector<16x64xbf16>, vector<8x64xf32> -> vector<8x64xf32>
    %1028 = arith.addf %1024, %1027 : vector<8x64xf32>
    %1029 = arith.negf %1028 : vector<8x64xf32>
    %1030 = math.exp %1029 : vector<8x64xf32>
    %cst_370 = arith.constant 1.000000e+00 : f32
    %1031 = vector.broadcast %cst_370 : f32 to vector<8x64xf32>
    %1032 = arith.addf %1031, %1030 : vector<8x64xf32>
    %1033 = arith.divf %1031, %1032 : vector<8x64xf32>
    %1034 = vector.extract_strided_slice %1028 {offsets = [0, 32], sizes = [8, 16], strides = [1, 1]} : vector<8x64xf32> to vector<8x16xf32>
    %1035 = math.tanh %1034 : vector<8x16xf32>
    %1036 = vector.extract_strided_slice %1033 {offsets = [0, 0], sizes = [8, 16], strides = [1, 1]} : vector<8x64xf32> to vector<8x16xf32>
    %1037 = vector.extract_strided_slice %1033 {offsets = [0, 16], sizes = [8, 16], strides = [1, 1]} : vector<8x64xf32> to vector<8x16xf32>
    %1038 = vector.extract_strided_slice %1033 {offsets = [0, 48], sizes = [8, 16], strides = [1, 1]} : vector<8x64xf32> to vector<8x16xf32>
    %1039 = arith.mulf %1037, %1016 : vector<8x16xf32>
    %1040 = arith.mulf %1036, %1035 : vector<8x16xf32>
    %1041 = arith.addf %1039, %1040 : vector<8x16xf32>
    %1042 = math.tanh %1041 : vector<8x16xf32>
    %1043 = arith.mulf %1038, %1042 : vector<8x16xf32>
    %1044 = arith.index_cast %1022 : i32 to index
    %c0_371 = arith.constant 0 : index
    %1045 = vector.load %arg24[%1044, %c0_371] : memref<64x16xf32, #tpu.memory_space<vmem>>, vector<8x16xf32>
    tpu.vector_store %arg24[%1044, %c0_371], %1043 {strides = array<i32>} : memref<64x16xf32, #tpu.memory_space<vmem>>, vector<8x16xf32>,
    %c7_i32_372 = arith.constant 7 : i32
    %c8_i32_373 = arith.constant 8 : i32
    %1046 = arith.muli %c7_i32_372, %c8_i32_373 : i32
    %1047 = tpu.assume_multiple %1046, 8 : i32
    %1048 = arith.index_cast %1047 : i32 to index
    %c0_374 = arith.constant 0 : index
    %1049 = vector.load %arg25[%1048, %c0_374] : memref<64x64xf32, #tpu.memory_space<vmem>>, vector<8x64xf32>
    %1050 = arith.truncf %1043 : vector<8x16xf32> to vector<8x16xbf16>
    %c0_375 = arith.constant 0 : index
    %c0_376 = arith.constant 0 : index
    %1051 = vector.load %arg18[%c0_375, %c0_376] : memref<16x64xbf16, #tpu.memory_space<vmem>>, vector<16x64xbf16>
    %cst_377 = arith.constant dense<0.000000e+00> : vector<8x64xf32>
    %1052 = tpu.matmul %1050, %1051, %cst_377 {dimension_numbers = #tpu.dot_dimension_numbers<[1], [0], [0], [1], [0, 0, 1, 1], [], []>} : vector<8x16xbf16>, vector<16x64xbf16>, vector<8x64xf32> -> vector<8x64xf32>
    %1053 = arith.addf %1049, %1052 : vector<8x64xf32>
    %1054 = arith.negf %1053 : vector<8x64xf32>
    %1055 = math.exp %1054 : vector<8x64xf32>
    %cst_378 = arith.constant 1.000000e+00 : f32
    %1056 = vector.broadcast %cst_378 : f32 to vector<8x64xf32>
    %1057 = arith.addf %1056, %1055 : vector<8x64xf32>
    %1058 = arith.divf %1056, %1057 : vector<8x64xf32>
    %1059 = vector.extract_strided_slice %1053 {offsets = [0, 32], sizes = [8, 16], strides = [1, 1]} : vector<8x64xf32> to vector<8x16xf32>
    %1060 = math.tanh %1059 : vector<8x16xf32>
    %1061 = vector.extract_strided_slice %1058 {offsets = [0, 0], sizes = [8, 16], strides = [1, 1]} : vector<8x64xf32> to vector<8x16xf32>
    %1062 = vector.extract_strided_slice %1058 {offsets = [0, 16], sizes = [8, 16], strides = [1, 1]} : vector<8x64xf32> to vector<8x16xf32>
    %1063 = vector.extract_strided_slice %1058 {offsets = [0, 48], sizes = [8, 16], strides = [1, 1]} : vector<8x64xf32> to vector<8x16xf32>
    %1064 = arith.mulf %1062, %1041 : vector<8x16xf32>
    %1065 = arith.mulf %1061, %1060 : vector<8x16xf32>
    %1066 = arith.addf %1064, %1065 : vector<8x16xf32>
    %1067 = math.tanh %1066 : vector<8x16xf32>
    %1068 = arith.mulf %1063, %1067 : vector<8x16xf32>
    %1069 = arith.index_cast %1047 : i32 to index
    %c0_379 = arith.constant 0 : index
    %1070 = vector.load %arg24[%1069, %c0_379] : memref<64x16xf32, #tpu.memory_space<vmem>>, vector<8x16xf32>
    tpu.vector_store %arg24[%1069, %c0_379], %1068 {strides = array<i32>} : memref<64x16xf32, #tpu.memory_space<vmem>>, vector<8x16xf32>,
    %c8_i32_380 = arith.constant 8 : i32
    %c0_381 = arith.constant 0 : index
    %c0_382 = arith.constant 0 : index
    %1071 = vector.load %arg24[%c0_381, %c0_382] : memref<64x16xf32, #tpu.memory_space<vmem>>, vector<64x16xf32>
    %1072 = arith.truncf %1071 : vector<64x16xf32> to vector<64x16xbf16>
    %c0_383 = arith.constant 0 : index
    %c0_384 = arith.constant 0 : index
    %1073 = vector.load %arg20[%c0_383, %c0_384] : memref<16x64xbf16, #tpu.memory_space<vmem>>, vector<16x64xbf16>
    %cst_385 = arith.constant dense<0.000000e+00> : vector<64x64xf32>
    %1074 = tpu.matmul %1072, %1073, %cst_385 {dimension_numbers = #tpu.dot_dimension_numbers<[1], [0], [0], [1], [0, 0, 1, 1], [], []>} : vector<64x16xbf16>, vector<16x64xbf16>, vector<64x64xf32> -> vector<64x64xf32>
    %c0_386 = arith.constant 0 : index
    %c0_387 = arith.constant 0 : index
    %1075 = vector.load %arg22[%c0_386, %c0_387] : memref<1x64xf32, #tpu.memory_space<vmem>>, vector<1x64xf32>
    %1076 = vector.broadcast %1075 : vector<1x64xf32> to vector<64x64xf32>
    %1077 = arith.addf %1074, %1076 : vector<64x64xf32>
    %c0_388 = arith.constant 0 : index
    %c0_389 = arith.constant 0 : index
    %1078 = vector.load %arg25[%c0_388, %c0_389] : memref<64x64xf32, #tpu.memory_space<vmem>>, vector<64x64xf32>
    tpu.vector_store %arg25[%c0_388, %c0_389], %1077 {strides = array<i32>} : memref<64x64xf32, #tpu.memory_space<vmem>>, vector<64x64xf32>,
    %cst_390 = arith.constant 0.000000e+00 : f32
    %1079 = vector.broadcast %cst_390 : f32 to vector<8x16xf32>
    %cst_391 = arith.constant 0.000000e+00 : f32
    %1080 = vector.broadcast %cst_391 : f32 to vector<8x16xf32>
    %c0_i32_392 = arith.constant 0 : i32
    %c8_i32_393 = arith.constant 8 : i32
    %1081 = arith.muli %c0_i32_392, %c8_i32_393 : i32
    %1082 = tpu.assume_multiple %1081, 8 : i32
    %1083 = arith.index_cast %1082 : i32 to index
    %c0_394 = arith.constant 0 : index
    %1084 = vector.load %arg25[%1083, %c0_394] : memref<64x64xf32, #tpu.memory_space<vmem>>, vector<8x64xf32>
    %1085 = arith.truncf %1079 : vector<8x16xf32> to vector<8x16xbf16>
    %c0_395 = arith.constant 0 : index
    %c0_396 = arith.constant 0 : index
    %1086 = vector.load %arg21[%c0_395, %c0_396] : memref<16x64xbf16, #tpu.memory_space<vmem>>, vector<16x64xbf16>
    %cst_397 = arith.constant dense<0.000000e+00> : vector<8x64xf32>
    %1087 = tpu.matmul %1085, %1086, %cst_397 {dimension_numbers = #tpu.dot_dimension_numbers<[1], [0], [0], [1], [0, 0, 1, 1], [], []>} : vector<8x16xbf16>, vector<16x64xbf16>, vector<8x64xf32> -> vector<8x64xf32>
    %1088 = arith.addf %1084, %1087 : vector<8x64xf32>
    %1089 = arith.negf %1088 : vector<8x64xf32>
    %1090 = math.exp %1089 : vector<8x64xf32>
    %cst_398 = arith.constant 1.000000e+00 : f32
    %1091 = vector.broadcast %cst_398 : f32 to vector<8x64xf32>
    %1092 = arith.addf %1091, %1090 : vector<8x64xf32>
    %1093 = arith.divf %1091, %1092 : vector<8x64xf32>
    %1094 = vector.extract_strided_slice %1088 {offsets = [0, 32], sizes = [8, 16], strides = [1, 1]} : vector<8x64xf32> to vector<8x16xf32>
    %1095 = math.tanh %1094 : vector<8x16xf32>
    %1096 = vector.extract_strided_slice %1093 {offsets = [0, 0], sizes = [8, 16], strides = [1, 1]} : vector<8x64xf32> to vector<8x16xf32>
    %1097 = vector.extract_strided_slice %1093 {offsets = [0, 16], sizes = [8, 16], strides = [1, 1]} : vector<8x64xf32> to vector<8x16xf32>
    %1098 = vector.extract_strided_slice %1093 {offsets = [0, 48], sizes = [8, 16], strides = [1, 1]} : vector<8x64xf32> to vector<8x16xf32>
    %1099 = arith.mulf %1097, %1080 : vector<8x16xf32>
    %1100 = arith.mulf %1096, %1095 : vector<8x16xf32>
    %1101 = arith.addf %1099, %1100 : vector<8x16xf32>
    %1102 = math.tanh %1101 : vector<8x16xf32>
    %1103 = arith.mulf %1098, %1102 : vector<8x16xf32>
    %1104 = arith.index_cast %1082 : i32 to index
    %c0_399 = arith.constant 0 : index
    %1105 = vector.load %arg23[%1104, %c0_399] : memref<64x16xf32, #tpu.memory_space<vmem>>, vector<8x16xf32>
    tpu.vector_store %arg23[%1104, %c0_399], %1103 {strides = array<i32>} : memref<64x16xf32, #tpu.memory_space<vmem>>, vector<8x16xf32>,
    %c1_i32_400 = arith.constant 1 : i32
    %c8_i32_401 = arith.constant 8 : i32
    %1106 = arith.muli %c1_i32_400, %c8_i32_401 : i32
    %1107 = tpu.assume_multiple %1106, 8 : i32
    %1108 = arith.index_cast %1107 : i32 to index
    %c0_402 = arith.constant 0 : index
    %1109 = vector.load %arg25[%1108, %c0_402] : memref<64x64xf32, #tpu.memory_space<vmem>>, vector<8x64xf32>
    %1110 = arith.truncf %1103 : vector<8x16xf32> to vector<8x16xbf16>
    %c0_403 = arith.constant 0 : index
    %c0_404 = arith.constant 0 : index
    %1111 = vector.load %arg21[%c0_403, %c0_404] : memref<16x64xbf16, #tpu.memory_space<vmem>>, vector<16x64xbf16>
    %cst_405 = arith.constant dense<0.000000e+00> : vector<8x64xf32>
    %1112 = tpu.matmul %1110, %1111, %cst_405 {dimension_numbers = #tpu.dot_dimension_numbers<[1], [0], [0], [1], [0, 0, 1, 1], [], []>} : vector<8x16xbf16>, vector<16x64xbf16>, vector<8x64xf32> -> vector<8x64xf32>
    %1113 = arith.addf %1109, %1112 : vector<8x64xf32>
    %1114 = arith.negf %1113 : vector<8x64xf32>
    %1115 = math.exp %1114 : vector<8x64xf32>
    %cst_406 = arith.constant 1.000000e+00 : f32
    %1116 = vector.broadcast %cst_406 : f32 to vector<8x64xf32>
    %1117 = arith.addf %1116, %1115 : vector<8x64xf32>
    %1118 = arith.divf %1116, %1117 : vector<8x64xf32>
    %1119 = vector.extract_strided_slice %1113 {offsets = [0, 32], sizes = [8, 16], strides = [1, 1]} : vector<8x64xf32> to vector<8x16xf32>
    %1120 = math.tanh %1119 : vector<8x16xf32>
    %1121 = vector.extract_strided_slice %1118 {offsets = [0, 0], sizes = [8, 16], strides = [1, 1]} : vector<8x64xf32> to vector<8x16xf32>
    %1122 = vector.extract_strided_slice %1118 {offsets = [0, 16], sizes = [8, 16], strides = [1, 1]} : vector<8x64xf32> to vector<8x16xf32>
    %1123 = vector.extract_strided_slice %1118 {offsets = [0, 48], sizes = [8, 16], strides = [1, 1]} : vector<8x64xf32> to vector<8x16xf32>
    %1124 = arith.mulf %1122, %1101 : vector<8x16xf32>
    %1125 = arith.mulf %1121, %1120 : vector<8x16xf32>
    %1126 = arith.addf %1124, %1125 : vector<8x16xf32>
    %1127 = math.tanh %1126 : vector<8x16xf32>
    %1128 = arith.mulf %1123, %1127 : vector<8x16xf32>
    %1129 = arith.index_cast %1107 : i32 to index
    %c0_407 = arith.constant 0 : index
    %1130 = vector.load %arg23[%1129, %c0_407] : memref<64x16xf32, #tpu.memory_space<vmem>>, vector<8x16xf32>
    tpu.vector_store %arg23[%1129, %c0_407], %1128 {strides = array<i32>} : memref<64x16xf32, #tpu.memory_space<vmem>>, vector<8x16xf32>,
    %c2_i32_408 = arith.constant 2 : i32
    %c8_i32_409 = arith.constant 8 : i32
    %1131 = arith.muli %c2_i32_408, %c8_i32_409 : i32
    %1132 = tpu.assume_multiple %1131, 8 : i32
    %1133 = arith.index_cast %1132 : i32 to index
    %c0_410 = arith.constant 0 : index
    %1134 = vector.load %arg25[%1133, %c0_410] : memref<64x64xf32, #tpu.memory_space<vmem>>, vector<8x64xf32>
    %1135 = arith.truncf %1128 : vector<8x16xf32> to vector<8x16xbf16>
    %c0_411 = arith.constant 0 : index
    %c0_412 = arith.constant 0 : index
    %1136 = vector.load %arg21[%c0_411, %c0_412] : memref<16x64xbf16, #tpu.memory_space<vmem>>, vector<16x64xbf16>
    %cst_413 = arith.constant dense<0.000000e+00> : vector<8x64xf32>
    %1137 = tpu.matmul %1135, %1136, %cst_413 {dimension_numbers = #tpu.dot_dimension_numbers<[1], [0], [0], [1], [0, 0, 1, 1], [], []>} : vector<8x16xbf16>, vector<16x64xbf16>, vector<8x64xf32> -> vector<8x64xf32>
    %1138 = arith.addf %1134, %1137 : vector<8x64xf32>
    %1139 = arith.negf %1138 : vector<8x64xf32>
    %1140 = math.exp %1139 : vector<8x64xf32>
    %cst_414 = arith.constant 1.000000e+00 : f32
    %1141 = vector.broadcast %cst_414 : f32 to vector<8x64xf32>
    %1142 = arith.addf %1141, %1140 : vector<8x64xf32>
    %1143 = arith.divf %1141, %1142 : vector<8x64xf32>
    %1144 = vector.extract_strided_slice %1138 {offsets = [0, 32], sizes = [8, 16], strides = [1, 1]} : vector<8x64xf32> to vector<8x16xf32>
    %1145 = math.tanh %1144 : vector<8x16xf32>
    %1146 = vector.extract_strided_slice %1143 {offsets = [0, 0], sizes = [8, 16], strides = [1, 1]} : vector<8x64xf32> to vector<8x16xf32>
    %1147 = vector.extract_strided_slice %1143 {offsets = [0, 16], sizes = [8, 16], strides = [1, 1]} : vector<8x64xf32> to vector<8x16xf32>
    %1148 = vector.extract_strided_slice %1143 {offsets = [0, 48], sizes = [8, 16], strides = [1, 1]} : vector<8x64xf32> to vector<8x16xf32>
    %1149 = arith.mulf %1147, %1126 : vector<8x16xf32>
    %1150 = arith.mulf %1146, %1145 : vector<8x16xf32>
    %1151 = arith.addf %1149, %1150 : vector<8x16xf32>
    %1152 = math.tanh %1151 : vector<8x16xf32>
    %1153 = arith.mulf %1148, %1152 : vector<8x16xf32>
    %1154 = arith.index_cast %1132 : i32 to index
    %c0_415 = arith.constant 0 : index
    %1155 = vector.load %arg23[%1154, %c0_415] : memref<64x16xf32, #tpu.memory_space<vmem>>, vector<8x16xf32>
    tpu.vector_store %arg23[%1154, %c0_415], %1153 {strides = array<i32>} : memref<64x16xf32, #tpu.memory_space<vmem>>, vector<8x16xf32>,
    %c3_i32_416 = arith.constant 3 : i32
    %c8_i32_417 = arith.constant 8 : i32
    %1156 = arith.muli %c3_i32_416, %c8_i32_417 : i32
    %1157 = tpu.assume_multiple %1156, 8 : i32
    %1158 = arith.index_cast %1157 : i32 to index
    %c0_418 = arith.constant 0 : index
    %1159 = vector.load %arg25[%1158, %c0_418] : memref<64x64xf32, #tpu.memory_space<vmem>>, vector<8x64xf32>
    %1160 = arith.truncf %1153 : vector<8x16xf32> to vector<8x16xbf16>
    %c0_419 = arith.constant 0 : index
    %c0_420 = arith.constant 0 : index
    %1161 = vector.load %arg21[%c0_419, %c0_420] : memref<16x64xbf16, #tpu.memory_space<vmem>>, vector<16x64xbf16>
    %cst_421 = arith.constant dense<0.000000e+00> : vector<8x64xf32>
    %1162 = tpu.matmul %1160, %1161, %cst_421 {dimension_numbers = #tpu.dot_dimension_numbers<[1], [0], [0], [1], [0, 0, 1, 1], [], []>} : vector<8x16xbf16>, vector<16x64xbf16>, vector<8x64xf32> -> vector<8x64xf32>
    %1163 = arith.addf %1159, %1162 : vector<8x64xf32>
    %1164 = arith.negf %1163 : vector<8x64xf32>
    %1165 = math.exp %1164 : vector<8x64xf32>
    %cst_422 = arith.constant 1.000000e+00 : f32
    %1166 = vector.broadcast %cst_422 : f32 to vector<8x64xf32>
    %1167 = arith.addf %1166, %1165 : vector<8x64xf32>
    %1168 = arith.divf %1166, %1167 : vector<8x64xf32>
    %1169 = vector.extract_strided_slice %1163 {offsets = [0, 32], sizes = [8, 16], strides = [1, 1]} : vector<8x64xf32> to vector<8x16xf32>
    %1170 = math.tanh %1169 : vector<8x16xf32>
    %1171 = vector.extract_strided_slice %1168 {offsets = [0, 0], sizes = [8, 16], strides = [1, 1]} : vector<8x64xf32> to vector<8x16xf32>
    %1172 = vector.extract_strided_slice %1168 {offsets = [0, 16], sizes = [8, 16], strides = [1, 1]} : vector<8x64xf32> to vector<8x16xf32>
    %1173 = vector.extract_strided_slice %1168 {offsets = [0, 48], sizes = [8, 16], strides = [1, 1]} : vector<8x64xf32> to vector<8x16xf32>
    %1174 = arith.mulf %1172, %1151 : vector<8x16xf32>
    %1175 = arith.mulf %1171, %1170 : vector<8x16xf32>
    %1176 = arith.addf %1174, %1175 : vector<8x16xf32>
    %1177 = math.tanh %1176 : vector<8x16xf32>
    %1178 = arith.mulf %1173, %1177 : vector<8x16xf32>
    %1179 = arith.index_cast %1157 : i32 to index
    %c0_423 = arith.constant 0 : index
    %1180 = vector.load %arg23[%1179, %c0_423] : memref<64x16xf32, #tpu.memory_space<vmem>>, vector<8x16xf32>
    tpu.vector_store %arg23[%1179, %c0_423], %1178 {strides = array<i32>} : memref<64x16xf32, #tpu.memory_space<vmem>>, vector<8x16xf32>,
    %c4_i32_424 = arith.constant 4 : i32
    %c8_i32_425 = arith.constant 8 : i32
    %1181 = arith.muli %c4_i32_424, %c8_i32_425 : i32
    %1182 = tpu.assume_multiple %1181, 8 : i32
    %1183 = arith.index_cast %1182 : i32 to index
    %c0_426 = arith.constant 0 : index
    %1184 = vector.load %arg25[%1183, %c0_426] : memref<64x64xf32, #tpu.memory_space<vmem>>, vector<8x64xf32>
    %1185 = arith.truncf %1178 : vector<8x16xf32> to vector<8x16xbf16>
    %c0_427 = arith.constant 0 : index
    %c0_428 = arith.constant 0 : index
    %1186 = vector.load %arg21[%c0_427, %c0_428] : memref<16x64xbf16, #tpu.memory_space<vmem>>, vector<16x64xbf16>
    %cst_429 = arith.constant dense<0.000000e+00> : vector<8x64xf32>
    %1187 = tpu.matmul %1185, %1186, %cst_429 {dimension_numbers = #tpu.dot_dimension_numbers<[1], [0], [0], [1], [0, 0, 1, 1], [], []>} : vector<8x16xbf16>, vector<16x64xbf16>, vector<8x64xf32> -> vector<8x64xf32>
    %1188 = arith.addf %1184, %1187 : vector<8x64xf32>
    %1189 = arith.negf %1188 : vector<8x64xf32>
    %1190 = math.exp %1189 : vector<8x64xf32>
    %cst_430 = arith.constant 1.000000e+00 : f32
    %1191 = vector.broadcast %cst_430 : f32 to vector<8x64xf32>
    %1192 = arith.addf %1191, %1190 : vector<8x64xf32>
    %1193 = arith.divf %1191, %1192 : vector<8x64xf32>
    %1194 = vector.extract_strided_slice %1188 {offsets = [0, 32], sizes = [8, 16], strides = [1, 1]} : vector<8x64xf32> to vector<8x16xf32>
    %1195 = math.tanh %1194 : vector<8x16xf32>
    %1196 = vector.extract_strided_slice %1193 {offsets = [0, 0], sizes = [8, 16], strides = [1, 1]} : vector<8x64xf32> to vector<8x16xf32>
    %1197 = vector.extract_strided_slice %1193 {offsets = [0, 16], sizes = [8, 16], strides = [1, 1]} : vector<8x64xf32> to vector<8x16xf32>
    %1198 = vector.extract_strided_slice %1193 {offsets = [0, 48], sizes = [8, 16], strides = [1, 1]} : vector<8x64xf32> to vector<8x16xf32>
    %1199 = arith.mulf %1197, %1176 : vector<8x16xf32>
    %1200 = arith.mulf %1196, %1195 : vector<8x16xf32>
    %1201 = arith.addf %1199, %1200 : vector<8x16xf32>
    %1202 = math.tanh %1201 : vector<8x16xf32>
    %1203 = arith.mulf %1198, %1202 : vector<8x16xf32>
    %1204 = arith.index_cast %1182 : i32 to index
    %c0_431 = arith.constant 0 : index
    %1205 = vector.load %arg23[%1204, %c0_431] : memref<64x16xf32, #tpu.memory_space<vmem>>, vector<8x16xf32>
    tpu.vector_store %arg23[%1204, %c0_431], %1203 {strides = array<i32>} : memref<64x16xf32, #tpu.memory_space<vmem>>, vector<8x16xf32>,
    %c5_i32_432 = arith.constant 5 : i32
    %c8_i32_433 = arith.constant 8 : i32
    %1206 = arith.muli %c5_i32_432, %c8_i32_433 : i32
    %1207 = tpu.assume_multiple %1206, 8 : i32
    %1208 = arith.index_cast %1207 : i32 to index
    %c0_434 = arith.constant 0 : index
    %1209 = vector.load %arg25[%1208, %c0_434] : memref<64x64xf32, #tpu.memory_space<vmem>>, vector<8x64xf32>
    %1210 = arith.truncf %1203 : vector<8x16xf32> to vector<8x16xbf16>
    %c0_435 = arith.constant 0 : index
    %c0_436 = arith.constant 0 : index
    %1211 = vector.load %arg21[%c0_435, %c0_436] : memref<16x64xbf16, #tpu.memory_space<vmem>>, vector<16x64xbf16>
    %cst_437 = arith.constant dense<0.000000e+00> : vector<8x64xf32>
    %1212 = tpu.matmul %1210, %1211, %cst_437 {dimension_numbers = #tpu.dot_dimension_numbers<[1], [0], [0], [1], [0, 0, 1, 1], [], []>} : vector<8x16xbf16>, vector<16x64xbf16>, vector<8x64xf32> -> vector<8x64xf32>
    %1213 = arith.addf %1209, %1212 : vector<8x64xf32>
    %1214 = arith.negf %1213 : vector<8x64xf32>
    %1215 = math.exp %1214 : vector<8x64xf32>
    %cst_438 = arith.constant 1.000000e+00 : f32
    %1216 = vector.broadcast %cst_438 : f32 to vector<8x64xf32>
    %1217 = arith.addf %1216, %1215 : vector<8x64xf32>
    %1218 = arith.divf %1216, %1217 : vector<8x64xf32>
    %1219 = vector.extract_strided_slice %1213 {offsets = [0, 32], sizes = [8, 16], strides = [1, 1]} : vector<8x64xf32> to vector<8x16xf32>
    %1220 = math.tanh %1219 : vector<8x16xf32>
    %1221 = vector.extract_strided_slice %1218 {offsets = [0, 0], sizes = [8, 16], strides = [1, 1]} : vector<8x64xf32> to vector<8x16xf32>
    %1222 = vector.extract_strided_slice %1218 {offsets = [0, 16], sizes = [8, 16], strides = [1, 1]} : vector<8x64xf32> to vector<8x16xf32>
    %1223 = vector.extract_strided_slice %1218 {offsets = [0, 48], sizes = [8, 16], strides = [1, 1]} : vector<8x64xf32> to vector<8x16xf32>
    %1224 = arith.mulf %1222, %1201 : vector<8x16xf32>
    %1225 = arith.mulf %1221, %1220 : vector<8x16xf32>
    %1226 = arith.addf %1224, %1225 : vector<8x16xf32>
    %1227 = math.tanh %1226 : vector<8x16xf32>
    %1228 = arith.mulf %1223, %1227 : vector<8x16xf32>
    %1229 = arith.index_cast %1207 : i32 to index
    %c0_439 = arith.constant 0 : index
    %1230 = vector.load %arg23[%1229, %c0_439] : memref<64x16xf32, #tpu.memory_space<vmem>>, vector<8x16xf32>
    tpu.vector_store %arg23[%1229, %c0_439], %1228 {strides = array<i32>} : memref<64x16xf32, #tpu.memory_space<vmem>>, vector<8x16xf32>,
    %c6_i32_440 = arith.constant 6 : i32
    %c8_i32_441 = arith.constant 8 : i32
    %1231 = arith.muli %c6_i32_440, %c8_i32_441 : i32
    %1232 = tpu.assume_multiple %1231, 8 : i32
    %1233 = arith.index_cast %1232 : i32 to index
    %c0_442 = arith.constant 0 : index
    %1234 = vector.load %arg25[%1233, %c0_442] : memref<64x64xf32, #tpu.memory_space<vmem>>, vector<8x64xf32>
    %1235 = arith.truncf %1228 : vector<8x16xf32> to vector<8x16xbf16>
    %c0_443 = arith.constant 0 : index
    %c0_444 = arith.constant 0 : index
    %1236 = vector.load %arg21[%c0_443, %c0_444] : memref<16x64xbf16, #tpu.memory_space<vmem>>, vector<16x64xbf16>
    %cst_445 = arith.constant dense<0.000000e+00> : vector<8x64xf32>
    %1237 = tpu.matmul %1235, %1236, %cst_445 {dimension_numbers = #tpu.dot_dimension_numbers<[1], [0], [0], [1], [0, 0, 1, 1], [], []>} : vector<8x16xbf16>, vector<16x64xbf16>, vector<8x64xf32> -> vector<8x64xf32>
    %1238 = arith.addf %1234, %1237 : vector<8x64xf32>
    %1239 = arith.negf %1238 : vector<8x64xf32>
    %1240 = math.exp %1239 : vector<8x64xf32>
    %cst_446 = arith.constant 1.000000e+00 : f32
    %1241 = vector.broadcast %cst_446 : f32 to vector<8x64xf32>
    %1242 = arith.addf %1241, %1240 : vector<8x64xf32>
    %1243 = arith.divf %1241, %1242 : vector<8x64xf32>
    %1244 = vector.extract_strided_slice %1238 {offsets = [0, 32], sizes = [8, 16], strides = [1, 1]} : vector<8x64xf32> to vector<8x16xf32>
    %1245 = math.tanh %1244 : vector<8x16xf32>
    %1246 = vector.extract_strided_slice %1243 {offsets = [0, 0], sizes = [8, 16], strides = [1, 1]} : vector<8x64xf32> to vector<8x16xf32>
    %1247 = vector.extract_strided_slice %1243 {offsets = [0, 16], sizes = [8, 16], strides = [1, 1]} : vector<8x64xf32> to vector<8x16xf32>
    %1248 = vector.extract_strided_slice %1243 {offsets = [0, 48], sizes = [8, 16], strides = [1, 1]} : vector<8x64xf32> to vector<8x16xf32>
    %1249 = arith.mulf %1247, %1226 : vector<8x16xf32>
    %1250 = arith.mulf %1246, %1245 : vector<8x16xf32>
    %1251 = arith.addf %1249, %1250 : vector<8x16xf32>
    %1252 = math.tanh %1251 : vector<8x16xf32>
    %1253 = arith.mulf %1248, %1252 : vector<8x16xf32>
    %1254 = arith.index_cast %1232 : i32 to index
    %c0_447 = arith.constant 0 : index
    %1255 = vector.load %arg23[%1254, %c0_447] : memref<64x16xf32, #tpu.memory_space<vmem>>, vector<8x16xf32>
    tpu.vector_store %arg23[%1254, %c0_447], %1253 {strides = array<i32>} : memref<64x16xf32, #tpu.memory_space<vmem>>, vector<8x16xf32>,
    %c7_i32_448 = arith.constant 7 : i32
    %c8_i32_449 = arith.constant 8 : i32
    %1256 = arith.muli %c7_i32_448, %c8_i32_449 : i32
    %1257 = tpu.assume_multiple %1256, 8 : i32
    %1258 = arith.index_cast %1257 : i32 to index
    %c0_450 = arith.constant 0 : index
    %1259 = vector.load %arg25[%1258, %c0_450] : memref<64x64xf32, #tpu.memory_space<vmem>>, vector<8x64xf32>
    %1260 = arith.truncf %1253 : vector<8x16xf32> to vector<8x16xbf16>
    %c0_451 = arith.constant 0 : index
    %c0_452 = arith.constant 0 : index
    %1261 = vector.load %arg21[%c0_451, %c0_452] : memref<16x64xbf16, #tpu.memory_space<vmem>>, vector<16x64xbf16>
    %cst_453 = arith.constant dense<0.000000e+00> : vector<8x64xf32>
    %1262 = tpu.matmul %1260, %1261, %cst_453 {dimension_numbers = #tpu.dot_dimension_numbers<[1], [0], [0], [1], [0, 0, 1, 1], [], []>} : vector<8x16xbf16>, vector<16x64xbf16>, vector<8x64xf32> -> vector<8x64xf32>
    %1263 = arith.addf %1259, %1262 : vector<8x64xf32>
    %1264 = arith.negf %1263 : vector<8x64xf32>
    %1265 = math.exp %1264 : vector<8x64xf32>
    %cst_454 = arith.constant 1.000000e+00 : f32
    %1266 = vector.broadcast %cst_454 : f32 to vector<8x64xf32>
    %1267 = arith.addf %1266, %1265 : vector<8x64xf32>
    %1268 = arith.divf %1266, %1267 : vector<8x64xf32>
    %1269 = vector.extract_strided_slice %1263 {offsets = [0, 32], sizes = [8, 16], strides = [1, 1]} : vector<8x64xf32> to vector<8x16xf32>
    %1270 = math.tanh %1269 : vector<8x16xf32>
    %1271 = vector.extract_strided_slice %1268 {offsets = [0, 0], sizes = [8, 16], strides = [1, 1]} : vector<8x64xf32> to vector<8x16xf32>
    %1272 = vector.extract_strided_slice %1268 {offsets = [0, 16], sizes = [8, 16], strides = [1, 1]} : vector<8x64xf32> to vector<8x16xf32>
    %1273 = vector.extract_strided_slice %1268 {offsets = [0, 48], sizes = [8, 16], strides = [1, 1]} : vector<8x64xf32> to vector<8x16xf32>
    %1274 = arith.mulf %1272, %1251 : vector<8x16xf32>
    %1275 = arith.mulf %1271, %1270 : vector<8x16xf32>
    %1276 = arith.addf %1274, %1275 : vector<8x16xf32>
    %1277 = math.tanh %1276 : vector<8x16xf32>
    %1278 = arith.mulf %1273, %1277 : vector<8x16xf32>
    %1279 = arith.index_cast %1257 : i32 to index
    %c0_455 = arith.constant 0 : index
    %1280 = vector.load %arg23[%1279, %c0_455] : memref<64x16xf32, #tpu.memory_space<vmem>>, vector<8x16xf32>
    tpu.vector_store %arg23[%1279, %c0_455], %1278 {strides = array<i32>} : memref<64x16xf32, #tpu.memory_space<vmem>>, vector<8x16xf32>,
    %c8_i32_456 = arith.constant 8 : i32
    return
  }
}

</mosaic_0001>

<bundles_post_ra>
// kernel: tpu_custom_call.1
= control target key start
LH: loop header
LB: loop body
LE: loop exit
PB: predicated region body
PF: predicated region fallthrough
CT: control target
= control target key end

     0   :  { %s7639_s0 = inlined_call_operand.vmem [shape: bf16[64,16], index: 0, kind: input, shape index: {}]   ;;  %s7640_s1 = inlined_call_operand.vmem [shape: bf16[16,16], index: 1, kind: input, shape index: {}]   ;;  %s7641_s2 = inlined_call_operand.vmem [shape: f32[1,16], index: 2, kind: input, shape index: {}]   ;;  %s7642_s3 = inlined_call_operand.vmem [shape: bf16[16,32], index: 3, kind: input, shape index: {}]   ;;  %s7643_s4 = inlined_call_operand.hbm [shape: bf16[8,32], index: 4, kind: input, shape index: {}]   ;;  %s7644_s5 = inlined_call_operand.hbm [shape: f32[1,32], index: 5, kind: input, shape index: {}]   ;;  %s7645_s6 = inlined_call_operand.vmem [shape: bf16[8,32], index: 6, kind: input, shape index: {}]   ;;  %s7646_s7 = inlined_call_operand.vmem [shape: bf16[8,32], index: 7, kind: input, shape index: {}]   ;;  %s7647_s8 = inlined_call_operand.hbm [shape: f32[1,32], index: 8, kind: input, shape index: {}]   ;;  %s7648_s9 = inlined_call_operand.vmem [shape: bf16[8,32], index: 9, kind: input, shape index: {}]   ;;  %s7649_s10 = inlined_call_operand.vmem [shape: bf16[8,32], index: 10, kind: input, shape index: {}]   ;;  %s7650_s11 = inlined_call_operand.hbm [shape: f32[1,32], index: 11, kind: input, shape index: {}]   ;;  %s7651_s12 = inlined_call_operand.vmem [shape: bf16[8,8], index: 12, kind: input, shape index: {}]   ;;  %s7652_s13 = inlined_call_operand.vmem [shape: f32[1,8], index: 13, kind: input, shape index: {}]   ;;  %s7653_s14 = inlined_call_operand.vmem [shape: bf16[8,64], index: 14, kind: input, shape index: {}]   ;;  %s7654_s15 = inlined_call_operand.vmem [shape: bf16[16,64], index: 15, kind: input, shape index: {}]   ;;  %s7655_s16 = inlined_call_operand.vmem [shape: f32[1,64], index: 16, kind: input, shape index: {}]   ;;  %s7656_s17 = inlined_call_operand.vmem [shape: bf16[16,64], index: 17, kind: input, shape index: {}]   ;;  %s7657_s18 = inlined_call_operand.vmem [shape: bf16[16,64], index: 18, kind: input, shape index: {}]   ;;  %s7658_s19 = inlined_call_operand.vmem [shape: f32[1,64], index: 19, kind: input, shape index: {}]   ;;  %s7659_s20 = inlined_call_operand.vmem [shape: bf16[16,64], index: 20, kind: input, shape index: {}]   ;;  %s7660_s21 = inlined_call_operand.vmem [shape: bf16[16,64], index: 21, kind: input, shape index: {}]   ;;  %s7661_s22 = inlined_call_operand.vmem [shape: f32[1,64], index: 22, kind: input, shape index: {}]   ;;  %s7662_s23 = inlined_call_operand.vmem [shape: f32[64,16], index: 23, kind: output, shape index: {}]  }
   0x1   :  { %7667 = sst [smem:[#allocation14_spill]] %s7639_s0 }
   0x2   :  { %7668 = sst [smem:[#allocation15_spill]] %s7640_s1 }
   0x3   :  { %7669 = sst [smem:[#allocation16_spill]] %s7641_s2 }
   0x4   :  { %7670 = sst [smem:[#allocation17_spill]] %s7642_s3 }
   0x5   :  { %7671 = sst [smem:[#allocation18_spill]] %s7643_s4 }
   0x6   :  { %7672 = sst [smem:[#allocation19_spill]] %s7644_s5 }
   0x7   :  { %7673 = sst [smem:[#allocation20_spill]] %s7645_s6 }
   0x8   :  { %7674 = sst [smem:[#allocation21_spill]] %s7646_s7 }
   0x9   :  { %28 = vsyncpa [#allocation5], 0 }
   0xa   :  { %29 = vsyncpa [#allocation7], 0 }
   0xb   :  { %30 = vsyncpa [#allocation10], 0  ;;  %s6391_s4 = smov [#allocation6]   ;;  %s6392_s24 = smov [#allocation4]  }
   0xc   :  { %s55_s30 = sshll.u32 %s6391_s4, 4  ;;  %s45_s25 = sshll.u32 %s6392_s24, 4  ;;  %s56_s30 = int_to_ptr.vmem [resolvable:$true] %s55_s30  ;;  %s46_s25 = int_to_ptr.vmem [resolvable:$true] %s45_s25 }
   0xd   :  { %s7675_s26 = sld [smem:[#allocation19_spill]] }
  0x13   :  { %s6297_s2 = scalar_lea.hbm %s7675_s26, 16 }
  0x14   :  { %p6298_p0 = scmp.ne.s32.totalorder %s7675_s26, %s6297_s2  ;;  %p6301_p1 = scmp.lt.u32.totalorder %s6297_s2, %s7675_s26 }
  0x16   :  { %p6303_p2 = pnand %p6301_p1, %p6298_p0 }
  0x18   :  { %6306 = shalt.err (!%p6303_p2)
}
  0x19   :  { %s6307_s29 = scalar_lea.vmem %s56_s30, 16  ;;  %s6311_s3 = scalar_lea.vmem %s56_s30, 32 }
  0x1a   :  { %p6308_p3 = scmp.ne.s32.totalorder %s56_s30, %s6307_s29  ;;  %p6312_p4 = scmp.lt.s32.totalorder %s56_s30, %s56_s30 }
  0x1b   :  { %p6313_p5 = scmp.lt.s32.totalorder %s6311_s3, %s6307_s29 }
  0x1d   :  { %p6314_p6 = por %p6313_p5, %p6312_p4 }
  0x1f   :  { %p6315_p7 = pnand %p6314_p6, %p6308_p3 }
  0x21   :  { %6318 = shalt.err (!%p6315_p7)
}
  0x22   :  { %58 = dma.hbm_to_vmem [thread:$0]  %s7675_s26, 16, %s56_s30, [#allocation7]  }
  0x23   :  { %s7676_s1 = sld [smem:[#allocation18_spill]] }
  0x29   :  { %s6319_s6 = scalar_lea.hbm %s7676_s1, 64 }
  0x2a   :  { %p6320_p8 = scmp.ne.s32.totalorder %s7676_s1, %s6319_s6  ;;  %p6323_p9 = scmp.lt.u32.totalorder %s6319_s6, %s7676_s1 }
  0x2c   :  { %p6325_p10 = pnand %p6323_p9, %p6320_p8 }
  0x2e   :  { %6328 = shalt.err (!%p6325_p10)
}
  0x2f   :  { %s6329_s29 = scalar_lea.vmem %s46_s25, 64  ;;  %p6334_p12 = scmp.lt.s32.totalorder %s46_s25, %s46_s25 }
  0x30   :  { %p6330_p11 = scmp.ne.s32.totalorder %s46_s25, %s6329_s29  ;;  %p6335_p13 = scmp.lt.s32.totalorder %s6329_s29, %s6329_s29 }
  0x32   :  { %p6336_p0 = por %p6335_p13, %p6334_p12 }
  0x34   :  { %p6337_p1 = pnand %p6336_p0, %p6330_p11 }
  0x36   :  { %6340 = shalt.err (!%p6337_p1)
}
  0x37   :  { %48 = dma.hbm_to_vmem [thread:$0]  %s7676_s1, 64, %s46_s25, [#allocation5]  }
  0x38   :  { %s6393_s3 = smov [#allocation8]   ;;  %s6394_s4 = smov [#allocation9]  }
  0x39   :  { %s69_s0 = sshll.u32 %s6393_s3, 4  ;;  %s83_s24 = sshll.u32 %s6394_s4, 4  ;;  %s70_s0 = int_to_ptr.vmem [resolvable:$true] %s69_s0  ;;  %s84_s24 = int_to_ptr.vmem [resolvable:$true] %s83_s24 }
  0x3a   :  { %s6341_s27 = scalar_lea.hbm %s7647_s8, 16 }
  0x3b   :  { %p6342_p2 = scmp.ne.s32.totalorder %s7647_s8, %s6341_s27  ;;  %p6345_p3 = scmp.lt.u32.totalorder %s6341_s27, %s7647_s8 }
  0x3d   :  { %p6347_p4 = pnand %p6345_p3, %p6342_p2 }
  0x3f   :  { %6350 = shalt.err (!%p6347_p4)
}
  0x40   :  { %s6351_s25 = scalar_lea.vmem %s70_s0, 16  ;;  %s6355_s1 = scalar_lea.vmem %s70_s0, 32 }
  0x41   :  { %p6352_p5 = scmp.ne.s32.totalorder %s70_s0, %s6351_s25  ;;  %p6356_p6 = scmp.lt.s32.totalorder %s70_s0, %s70_s0 }
  0x42   :  { %p6357_p7 = scmp.lt.s32.totalorder %s6355_s1, %s6351_s25 }
  0x44   :  { %p6358_p8 = por %p6357_p7, %p6356_p6 }
  0x46   :  { %p6359_p9 = pnand %p6358_p8, %p6352_p5 }
  0x48   :  { %6362 = shalt.err (!%p6359_p9)
}
  0x49   :  { %72 = dma.hbm_to_vmem [thread:$0]  %s7647_s8, 16, %s70_s0, [#allocation7]  }
  0x4a   :  { %s6363_s5 = scalar_lea.hbm %s7650_s11, 16 }
  0x4b   :  { %p6364_p10 = scmp.ne.s32.totalorder %s7650_s11, %s6363_s5  ;;  %p6367_p11 = scmp.lt.u32.totalorder %s6363_s5, %s7650_s11 }
  0x4d   :  { %p6369_p12 = pnand %p6367_p11, %p6364_p10 }
  0x4f   :  { %6372 = shalt.err (!%p6369_p12)
}
  0x50   :  { %s6373_s28 = scalar_lea.vmem %s84_s24, 16  ;;  %s6377_s29 = scalar_lea.vmem %s84_s24, 32 }
  0x51   :  { %p6374_p13 = scmp.ne.s32.totalorder %s84_s24, %s6373_s28  ;;  %p6378_p0 = scmp.lt.s32.totalorder %s84_s24, %s84_s24 }
  0x52   :  { %p6379_p1 = scmp.lt.s32.totalorder %s6377_s29, %s6373_s28 }
  0x54   :  { %p6380_p2 = por %p6379_p1, %p6378_p0 }
  0x56   :  { %p6381_p3 = pnand %p6380_p2, %p6374_p13 }
  0x58   :  { %6384 = shalt.err (!%p6381_p3)
}
  0x59   :  { %86 = dma.hbm_to_vmem [thread:$0]  %s7650_s11, 16, %s84_s24, [#allocation10]  }
  0x5a   :  { %6385 = dma.done.wait [#allocation5], 64  }
  0x5b   :  { %6386 = vsyncadd [#allocation5], 4294967232 }
  0x5c   :  { %6387 = dma.done.wait [#allocation7], 32  }
  0x5d   :  { %6388 = vsyncadd [#allocation7], 4294967264 }
  0x5e   :  { %6389 = dma.done.wait [#allocation10], 16  }
  0x5f   :  { %6390 = vsyncadd [#allocation10], 4294967280  ;;  %s7677_s30 = sld [smem:[#allocation15_spill]]  ;;  %vm165_vm0 = vcmask 130048   ;;  %s7678_s4 = sld [smem:[#allocation14_spill]]  ;;  %vm402_vm1 = vcmask 1043456  }
  0x60   :  { %v397_v4 = vld [vmem:[#allocation4] sm:$0xf]  ;;  %v6395_v6 = vmov 0.0   ;;  %s7679_s29 = sld [smem:[#allocation17_spill]]  ;;  %vm6396_vm2 = vmmov 0   ;;  %v6397_v9 = vmov 0  }
  0x61   :  { %v404_v7 = vsel %vm402_vm1, %v397_v4, 0  ;;  %s7680_s25 = sld [smem:[#allocation16_spill]]  ;;  %vm387_vm3 = vcmask 261120   ;;  %s6398_s1 = smov 112   ;;  %vm398_vm4 = vcmask 64512   ;;  %vm2818_vm5 = vcmask 523264  }
  0x62   :  { %s6400_s26 = smov 16   ;;  %s6401_s3 = smov 104  }
  0x63   :  { %s7681_s6 = sld [smem:[#allocation20_spill]]  ;;  %s7682_s27 = sld [smem:[#allocation21_spill]] }
  0x64   :  { %s6404_s11 = smov 80  }
  0x65   :  { %v5817_v0 = vld [vmem:[%s7677_s30] sm:$0xff]   ;;  %v5819_v2 = vld [vmem:[%s7678_s4 + $0x8] sm:$0xff]   ;;  %v5820_v3 = vld [vmem:[%s7678_s4 + $0x10] sm:$0xff]   ;;  %s6399_s30 = smov 8  }
  0x66   :  { %v5818_v1 = vld [vmem:[%s7678_s4] sm:$0xff]   ;;  %5431 = vmatprep.subr.bf16.mxu0 %v5817_v0  ;;  %v5821_v5 = vld [vmem:[%s7678_s4 + $0x18] sm:$0xff]  }
  0x67   :  { %5432 = vmatpush3.bf16.msra.mxu0 %v5817_v0  ;;  %5433 = vmatprep.mubr.msk.bf16.mxu0 %vm165_vm0, %v5818_v1  ;;  %v5822_v8 = vld [vmem:[%s7679_s29] sm:$0xff]  }
  0x68   :  { %5451 = vmatprep.subr.bf16.mxu0 %v6395_v6  ;;  %5441 = vmatprep.subr.bf16.mxu1 %v5822_v8  ;;  %v5110_v10 = vld [vmem:[%s7680_s25] ss:$0 sm:$0xff] }
  0x69   :  { %5442 = vmatpush3.bf16.msra.mxu1 %v5822_v8 }
  0x6a   :  { %5434 = vmatmul.mubr.msk.bf16.vlgmr.msra.gmra.mrb[0].mxu0 %vm165_vm0, %v5819_v2  ;;  %5457 = vmatprep.subr.bf16.mxu1 %v6395_v6 }
  0x6b   :  { %5437 = vmatprep.mubr.msk.bf16.mxu0 %vm165_vm0, %v5820_v3  ;;  %5452 = vmatpush3.bf16.msra.mxu0 %v404_v7  ;;  %v5128_v3 = vld [vmem:[#allocation6] ss:$0 sm:$0xff] }
  0x6c   :  { %5463 = vmatprep.subr.bf16.mxu0 %v6395_v6 }
  0x72   :  { %5438 = vmatmul.mubr.msk.bf16.gmra.mrb[4].mxu0 %vm165_vm0, %v5821_v5 }
  0x73   :  { %5453 = vmatprep.mubr.msk.bf16.mxu0 %vm6396_vm2, %v6395_v6 }
  0x7a   :  { %5454 = vmatmul.mubr.bf16.vlgmr.msra.gmra.mrb[8].mxu0 %v6397_v9 }
  0x7b   :  { %5465 = vmatprep.mubr.msk.bf16.mxu0 %vm6396_vm2, %v6395_v6 }
 0x13d   :  { %v5435_v11 = vpop.f32.mrb[0].mxu0 }
 0x13e   :  { %v221_v12 = vadd.f32 %v5435_v11, %v5110_v10  ;;  %v212_v13 = vpop.f32.mrb[1].mxu0 }
 0x13f   :  { %v213_v14 = vadd.f32 %v5110_v10, %v212_v13  ;;  %v5436_v15 = vpop.f32.mrb[2].mxu0 }
 0x140   :  { %v5122_v16 = vmul.f32 -1.442695, %v221_v12  ;;  %v224_v17 = vadd.f32 %v5436_v15, %v5110_v10  ;;  %v215_v18 = vpop.f32.mrb[3].mxu0 }
 0x141   :  { %v5120_v19 = vmul.f32 -1.442695, %v213_v14  ;;  %v216_v20 = vadd.f32 %v5110_v10, %v215_v18 }
 0x142   :  { %5849 = vpow2.f32 %v5122_v16  ;;  %v5123_v21 = vmul.f32 -1.442695, %v224_v17 }
 0x143   :  { %5851 = vpow2.f32 %v5120_v19  ;;  %v5121_v22 = vmul.f32 -1.442695, %v216_v20 }
 0x144   :  { %5853 = vpow2.f32 %v5123_v21 }
 0x145   :  { %5855 = vpow2.f32 %v5121_v22  ;;  %v5439_v37 = vpop.f32.mrb[4].mxu0 }
 0x146   :  { %v237_v38 = vadd.f32 %v5439_v37, %v5110_v10  ;;  %v228_v39 = vpop.f32.mrb[5].mxu0 }
 0x147   :  { %v229_v40 = vadd.f32 %v5110_v10, %v228_v39  ;;  %v5440_v41 = vpop.f32.mrb[6].mxu0 }
 0x148   :  { %v5126_v42 = vmul.f32 -1.442695, %v237_v38  ;;  %v240_v43 = vadd.f32 %v5440_v41, %v5110_v10  ;;  %v231_v44 = vpop.f32.mrb[7].mxu0 }
 0x149   :  { %v5124_v45 = vmul.f32 -1.442695, %v229_v40  ;;  %v232_v46 = vadd.f32 %v5110_v10, %v231_v44 }
 0x14a   :  { %v5127_v47 = vmul.f32 -1.442695, %v240_v43 }
 0x14b   :  { %v5125_v48 = vmul.f32 -1.442695, %v232_v46 }
 0x14c   :  { %v5850_v23 = vpop.eup %5849 }
 0x14d   :  { %v5852_v24 = vpop.eup %5851  ;;  %v269_v25 = vadd.f32 1.0, %v5850_v23  ;;  %v440_v52 = vpop.f32.mrb[8].mxu0 }
 0x14e   :  { %v5854_v26 = vpop.eup %5853  ;;  %v267_v27 = vadd.f32 1.0, %v5852_v24  ;;  %v5455_v55 = vpop.f32.mrb[9].mxu0 }
 0x14f   :  { %v5856_v28 = vpop.eup %5855  ;;  %5857 = vrcp.f32 %v269_v25  ;;  %v270_v29 = vadd.f32 1.0, %v5854_v26  ;;  %v443_v57 = vpop.f32.mrb[10].mxu0 }
 0x150   :  { %5859 = vrcp.f32 %v267_v27  ;;  %v268_v30 = vadd.f32 1.0, %v5856_v28  ;;  %v5456_v59 = vpop.f32.mrb[11].mxu0  ;;  %v563_v57 = vld [vmem:[#allocation4] sm:$0xf] }
 0x151   :  { %5861 = vrcp.f32 %v270_v29 }
 0x152   :  { %5863 = vrcp.f32 %v268_v30 }
 0x153   :  { %5865 = vpow2.f32 %v5126_v42 }
 0x154   :  { %5867 = vpow2.f32 %v5124_v45 }
 0x155   :  { %5869 = vpow2.f32 %v5125_v48 }
 0x156   :  { %5871 = vpow2.f32 %v5127_v47 }
 0x159   :  { %v5858_v31 = vpop.eup %5857 }
 0x15a   :  { %v5860_v32 = vpop.eup %5859 }
 0x15b   :  { %v5862_v33 = vpop.eup %5861 }
 0x15c   :  { %v5864_v34 = vpop.eup %5863  ;;  %v292_v35 = vpack.c.bf16 %v5862_v33, %v5858_v31 }
 0x15d   :  { %v291_v36 = vpack.c.bf16 %v5864_v34, %v5860_v32  ;;  %v5866_v49 = vpop.eup %5865  ;;  %v479_v34 = vld [vmem:[#allocation4] sm:$0xf] }
 0x15e   :  { %v5868_v50 = vpop.eup %5867  ;;  %v273_v54 = vadd.f32 1.0, %v5866_v49 }
 0x15f   :  { %5443 = vmatprep.mubr.msk.bf16.mxu1 %vm165_vm0, %v291_v36  ;;  %v5870_v51 = vpop.eup %5869  ;;  %v271_v56 = vadd.f32 1.0, %v5868_v50 }
 0x160   :  { %5444 = vmatmul.mubr.msk.bf16.vlgmr.msra.gmra.mrb[0].mxu1 %vm165_vm0, %v292_v35  ;;  %v5872_v53 = vpop.eup %5871  ;;  %v272_v58 = vadd.f32 1.0, %v5870_v51  ;;  %5873 = vrcp.f32 %v273_v54  ;;  %v487_v35 = vsel %vm402_vm1, %v479_v34, 0 }
 0x161   :  { %v274_v60 = vadd.f32 1.0, %v5872_v53  ;;  %5875 = vrcp.f32 %v271_v56  ;;  %5458 = vmatpush3.bf16.msra.mxu1 %v487_v35 }
 0x162   :  { %5877 = vrcp.f32 %v272_v58  ;;  %5469 = vmatprep.subr.bf16.mxu1 %v6395_v6  ;;  %v571_v58 = vsel %vm402_vm1, %v563_v57, 0 }
 0x163   :  { %5879 = vrcp.f32 %v274_v60  ;;  %5464 = vmatpush3.bf16.msra.mxu0 %v571_v58 }
 0x164   :  { %5475 = vmatprep.subr.bf16.mxu0 %v6395_v6 }
 0x16a   :  { %v5874_v61 = vpop.eup %5873 }
 0x16b   :  { %v5876_v62 = vpop.eup %5875 }
 0x16c   :  { %v5878_v63 = vpop.eup %5877 }
 0x16d   :  { %v5880_v0 = vpop.eup %5879  ;;  %v293_v1 = vpack.c.bf16 %v5878_v63, %v5876_v62 }
 0x16e   :  { %v294_v2 = vpack.c.bf16 %v5880_v0, %v5874_v61 }
 0x16f   :  { %5447 = vmatprep.mubr.msk.bf16.mxu1 %vm165_vm0, %v293_v1 }
 0x170   :  { %5448 = vmatmul.mubr.msk.bf16.gmra.mrb[4].mxu1 %vm165_vm0, %v294_v2 }
 0x171   :  { %5459 = vmatprep.mubr.msk.bf16.mxu1 %vm6396_vm2, %v6395_v6 }
 0x233   :  { %v5445_v4 = vpop.f32.mrb[0].mxu1 }
 0x234   :  { %v365_v5 = vadd.f32 %v5445_v4, %v5128_v3  ;;  %v356_v7 = vpop.f32.mrb[1].mxu1 }
 0x235   :  { %v357_v8 = vadd.f32 %v5128_v3, %v356_v7  ;;  %v5446_v10 = vpop.f32.mrb[2].mxu1 }
 0x236   :  { %390 = vst.msk [vmem:[#allocation3 + $0x10] sm:$0xff] %vm387_vm3, %v365_v5  ;;  %v368_v11 = vadd.f32 %v5446_v10, %v5128_v3  ;;  %v359_v12 = vpop.f32.mrb[3].mxu1 }
 0x237   :  { %388 = vst.msk [vmem:[#allocation3] sm:$0xff] %vm387_vm3, %v357_v8  ;;  %v360_v13 = vadd.f32 %v5128_v3, %v359_v12 }
 0x238   :  { %391 = vst.msk [vmem:[#allocation3 + $0x18] sm:$0xff] %vm387_vm3, %v368_v11 }
 0x239   :  { %389 = vst.msk [vmem:[#allocation3 + $0x8] sm:$0xff] %vm387_vm3, %v360_v13 }
 0x23d   :  { %v561_v0 = vld [vmem:[#allocation3 + $0x10] sm:$0xff] }
 0x23e   :  { %v396_v14 = vld [vmem:[#allocation3] sm:$0xff] }
 0x23f   :  { %v446_v15 = vadd.f32 %v440_v52, %v396_v14 }
 0x240   :  { %v477_v41 = vld [vmem:[#allocation3 + $0x8] sm:$0xff] }
 0x241   :  { %5881 = vtanh.f32 %v446_v15  ;;  %v5134_v17 = vmul.f32 -1.442695, %v446_v15 }
 0x243   :  { %5883 = vpow2.f32 %v5134_v17  ;;  %v5449_v18 = vpop.f32.mrb[4].mxu1 }
 0x244   :  { %v381_v19 = vadd.f32 %v5449_v18, %v5128_v3  ;;  %v372_v20 = vpop.f32.mrb[5].mxu1  ;;  %v647_v18 = vld [vmem:[#allocation4] sm:$0xf] }
 0x245   :  { %v373_v21 = vadd.f32 %v5128_v3, %v372_v20  ;;  %v5450_v22 = vpop.f32.mrb[6].mxu1 }
 0x246   :  { %394 = vst.msk [vmem:[#allocation3 + $0x30] sm:$0xff] %vm387_vm3, %v381_v19  ;;  %v384_v23 = vadd.f32 %v5450_v22, %v5128_v3  ;;  %v375_v24 = vpop.f32.mrb[7].mxu1  ;;  %v655_v19 = vsel %vm402_vm1, %v647_v18, 0 }
 0x247   :  { %392 = vst.msk [vmem:[#allocation3 + $0x20] sm:$0xff] %vm387_vm3, %v373_v21  ;;  %v376_v25 = vadd.f32 %v5128_v3, %v375_v24 }
 0x248   :  { %395 = vst.msk [vmem:[#allocation3 + $0x38] sm:$0xff] %vm387_vm3, %v384_v23 }
 0x249   :  { %393 = vst.msk [vmem:[#allocation3 + $0x28] sm:$0xff] %vm387_vm3, %v376_v25  ;;  %v645_v25 = vld [vmem:[#allocation3 + $0x18] sm:$0xff] }
 0x24b   :  { %v5882_v16 = vpop.eup %5881 }
 0x24c   :  { %456 = vrot.lane.b32.xlu0 %v5882_v16, %s6398_s1 }
 0x24d   :  { %v5884_v26 = vpop.eup %5883 }
 0x24e   :  { %v450_v27 = vadd.f32 1.0, %v5884_v26 }
 0x250   :  { %5885 = vrcp.f32 %v450_v27 }
 0x25a   :  { %v5886_v28 = vpop.eup %5885 }
 0x25b   :  { %v454_v31 = vmul.f32 0.0, %v5886_v28 }
 0x2be   :  { %v457_v29 = vpop.permute.xlu0 %456 }
 0x2bf   :  { %v459_v30 = vmul.f32 %v5886_v28, %v457_v29 }
 0x2c1   :  { %461 = vrot.lane.b32.xlu0 %v459_v30, %s6399_s30 }
 0x333   :  { %v462_v32 = vpop.permute.xlu0 %461 }
 0x334   :  { %v464_v33 = vadd.f32 %v462_v32, %v454_v31 }
 0x336   :  { %5887 = vtanh.f32 %v464_v33 }
 0x340   :  { %v5888_v36 = vpop.eup %5887 }
 0x341   :  { %467 = vrot.lane.b32.xlu1 %v5888_v36, %s6400_s26 }
 0x3b3   :  { %v468_v37 = vpop.permute.xlu1 %467 }
 0x3b4   :  { %v6626_v38 = vmul.f32 %v5886_v28, %v468_v37 }
 0x3b6   :  { %v478_v39 = vpack.c.bf16 %v6626_v38, %v6626_v38 }
 0x3b8   :  { %481 = vrot.lane.b32.xlu1 %v478_v39, %s6401_s3 }
 0x42a   :  { %v482_v40 = vpop.permute.xlu1 %481 }
 0x42b   :  { %5460 = vmatmul.mubr.msk.bf16.vlgmr.msra.gmra.mrb[8].mxu1 %vm398_vm4, %v482_v40 }
 0x42c   :  { %5471 = vmatprep.mubr.msk.bf16.mxu1 %vm6396_vm2, %v6395_v6  ;;  %5470 = vmatpush3.bf16.msra.mxu1 %v655_v19 }
 0x42d   :  { %5481 = vmatprep.subr.bf16.mxu1 %v6395_v6 }
 0x4fe   :  { %v523_v42 = vpop.f32.mrb[8].mxu1 }
 0x4ff   :  { %v529_v43 = vadd.f32 %v523_v42, %v477_v41  ;;  %v5461_v44 = vpop.f32.mrb[9].mxu1  ;;  %v731_v42 = vld [vmem:[#allocation4] sm:$0xf] }
 0x500   :  { %v526_v45 = vpop.f32.mrb[10].mxu1 }
 0x501   :  { %5889 = vtanh.f32 %v529_v43  ;;  %v5462_v46 = vpop.f32.mrb[11].mxu1  ;;  %v5136_v48 = vmul.f32 -1.442695, %v529_v43  ;;  %v739_v43 = vsel %vm402_vm1, %v731_v42, 0 }
 0x503   :  { %5891 = vpow2.f32 %v5136_v48 }
 0x50b   :  { %v5890_v47 = vpop.eup %5889 }
 0x50c   :  { %539 = vrot.lane.b32.xlu0 %v5890_v47, %s6398_s1 }
 0x50d   :  { %v5892_v49 = vpop.eup %5891 }
 0x50e   :  { %v533_v50 = vadd.f32 1.0, %v5892_v49  ;;  %v729_v49 = vld [vmem:[#allocation3 + $0x20] sm:$0xff] }
 0x510   :  { %5893 = vrcp.f32 %v533_v50 }
 0x51a   :  { %v5894_v51 = vpop.eup %5893 }
 0x51b   :  { %v537_v54 = vmul.f32 %v5894_v51, %v464_v33 }
 0x57e   :  { %v540_v52 = vpop.permute.xlu0 %539 }
 0x57f   :  { %v542_v53 = vmul.f32 %v5894_v51, %v540_v52 }
 0x581   :  { %544 = vrot.lane.b32.xlu1 %v542_v53, %s6399_s30 }
 0x5f3   :  { %v545_v55 = vpop.permute.xlu1 %544 }
 0x5f4   :  { %v547_v56 = vadd.f32 %v545_v55, %v537_v54 }
 0x5f6   :  { %5895 = vtanh.f32 %v547_v56 }
 0x600   :  { %v5896_v59 = vpop.eup %5895 }
 0x601   :  { %550 = vrot.lane.b32.xlu0 %v5896_v59, %s6400_s26 }
 0x673   :  { %v551_v60 = vpop.permute.xlu0 %550 }
 0x674   :  { %v6639_v61 = vmul.f32 %v5894_v51, %v551_v60 }
 0x676   :  { %v562_v62 = vpack.c.bf16 %v6639_v61, %v6639_v61 }
 0x678   :  { %565 = vrot.lane.b32.xlu1 %v562_v62, %s6401_s3 }
 0x6ea   :  { %v566_v63 = vpop.permute.xlu1 %565 }
 0x6eb   :  { %5466 = vmatmul.mubr.msk.bf16.vlgmr.msra.gmra.mrb[12].mxu0 %vm398_vm4, %v566_v63 }
 0x6ec   :  { %5477 = vmatprep.mubr.msk.bf16.mxu0 %vm6396_vm2, %v6395_v6  ;;  %5476 = vmatpush3.bf16.msra.mxu0 %v739_v43 }
 0x6ed   :  { %5487 = vmatprep.subr.bf16.mxu0 %v6395_v6 }
 0x7be   :  { %v607_v1 = vpop.f32.mrb[12].mxu0 }
 0x7bf   :  { %v613_v2 = vadd.f32 %v607_v1, %v561_v0  ;;  %v5467_v3 = vpop.f32.mrb[13].mxu0 }
 0x7c0   :  { %v610_v4 = vpop.f32.mrb[14].mxu0 }
 0x7c1   :  { %5897 = vtanh.f32 %v613_v2  ;;  %v5468_v5 = vpop.f32.mrb[15].mxu0  ;;  %v5138_v8 = vmul.f32 -1.442695, %v613_v2  ;;  %v815_v2 = vld [vmem:[#allocation4] sm:$0xf] }
 0x7c2   :  { %v823_v3 = vsel %vm402_vm1, %v815_v2, 0 }
 0x7c3   :  { %5899 = vpow2.f32 %v5138_v8 }
 0x7cb   :  { %v5898_v7 = vpop.eup %5897 }
 0x7cc   :  { %623 = vrot.lane.b32.xlu0 %v5898_v7, %s6398_s1 }
 0x7cd   :  { %v5900_v10 = vpop.eup %5899 }
 0x7ce   :  { %v617_v11 = vadd.f32 1.0, %v5900_v10 }
 0x7d0   :  { %5901 = vrcp.f32 %v617_v11  ;;  %v813_v11 = vld [vmem:[#allocation3 + $0x28] sm:$0xff] }
 0x7da   :  { %v5902_v12 = vpop.eup %5901 }
 0x7db   :  { %v621_v15 = vmul.f32 %v5902_v12, %v547_v56 }
 0x83e   :  { %v624_v13 = vpop.permute.xlu0 %623 }
 0x83f   :  { %v626_v14 = vmul.f32 %v5902_v12, %v624_v13 }
 0x841   :  { %628 = vrot.lane.b32.xlu1 %v626_v14, %s6399_s30 }
 0x8b3   :  { %v629_v16 = vpop.permute.xlu1 %628 }
 0x8b4   :  { %v631_v17 = vadd.f32 %v629_v16, %v621_v15 }
 0x8b6   :  { %5903 = vtanh.f32 %v631_v17 }
 0x8c0   :  { %v5904_v20 = vpop.eup %5903 }
 0x8c1   :  { %634 = vrot.lane.b32.xlu0 %v5904_v20, %s6400_s26 }
 0x933   :  { %v635_v21 = vpop.permute.xlu0 %634 }
 0x934   :  { %v6652_v22 = vmul.f32 %v5902_v12, %v635_v21 }
 0x936   :  { %v646_v23 = vpack.c.bf16 %v6652_v22, %v6652_v22 }
 0x938   :  { %649 = vrot.lane.b32.xlu1 %v646_v23, %s6401_s3 }
 0x9aa   :  { %v650_v24 = vpop.permute.xlu1 %649 }
 0x9ab   :  { %5472 = vmatmul.mubr.msk.bf16.vlgmr.msra.gmra.mrb[12].mxu1 %vm398_vm4, %v650_v24 }
 0x9ac   :  { %5483 = vmatprep.mubr.msk.bf16.mxu1 %vm6396_vm2, %v6395_v6  ;;  %5482 = vmatpush3.bf16.msra.mxu1 %v823_v3 }
 0x9ad   :  { %5493 = vmatprep.subr.bf16.mxu1 %v6395_v6 }
 0xa7e   :  { %v691_v26 = vpop.f32.mrb[12].mxu1 }
 0xa7f   :  { %v697_v27 = vadd.f32 %v691_v26, %v645_v25  ;;  %v5473_v28 = vpop.f32.mrb[13].mxu1 }
 0xa80   :  { %v694_v29 = vpop.f32.mrb[14].mxu1  ;;  %v899_v28 = vld [vmem:[#allocation4] sm:$0xf] }
 0xa81   :  { %5905 = vtanh.f32 %v697_v27  ;;  %v5474_v30 = vpop.f32.mrb[15].mxu1  ;;  %v5140_v32 = vmul.f32 -1.442695, %v697_v27  ;;  %v907_v29 = vsel %vm402_vm1, %v899_v28, 0 }
 0xa83   :  { %5907 = vpow2.f32 %v5140_v32 }
 0xa8b   :  { %v5906_v31 = vpop.eup %5905 }
 0xa8c   :  { %707 = vrot.lane.b32.xlu0 %v5906_v31, %s6398_s1 }
 0xa8d   :  { %v5908_v33 = vpop.eup %5907 }
 0xa8e   :  { %v701_v34 = vadd.f32 1.0, %v5908_v33 }
 0xa90   :  { %5909 = vrcp.f32 %v701_v34 }
 0xa9a   :  { %v5910_v35 = vpop.eup %5909 }
 0xa9b   :  { %v705_v39 = vmul.f32 %v5910_v35, %v631_v17 }
 0xafe   :  { %v708_v36 = vpop.permute.xlu0 %707 }
 0xaff   :  { %v710_v37 = vmul.f32 %v5910_v35, %v708_v36 }
 0xb01   :  { %712 = vrot.lane.b32.xlu1 %v710_v37, %s6399_s30 }
 0xb73   :  { %v713_v40 = vpop.permute.xlu1 %712 }
 0xb74   :  { %v715_v41 = vadd.f32 %v713_v40, %v705_v39 }
 0xb76   :  { %5911 = vtanh.f32 %v715_v41 }
 0xb80   :  { %v5912_v44 = vpop.eup %5911 }
 0xb81   :  { %718 = vrot.lane.b32.xlu0 %v5912_v44, %s6400_s26 }
 0xbf3   :  { %v719_v45 = vpop.permute.xlu0 %718 }
 0xbf4   :  { %v6665_v46 = vmul.f32 %v5910_v35, %v719_v45  ;;  %v897_v35 = vld [vmem:[#allocation3 + $0x30] sm:$0xff] }
 0xbf6   :  { %v730_v47 = vpack.c.bf16 %v6665_v46, %v6665_v46 }
 0xbf8   :  { %733 = vrot.lane.b32.xlu1 %v730_v47, %s6401_s3 }
 0xc6a   :  { %v734_v48 = vpop.permute.xlu1 %733 }
 0xc6b   :  { %5478 = vmatmul.mubr.msk.bf16.vlgmr.msra.gmra.mrb[16].mxu0 %vm398_vm4, %v734_v48 }
 0xc6c   :  { %5489 = vmatprep.mubr.msk.bf16.mxu0 %vm6396_vm2, %v6395_v6  ;;  %5488 = vmatpush3.bf16.msra.mxu0 %v907_v29 }
 0xd3e   :  { %v775_v50 = vpop.f32.mrb[16].mxu0 }
 0xd3f   :  { %v781_v51 = vadd.f32 %v775_v50, %v729_v49  ;;  %v5479_v52 = vpop.f32.mrb[17].mxu0 }
 0xd40   :  { %v778_v53 = vpop.f32.mrb[18].mxu0 }
 0xd41   :  { %5913 = vtanh.f32 %v781_v51  ;;  %v5480_v54 = vpop.f32.mrb[19].mxu0  ;;  %v5142_v56 = vmul.f32 -1.442695, %v781_v51 }
 0xd43   :  { %5915 = vpow2.f32 %v5142_v56  ;;  %v983_v56 = vld [vmem:[#allocation4] sm:$0xf] }
 0xd4b   :  { %v5914_v55 = vpop.eup %5913 }
 0xd4c   :  { %791 = vrot.lane.b32.xlu0 %v5914_v55, %s6398_s1  ;;  %v1076_v55 = vld [vmem:[%s7681_s6] sm:$0xf]  ;;  %s6403_s6 = smov 32  }
 0xd4d   :  { %v5916_v57 = vpop.eup %5915  ;;  %5799 = vmatprep.subr.msk.bf16.mxu0 %vm402_vm1, %v1076_v55 }
 0xd4e   :  { %v785_v58 = vadd.f32 1.0, %v5916_v57  ;;  %v991_v57 = vsel %vm402_vm1, %v983_v56, 0 }
 0xd50   :  { %5917 = vrcp.f32 %v785_v58 }
 0xd5a   :  { %v5918_v59 = vpop.eup %5917 }
 0xd5b   :  { %v789_v63 = vmul.f32 %v5918_v59, %v715_v41 }
 0xdbe   :  { %v792_v60 = vpop.permute.xlu0 %791 }
 0xdbf   :  { %v794_v62 = vmul.f32 %v5918_v59, %v792_v60 }
 0xdc1   :  { %796 = vrot.lane.b32.xlu1 %v794_v62, %s6399_s30 }
 0xe33   :  { %v797_v0 = vpop.permute.xlu1 %796 }
 0xe34   :  { %v799_v1 = vadd.f32 %v797_v0, %v789_v63 }
 0xe36   :  { %5919 = vtanh.f32 %v799_v1 }
 0xe40   :  { %v5920_v4 = vpop.eup %5919 }
 0xe41   :  { %802 = vrot.lane.b32.xlu0 %v5920_v4, %s6400_s26  ;;  %v1173_v4 = vld [vmem:[%s7682_s27] sm:$0xf] }
 0xeb3   :  { %v803_v5 = vpop.permute.xlu0 %802 }
 0xeb4   :  { %v6678_v7 = vmul.f32 %v5918_v59, %v803_v5  ;;  %v1175_v5 = vsel %vm402_vm1, %v1173_v4, 0 }
 0xeb6   :  { %v814_v8 = vpack.c.bf16 %v6678_v7, %v6678_v7 }
 0xeb8   :  { %817 = vrot.lane.b32.xlu1 %v814_v8, %s6401_s3 }
 0xf2a   :  { %v818_v10 = vpop.permute.xlu1 %817 }
 0xf2b   :  { %5484 = vmatmul.mubr.msk.bf16.vlgmr.msra.gmra.mrb[16].mxu1 %vm398_vm4, %v818_v10  ;;  %v6740_v10 = vld [vmem:[#allocation8] ss:$0 sm:$0xff] }
 0xf2c   :  { %5495 = vmatprep.mubr.msk.bf16.mxu1 %vm6396_vm2, %v6395_v6  ;;  %5494 = vmatpush3.bf16.msra.mxu1 %v991_v57 }
 0xf2d   :  { %5509 = vmatprep.subr.bf16.mxu1 %v6395_v6 }
 0xffe   :  { %v859_v12 = vpop.f32.mrb[16].mxu1 }
 0xfff   :  { %v865_v13 = vadd.f32 %v859_v12, %v813_v11  ;;  %v5485_v14 = vpop.f32.mrb[17].mxu1 }
0x1000   :  { %v862_v15 = vpop.f32.mrb[18].mxu1 }
0x1001   :  { %5921 = vtanh.f32 %v865_v13  ;;  %v5486_v16 = vpop.f32.mrb[19].mxu1  ;;  %v5144_v18 = vmul.f32 -1.442695, %v865_v13 }
0x1003   :  { %5923 = vpow2.f32 %v5144_v18 }
0x100b   :  { %v5922_v17 = vpop.eup %5921 }
0x100c   :  { %875 = vrot.lane.b32.xlu0 %v5922_v17, %s6398_s1 }
0x100d   :  { %v5924_v19 = vpop.eup %5923 }
0x100e   :  { %v869_v20 = vadd.f32 1.0, %v5924_v19 }
0x1010   :  { %5925 = vrcp.f32 %v869_v20 }
0x101a   :  { %v5926_v21 = vpop.eup %5925 }
0x101b   :  { %v873_v25 = vmul.f32 %v5926_v21, %v799_v1 }
0x107e   :  { %v876_v23 = vpop.permute.xlu0 %875 }
0x107f   :  { %v878_v24 = vmul.f32 %v5926_v21, %v876_v23 }
0x1081   :  { %880 = vrot.lane.b32.xlu1 %v878_v24, %s6399_s30 }
0x10f3   :  { %v881_v26 = vpop.permute.xlu1 %880 }
0x10f4   :  { %v883_v27 = vadd.f32 %v881_v26, %v873_v25 }
0x10f6   :  { %5927 = vtanh.f32 %v883_v27 }
0x1100   :  { %v5928_v30 = vpop.eup %5927 }
0x1101   :  { %886 = vrot.lane.b32.xlu0 %v5928_v30, %s6400_s26 }
0x1173   :  { %v887_v31 = vpop.permute.xlu0 %886 }
0x1174   :  { %v6690_v32 = vmul.f32 %v5926_v21, %v887_v31 }
0x1176   :  { %v898_v33 = vpack.c.bf16 %v6690_v32, %v6690_v32 }
0x1178   :  { %901 = vrot.lane.b32.xlu1 %v898_v33, %s6401_s3 }
0x11ea   :  { %v902_v34 = vpop.permute.xlu1 %901 }
0x11eb   :  { %5490 = vmatmul.mubr.msk.bf16.vlgmr.msra.gmra.mrb[20].mxu0 %vm398_vm4, %v902_v34 }
0x12be   :  { %v943_v36 = vpop.f32.mrb[20].mxu0 }
0x12bf   :  { %v949_v37 = vadd.f32 %v943_v36, %v897_v35  ;;  %v5491_v39 = vpop.f32.mrb[21].mxu0 }
0x12c0   :  { %v946_v40 = vpop.f32.mrb[22].mxu0 }
0x12c1   :  { %5929 = vtanh.f32 %v949_v37  ;;  %v5492_v41 = vpop.f32.mrb[23].mxu0  ;;  %v5146_v43 = vmul.f32 -1.442695, %v949_v37 }
0x12c3   :  { %5931 = vpow2.f32 %v5146_v43 }
0x12cb   :  { %v5930_v42 = vpop.eup %5929 }
0x12cc   :  { %959 = vrot.lane.b32.xlu0 %v5930_v42, %s6398_s1  ;;  %v981_v42 = vld [vmem:[#allocation3 + $0x38] sm:$0xff] }
0x12cd   :  { %v5932_v44 = vpop.eup %5931 }
0x12ce   :  { %v953_v45 = vadd.f32 1.0, %v5932_v44  ;;  %v1249_v44 = vld [vmem:[%s7682_s27] sm:$0xf] }
0x12d0   :  { %5933 = vrcp.f32 %v953_v45  ;;  %v1257_v45 = vsel %vm402_vm1, %v1249_v44, 0 }
0x12da   :  { %v5934_v47 = vpop.eup %5933 }
0x12db   :  { %v957_v50 = vmul.f32 %v5934_v47, %v883_v27 }
0x133e   :  { %v960_v48 = vpop.permute.xlu0 %959 }
0x133f   :  { %v962_v49 = vmul.f32 %v5934_v47, %v960_v48 }
0x1341   :  { %964 = vrot.lane.b32.xlu1 %v962_v49, %s6399_s30 }
0x1345   :  { %472 = vrot.lane.b32.xlu1 %v6626_v38, %s6401_s3 }
0x1349   :  { %639 = vrot.lane.b32.xlu1 %v6652_v22, %s6401_s3  ;;  %v1097_v22 = vsel %vm402_vm1, %v1076_v55, 0 }
0x134a   :  { %5500 = vmatpush3.bf16.msra.mxu0 %v1097_v22 }
0x134b   :  { %5521 = vmatprep.subr.bf16.mxu0 %v6395_v6 }
0x13b3   :  { %v965_v51 = vpop.permute.xlu1 %964 }
0x13b4   :  { %v6702_v52 = vadd.f32 %v965_v51, %v957_v50 }
0x13b6   :  { %5935 = vtanh.f32 %v6702_v52 }
0x13b7   :  { %v473_v53 = vpop.permute.xlu1 %472 }
0x13b8   :  { %475 = vst.msk [vmem:[#allocation2] sm:$0xff] %vm398_vm4, %v473_v53 }
0x13bb   :  { %v640_v54 = vpop.permute.xlu1 %639 }
0x13bc   :  { %643 = vst.msk [vmem:[#allocation2 + $0x10] sm:$0xff] %vm398_vm4, %v640_v54 }
0x13bf   :  { %v1064_v63 = vld [vmem:[#allocation2] sm:$0xff] }
0x13c0   :  { %v5936_v38 = vpop.eup %5935 }
0x13c1   :  { %970 = vrot.lane.b32.xlu0 %v5936_v38, %s6400_s26 }
0x13c5   :  { %555 = vrot.lane.b32.xlu0 %v6639_v61, %s6401_s3 }
0x13c9   :  { %723 = vrot.lane.b32.xlu0 %v6665_v46, %s6401_s3  ;;  %v1066_v46 = vld [vmem:[#allocation2 + $0x10] sm:$0xff] }
0x1433   :  { %v971_v58 = vpop.permute.xlu0 %970 }
0x1434   :  { %v6720_v59 = vmul.f32 %v5934_v47, %v971_v58 }
0x1436   :  { %v982_v60 = vpack.c.bf16 %v6720_v59, %v6720_v59 }
0x1437   :  { %v556_v62 = vpop.permute.xlu0 %555 }
0x1438   :  { %559 = vst.msk [vmem:[#allocation2 + $0x8] sm:$0xff] %vm398_vm4, %v556_v62  ;;  %985 = vrot.lane.b32.xlu1 %v982_v60, %s6401_s3 }
0x143b   :  { %v724_v61 = vpop.permute.xlu0 %723 }
0x143c   :  { %727 = vst.msk [vmem:[#allocation2 + $0x18] sm:$0xff] %vm398_vm4, %v724_v61 }
0x143f   :  { %v1065_v0 = vld [vmem:[#allocation2 + $0x8] sm:$0xff] }
0x1440   :  { %v1072_v1 = vpack.c.bf16 %v1065_v0, %v1064_v63 }
0x1442   :  { %5501 = vmatprep.mubr.msk.bf16.mxu0 %vm398_vm4, %v1072_v1 }
0x1443   :  { %v1067_v2 = vld [vmem:[#allocation2 + $0x18] sm:$0xff] }
0x1444   :  { %v1073_v3 = vpack.c.bf16 %v1067_v2, %v1066_v46 }
0x1446   :  { %5502 = vmatmul.mubr.msk.bf16.vlgmr.msra.gmra.mrb[24].mxu0 %vm398_vm4, %v1073_v3 }
0x14aa   :  { %v986_v8 = vpop.permute.xlu1 %985 }
0x14ab   :  { %5496 = vmatmul.mubr.msk.bf16.vlgmr.msra.gmra.mrb[20].mxu1 %vm398_vm4, %v986_v8 }
0x14ac   :  { %5510 = vmatpush3.bf16.msra.mxu1 %v1175_v5  ;;  %5511 = vmatprep.mubr.msk.bf16.mxu1 %vm6396_vm2, %v6395_v6 }
0x14ad   :  { %5515 = vmatprep.subr.bf16.mxu1 %v6395_v6 }
0x14b3   :  { %5512 = vmatmul.mubr.bf16.vlgmr.msra.gmra.mrb[24].mxu1 %v6397_v9 }
0x14b4   :  { %5517 = vmatprep.mubr.msk.bf16.mxu1 %vm6396_vm2, %v6395_v6  ;;  %5516 = vmatpush3.bf16.msra.mxu1 %v1257_v45 }
0x14b5   :  { %5527 = vmatprep.subr.bf16.mxu1 %v6395_v6 }
0x1519   :  { %v5503_v11 = vpop.f32.mrb[24].mxu0 }
0x151a   :  { %v1142_v12 = vadd.f32 %v5503_v11, %v6740_v10  ;;  %v1133_v13 = vpop.f32.mrb[25].mxu0 }
0x151b   :  { %v1134_v14 = vadd.f32 %v6740_v10, %v1133_v13  ;;  %v5504_v15 = vpop.f32.mrb[26].mxu0 }
0x151c   :  { %1166 = vst.msk [vmem:[#allocation3 + $0x10] sm:$0xff] %vm387_vm3, %v1142_v12  ;;  %v1145_v16 = vadd.f32 %v5504_v15, %v6740_v10  ;;  %v1136_v17 = vpop.f32.mrb[27].mxu0 }
0x151d   :  { %1164 = vst.msk [vmem:[#allocation3] sm:$0xff] %vm387_vm3, %v1134_v14  ;;  %v1137_v18 = vadd.f32 %v6740_v10, %v1136_v17 }
0x151e   :  { %1167 = vst.msk [vmem:[#allocation3 + $0x18] sm:$0xff] %vm387_vm3, %v1145_v16 }
0x151f   :  { %1165 = vst.msk [vmem:[#allocation3 + $0x8] sm:$0xff] %vm387_vm3, %v1137_v18 }
0x1523   :  { %v1329_v44 = vld [vmem:[#allocation3 + $0x10] sm:$0xff] }
0x1524   :  { %v1172_v24 = vld [vmem:[#allocation3] sm:$0xff] }
0x1526   :  { %v1247_v1 = vld [vmem:[#allocation3 + $0x8] sm:$0xff] }
0x157e   :  { %v1027_v19 = vpop.f32.mrb[20].mxu1 }
0x157f   :  { %v5497_v20 = vpop.f32.mrb[21].mxu1  ;;  %v1033_v43 = vadd.f32 %v1027_v19, %v981_v42  ;;  %v1331_v19 = vld [vmem:[%s7682_s27] sm:$0xf] }
0x1580   :  { %v1030_v21 = vpop.f32.mrb[22].mxu1 }
0x1581   :  { %v5498_v23 = vpop.f32.mrb[23].mxu1  ;;  %v5148_v49 = vmul.f32 -1.442695, %v1033_v43  ;;  %v1339_v21 = vsel %vm402_vm1, %v1331_v19, 0 }
0x1582   :  { %5522 = vmatpush3.bf16.msra.mxu0 %v1339_v21 }
0x1583   :  { %5533 = vmatprep.subr.bf16.mxu0 %v6395_v6 }
0x1586   :  { %v1211_v25 = vpop.f32.mrb[24].mxu1 }
0x1587   :  { %v1217_v26 = vadd.f32 %v1211_v25, %v1172_v24  ;;  %v5513_v27 = vpop.f32.mrb[25].mxu1 }
0x1588   :  { %v1214_v28 = vpop.f32.mrb[26].mxu1 }
0x1589   :  { %5937 = vtanh.f32 %v1217_v26  ;;  %v5514_v29 = vpop.f32.mrb[27].mxu1  ;;  %v5154_v31 = vmul.f32 -1.442695, %v1217_v26 }
0x158b   :  { %5939 = vpow2.f32 %v5154_v31 }
0x1593   :  { %v5938_v30 = vpop.eup %5937 }
0x1594   :  { %1227 = vrot.lane.b32.xlu0 %v5938_v30, %s6398_s1 }
0x1595   :  { %v5940_v33 = vpop.eup %5939 }
0x1596   :  { %v1221_v34 = vadd.f32 1.0, %v5940_v33 }
0x1598   :  { %5941 = vrcp.f32 %v1221_v34 }
0x15a2   :  { %v5942_v35 = vpop.eup %5941 }
0x15a3   :  { %v1225_v39 = vmul.f32 0.0, %v5942_v35 }
0x1606   :  { %v1228_v36 = vpop.permute.xlu0 %1227 }
0x1607   :  { %v1230_v37 = vmul.f32 %v5942_v35, %v1228_v36 }
0x1609   :  { %1232 = vrot.lane.b32.xlu1 %v1230_v37, %s6399_s30 }
0x167b   :  { %v1233_v40 = vpop.permute.xlu1 %1232 }
0x167c   :  { %v1235_v41 = vadd.f32 %v1233_v40, %v1225_v39 }
0x167e   :  { %5943 = vtanh.f32 %v1235_v41 }
0x167f   :  { %5945 = vtanh.f32 %v1033_v43 }
0x1680   :  { %5947 = vpow2.f32 %v5148_v49 }
0x1688   :  { %v5944_v47 = vpop.eup %5943 }
0x1689   :  { %1238 = vrot.lane.b32.xlu0 %v5944_v47, %s6400_s26  ;;  %v5946_v48 = vpop.eup %5945 }
0x168a   :  { %v5948_v50 = vpop.eup %5947 }
0x168b   :  { %v1037_v51 = vadd.f32 1.0, %v5948_v50 }
0x168d   :  { %1043 = vrot.lane.b32.xlu0 %v5946_v48, %s6398_s1  ;;  %5949 = vrcp.f32 %v1037_v51 }
0x1697   :  { %v5950_v38 = vpop.eup %5949 }
0x1698   :  { %v1041_v58 = vmul.f32 %v5950_v38, %v6702_v52 }
0x16fb   :  { %v1239_v53 = vpop.permute.xlu0 %1238 }
0x16fc   :  { %v6759_v54 = vmul.f32 %v5942_v35, %v1239_v53 }
0x16fe   :  { %v1248_v55 = vpack.c.bf16 %v6759_v54, %v6759_v54 }
0x16ff   :  { %v1044_v22 = vpop.permute.xlu0 %1043 }
0x1700   :  { %v1046_v56 = vmul.f32 %v5950_v38, %v1044_v22  ;;  %1251 = vrot.lane.b32.xlu1 %v1248_v55, %s6401_s3 }
0x1702   :  { %1048 = vrot.lane.b32.xlu0 %v1046_v56, %s6399_s30 }
0x1772   :  { %v1252_v57 = vpop.permute.xlu1 %1251 }
0x1773   :  { %5518 = vmatmul.mubr.msk.bf16.vlgmr.msra.gmra.mrb[28].mxu1 %vm398_vm4, %v1252_v57 }
0x1774   :  { %v1049_v60 = vpop.permute.xlu0 %1048  ;;  %5529 = vmatprep.mubr.msk.bf16.mxu1 %vm6396_vm2, %v6395_v6 }
0x1775   :  { %v1051_v62 = vadd.f32 %v1049_v60, %v1041_v58 }
0x1777   :  { %5951 = vtanh.f32 %v1051_v62  ;;  %v1413_v62 = vld [vmem:[%s7682_s27] sm:$0xf] }
0x1781   :  { %v5952_v61 = vpop.eup %5951 }
0x1782   :  { %1054 = vrot.lane.b32.xlu0 %v5952_v61, %s6400_s26  ;;  %v1421_v61 = vsel %vm402_vm1, %v1413_v62, 0 }
0x1783   :  { %5528 = vmatpush3.bf16.msra.mxu1 %v1421_v61 }
0x1784   :  { %5539 = vmatprep.subr.bf16.mxu1 %v6395_v6 }
0x1786   :  { %807 = vrot.lane.b32.xlu0 %v6678_v7, %s6401_s3 }
0x178a   :  { %975 = vrot.lane.b32.xlu0 %v6720_v59, %s6401_s3 }
0x17f4   :  { %v1055_v63 = vpop.permute.xlu0 %1054 }
0x17f5   :  { %v1057_v20 = vmul.f32 %v5950_v38, %v1055_v63 }
0x17f8   :  { %v808_v0 = vpop.permute.xlu0 %807 }
0x17f9   :  { %811 = vst.msk [vmem:[#allocation2 + $0x20] sm:$0xff] %vm398_vm4, %v808_v0 }
0x17fc   :  { %v976_v52 = vpop.permute.xlu0 %975 }
0x17fd   :  { %979 = vst.msk [vmem:[#allocation2 + $0x30] sm:$0xff] %vm398_vm4, %v976_v52 }
0x1800   :  { %v1068_v27 = vld [vmem:[#allocation2 + $0x20] sm:$0xff] }
0x1804   :  { %v1070_v30 = vld [vmem:[#allocation2 + $0x30] sm:$0xff] }
0x1846   :  { %v1293_v46 = vpop.f32.mrb[28].mxu1 }
0x1847   :  { %v1299_v2 = vadd.f32 %v1293_v46, %v1247_v1  ;;  %v5519_v3 = vpop.f32.mrb[29].mxu1 }
0x1848   :  { %v1296_v4 = vpop.f32.mrb[30].mxu1 }
0x1849   :  { %5953 = vtanh.f32 %v1299_v2  ;;  %v5520_v5 = vpop.f32.mrb[31].mxu1  ;;  %v5156_v7 = vmul.f32 -1.442695, %v1299_v2  ;;  %v1411_v2 = vld [vmem:[#allocation3 + $0x18] sm:$0xff] }
0x184b   :  { %5955 = vpow2.f32 %v5156_v7 }
0x1853   :  { %v5954_v8 = vpop.eup %5953 }
0x1854   :  { %1309 = vrot.lane.b32.xlu1 %v5954_v8, %s6398_s1 }
0x1855   :  { %v5956_v59 = vpop.eup %5955 }
0x1856   :  { %v1303_v11 = vadd.f32 1.0, %v5956_v59 }
0x1858   :  { %5957 = vrcp.f32 %v1303_v11 }
0x1862   :  { %v5958_v12 = vpop.eup %5957 }
0x1863   :  { %v1307_v15 = vmul.f32 %v5958_v12, %v1235_v41 }
0x18c6   :  { %v1310_v13 = vpop.permute.xlu1 %1309 }
0x18c7   :  { %v1312_v14 = vmul.f32 %v5958_v12, %v1310_v13 }
0x18c9   :  { %1314 = vrot.lane.b32.xlu1 %v1312_v14, %s6399_s30 }
0x193b   :  { %v1315_v16 = vpop.permute.xlu1 %1314 }
0x193c   :  { %v1317_v17 = vadd.f32 %v1315_v16, %v1307_v15 }
0x193e   :  { %5959 = vtanh.f32 %v1317_v17 }
0x1948   :  { %v5960_v18 = vpop.eup %5959 }
0x1949   :  { %1320 = vrot.lane.b32.xlu1 %v5960_v18, %s6400_s26 }
0x194d   :  { %891 = vrot.lane.b32.xlu1 %v6690_v32, %s6401_s3 }
0x1951   :  { %1059 = vrot.lane.b32.xlu1 %v1057_v20, %s6401_s3  ;;  %v1495_v20 = vld [vmem:[%s7682_s27] sm:$0xf] }
0x1952   :  { %v1503_v21 = vsel %vm402_vm1, %v1495_v20, 0 }
0x19bb   :  { %v1321_v23 = vpop.permute.xlu1 %1320 }
0x19bc   :  { %v6787_v24 = vmul.f32 %v5958_v12, %v1321_v23 }
0x19be   :  { %v1330_v25 = vpack.c.bf16 %v6787_v24, %v6787_v24 }
0x19bf   :  { %v892_v26 = vpop.permute.xlu1 %891 }
0x19c0   :  { %895 = vst.msk [vmem:[#allocation2 + $0x28] sm:$0xff] %vm398_vm4, %v892_v26  ;;  %1333 = vrot.lane.b32.xlu0 %v1330_v25, %s6401_s3 }
0x19c3   :  { %v1060_v32 = vpop.permute.xlu1 %1059 }
0x19c4   :  { %1063 = vst.msk [vmem:[#allocation2 + $0x38] sm:$0xff] %vm398_vm4, %v1060_v32 }
0x19c7   :  { %v1069_v28 = vld [vmem:[#allocation2 + $0x28] sm:$0xff] }
0x19c8   :  { %v1074_v29 = vpack.c.bf16 %v1069_v28, %v1068_v27 }
0x19ca   :  { %5505 = vmatprep.mubr.msk.bf16.mxu0 %vm398_vm4, %v1074_v29 }
0x19cb   :  { %v1071_v31 = vld [vmem:[#allocation2 + $0x38] sm:$0xff] }
0x19cc   :  { %v1075_v33 = vpack.c.bf16 %v1071_v31, %v1070_v30 }
0x19ce   :  { %5506 = vmatmul.mubr.msk.bf16.gmra.mrb[28].mxu0 %vm398_vm4, %v1075_v33 }
0x19cf   :  { %5523 = vmatprep.mubr.msk.bf16.mxu0 %vm6396_vm2, %v6395_v6 }
0x1a32   :  { %v1334_v34 = vpop.permute.xlu0 %1333 }
0x1a33   :  { %5524 = vmatmul.mubr.msk.bf16.vlgmr.msra.gmra.mrb[32].mxu0 %vm398_vm4, %v1334_v34 }
0x1a34   :  { %5535 = vmatprep.mubr.msk.bf16.mxu0 %vm6396_vm2, %v6395_v6  ;;  %5534 = vmatpush3.bf16.msra.mxu0 %v1503_v21 }
0x1a35   :  { %5545 = vmatprep.subr.bf16.mxu0 %v6395_v6 }
0x1aa1   :  { %v5507_v35 = vpop.f32.mrb[28].mxu0 }
0x1aa2   :  { %v1158_v36 = vadd.f32 %v5507_v35, %v6740_v10  ;;  %v1149_v37 = vpop.f32.mrb[29].mxu0 }
0x1aa3   :  { %v1150_v39 = vadd.f32 %v6740_v10, %v1149_v37  ;;  %v5508_v40 = vpop.f32.mrb[30].mxu0 }
0x1aa4   :  { %1170 = vst.msk [vmem:[#allocation3 + $0x30] sm:$0xff] %vm387_vm3, %v1158_v36  ;;  %v1161_v41 = vadd.f32 %v5508_v40, %v6740_v10  ;;  %v1152_v42 = vpop.f32.mrb[31].mxu0 }
0x1aa5   :  { %1168 = vst.msk [vmem:[#allocation3 + $0x20] sm:$0xff] %vm387_vm3, %v1150_v39  ;;  %v1153_v43 = vadd.f32 %v6740_v10, %v1152_v42 }
0x1aa6   :  { %1171 = vst.msk [vmem:[#allocation3 + $0x38] sm:$0xff] %vm387_vm3, %v1161_v41 }
0x1aa7   :  { %1169 = vst.msk [vmem:[#allocation3 + $0x28] sm:$0xff] %vm387_vm3, %v1153_v43 }
0x1aac   :  { %v1493_v28 = vld [vmem:[#allocation3 + $0x20] sm:$0xff] }
0x1b06   :  { %v1375_v45 = vpop.f32.mrb[32].mxu0 }
0x1b07   :  { %v1381_v47 = vadd.f32 %v1375_v45, %v1329_v44  ;;  %v5525_v48 = vpop.f32.mrb[33].mxu0 }
0x1b08   :  { %v1378_v49 = vpop.f32.mrb[34].mxu0 }
0x1b09   :  { %5961 = vtanh.f32 %v1381_v47  ;;  %v5526_v50 = vpop.f32.mrb[35].mxu0  ;;  %v5158_v53 = vmul.f32 -1.442695, %v1381_v47  ;;  %v1577_v47 = vld [vmem:[%s7682_s27] sm:$0xf] }
0x1b0a   :  { %v1585_v48 = vsel %vm402_vm1, %v1577_v47, 0 }
0x1b0b   :  { %5963 = vpow2.f32 %v5158_v53 }
0x1b13   :  { %v5962_v51 = vpop.eup %5961 }
0x1b14   :  { %1391 = vrot.lane.b32.xlu1 %v5962_v51, %s6398_s1 }
0x1b15   :  { %v5964_v55 = vpop.eup %5963 }
0x1b16   :  { %v1385_v38 = vadd.f32 1.0, %v5964_v55 }
0x1b18   :  { %5965 = vrcp.f32 %v1385_v38  ;;  %v1575_v38 = vld [vmem:[#allocation3 + $0x28] sm:$0xff] }
0x1b22   :  { %v5966_v10 = vpop.eup %5965 }
0x1b23   :  { %v1389_v57 = vmul.f32 %v5966_v10, %v1317_v17 }
0x1b86   :  { %v1392_v22 = vpop.permute.xlu1 %1391 }
0x1b87   :  { %v1394_v56 = vmul.f32 %v5966_v10, %v1392_v22 }
0x1b89   :  { %1396 = vrot.lane.b32.xlu0 %v1394_v56, %s6399_s30 }
0x1bfb   :  { %v1397_v58 = vpop.permute.xlu0 %1396 }
0x1bfc   :  { %v1399_v60 = vadd.f32 %v1397_v58, %v1389_v57 }
0x1bfe   :  { %5967 = vtanh.f32 %v1399_v60 }
0x1c08   :  { %v5968_v63 = vpop.eup %5967 }
0x1c09   :  { %1402 = vrot.lane.b32.xlu1 %v5968_v63, %s6400_s26 }
0x1c7b   :  { %v1403_v0 = vpop.permute.xlu1 %1402 }
0x1c7c   :  { %v6817_v52 = vmul.f32 %v5966_v10, %v1403_v0 }
0x1c7e   :  { %v1412_v1 = vpack.c.bf16 %v6817_v52, %v6817_v52 }
0x1c80   :  { %1415 = vrot.lane.b32.xlu0 %v1412_v1, %s6401_s3 }
0x1cf2   :  { %v1416_v46 = vpop.permute.xlu0 %1415 }
0x1cf3   :  { %5530 = vmatmul.mubr.msk.bf16.vlgmr.msra.gmra.mrb[32].mxu1 %vm398_vm4, %v1416_v46 }
0x1cf4   :  { %5541 = vmatprep.mubr.msk.bf16.mxu1 %vm6396_vm2, %v6395_v6  ;;  %5540 = vmatpush3.bf16.msra.mxu1 %v1585_v48 }
0x1cf5   :  { %5551 = vmatprep.subr.bf16.mxu1 %v6395_v6 }
0x1dc6   :  { %v1457_v3 = vpop.f32.mrb[32].mxu1 }
0x1dc7   :  { %v1463_v4 = vadd.f32 %v1457_v3, %v1411_v2  ;;  %v5531_v5 = vpop.f32.mrb[33].mxu1 }
0x1dc8   :  { %v1460_v8 = vpop.f32.mrb[34].mxu1  ;;  %v1659_v5 = vld [vmem:[%s7682_s27] sm:$0xf] }
0x1dc9   :  { %5969 = vtanh.f32 %v1463_v4  ;;  %v5532_v7 = vpop.f32.mrb[35].mxu1  ;;  %v5160_v11 = vmul.f32 -1.442695, %v1463_v4  ;;  %v1667_v8 = vsel %vm402_vm1, %v1659_v5, 0 }
0x1dcb   :  { %5971 = vpow2.f32 %v5160_v11 }
0x1dd3   :  { %v5970_v59 = vpop.eup %5969 }
0x1dd4   :  { %1473 = vrot.lane.b32.xlu1 %v5970_v59, %s6398_s1 }
0x1dd5   :  { %v5972_v12 = vpop.eup %5971 }
0x1dd6   :  { %v1467_v13 = vadd.f32 1.0, %v5972_v12 }
0x1dd8   :  { %5973 = vrcp.f32 %v1467_v13 }
0x1de2   :  { %v5974_v14 = vpop.eup %5973 }
0x1de3   :  { %v1471_v17 = vmul.f32 %v5974_v14, %v1399_v60 }
0x1e46   :  { %v1474_v15 = vpop.permute.xlu1 %1473 }
0x1e47   :  { %v1476_v16 = vmul.f32 %v5974_v14, %v1474_v15 }
0x1e49   :  { %1478 = vrot.lane.b32.xlu0 %v1476_v16, %s6399_s30 }
0x1ebb   :  { %v1479_v18 = vpop.permute.xlu0 %1478 }
0x1ebc   :  { %v1481_v19 = vadd.f32 %v1479_v18, %v1471_v17 }
0x1ebe   :  { %5975 = vtanh.f32 %v1481_v19 }
0x1ec8   :  { %v5976_v23 = vpop.eup %5975 }
0x1ec9   :  { %1484 = vrot.lane.b32.xlu1 %v5976_v23, %s6400_s26 }
0x1f3b   :  { %v1485_v25 = vpop.permute.xlu1 %1484 }
0x1f3c   :  { %v6833_v26 = vmul.f32 %v5974_v14, %v1485_v25  ;;  %v1657_v14 = vld [vmem:[#allocation3 + $0x30] sm:$0xff] }
0x1f3e   :  { %v1494_v32 = vpack.c.bf16 %v6833_v26, %v6833_v26 }
0x1f40   :  { %1497 = vrot.lane.b32.xlu0 %v1494_v32, %s6401_s3 }
0x1fb2   :  { %v1498_v27 = vpop.permute.xlu0 %1497 }
0x1fb3   :  { %5536 = vmatmul.mubr.msk.bf16.vlgmr.msra.gmra.mrb[36].mxu0 %vm398_vm4, %v1498_v27 }
0x1fb4   :  { %5547 = vmatprep.mubr.msk.bf16.mxu0 %vm6396_vm2, %v6395_v6  ;;  %5546 = vmatpush3.bf16.msra.mxu0 %v1667_v8 }
0x2086   :  { %v1539_v29 = vpop.f32.mrb[36].mxu0 }
0x2087   :  { %v1545_v30 = vadd.f32 %v1539_v29, %v1493_v28  ;;  %v5537_v31 = vpop.f32.mrb[37].mxu0 }
0x2088   :  { %v1542_v33 = vpop.f32.mrb[38].mxu0 }
0x2089   :  { %5977 = vtanh.f32 %v1545_v30  ;;  %v5538_v34 = vpop.f32.mrb[39].mxu0  ;;  %v5162_v36 = vmul.f32 -1.442695, %v1545_v30 }
0x208b   :  { %5979 = vpow2.f32 %v5162_v36  ;;  %v1741_v36 = vld [vmem:[%s7682_s27] sm:$0xf] }
0x2093   :  { %v5978_v35 = vpop.eup %5977 }
0x2094   :  { %1555 = vrot.lane.b32.xlu1 %v5978_v35, %s6398_s1  ;;  %v1833_v35 = vld [vmem:[%s7648_s9] sm:$0xf] }
0x2095   :  { %v5980_v37 = vpop.eup %5979  ;;  %5800 = vmatprep.subr.msk.bf16.mxu0 %vm402_vm1, %v1833_v35 }
0x2096   :  { %v1549_v39 = vadd.f32 1.0, %v5980_v37  ;;  %v1749_v37 = vsel %vm402_vm1, %v1741_v36, 0 }
0x2098   :  { %5981 = vrcp.f32 %v1549_v39 }
0x20a2   :  { %v5982_v40 = vpop.eup %5981 }
0x20a3   :  { %v1553_v43 = vmul.f32 %v5982_v40, %v1481_v19 }
0x2106   :  { %v1556_v41 = vpop.permute.xlu1 %1555 }
0x2107   :  { %v1558_v42 = vmul.f32 %v5982_v40, %v1556_v41 }
0x2109   :  { %1560 = vrot.lane.b32.xlu0 %v1558_v42, %s6399_s30 }
0x217b   :  { %v1561_v44 = vpop.permute.xlu0 %1560 }
0x217c   :  { %v1563_v45 = vadd.f32 %v1561_v44, %v1553_v43 }
0x217e   :  { %5983 = vtanh.f32 %v1563_v45 }
0x2188   :  { %v5984_v49 = vpop.eup %5983 }
0x2189   :  { %1566 = vrot.lane.b32.xlu1 %v5984_v49, %s6400_s26  ;;  %v1930_v49 = vld [vmem:[%s7649_s10] sm:$0xf] }
0x21fb   :  { %v1567_v50 = vpop.permute.xlu1 %1566 }
0x21fc   :  { %v6849_v51 = vmul.f32 %v5982_v40, %v1567_v50  ;;  %v1932_v50 = vsel %vm402_vm1, %v1930_v49, 0 }
0x21fe   :  { %v1576_v53 = vpack.c.bf16 %v6849_v51, %v6849_v51 }
0x2200   :  { %1579 = vrot.lane.b32.xlu0 %v1576_v53, %s6401_s3 }
0x2272   :  { %v1580_v55 = vpop.permute.xlu0 %1579 }
0x2273   :  { %5542 = vmatmul.mubr.msk.bf16.vlgmr.msra.gmra.mrb[36].mxu1 %vm398_vm4, %v1580_v55  ;;  %v6917_v55 = vld [vmem:[#allocation9] ss:$0 sm:$0xff] }
0x2274   :  { %5553 = vmatprep.mubr.msk.bf16.mxu1 %vm6396_vm2, %v6395_v6  ;;  %5552 = vmatpush3.bf16.msra.mxu1 %v1749_v37 }
0x2275   :  { %5567 = vmatprep.subr.bf16.mxu1 %v6395_v6 }
0x2346   :  { %v1621_v10 = vpop.f32.mrb[36].mxu1 }
0x2347   :  { %v1627_v22 = vadd.f32 %v1621_v10, %v1575_v38  ;;  %v5543_v56 = vpop.f32.mrb[37].mxu1 }
0x2348   :  { %v1624_v57 = vpop.f32.mrb[38].mxu1 }
0x2349   :  { %5985 = vtanh.f32 %v1627_v22  ;;  %v5544_v58 = vpop.f32.mrb[39].mxu1  ;;  %v5164_v62 = vmul.f32 -1.442695, %v1627_v22 }
0x234b   :  { %5987 = vpow2.f32 %v5164_v62 }
0x2353   :  { %v5986_v60 = vpop.eup %5985 }
0x2354   :  { %1637 = vrot.lane.b32.xlu1 %v5986_v60, %s6398_s1 }
0x2355   :  { %v5988_v61 = vpop.eup %5987 }
0x2356   :  { %v1631_v63 = vadd.f32 1.0, %v5988_v61 }
0x2358   :  { %5989 = vrcp.f32 %v1631_v63 }
0x2362   :  { %v5990_v0 = vpop.eup %5989 }
0x2363   :  { %v1635_v2 = vmul.f32 %v5990_v0, %v1563_v45 }
0x23c6   :  { %v1638_v1 = vpop.permute.xlu1 %1637 }
0x23c7   :  { %v1640_v46 = vmul.f32 %v5990_v0, %v1638_v1 }
0x23c9   :  { %1642 = vrot.lane.b32.xlu0 %v1640_v46, %s6399_s30 }
0x243b   :  { %v1643_v3 = vpop.permute.xlu0 %1642 }
0x243c   :  { %v1645_v4 = vadd.f32 %v1643_v3, %v1635_v2 }
0x243e   :  { %5991 = vtanh.f32 %v1645_v4 }
0x2448   :  { %v5992_v7 = vpop.eup %5991 }
0x2449   :  { %1648 = vrot.lane.b32.xlu1 %v5992_v7, %s6400_s26 }
0x24bb   :  { %v1649_v59 = vpop.permute.xlu1 %1648 }
0x24bc   :  { %v6864_v11 = vmul.f32 %v5990_v0, %v1649_v59 }
0x24be   :  { %v1658_v12 = vpack.c.bf16 %v6864_v11, %v6864_v11 }
0x24c0   :  { %1661 = vrot.lane.b32.xlu0 %v1658_v12, %s6401_s3 }
0x2532   :  { %v1662_v13 = vpop.permute.xlu0 %1661 }
0x2533   :  { %5548 = vmatmul.mubr.msk.bf16.vlgmr.msra.gmra.mrb[40].mxu0 %vm398_vm4, %v1662_v13 }
0x2606   :  { %v1703_v15 = vpop.f32.mrb[40].mxu0 }
0x2607   :  { %v1709_v16 = vadd.f32 %v1703_v15, %v1657_v14  ;;  %v5549_v17 = vpop.f32.mrb[41].mxu0 }
0x2608   :  { %v1706_v18 = vpop.f32.mrb[42].mxu0 }
0x2609   :  { %5993 = vtanh.f32 %v1709_v16  ;;  %v5550_v19 = vpop.f32.mrb[43].mxu0  ;;  %v5166_v21 = vmul.f32 -1.442695, %v1709_v16 }
0x260b   :  { %5995 = vpow2.f32 %v5166_v21 }
0x2613   :  { %v5994_v20 = vpop.eup %5993 }
0x2614   :  { %1719 = vrot.lane.b32.xlu1 %v5994_v20, %s6398_s1  ;;  %v1739_v20 = vld [vmem:[#allocation3 + $0x38] sm:$0xff] }
0x2615   :  { %v5996_v23 = vpop.eup %5995 }
0x2616   :  { %v1713_v25 = vadd.f32 1.0, %v5996_v23  ;;  %v2006_v23 = vld [vmem:[%s7649_s10] sm:$0xf] }
0x2618   :  { %5997 = vrcp.f32 %v1713_v25  ;;  %v2014_v25 = vsel %vm402_vm1, %v2006_v23, 0 }
0x2622   :  { %v5998_v32 = vpop.eup %5997 }
0x2623   :  { %v1717_v29 = vmul.f32 %v5998_v32, %v1645_v4 }
0x2686   :  { %v1720_v27 = vpop.permute.xlu1 %1719 }
0x2687   :  { %v1722_v28 = vmul.f32 %v5998_v32, %v1720_v27 }
0x2689   :  { %1724 = vrot.lane.b32.xlu0 %v1722_v28, %s6399_s30 }
0x268d   :  { %1243 = vrot.lane.b32.xlu0 %v6759_v54, %s6401_s3 }
0x2691   :  { %1407 = vrot.lane.b32.xlu0 %v6817_v52, %s6401_s3  ;;  %v1854_v52 = vsel %vm402_vm1, %v1833_v35, 0 }
0x2692   :  { %5558 = vmatpush3.bf16.msra.mxu0 %v1854_v52 }
0x2693   :  { %5579 = vmatprep.subr.bf16.mxu0 %v6395_v6 }
0x26fb   :  { %v1725_v30 = vpop.permute.xlu0 %1724 }
0x26fc   :  { %v6876_v31 = vadd.f32 %v1725_v30, %v1717_v29 }
0x26fe   :  { %5999 = vtanh.f32 %v6876_v31 }
0x26ff   :  { %v1244_v33 = vpop.permute.xlu0 %1243 }
0x2700   :  { %1246 = vst.msk [vmem:[#allocation2] sm:$0xff] %vm398_vm4, %v1244_v33 }
0x2703   :  { %v1408_v34 = vpop.permute.xlu0 %1407 }
0x2704   :  { %1410 = vst.msk [vmem:[#allocation2 + $0x10] sm:$0xff] %vm398_vm4, %v1408_v34 }
0x2707   :  { %v1821_v43 = vld [vmem:[#allocation2] sm:$0xff] }
0x2708   :  { %v6000_v54 = vpop.eup %5999 }
0x2709   :  { %1730 = vrot.lane.b32.xlu1 %v6000_v54, %s6400_s26 }
0x270d   :  { %1325 = vrot.lane.b32.xlu1 %v6787_v24, %s6401_s3 }
0x2711   :  { %1489 = vrot.lane.b32.xlu1 %v6833_v26, %s6401_s3  ;;  %v1823_v26 = vld [vmem:[#allocation2 + $0x10] sm:$0xff] }
0x277b   :  { %v1731_v39 = vpop.permute.xlu1 %1730 }
0x277c   :  { %v6897_v40 = vmul.f32 %v5998_v32, %v1731_v39 }
0x277e   :  { %v1740_v41 = vpack.c.bf16 %v6897_v40, %v6897_v40 }
0x277f   :  { %v1326_v42 = vpop.permute.xlu1 %1325 }
0x2780   :  { %1328 = vst.msk [vmem:[#allocation2 + $0x8] sm:$0xff] %vm398_vm4, %v1326_v42  ;;  %1743 = vrot.lane.b32.xlu0 %v1740_v41, %s6401_s3 }
0x2783   :  { %v1490_v24 = vpop.permute.xlu1 %1489 }
0x2784   :  { %1492 = vst.msk [vmem:[#allocation2 + $0x18] sm:$0xff] %vm398_vm4, %v1490_v24 }
0x2787   :  { %v1822_v44 = vld [vmem:[#allocation2 + $0x8] sm:$0xff] }
0x2788   :  { %v1829_v45 = vpack.c.bf16 %v1822_v44, %v1821_v43 }
0x278a   :  { %5559 = vmatprep.mubr.msk.bf16.mxu0 %vm398_vm4, %v1829_v45 }
0x278b   :  { %v1824_v47 = vld [vmem:[#allocation2 + $0x18] sm:$0xff] }
0x278c   :  { %v1830_v48 = vpack.c.bf16 %v1824_v47, %v1823_v26 }
0x278e   :  { %5560 = vmatmul.mubr.msk.bf16.vlgmr.msra.gmra.mrb[44].mxu0 %vm398_vm4, %v1830_v48 }
0x27f2   :  { %v1744_v53 = vpop.permute.xlu0 %1743 }
0x27f3   :  { %5554 = vmatmul.mubr.msk.bf16.vlgmr.msra.gmra.mrb[40].mxu1 %vm398_vm4, %v1744_v53 }
0x27f4   :  { %5568 = vmatpush3.bf16.msra.mxu1 %v1932_v50  ;;  %5569 = vmatprep.mubr.msk.bf16.mxu1 %vm6396_vm2, %v6395_v6 }
0x27f5   :  { %5573 = vmatprep.subr.bf16.mxu1 %v6395_v6 }
0x27fb   :  { %5570 = vmatmul.mubr.bf16.vlgmr.msra.gmra.mrb[44].mxu1 %v6397_v9 }
0x27fc   :  { %5575 = vmatprep.mubr.msk.bf16.mxu1 %vm6396_vm2, %v6395_v6  ;;  %5574 = vmatpush3.bf16.msra.mxu1 %v2014_v25 }
0x27fd   :  { %5585 = vmatprep.subr.bf16.mxu1 %v6395_v6 }
0x2861   :  { %v5561_v38 = vpop.f32.mrb[44].mxu0 }
0x2862   :  { %v1899_v10 = vadd.f32 %v5561_v38, %v6917_v55  ;;  %v1890_v22 = vpop.f32.mrb[45].mxu0 }
0x2863   :  { %v1891_v56 = vadd.f32 %v6917_v55, %v1890_v22  ;;  %v5562_v57 = vpop.f32.mrb[46].mxu0 }
0x2864   :  { %1923 = vst.msk [vmem:[#allocation3 + $0x10] sm:$0xff] %vm387_vm3, %v1899_v10  ;;  %v1902_v58 = vadd.f32 %v5562_v57, %v6917_v55  ;;  %v1893_v60 = vpop.f32.mrb[47].mxu0 }
0x2865   :  { %1921 = vst.msk [vmem:[#allocation3] sm:$0xff] %vm387_vm3, %v1891_v56  ;;  %v1894_v62 = vadd.f32 %v6917_v55, %v1893_v60 }
0x2866   :  { %1924 = vst.msk [vmem:[#allocation3 + $0x18] sm:$0xff] %vm387_vm3, %v1902_v58 }
0x2867   :  { %1922 = vst.msk [vmem:[#allocation3 + $0x8] sm:$0xff] %vm387_vm3, %v1894_v62 }
0x286b   :  { %v2086_v23 = vld [vmem:[#allocation3 + $0x10] sm:$0xff] }
0x286c   :  { %v1929_v46 = vld [vmem:[#allocation3] sm:$0xff] }
0x286e   :  { %v2004_v45 = vld [vmem:[#allocation3 + $0x8] sm:$0xff] }
0x28c6   :  { %v1785_v61 = vpop.f32.mrb[40].mxu1 }
0x28c7   :  { %v5555_v63 = vpop.f32.mrb[41].mxu1  ;;  %v1791_v21 = vadd.f32 %v1785_v61, %v1739_v20  ;;  %v2088_v61 = vld [vmem:[%s7649_s10] sm:$0xf] }
0x28c8   :  { %v1788_v0 = vpop.f32.mrb[42].mxu1 }
0x28c9   :  { %v5556_v1 = vpop.f32.mrb[43].mxu1  ;;  %v5168_v28 = vmul.f32 -1.442695, %v1791_v21  ;;  %v2096_v0 = vsel %vm402_vm1, %v2088_v61, 0 }
0x28ca   :  { %5580 = vmatpush3.bf16.msra.mxu0 %v2096_v0 }
0x28cb   :  { %5591 = vmatprep.subr.bf16.mxu0 %v6395_v6 }
0x28ce   :  { %v1968_v2 = vpop.f32.mrb[44].mxu1 }
0x28cf   :  { %v1974_v3 = vadd.f32 %v1968_v2, %v1929_v46  ;;  %v5571_v4 = vpop.f32.mrb[45].mxu1 }
0x28d0   :  { %v1971_v5 = vpop.f32.mrb[46].mxu1 }
0x28d1   :  { %6001 = vtanh.f32 %v1974_v3  ;;  %v5572_v8 = vpop.f32.mrb[47].mxu1  ;;  %v5174_v59 = vmul.f32 -1.442695, %v1974_v3 }
0x28d3   :  { %6003 = vpow2.f32 %v5174_v59 }
0x28db   :  { %v6002_v7 = vpop.eup %6001 }
0x28dc   :  { %1984 = vrot.lane.b32.xlu1 %v6002_v7, %s6398_s1 }
0x28dd   :  { %v6004_v12 = vpop.eup %6003 }
0x28de   :  { %v1978_v13 = vadd.f32 1.0, %v6004_v12 }
0x28e0   :  { %6005 = vrcp.f32 %v1978_v13 }
0x28ea   :  { %v6006_v14 = vpop.eup %6005 }
0x28eb   :  { %v1982_v17 = vmul.f32 0.0, %v6006_v14 }
0x294e   :  { %v1985_v15 = vpop.permute.xlu1 %1984 }
0x294f   :  { %v1987_v16 = vmul.f32 %v6006_v14, %v1985_v15 }
0x2951   :  { %1989 = vrot.lane.b32.xlu0 %v1987_v16, %s6399_s30 }
0x29c3   :  { %v1990_v18 = vpop.permute.xlu0 %1989 }
0x29c4   :  { %v1992_v19 = vadd.f32 %v1990_v18, %v1982_v17 }
0x29c6   :  { %6007 = vtanh.f32 %v1992_v19 }
0x29c7   :  { %6009 = vtanh.f32 %v1791_v21 }
0x29c8   :  { %6011 = vpow2.f32 %v5168_v28 }
0x29d0   :  { %v6008_v32 = vpop.eup %6007 }
0x29d1   :  { %1995 = vrot.lane.b32.xlu1 %v6008_v32, %s6400_s26  ;;  %v6010_v27 = vpop.eup %6009 }
0x29d2   :  { %v6012_v29 = vpop.eup %6011 }
0x29d3   :  { %v1795_v30 = vadd.f32 1.0, %v6012_v29 }
0x29d5   :  { %1801 = vrot.lane.b32.xlu1 %v6010_v27, %s6398_s1  ;;  %6013 = vrcp.f32 %v1795_v30 }
0x29df   :  { %v6014_v54 = vpop.eup %6013 }
0x29e0   :  { %v1799_v39 = vmul.f32 %v6014_v54, %v6876_v31 }
0x2a43   :  { %v1996_v33 = vpop.permute.xlu1 %1995 }
0x2a44   :  { %v6936_v34 = vmul.f32 %v6006_v14, %v1996_v33 }
0x2a46   :  { %v2005_v35 = vpack.c.bf16 %v6936_v34, %v6936_v34 }
0x2a47   :  { %v1802_v52 = vpop.permute.xlu1 %1801 }
0x2a48   :  { %v1804_v36 = vmul.f32 %v6014_v54, %v1802_v52  ;;  %2008 = vrot.lane.b32.xlu0 %v2005_v35, %s6401_s3 }
0x2a4a   :  { %1806 = vrot.lane.b32.xlu1 %v1804_v36, %s6399_s30 }
0x2aba   :  { %v2009_v37 = vpop.permute.xlu0 %2008 }
0x2abb   :  { %5576 = vmatmul.mubr.msk.bf16.vlgmr.msra.gmra.mrb[48].mxu1 %vm398_vm4, %v2009_v37 }
0x2abc   :  { %v1807_v41 = vpop.permute.xlu1 %1806  ;;  %5587 = vmatprep.mubr.msk.bf16.mxu1 %vm6396_vm2, %v6395_v6 }
0x2abd   :  { %v1809_v42 = vadd.f32 %v1807_v41, %v1799_v39 }
0x2abf   :  { %6015 = vtanh.f32 %v1809_v42  ;;  %v2170_v42 = vld [vmem:[%s7649_s10] sm:$0xf] }
0x2ac9   :  { %v6016_v24 = vpop.eup %6015 }
0x2aca   :  { %1812 = vrot.lane.b32.xlu1 %v6016_v24, %s6400_s26  ;;  %v2178_v24 = vsel %vm402_vm1, %v2170_v42, 0 }
0x2acb   :  { %5586 = vmatpush3.bf16.msra.mxu1 %v2178_v24 }
0x2acc   :  { %5597 = vmatprep.subr.bf16.mxu1 %v6395_v6 }
0x2ace   :  { %1571 = vrot.lane.b32.xlu1 %v6849_v51, %s6401_s3 }
0x2ad2   :  { %1735 = vrot.lane.b32.xlu1 %v6897_v40, %s6401_s3 }
0x2b3c   :  { %v1813_v43 = vpop.permute.xlu1 %1812 }
0x2b3d   :  { %v1815_v63 = vmul.f32 %v6014_v54, %v1813_v43 }
0x2b40   :  { %v1572_v44 = vpop.permute.xlu1 %1571 }
0x2b41   :  { %1574 = vst.msk [vmem:[#allocation2 + $0x20] sm:$0xff] %vm398_vm4, %v1572_v44 }
0x2b44   :  { %v1736_v31 = vpop.permute.xlu1 %1735 }
0x2b45   :  { %1738 = vst.msk [vmem:[#allocation2 + $0x30] sm:$0xff] %vm398_vm4, %v1736_v31 }
0x2b48   :  { %v1825_v4 = vld [vmem:[#allocation2 + $0x20] sm:$0xff] }
0x2b4c   :  { %v1827_v7 = vld [vmem:[#allocation2 + $0x30] sm:$0xff] }
0x2b8e   :  { %v2050_v26 = vpop.f32.mrb[48].mxu1 }
0x2b8f   :  { %v2056_v47 = vadd.f32 %v2050_v26, %v2004_v45  ;;  %v5577_v48 = vpop.f32.mrb[49].mxu1 }
0x2b90   :  { %v2053_v49 = vpop.f32.mrb[50].mxu1 }
0x2b91   :  { %6017 = vtanh.f32 %v2056_v47  ;;  %v5578_v50 = vpop.f32.mrb[51].mxu1  ;;  %v5176_v51 = vmul.f32 -1.442695, %v2056_v47  ;;  %v2168_v47 = vld [vmem:[#allocation3 + $0x18] sm:$0xff] }
0x2b93   :  { %6019 = vpow2.f32 %v5176_v51 }
0x2b9b   :  { %v6018_v53 = vpop.eup %6017 }
0x2b9c   :  { %2066 = vrot.lane.b32.xlu0 %v6018_v53, %s6398_s1 }
0x2b9d   :  { %v6020_v40 = vpop.eup %6019 }
0x2b9e   :  { %v2060_v38 = vadd.f32 1.0, %v6020_v40 }
0x2ba0   :  { %6021 = vrcp.f32 %v2060_v38 }
0x2baa   :  { %v6022_v10 = vpop.eup %6021 }
0x2bab   :  { %v2064_v57 = vmul.f32 %v6022_v10, %v1992_v19 }
0x2c0e   :  { %v2067_v22 = vpop.permute.xlu0 %2066 }
0x2c0f   :  { %v2069_v56 = vmul.f32 %v6022_v10, %v2067_v22 }
0x2c11   :  { %2071 = vrot.lane.b32.xlu0 %v2069_v56, %s6399_s30 }
0x2c83   :  { %v2072_v58 = vpop.permute.xlu0 %2071 }
0x2c84   :  { %v2074_v60 = vadd.f32 %v2072_v58, %v2064_v57 }
0x2c86   :  { %6023 = vtanh.f32 %v2074_v60 }
0x2c90   :  { %v6024_v62 = vpop.eup %6023 }
0x2c91   :  { %2077 = vrot.lane.b32.xlu0 %v6024_v62, %s6400_s26 }
0x2c95   :  { %1653 = vrot.lane.b32.xlu0 %v6864_v11, %s6401_s3 }
0x2c99   :  { %1817 = vrot.lane.b32.xlu0 %v1815_v63, %s6401_s3  ;;  %v2252_v63 = vld [vmem:[%s7649_s10] sm:$0xf] }
0x2c9a   :  { %v2260_v0 = vsel %vm402_vm1, %v2252_v63, 0 }
0x2d03   :  { %v2078_v1 = vpop.permute.xlu0 %2077 }
0x2d04   :  { %v6964_v46 = vmul.f32 %v6022_v10, %v2078_v1 }
0x2d06   :  { %v2087_v2 = vpack.c.bf16 %v6964_v46, %v6964_v46 }
0x2d07   :  { %v1654_v3 = vpop.permute.xlu0 %1653 }
0x2d08   :  { %1656 = vst.msk [vmem:[#allocation2 + $0x28] sm:$0xff] %vm398_vm4, %v1654_v3  ;;  %2090 = vrot.lane.b32.xlu1 %v2087_v2, %s6401_s3 }
0x2d0b   :  { %v1818_v11 = vpop.permute.xlu0 %1817 }
0x2d0c   :  { %1820 = vst.msk [vmem:[#allocation2 + $0x38] sm:$0xff] %vm398_vm4, %v1818_v11 }
0x2d0f   :  { %v1826_v5 = vld [vmem:[#allocation2 + $0x28] sm:$0xff] }
0x2d10   :  { %v1831_v8 = vpack.c.bf16 %v1826_v5, %v1825_v4 }
0x2d12   :  { %5563 = vmatprep.mubr.msk.bf16.mxu0 %vm398_vm4, %v1831_v8 }
0x2d13   :  { %v1828_v59 = vld [vmem:[#allocation2 + $0x38] sm:$0xff] }
0x2d14   :  { %v1832_v12 = vpack.c.bf16 %v1828_v59, %v1827_v7 }
0x2d16   :  { %5564 = vmatmul.mubr.msk.bf16.gmra.mrb[48].mxu0 %vm398_vm4, %v1832_v12 }
0x2d17   :  { %5581 = vmatprep.mubr.msk.bf16.mxu0 %vm6396_vm2, %v6395_v6 }
0x2d7a   :  { %v2091_v13 = vpop.permute.xlu1 %2090 }
0x2d7b   :  { %5582 = vmatmul.mubr.msk.bf16.vlgmr.msra.gmra.mrb[52].mxu0 %vm398_vm4, %v2091_v13 }
0x2d7c   :  { %5593 = vmatprep.mubr.msk.bf16.mxu0 %vm6396_vm2, %v6395_v6  ;;  %5592 = vmatpush3.bf16.msra.mxu0 %v2260_v0 }
0x2d7d   :  { %5603 = vmatprep.subr.bf16.mxu0 %v6395_v6 }
0x2de9   :  { %v5565_v14 = vpop.f32.mrb[48].mxu0 }
0x2dea   :  { %v1915_v15 = vadd.f32 %v5565_v14, %v6917_v55  ;;  %v1906_v16 = vpop.f32.mrb[49].mxu0 }
0x2deb   :  { %v1907_v17 = vadd.f32 %v6917_v55, %v1906_v16  ;;  %v5566_v18 = vpop.f32.mrb[50].mxu0 }
0x2dec   :  { %1927 = vst.msk [vmem:[#allocation3 + $0x30] sm:$0xff] %vm387_vm3, %v1915_v15  ;;  %v1918_v19 = vadd.f32 %v5566_v18, %v6917_v55  ;;  %v1909_v20 = vpop.f32.mrb[51].mxu0 }
0x2ded   :  { %1925 = vst.msk [vmem:[#allocation3 + $0x20] sm:$0xff] %vm387_vm3, %v1907_v17  ;;  %v1910_v21 = vadd.f32 %v6917_v55, %v1909_v20 }
0x2dee   :  { %1928 = vst.msk [vmem:[#allocation3 + $0x38] sm:$0xff] %vm387_vm3, %v1918_v19 }
0x2def   :  { %1926 = vst.msk [vmem:[#allocation3 + $0x28] sm:$0xff] %vm387_vm3, %v1910_v21 }
0x2df4   :  { %v2250_v5 = vld [vmem:[#allocation3 + $0x20] sm:$0xff] }
0x2e4e   :  { %v2132_v25 = vpop.f32.mrb[52].mxu0 }
0x2e4f   :  { %v2138_v32 = vadd.f32 %v2132_v25, %v2086_v23  ;;  %v5583_v27 = vpop.f32.mrb[53].mxu0 }
0x2e50   :  { %v2135_v28 = vpop.f32.mrb[54].mxu0 }
0x2e51   :  { %6025 = vtanh.f32 %v2138_v32  ;;  %v5584_v29 = vpop.f32.mrb[55].mxu0  ;;  %v5178_v33 = vmul.f32 -1.442695, %v2138_v32  ;;  %v2334_v32 = vld [vmem:[%s7649_s10] sm:$0xf] }
0x2e52   :  { %v2342_v27 = vsel %vm402_vm1, %v2334_v32, 0 }
0x2e53   :  { %6027 = vpow2.f32 %v5178_v33 }
0x2e5b   :  { %v6026_v30 = vpop.eup %6025 }
0x2e5c   :  { %2148 = vrot.lane.b32.xlu0 %v6026_v30, %s6398_s1 }
0x2e5d   :  { %v6028_v35 = vpop.eup %6027 }
0x2e5e   :  { %v2142_v54 = vadd.f32 1.0, %v6028_v35 }
0x2e60   :  { %6029 = vrcp.f32 %v2142_v54  ;;  %v2332_v54 = vld [vmem:[#allocation3 + $0x28] sm:$0xff] }
0x2e6a   :  { %v6030_v55 = vpop.eup %6029 }
0x2e6b   :  { %v2146_v37 = vmul.f32 %v6030_v55, %v2074_v60 }
0x2ece   :  { %v2149_v52 = vpop.permute.xlu0 %2148 }
0x2ecf   :  { %v2151_v36 = vmul.f32 %v6030_v55, %v2149_v52 }
0x2ed1   :  { %2153 = vrot.lane.b32.xlu1 %v2151_v36, %s6399_s30 }
0x2f43   :  { %v2154_v39 = vpop.permute.xlu1 %2153 }
0x2f44   :  { %v2156_v41 = vadd.f32 %v2154_v39, %v2146_v37 }
0x2f46   :  { %6031 = vtanh.f32 %v2156_v41 }
0x2f50   :  { %v6032_v43 = vpop.eup %6031 }
0x2f51   :  { %2159 = vrot.lane.b32.xlu0 %v6032_v43, %s6400_s26 }
0x2fc3   :  { %v2160_v44 = vpop.permute.xlu0 %2159 }
0x2fc4   :  { %v6994_v31 = vmul.f32 %v6030_v55, %v2160_v44 }
0x2fc6   :  { %v2169_v45 = vpack.c.bf16 %v6994_v31, %v6994_v31 }
0x2fc8   :  { %2172 = vrot.lane.b32.xlu1 %v2169_v45, %s6401_s3 }
0x303a   :  { %v2173_v26 = vpop.permute.xlu1 %2172 }
0x303b   :  { %5588 = vmatmul.mubr.msk.bf16.vlgmr.msra.gmra.mrb[52].mxu1 %vm398_vm4, %v2173_v26 }
0x303c   :  { %5599 = vmatprep.mubr.msk.bf16.mxu1 %vm6396_vm2, %v6395_v6  ;;  %5598 = vmatpush3.bf16.msra.mxu1 %v2342_v27 }
0x303d   :  { %5609 = vmatprep.subr.bf16.mxu1 %v6395_v6 }
0x310e   :  { %v2214_v48 = vpop.f32.mrb[52].mxu1 }
0x310f   :  { %v2220_v49 = vadd.f32 %v2214_v48, %v2168_v47  ;;  %v5589_v50 = vpop.f32.mrb[53].mxu1 }
0x3110   :  { %v2217_v53 = vpop.f32.mrb[54].mxu1  ;;  %v2416_v50 = vld [vmem:[%s7649_s10] sm:$0xf] }
0x3111   :  { %6033 = vtanh.f32 %v2220_v49  ;;  %v5590_v51 = vpop.f32.mrb[55].mxu1  ;;  %v5180_v38 = vmul.f32 -1.442695, %v2220_v49  ;;  %v2424_v53 = vsel %vm402_vm1, %v2416_v50, 0 }
0x3113   :  { %6035 = vpow2.f32 %v5180_v38 }
0x311b   :  { %v6034_v40 = vpop.eup %6033 }
0x311c   :  { %2230 = vrot.lane.b32.xlu0 %v6034_v40, %s6398_s1 }
0x311d   :  { %v6036_v10 = vpop.eup %6035 }
0x311e   :  { %v2224_v22 = vadd.f32 1.0, %v6036_v10 }
0x3120   :  { %6037 = vrcp.f32 %v2224_v22 }
0x312a   :  { %v6038_v56 = vpop.eup %6037 }
0x312b   :  { %v2228_v60 = vmul.f32 %v6038_v56, %v2156_v41 }
0x318e   :  { %v2231_v57 = vpop.permute.xlu0 %2230 }
0x318f   :  { %v2233_v58 = vmul.f32 %v6038_v56, %v2231_v57 }
0x3191   :  { %2235 = vrot.lane.b32.xlu1 %v2233_v58, %s6399_s30 }
0x3203   :  { %v2236_v62 = vpop.permute.xlu1 %2235 }
0x3204   :  { %v2238_v61 = vadd.f32 %v2236_v62, %v2228_v60 }
0x3206   :  { %6039 = vtanh.f32 %v2238_v61 }
0x3210   :  { %v6040_v1 = vpop.eup %6039 }
0x3211   :  { %2241 = vrot.lane.b32.xlu0 %v6040_v1, %s6400_s26 }
0x3283   :  { %v2242_v2 = vpop.permute.xlu0 %2241 }
0x3284   :  { %v7010_v3 = vmul.f32 %v6038_v56, %v2242_v2  ;;  %v2414_v56 = vld [vmem:[#allocation3 + $0x30] sm:$0xff] }
0x3286   :  { %v2251_v11 = vpack.c.bf16 %v7010_v3, %v7010_v3 }
0x3288   :  { %2254 = vrot.lane.b32.xlu1 %v2251_v11, %s6401_s3 }
0x32fa   :  { %v2255_v4 = vpop.permute.xlu1 %2254 }
0x32fb   :  { %5594 = vmatmul.mubr.msk.bf16.vlgmr.msra.gmra.mrb[56].mxu0 %vm398_vm4, %v2255_v4 }
0x32fc   :  { %5605 = vmatprep.mubr.msk.bf16.mxu0 %vm6396_vm2, %v6395_v6  ;;  %5604 = vmatpush3.bf16.msra.mxu0 %v2424_v53 }
0x33ce   :  { %v2296_v8 = vpop.f32.mrb[56].mxu0 }
0x33cf   :  { %v2302_v7 = vadd.f32 %v2296_v8, %v2250_v5  ;;  %v5595_v59 = vpop.f32.mrb[57].mxu0 }
0x33d0   :  { %v2299_v12 = vpop.f32.mrb[58].mxu0 }
0x33d1   :  { %6041 = vtanh.f32 %v2302_v7  ;;  %v5596_v13 = vpop.f32.mrb[59].mxu0  ;;  %v5182_v15 = vmul.f32 -1.442695, %v2302_v7 }
0x33d2   :  { %v2498_v13 = vld [vmem:[%s7649_s10] sm:$0xf] }
0x33d3   :  { %6043 = vpow2.f32 %v5182_v15 }
0x33db   :  { %v6042_v14 = vpop.eup %6041 }
0x33dc   :  { %2312 = vrot.lane.b32.xlu0 %v6042_v14, %s6398_s1  ;;  %v2506_v14 = vsel %vm402_vm1, %v2498_v13, 0 }
0x33dd   :  { %v6044_v16 = vpop.eup %6043 }
0x33de   :  { %v2306_v17 = vadd.f32 1.0, %v6044_v16  ;;  %v2590_v16 = vld [vmem:[%s7651_s12] sm:$0xf] }
0x33df   :  { %5801 = vmatprep.subr.msk.bf16.mxu0 %vm402_vm1, %v2590_v16 }
0x33e0   :  { %6045 = vrcp.f32 %v2306_v17 }
0x33ea   :  { %v6046_v18 = vpop.eup %6045 }
0x33eb   :  { %v2310_v21 = vmul.f32 %v6046_v18, %v2238_v61 }
0x344e   :  { %v2313_v19 = vpop.permute.xlu0 %2312 }
0x344f   :  { %v2315_v20 = vmul.f32 %v6046_v18, %v2313_v19 }
0x3451   :  { %2317 = vrot.lane.b32.xlu1 %v2315_v20, %s6399_s30 }
0x34c3   :  { %v2318_v23 = vpop.permute.xlu1 %2317 }
0x34c4   :  { %v2320_v25 = vadd.f32 %v2318_v23, %v2310_v21 }
0x34c6   :  { %6047 = vtanh.f32 %v2320_v25 }
0x34d0   :  { %v6048_v28 = vpop.eup %6047 }
0x34d1   :  { %2323 = vrot.lane.b32.xlu0 %v6048_v28, %s6400_s26 }
0x3543   :  { %v2324_v29 = vpop.permute.xlu0 %2323 }
0x3544   :  { %v7026_v30 = vmul.f32 %v6046_v18, %v2324_v29 }
0x3546   :  { %v2333_v33 = vpack.c.bf16 %v7026_v30, %v7026_v30 }
0x3548   :  { %2336 = vrot.lane.b32.xlu1 %v2333_v33, %s6401_s3 }
0x35ba   :  { %v2337_v35 = vpop.permute.xlu1 %2336 }
0x35bb   :  { %5600 = vmatmul.mubr.msk.bf16.vlgmr.msra.gmra.mrb[56].mxu1 %vm398_vm4, %v2337_v35  ;;  %v2496_v35 = vld [vmem:[#allocation3 + $0x38] sm:$0xff] }
0x35bc   :  { %5611 = vmatprep.mubr.msk.bf16.mxu1 %vm6396_vm2, %v6395_v6  ;;  %5610 = vmatpush3.bf16.msra.mxu1 %v2506_v14 }
0x368e   :  { %v2378_v55 = vpop.f32.mrb[56].mxu1 }
0x368f   :  { %v2384_v52 = vadd.f32 %v2378_v55, %v2332_v54  ;;  %v5601_v36 = vpop.f32.mrb[57].mxu1 }
0x3690   :  { %v2381_v37 = vpop.f32.mrb[58].mxu1 }
0x3691   :  { %6049 = vtanh.f32 %v2384_v52  ;;  %v5602_v39 = vpop.f32.mrb[59].mxu1  ;;  %v5184_v42 = vmul.f32 -1.442695, %v2384_v52 }
0x3693   :  { %6051 = vpow2.f32 %v5184_v42 }
0x369b   :  { %v6050_v41 = vpop.eup %6049 }
0x369c   :  { %2394 = vrot.lane.b32.xlu0 %v6050_v41, %s6398_s1  ;;  %v7093_v41 = vld [vmem:[%s7652_s13] ss:$0 sm:$0xff] }
0x369d   :  { %v6052_v24 = vpop.eup %6051 }
0x369e   :  { %v2388_v43 = vadd.f32 1.0, %v6052_v24 }
0x36a0   :  { %6053 = vrcp.f32 %v2388_v43 }
0x36aa   :  { %v6054_v44 = vpop.eup %6053 }
0x36ab   :  { %v2392_v47 = vmul.f32 %v6054_v44, %v2320_v25 }
0x370e   :  { %v2395_v45 = vpop.permute.xlu0 %2394 }
0x370f   :  { %v2397_v26 = vmul.f32 %v6054_v44, %v2395_v45 }
0x3711   :  { %2399 = vrot.lane.b32.xlu1 %v2397_v26, %s6399_s30 }
0x3783   :  { %v2400_v48 = vpop.permute.xlu1 %2399 }
0x3784   :  { %v2402_v49 = vadd.f32 %v2400_v48, %v2392_v47 }
0x3786   :  { %6055 = vtanh.f32 %v2402_v49 }
0x3790   :  { %v6056_v51 = vpop.eup %6055 }
0x3791   :  { %2405 = vrot.lane.b32.xlu0 %v6056_v51, %s6400_s26 }
0x3803   :  { %v2406_v40 = vpop.permute.xlu0 %2405 }
0x3804   :  { %v7041_v38 = vmul.f32 %v6054_v44, %v2406_v40 }
0x3806   :  { %v2415_v10 = vpack.c.bf16 %v7041_v38, %v7041_v38 }
0x3808   :  { %2418 = vrot.lane.b32.xlu1 %v2415_v10, %s6401_s3 }
0x387a   :  { %v2419_v22 = vpop.permute.xlu1 %2418 }
0x387b   :  { %5606 = vmatmul.mubr.msk.bf16.vlgmr.msra.gmra.mrb[60].mxu0 %vm398_vm4, %v2419_v22 }
0x394e   :  { %v2460_v57 = vpop.f32.mrb[60].mxu0 }
0x394f   :  { %v2466_v58 = vadd.f32 %v2460_v57, %v2414_v56  ;;  %v5607_v60 = vpop.f32.mrb[61].mxu0 }
0x3950   :  { %v2463_v62 = vpop.f32.mrb[62].mxu0 }
0x3951   :  { %6057 = vtanh.f32 %v2466_v58  ;;  %v5608_v61 = vpop.f32.mrb[63].mxu0  ;;  %v5186_v0 = vmul.f32 -1.442695, %v2466_v58 }
0x3953   :  { %6059 = vpow2.f32 %v5186_v0 }
0x395b   :  { %v6058_v63 = vpop.eup %6057 }
0x395c   :  { %2476 = vrot.lane.b32.xlu0 %v6058_v63, %s6398_s1 }
0x395d   :  { %v6060_v1 = vpop.eup %6059 }
0x395e   :  { %v2470_v2 = vadd.f32 1.0, %v6060_v1 }
0x3960   :  { %6061 = vrcp.f32 %v2470_v2 }
0x396a   :  { %v6062_v11 = vpop.eup %6061 }
0x396b   :  { %v2474_v8 = vmul.f32 %v6062_v11, %v2402_v49 }
0x39ce   :  { %v2477_v4 = vpop.permute.xlu0 %2476 }
0x39cf   :  { %v2479_v5 = vmul.f32 %v6062_v11, %v2477_v4 }
0x39d1   :  { %2481 = vrot.lane.b32.xlu1 %v2479_v5, %s6399_s30 }
0x3a43   :  { %v2482_v7 = vpop.permute.xlu1 %2481 }
0x3a44   :  { %v7049_v59 = vadd.f32 %v2482_v7, %v2474_v8 }
0x3a46   :  { %6063 = vtanh.f32 %v7049_v59 }
0x3a50   :  { %v6064_v12 = vpop.eup %6063 }
0x3a51   :  { %2487 = vrot.lane.b32.xlu0 %v6064_v12, %s6400_s26 }
0x3a55   :  { %2000 = vrot.lane.b32.xlu0 %v6936_v34, %s6401_s3  ;;  %v2611_v34 = vsel %vm402_vm1, %v2590_v16, 0 }
0x3a56   :  { %5616 = vmatpush3.bf16.msra.mxu0 %v2611_v34 }
0x3a57   :  { %5635 = vmatprep.subr.bf16.mxu0 %v6395_v6 }
0x3a59   :  { %2164 = vrot.lane.b32.xlu0 %v6994_v31, %s6401_s3 }
0x3ac3   :  { %v2488_v15 = vpop.permute.xlu0 %2487 }
0x3ac4   :  { %v7064_v17 = vmul.f32 %v6062_v11, %v2488_v15 }
0x3ac6   :  { %v2497_v18 = vpack.c.bf16 %v7064_v17, %v7064_v17 }
0x3ac7   :  { %v2001_v19 = vpop.permute.xlu0 %2000 }
0x3ac8   :  { %2003 = vst.msk [vmem:[#allocation2] sm:$0xff] %vm398_vm4, %v2001_v19  ;;  %2500 = vrot.lane.b32.xlu1 %v2497_v18, %s6401_s3 }
0x3acb   :  { %v2165_v31 = vpop.permute.xlu0 %2164 }
0x3acc   :  { %2167 = vst.msk [vmem:[#allocation2 + $0x10] sm:$0xff] %vm398_vm4, %v2165_v31  ;;  %2082 = vrot.lane.b32.xlu1 %v6964_v46, %s6401_s3 }
0x3acf   :  { %v2578_v25 = vld [vmem:[#allocation2] sm:$0xff] }
0x3ad0   :  { %2246 = vrot.lane.b32.xlu1 %v7010_v3, %s6401_s3  ;;  %v2730_v3 = vld [vmem:[%s7653_s14] sm:$0xf] }
0x3ad1   :  { %5802 = vmatprep.subr.msk.bf16.mxu1 %vm402_vm1, %v2730_v3  ;;  %v2751_v33 = vsel %vm402_vm1, %v2730_v3, 0 }
0x3ad3   :  { %v2580_v28 = vld [vmem:[#allocation2 + $0x10] sm:$0xff] }
0x3b3a   :  { %v2501_v20 = vpop.permute.xlu1 %2500 }
0x3b3b   :  { %5612 = vmatmul.mubr.msk.bf16.vlgmr.msra.gmra.mrb[60].mxu1 %vm398_vm4, %v2501_v20 }
0x3b3c   :  { %5626 = vmatpush3.bf16.msra.mxu1 %v2751_v33 }
0x3b3d   :  { %5641 = vmatprep.subr.bf16.mxu1 %v6395_v6 }
0x3b3e   :  { %v2083_v21 = vpop.permute.xlu1 %2082 }
0x3b3f   :  { %2085 = vst.msk [vmem:[#allocation2 + $0x8] sm:$0xff] %vm398_vm4, %v2083_v21 }
0x3b42   :  { %v2247_v23 = vpop.permute.xlu1 %2246 }
0x3b43   :  { %2249 = vst.msk [vmem:[#allocation2 + $0x18] sm:$0xff] %vm398_vm4, %v2247_v23 }
0x3b46   :  { %v2579_v32 = vld [vmem:[#allocation2 + $0x8] sm:$0xff] }
0x3b47   :  { %v2586_v27 = vpack.c.bf16 %v2579_v32, %v2578_v25 }
0x3b49   :  { %5617 = vmatprep.mubr.msk.bf16.mxu0 %vm398_vm4, %v2586_v27 }
0x3b4a   :  { %v2581_v29 = vld [vmem:[#allocation2 + $0x18] sm:$0xff] }
0x3b4b   :  { %v2587_v46 = vpack.c.bf16 %v2581_v29, %v2580_v28 }
0x3b4d   :  { %5618 = vmatmul.mubr.msk.bf16.vlgmr.msra.gmra.mrb[64].mxu0 %vm398_vm4, %v2587_v46 }
0x3c0e   :  { %v2542_v54 = vpop.f32.mrb[60].mxu1 }
0x3c0f   :  { %v2548_v55 = vadd.f32 %v2542_v54, %v2496_v35  ;;  %v5613_v52 = vpop.f32.mrb[61].mxu1 }
0x3c10   :  { %v2545_v36 = vpop.f32.mrb[62].mxu1 }
0x3c11   :  { %6065 = vtanh.f32 %v2548_v55  ;;  %v5614_v37 = vpop.f32.mrb[63].mxu1  ;;  %v5188_v4 = vmul.f32 -1.442695, %v2548_v55 }
0x3c1b   :  { %v6066_v39 = vpop.eup %6065 }
0x3c1c   :  { %2558 = vrot.lane.b32.xlu0 %v6066_v39, %s6398_s1 }
0x3c20   :  { %v5619_v42 = vpop.f32.mrb[64].mxu0 }
0x3c21   :  { %v2656_v24 = vadd.f32 %v5619_v42, %v7093_v41  ;;  %v2647_v43 = vpop.f32.mrb[65].mxu0 }
0x3c22   :  { %v2648_v44 = vadd.f32 %v7093_v41, %v2647_v43  ;;  %v5620_v45 = vpop.f32.mrb[66].mxu0 }
0x3c23   :  { %v5196_v26 = vmul.f32 -1.442695, %v2656_v24  ;;  %v2659_v47 = vadd.f32 %v5620_v45, %v7093_v41  ;;  %v2650_v48 = vpop.f32.mrb[67].mxu0 }
0x3c24   :  { %v5194_v49 = vmul.f32 -1.442695, %v2648_v44  ;;  %v2651_v50 = vadd.f32 %v7093_v41, %v2650_v48 }
0x3c25   :  { %6067 = vpow2.f32 %v5196_v26  ;;  %v5197_v53 = vmul.f32 -1.442695, %v2659_v47 }
0x3c26   :  { %6069 = vpow2.f32 %v5194_v49  ;;  %v5195_v51 = vmul.f32 -1.442695, %v2651_v50 }
0x3c27   :  { %6071 = vpow2.f32 %v5197_v53 }
0x3c28   :  { %6073 = vpow2.f32 %v5195_v51 }
0x3c2f   :  { %v6068_v40 = vpop.eup %6067 }
0x3c30   :  { %v6070_v10 = vpop.eup %6069  ;;  %v2704_v22 = vadd.f32 1.0, %v6068_v40 }
0x3c31   :  { %v6072_v56 = vpop.eup %6071  ;;  %v2702_v57 = vadd.f32 1.0, %v6070_v10 }
0x3c32   :  { %v6074_v58 = vpop.eup %6073  ;;  %6075 = vrcp.f32 %v2704_v22  ;;  %v2705_v60 = vadd.f32 1.0, %v6072_v56 }
0x3c33   :  { %6077 = vrcp.f32 %v2702_v57  ;;  %v2703_v62 = vadd.f32 1.0, %v6074_v58 }
0x3c34   :  { %6079 = vrcp.f32 %v2705_v60 }
0x3c35   :  { %6081 = vrcp.f32 %v2703_v62 }
0x3c36   :  { %6083 = vpow2.f32 %v5188_v4 }
0x3c3c   :  { %v6076_v61 = vpop.eup %6075 }
0x3c3d   :  { %v6078_v63 = vpop.eup %6077 }
0x3c3e   :  { %v6080_v0 = vpop.eup %6079 }
0x3c3f   :  { %v6082_v1 = vpop.eup %6081  ;;  %v2727_v2 = vpack.c.bf16 %v6080_v0, %v6076_v61 }
0x3c40   :  { %v2726_v11 = vpack.c.bf16 %v6082_v1, %v6078_v63  ;;  %v6084_v5 = vpop.eup %6083 }
0x3c41   :  { %v2552_v8 = vadd.f32 1.0, %v6084_v5 }
0x3c42   :  { %5627 = vmatprep.mubr.msk.bf16.mxu1 %vm398_vm4, %v2726_v11 }
0x3c43   :  { %5628 = vmatmul.mubr.msk.bf16.vlgmr.msra.gmra.mrb[64].mxu1 %vm398_vm4, %v2727_v2  ;;  %6085 = vrcp.f32 %v2552_v8 }
0x3c4d   :  { %v6086_v7 = vpop.eup %6085 }
0x3c4e   :  { %v2556_v14 = vmul.f32 %v6086_v7, %v7049_v59 }
0x3c8e   :  { %v2559_v12 = vpop.permute.xlu0 %2558 }
0x3c8f   :  { %v2561_v13 = vmul.f32 %v6086_v7, %v2559_v12 }
0x3c91   :  { %2563 = vrot.lane.b32.xlu1 %v2561_v13, %s6399_s30  ;;  %s6402_s30 = smov 96  }
0x3c95   :  { %2328 = vrot.lane.b32.xlu1 %v7026_v30, %s6401_s3  ;;  %v7113_v30 = vld [vmem:[%s7655_s16] ss:$0 sm:$0xff] }
0x3c99   :  { %2492 = vrot.lane.b32.xlu1 %v7064_v17, %s6401_s3 }
0x3d03   :  { %v2564_v15 = vpop.permute.xlu1 %2563 }
0x3d04   :  { %v2566_v16 = vadd.f32 %v2564_v15, %v2556_v14 }
0x3d06   :  { %6087 = vtanh.f32 %v2566_v16 }
0x3d07   :  { %v2329_v18 = vpop.permute.xlu1 %2328 }
0x3d08   :  { %2331 = vst.msk [vmem:[#allocation2 + $0x20] sm:$0xff] %vm398_vm4, %v2329_v18 }
0x3d0b   :  { %v2493_v19 = vpop.permute.xlu1 %2492 }
0x3d0c   :  { %2495 = vst.msk [vmem:[#allocation2 + $0x30] sm:$0xff] %vm398_vm4, %v2493_v19 }
0x3d0f   :  { %v2582_v46 = vld [vmem:[#allocation2 + $0x20] sm:$0xff] }
0x3d10   :  { %v6088_v34 = vpop.eup %6087 }
0x3d11   :  { %2569 = vrot.lane.b32.xlu0 %v6088_v34, %s6400_s26 }
0x3d13   :  { %v2584_v54 = vld [vmem:[#allocation2 + $0x30] sm:$0xff] }
0x3d15   :  { %2410 = vrot.lane.b32.xlu0 %v7041_v38, %s6401_s3  ;;  %v5823_v38 = vld [vmem:[%s7654_s15] sm:$0xff]  }
0x3d16   :  { %v5629_v59 = vpop.f32.mrb[64].mxu1  ;;  %5636 = vmatpush3.bf16.msra.mxu0 %v5823_v38  ;;  %v5824_v38 = vld [vmem:[%s7654_s15] sm:$0xff]  }
0x3d17   :  { %v2796_v17 = vadd.f32 %v5629_v59, %v7113_v30  ;;  %v2787_v31 = vpop.f32.mrb[65].mxu1  ;;  %5647 = vmatprep.subr.bf16.mxu0 %v6395_v6  ;;  %5642 = vmatpush3.bf16.msra.mxu1 %v5824_v38 }
0x3d18   :  { %v2788_v20 = vadd.f32 %v7113_v30, %v2787_v31  ;;  %v5630_v21 = vpop.f32.mrb[66].mxu1  ;;  %5653 = vmatprep.subr.bf16.mxu1 %v6395_v6 }
0x3d19   :  { %2821 = vst.msk [vmem:[#allocation3 + $0x10] sm:$0xff] %vm2818_vm5, %v2796_v17  ;;  %v2799_v23 = vadd.f32 %v5630_v21, %v7113_v30  ;;  %v2790_v25 = vpop.f32.mrb[67].mxu1 }
0x3d1a   :  { %2819 = vst.msk [vmem:[#allocation3] sm:$0xff] %vm2818_vm5, %v2788_v20  ;;  %v2791_v32 = vadd.f32 %v7113_v30, %v2790_v25 }
0x3d1b   :  { %2822 = vst.msk [vmem:[#allocation3 + $0x18] sm:$0xff] %vm2818_vm5, %v2799_v23 }
0x3d1c   :  { %2820 = vst.msk [vmem:[#allocation3 + $0x8] sm:$0xff] %vm2818_vm5, %v2791_v32 }
0x3d21   :  { %v2827_v50 = vld [vmem:[#allocation3] sm:$0xff] }
0x3d83   :  { %v2570_v27 = vpop.permute.xlu0 %2569 }
0x3d84   :  { %v2572_v28 = vmul.f32 %v6086_v7, %v2570_v27 }
0x3d86   :  { %2574 = vrot.lane.b32.xlu0 %v2572_v28, %s6401_s3 }
0x3d87   :  { %v2411_v29 = vpop.permute.xlu0 %2410 }
0x3d88   :  { %2413 = vst.msk [vmem:[#allocation2 + $0x28] sm:$0xff] %vm398_vm4, %v2411_v29 }
0x3d8f   :  { %v2583_v3 = vld [vmem:[#allocation2 + $0x28] sm:$0xff] }
0x3d90   :  { %v2588_v33 = vpack.c.bf16 %v2583_v3, %v2582_v46  ;;  %v2908_v3 = vld [vmem:[#allocation3 + $0x8] sm:$0xff] }
0x3d92   :  { %5621 = vmatprep.mubr.msk.bf16.mxu0 %vm398_vm4, %v2588_v33 }
0x3df8   :  { %v2575_v35 = vpop.permute.xlu0 %2574 }
0x3df9   :  { %2577 = vst.msk [vmem:[#allocation2 + $0x38] sm:$0xff] %vm398_vm4, %v2575_v35 }
0x3e00   :  { %v2585_v55 = vld [vmem:[#allocation2 + $0x38] sm:$0xff] }
0x3e01   :  { %v2589_v52 = vpack.c.bf16 %v2585_v55, %v2584_v54 }
0x3e03   :  { %5622 = vmatmul.mubr.msk.bf16.gmra.mrb[68].mxu0 %vm398_vm4, %v2589_v52 }
0x3e04   :  { %5637 = vmatprep.mubr.msk.bf16.mxu0 %vm6396_vm2, %v6395_v6 }
0x3e0b   :  { %5638 = vmatmul.mubr.bf16.vlgmr.msra.gmra.mrb[72].mxu0 %v6397_v9 }
0x3e0c   :  { %5649 = vmatprep.mubr.msk.bf16.mxu0 %vm6396_vm2, %v6395_v6 }
0x3ed6   :  { %v5623_v36 = vpop.f32.mrb[68].mxu0 }
0x3ed7   :  { %v2672_v37 = vadd.f32 %v5623_v36, %v7093_v41  ;;  %v2663_v39 = vpop.f32.mrb[69].mxu0 }
0x3ed8   :  { %v2664_v42 = vadd.f32 %v7093_v41, %v2663_v39  ;;  %v5624_v24 = vpop.f32.mrb[70].mxu0 }
0x3ed9   :  { %v5200_v43 = vmul.f32 -1.442695, %v2672_v37  ;;  %v2675_v44 = vadd.f32 %v5624_v24, %v7093_v41  ;;  %v2666_v45 = vpop.f32.mrb[71].mxu0 }
0x3eda   :  { %v5198_v26 = vmul.f32 -1.442695, %v2664_v42  ;;  %v2667_v47 = vadd.f32 %v7093_v41, %v2666_v45 }
0x3edb   :  { %6089 = vpow2.f32 %v5200_v43  ;;  %v5201_v48 = vmul.f32 -1.442695, %v2675_v44 }
0x3edc   :  { %6091 = vpow2.f32 %v5198_v26  ;;  %v5199_v49 = vmul.f32 -1.442695, %v2667_v47 }
0x3edd   :  { %6093 = vpow2.f32 %v5201_v48  ;;  %v5825_v48 = vld [vmem:[%s7654_s15] sm:$0xff]  }
0x3ede   :  { %6095 = vpow2.f32 %v5199_v49  ;;  %v2872_v53 = vpop.f32.mrb[72].mxu0  ;;  %5648 = vmatpush3.bf16.msra.mxu0 %v5825_v48 }
0x3edf   :  { %v2878_v51 = vadd.f32 %v2872_v53, %v2827_v50  ;;  %v5639_v40 = vpop.f32.mrb[73].mxu0  ;;  %5659 = vmatprep.subr.bf16.mxu0 %v6395_v6 }
0x3ee0   :  { %v2875_v10 = vpop.f32.mrb[74].mxu0 }
0x3ee1   :  { %6097 = vtanh.f32 %v2878_v51  ;;  %v5640_v22 = vpop.f32.mrb[75].mxu0  ;;  %v5208_v7 = vmul.f32 -1.442695, %v2878_v51  ;;  %v2994_v10 = vld [vmem:[#allocation3 + $0x10] sm:$0xff] }
0x3ee5   :  { %v6090_v56 = vpop.eup %6089 }
0x3ee6   :  { %v6092_v57 = vpop.eup %6091  ;;  %v2708_v58 = vadd.f32 1.0, %v6090_v56 }
0x3ee7   :  { %v6094_v60 = vpop.eup %6093  ;;  %v2706_v62 = vadd.f32 1.0, %v6092_v57 }
0x3ee8   :  { %v6096_v61 = vpop.eup %6095  ;;  %6099 = vrcp.f32 %v2708_v58  ;;  %v2709_v41 = vadd.f32 1.0, %v6094_v60 }
0x3ee9   :  { %6101 = vrcp.f32 %v2706_v62  ;;  %v2707_v63 = vadd.f32 1.0, %v6096_v61 }
0x3eea   :  { %6103 = vrcp.f32 %v2709_v41 }
0x3eeb   :  { %v6098_v0 = vpop.eup %6097  ;;  %6105 = vrcp.f32 %v2707_v63 }
0x3eec   :  { %2888 = vrot.lane.b32.xlu1 %v6098_v0, %s6402_s30  ;;  %6107 = vpow2.f32 %v5208_v7 }
0x3ef2   :  { %v6100_v1 = vpop.eup %6099 }
0x3ef3   :  { %v6102_v2 = vpop.eup %6101 }
0x3ef4   :  { %v6104_v11 = vpop.eup %6103 }
0x3ef5   :  { %v6106_v4 = vpop.eup %6105  ;;  %v2729_v5 = vpack.c.bf16 %v6104_v11, %v6100_v1 }
0x3ef6   :  { %v2728_v8 = vpack.c.bf16 %v6106_v4, %v6102_v2  ;;  %v6108_v12 = vpop.eup %6107 }
0x3ef7   :  { %v2882_v13 = vadd.f32 1.0, %v6108_v12 }
0x3ef8   :  { %5631 = vmatprep.mubr.msk.bf16.mxu1 %vm398_vm4, %v2728_v8  ;;  %v5826_v8 = vld [vmem:[%s7654_s15] sm:$0xff]  }
0x3ef9   :  { %5632 = vmatmul.mubr.msk.bf16.gmra.mrb[68].mxu1 %vm398_vm4, %v2729_v5  ;;  %6109 = vrcp.f32 %v2882_v13 }
0x3efa   :  { %5643 = vmatprep.mubr.msk.bf16.mxu1 %vm6396_vm2, %v6395_v6 }
0x3f03   :  { %v6110_v14 = vpop.eup %6109 }
0x3f04   :  { %v2886_v23 = vmul.f32 0.0, %v6110_v14 }
0x3f5e   :  { %v2889_v15 = vpop.permute.xlu1 %2888 }
0x3f5f   :  { %v2891_v16 = vmul.f32 %v6110_v14, %v2889_v15 }
0x3f61   :  { %2893 = vrot.lane.b32.xlu0 %v2891_v16, %s6400_s26  ;;  %v3080_v16 = vld [vmem:[#allocation3 + $0x18] sm:$0xff] }
0x3fcc   :  { %v5633_v18 = vpop.f32.mrb[68].mxu1 }
0x3fcd   :  { %v2812_v19 = vadd.f32 %v5633_v18, %v7113_v30  ;;  %v2803_v34 = vpop.f32.mrb[69].mxu1 }
0x3fce   :  { %v2804_v59 = vadd.f32 %v7113_v30, %v2803_v34  ;;  %v5634_v17 = vpop.f32.mrb[70].mxu1 }
0x3fcf   :  { %2825 = vst.msk [vmem:[#allocation3 + $0x30] sm:$0xff] %vm2818_vm5, %v2812_v19  ;;  %v2815_v31 = vadd.f32 %v5634_v17, %v7113_v30  ;;  %v2806_v20 = vpop.f32.mrb[71].mxu1 }
0x3fd0   :  { %2823 = vst.msk [vmem:[#allocation3 + $0x20] sm:$0xff] %vm2818_vm5, %v2804_v59  ;;  %v2807_v21 = vadd.f32 %v7113_v30, %v2806_v20 }
0x3fd1   :  { %2826 = vst.msk [vmem:[#allocation3 + $0x38] sm:$0xff] %vm2818_vm5, %v2815_v31 }
0x3fd2   :  { %2824 = vst.msk [vmem:[#allocation3 + $0x28] sm:$0xff] %vm2818_vm5, %v2807_v21 }
0x3fd3   :  { %v2894_v25 = vpop.permute.xlu0 %2893 }
0x3fd4   :  { %v2896_v32 = vadd.f32 %v2894_v25, %v2886_v23 }
0x3fd6   :  { %6111 = vtanh.f32 %v2896_v32 }
0x3fe0   :  { %v6112_v27 = vpop.eup %6111 }
0x3fe1   :  { %2899 = vrot.lane.b32.xlu1 %v6112_v27, %s6403_s6 }
0x4053   :  { %v2900_v30 = vpop.permute.xlu1 %2899 }
0x4054   :  { %v7162_v28 = vmul.f32 %v6110_v14, %v2900_v30 }
0x4056   :  { %v2909_v29 = vpack.c.bf16 %v7162_v28, %v7162_v28 }
0x4058   :  { %2913 = vrot.lane.b32.xlu0 %v2909_v29, %s6404_s11 }
0x40ca   :  { %v2914_v46 = vpop.permute.xlu0 %2913 }
0x40cb   :  { %5644 = vmatmul.mubr.msk.bf16.vlgmr.msra.gmra.mrb[72].mxu1 %vm165_vm0, %v2914_v46  ;;  %v5827_v46 = vld [vmem:[%s7654_s15] sm:$0xff]  }
0x40cc   :  { %5655 = vmatprep.mubr.msk.bf16.mxu1 %vm6396_vm2, %v6395_v6  ;;  %5654 = vmatpush3.bf16.msra.mxu1 %v5826_v8 }
0x40cd   :  { %5665 = vmatprep.subr.bf16.mxu1 %v6395_v6 }
0x419e   :  { %v2958_v33 = vpop.f32.mrb[72].mxu1 }
0x419f   :  { %v2964_v35 = vadd.f32 %v2958_v33, %v2908_v3  ;;  %v5645_v54 = vpop.f32.mrb[73].mxu1 }
0x41a0   :  { %v2961_v55 = vpop.f32.mrb[74].mxu1 }
0x41a1   :  { %6113 = vtanh.f32 %v2964_v35  ;;  %v5646_v52 = vpop.f32.mrb[75].mxu1  ;;  %v5211_v37 = vmul.f32 -1.442695, %v2964_v35 }
0x41a2   :  { %v3166_v52 = vld [vmem:[#allocation3 + $0x20] sm:$0xff] }
0x41a3   :  { %6115 = vpow2.f32 %v5211_v37 }
0x41ab   :  { %v6114_v36 = vpop.eup %6113 }
0x41ac   :  { %2974 = vrot.lane.b32.xlu1 %v6114_v36, %s6402_s30 }
0x41ad   :  { %v6116_v39 = vpop.eup %6115 }
0x41ae   :  { %v2968_v42 = vadd.f32 1.0, %v6116_v39 }
0x41b0   :  { %6117 = vrcp.f32 %v2968_v42 }
0x41ba   :  { %v6118_v24 = vpop.eup %6117 }
0x41bb   :  { %v2972_v45 = vmul.f32 %v6118_v24, %v2896_v32 }
0x421e   :  { %v2975_v43 = vpop.permute.xlu1 %2974 }
0x421f   :  { %v2977_v44 = vmul.f32 %v6118_v24, %v2975_v43 }
0x4221   :  { %2979 = vrot.lane.b32.xlu0 %v2977_v44, %s6400_s26 }
0x4293   :  { %v2980_v26 = vpop.permute.xlu0 %2979 }
0x4294   :  { %v2982_v47 = vadd.f32 %v2980_v26, %v2972_v45 }
0x4296   :  { %6119 = vtanh.f32 %v2982_v47 }
0x42a0   :  { %v6120_v49 = vpop.eup %6119 }
0x42a1   :  { %2985 = vrot.lane.b32.xlu1 %v6120_v49, %s6403_s6 }
0x4313   :  { %v2986_v50 = vpop.permute.xlu1 %2985 }
0x4314   :  { %v7177_v53 = vmul.f32 %v6118_v24, %v2986_v50 }
0x4316   :  { %v2995_v51 = vpack.c.bf16 %v7177_v53, %v7177_v53 }
0x4318   :  { %2999 = vrot.lane.b32.xlu0 %v2995_v51, %s6404_s11 }
0x438a   :  { %v3000_v40 = vpop.permute.xlu0 %2999 }
0x438b   :  { %5650 = vmatmul.mubr.msk.bf16.vlgmr.msra.gmra.mrb[76].mxu0 %vm165_vm0, %v3000_v40 }
0x438c   :  { %5661 = vmatprep.mubr.msk.bf16.mxu0 %vm6396_vm2, %v6395_v6  ;;  %5660 = vmatpush3.bf16.msra.mxu0 %v5827_v46 }
0x438d   :  { %5671 = vmatprep.subr.bf16.mxu0 %v6395_v6 }
0x445e   :  { %v3044_v22 = vpop.f32.mrb[76].mxu0 }
0x445f   :  { %v3050_v56 = vadd.f32 %v3044_v22, %v2994_v10  ;;  %v5651_v57 = vpop.f32.mrb[77].mxu0  ;;  %v5828_v10 = vld [vmem:[%s7654_s15] sm:$0xff]  }
0x4460   :  { %v3047_v58 = vpop.f32.mrb[78].mxu0 }
0x4461   :  { %6121 = vtanh.f32 %v3050_v56  ;;  %v5652_v60 = vpop.f32.mrb[79].mxu0  ;;  %v5214_v61 = vmul.f32 -1.442695, %v3050_v56 }
0x4463   :  { %6123 = vpow2.f32 %v5214_v61 }
0x446b   :  { %v6122_v62 = vpop.eup %6121 }
0x446c   :  { %3060 = vrot.lane.b32.xlu1 %v6122_v62, %s6402_s30  ;;  %v3252_v62 = vld [vmem:[#allocation3 + $0x28] sm:$0xff] }
0x446d   :  { %v6124_v41 = vpop.eup %6123 }
0x446e   :  { %v3054_v63 = vadd.f32 1.0, %v6124_v41 }
0x4470   :  { %6125 = vrcp.f32 %v3054_v63 }
0x447a   :  { %v6126_v0 = vpop.eup %6125 }
0x447b   :  { %v3058_v11 = vmul.f32 %v6126_v0, %v2982_v47 }
0x44de   :  { %v3061_v1 = vpop.permute.xlu1 %3060 }
0x44df   :  { %v3063_v2 = vmul.f32 %v6126_v0, %v3061_v1 }
0x44e1   :  { %3065 = vrot.lane.b32.xlu0 %v3063_v2, %s6400_s26 }
0x4553   :  { %v3066_v4 = vpop.permute.xlu0 %3065 }
0x4554   :  { %v3068_v5 = vadd.f32 %v3066_v4, %v3058_v11 }
0x4556   :  { %6127 = vtanh.f32 %v3068_v5 }
0x4560   :  { %v6128_v7 = vpop.eup %6127 }
0x4561   :  { %3071 = vrot.lane.b32.xlu1 %v6128_v7, %s6403_s6 }
0x45d3   :  { %v3072_v12 = vpop.permute.xlu1 %3071 }
0x45d4   :  { %v7192_v13 = vmul.f32 %v6126_v0, %v3072_v12 }
0x45d6   :  { %v3081_v14 = vpack.c.bf16 %v7192_v13, %v7192_v13 }
0x45d8   :  { %3085 = vrot.lane.b32.xlu0 %v3081_v14, %s6404_s11 }
0x464a   :  { %v3086_v15 = vpop.permute.xlu0 %3085 }
0x464b   :  { %5656 = vmatmul.mubr.msk.bf16.vlgmr.msra.gmra.mrb[76].mxu1 %vm165_vm0, %v3086_v15 }
0x464c   :  { %5667 = vmatprep.mubr.msk.bf16.mxu1 %vm6396_vm2, %v6395_v6  ;;  %5666 = vmatpush3.bf16.msra.mxu1 %v5828_v10  ;;  %v7288_v10 = vld [vmem:[%s7658_s19] ss:$0 sm:$0xff] }
0x464d   :  { %5677 = vmatprep.subr.bf16.mxu1 %v6395_v6 }
0x471e   :  { %v3130_v18 = vpop.f32.mrb[76].mxu1 }
0x471f   :  { %v3136_v19 = vadd.f32 %v3130_v18, %v3080_v16  ;;  %v5657_v34 = vpop.f32.mrb[77].mxu1  ;;  %v5829_v18 = vld [vmem:[%s7654_s15] sm:$0xff]  }
0x4720   :  { %v3133_v59 = vpop.f32.mrb[78].mxu1 }
0x4721   :  { %6129 = vtanh.f32 %v3136_v19  ;;  %v5658_v17 = vpop.f32.mrb[79].mxu1  ;;  %v5217_v20 = vmul.f32 -1.442695, %v3136_v19 }
0x4723   :  { %6131 = vpow2.f32 %v5217_v20  ;;  %v3338_v20 = vld [vmem:[#allocation3 + $0x30] sm:$0xff] }
0x472b   :  { %v6130_v31 = vpop.eup %6129 }
0x472c   :  { %3146 = vrot.lane.b32.xlu1 %v6130_v31, %s6402_s30 }
0x472d   :  { %v6132_v21 = vpop.eup %6131 }
0x472e   :  { %v3140_v23 = vadd.f32 1.0, %v6132_v21 }
0x4730   :  { %6133 = vrcp.f32 %v3140_v23 }
0x473a   :  { %v6134_v25 = vpop.eup %6133 }
0x473b   :  { %v3144_v27 = vmul.f32 %v6134_v25, %v3068_v5 }
0x479e   :  { %v3147_v32 = vpop.permute.xlu1 %3146 }
0x479f   :  { %v3149_v38 = vmul.f32 %v6134_v25, %v3147_v32 }
0x47a1   :  { %3151 = vrot.lane.b32.xlu0 %v3149_v38, %s6400_s26 }
0x4813   :  { %v3152_v30 = vpop.permute.xlu0 %3151 }
0x4814   :  { %v3154_v29 = vadd.f32 %v3152_v30, %v3144_v27 }
0x4816   :  { %6135 = vtanh.f32 %v3154_v29 }
0x4820   :  { %v6136_v3 = vpop.eup %6135 }
0x4821   :  { %3157 = vrot.lane.b32.xlu1 %v6136_v3, %s6403_s6 }
0x4893   :  { %v3158_v33 = vpop.permute.xlu1 %3157 }
0x4894   :  { %v7207_v35 = vmul.f32 %v6134_v25, %v3158_v33 }
0x4896   :  { %v3167_v54 = vpack.c.bf16 %v7207_v35, %v7207_v35 }
0x4898   :  { %3171 = vrot.lane.b32.xlu0 %v3167_v54, %s6404_s11 }
0x490a   :  { %v3172_v55 = vpop.permute.xlu0 %3171 }
0x490b   :  { %5662 = vmatmul.mubr.msk.bf16.vlgmr.msra.gmra.mrb[80].mxu0 %vm165_vm0, %v3172_v55 }
0x490c   :  { %5673 = vmatprep.mubr.msk.bf16.mxu0 %vm6396_vm2, %v6395_v6  ;;  %5672 = vmatpush3.bf16.msra.mxu0 %v5829_v18 }
0x49de   :  { %v3216_v36 = vpop.f32.mrb[80].mxu0 }
0x49df   :  { %v3222_v37 = vadd.f32 %v3216_v36, %v3166_v52  ;;  %v5663_v39 = vpop.f32.mrb[81].mxu0 }
0x49e0   :  { %v3219_v42 = vpop.f32.mrb[82].mxu0 }
0x49e1   :  { %6137 = vtanh.f32 %v3222_v37  ;;  %v5664_v24 = vpop.f32.mrb[83].mxu0  ;;  %v5220_v44 = vmul.f32 -1.442695, %v3222_v37  ;;  %v5830_v42 = vld [vmem:[%s7656_s17] sm:$0xff]  }
0x49e2   :  { %5683 = vmatprep.subr.bf16.mxu0 %v5830_v42 }
0x49e3   :  { %6139 = vpow2.f32 %v5220_v44 }
0x49eb   :  { %v6138_v43 = vpop.eup %6137 }
0x49ec   :  { %3232 = vrot.lane.b32.xlu1 %v6138_v43, %s6402_s30 }
0x49ed   :  { %v6140_v45 = vpop.eup %6139 }
0x49ee   :  { %v3226_v26 = vadd.f32 1.0, %v6140_v45 }
0x49f0   :  { %6141 = vrcp.f32 %v3226_v26 }
0x49fa   :  { %v6142_v47 = vpop.eup %6141 }
0x49fb   :  { %v3230_v50 = vmul.f32 %v6142_v47, %v3154_v29 }
0x4a5e   :  { %v3233_v48 = vpop.permute.xlu1 %3232 }
0x4a5f   :  { %v3235_v49 = vmul.f32 %v6142_v47, %v3233_v48 }
0x4a61   :  { %3237 = vrot.lane.b32.xlu0 %v3235_v49, %s6400_s26 }
0x4ad3   :  { %v3238_v51 = vpop.permute.xlu0 %3237 }
0x4ad4   :  { %v3240_v40 = vadd.f32 %v3238_v51, %v3230_v50  ;;  %v5832_v51 = vld [vmem:[%s7657_s18] sm:$0xff]  }
0x4ad6   :  { %6143 = vtanh.f32 %v3240_v40 }
0x4ae0   :  { %v6144_v22 = vpop.eup %6143 }
0x4ae1   :  { %3243 = vrot.lane.b32.xlu1 %v6144_v22, %s6403_s6 }
0x4b53   :  { %v3244_v56 = vpop.permute.xlu1 %3243 }
0x4b54   :  { %v7222_v57 = vmul.f32 %v6142_v47, %v3244_v56 }
0x4b56   :  { %v3253_v58 = vpack.c.bf16 %v7222_v57, %v7222_v57 }
0x4b58   :  { %3257 = vrot.lane.b32.xlu0 %v3253_v58, %s6404_s11 }
0x4bca   :  { %v3258_v60 = vpop.permute.xlu0 %3257 }
0x4bcb   :  { %5668 = vmatmul.mubr.msk.bf16.vlgmr.msra.gmra.mrb[80].mxu1 %vm165_vm0, %v3258_v60 }
0x4bcc   :  { %5679 = vmatprep.mubr.msk.bf16.mxu1 %vm6396_vm2, %v6395_v6 }
0x4c9e   :  { %v3302_v61 = vpop.f32.mrb[80].mxu1 }
0x4c9f   :  { %v3308_v41 = vadd.f32 %v3302_v61, %v3252_v62  ;;  %v5669_v63 = vpop.f32.mrb[81].mxu1 }
0x4ca0   :  { %v3305_v0 = vpop.f32.mrb[82].mxu1 }
0x4ca1   :  { %6145 = vtanh.f32 %v3308_v41  ;;  %v5670_v1 = vpop.f32.mrb[83].mxu1  ;;  %v5223_v11 = vmul.f32 -1.442695, %v3308_v41 }
0x4ca3   :  { %6147 = vpow2.f32 %v5223_v11 }
0x4cab   :  { %v6146_v2 = vpop.eup %6145 }
0x4cac   :  { %3318 = vrot.lane.b32.xlu1 %v6146_v2, %s6402_s30 }
0x4cad   :  { %v6148_v4 = vpop.eup %6147 }
0x4cae   :  { %v3312_v5 = vadd.f32 1.0, %v6148_v4 }
0x4cb0   :  { %6149 = vrcp.f32 %v3312_v5 }
0x4cba   :  { %v6150_v8 = vpop.eup %6149 }
0x4cbb   :  { %v3316_v14 = vmul.f32 %v6150_v8, %v3240_v40 }
0x4d1e   :  { %v3319_v7 = vpop.permute.xlu1 %3318 }
0x4d1f   :  { %v3321_v12 = vmul.f32 %v6150_v8, %v3319_v7 }
0x4d21   :  { %3323 = vrot.lane.b32.xlu0 %v3321_v12, %s6400_s26 }
0x4d93   :  { %v3324_v15 = vpop.permute.xlu0 %3323 }
0x4d94   :  { %v3326_v16 = vadd.f32 %v3324_v15, %v3316_v14 }
0x4d96   :  { %6151 = vtanh.f32 %v3326_v16 }
0x4da0   :  { %v6152_v19 = vpop.eup %6151 }
0x4da1   :  { %3329 = vrot.lane.b32.xlu1 %v6152_v19, %s6403_s6 }
0x4e13   :  { %v3330_v34 = vpop.permute.xlu1 %3329 }
0x4e14   :  { %v7236_v59 = vmul.f32 %v6150_v8, %v3330_v34 }
0x4e16   :  { %v3339_v17 = vpack.c.bf16 %v7236_v59, %v7236_v59 }
0x4e18   :  { %3343 = vrot.lane.b32.xlu0 %v3339_v17, %s6404_s11 }
0x4e8a   :  { %v3344_v31 = vpop.permute.xlu0 %3343 }
0x4e8b   :  { %5674 = vmatmul.mubr.msk.bf16.vlgmr.msra.gmra.mrb[84].mxu0 %vm165_vm0, %v3344_v31 }
0x4e8c   :  { %5684 = vmatpush3.bf16.msra.mxu0 %v5830_v42 }
0x4e8d   :  { %5705 = vmatprep.subr.bf16.mxu0 %v6395_v6 }
0x4f5e   :  { %v3388_v21 = vpop.f32.mrb[84].mxu0 }
0x4f5f   :  { %v3394_v23 = vadd.f32 %v3388_v21, %v3338_v20  ;;  %v5675_v25 = vpop.f32.mrb[85].mxu0 }
0x4f60   :  { %v3391_v32 = vpop.f32.mrb[86].mxu0  ;;  %v3424_v25 = vld [vmem:[#allocation3 + $0x38] sm:$0xff] }
0x4f61   :  { %6153 = vtanh.f32 %v3394_v23  ;;  %v5676_v38 = vpop.f32.mrb[87].mxu0  ;;  %v5226_v30 = vmul.f32 -1.442695, %v3394_v23 }
0x4f62   :  { %v5833_v38 = vld [vmem:[%s7657_s18] sm:$0xff]  }
0x4f63   :  { %6155 = vpow2.f32 %v5226_v30 }
0x4f6b   :  { %v6154_v27 = vpop.eup %6153 }
0x4f6c   :  { %3404 = vrot.lane.b32.xlu1 %v6154_v27, %s6402_s30 }
0x4f6d   :  { %v6156_v29 = vpop.eup %6155 }
0x4f6e   :  { %v3398_v46 = vadd.f32 1.0, %v6156_v29 }
0x4f70   :  { %6157 = vrcp.f32 %v3398_v46 }
0x4f7a   :  { %v6158_v3 = vpop.eup %6157 }
0x4f7b   :  { %v3402_v55 = vmul.f32 %v6158_v3, %v3326_v16 }
0x4fde   :  { %v3405_v33 = vpop.permute.xlu1 %3404 }
0x4fdf   :  { %v3407_v54 = vmul.f32 %v6158_v3, %v3405_v33 }
0x4fe1   :  { %3409 = vrot.lane.b32.xlu0 %v3407_v54, %s6400_s26 }
0x4fe5   :  { %2904 = vrot.lane.b32.xlu0 %v7162_v28, %s6404_s11 }
0x4fe9   :  { %3076 = vrot.lane.b32.xlu0 %v7192_v13, %s6404_s11  ;;  %v5831_v13 = vld [vmem:[%s7654_s15] sm:$0xff]  }
0x4fea   :  { %5678 = vmatpush3.bf16.msra.mxu1 %v5831_v13 }
0x4feb   :  { %5693 = vmatprep.subr.bf16.mxu1 %v6395_v6 }
0x5053   :  { %v3410_v52 = vpop.permute.xlu0 %3409 }
0x5054   :  { %v7248_v36 = vadd.f32 %v3410_v52, %v3402_v55 }
0x5056   :  { %6159 = vtanh.f32 %v7248_v36 }
0x5057   :  { %v2905_v37 = vpop.permute.xlu0 %2904 }
0x5058   :  { %2907 = vst.msk [vmem:[#allocation2] sm:$0xff] %vm165_vm0, %v2905_v37 }
0x505b   :  { %v3077_v39 = vpop.permute.xlu0 %3076 }
0x505c   :  { %3079 = vst.msk [vmem:[#allocation2 + $0x10] sm:$0xff] %vm165_vm0, %v3077_v39 }
0x505f   :  { %v3510_v26 = vld [vmem:[#allocation2] sm:$0xff] }
0x5060   :  { %v6160_v28 = vpop.eup %6159 }
0x5061   :  { %3415 = vrot.lane.b32.xlu1 %v6160_v28, %s6403_s6 }
0x5065   :  { %2990 = vrot.lane.b32.xlu1 %v7177_v53, %s6404_s11 }
0x5069   :  { %3162 = vrot.lane.b32.xlu1 %v7207_v35, %s6404_s11  ;;  %v3512_v35 = vld [vmem:[#allocation2 + $0x10] sm:$0xff] }
0x50d3   :  { %v3416_v24 = vpop.permute.xlu1 %3415 }
0x50d4   :  { %v7266_v43 = vmul.f32 %v6158_v3, %v3416_v24 }
0x50d6   :  { %v3425_v44 = vpack.c.bf16 %v7266_v43, %v7266_v43 }
0x50d7   :  { %v2991_v45 = vpop.permute.xlu1 %2990 }
0x50d8   :  { %2993 = vst.msk [vmem:[#allocation2 + $0x8] sm:$0xff] %vm165_vm0, %v2991_v45  ;;  %3429 = vrot.lane.b32.xlu0 %v3425_v44, %s6404_s11 }
0x50db   :  { %v3163_v53 = vpop.permute.xlu1 %3162 }
0x50dc   :  { %3165 = vst.msk [vmem:[#allocation2 + $0x18] sm:$0xff] %vm165_vm0, %v3163_v53 }
0x50df   :  { %v3511_v47 = vld [vmem:[#allocation2 + $0x8] sm:$0xff] }
0x50e0   :  { %v3518_v48 = vpack.c.bf16 %v3511_v47, %v3510_v26 }
0x50e2   :  { %5685 = vmatprep.mubr.msk.bf16.mxu0 %vm165_vm0, %v3518_v48 }
0x50e3   :  { %v3513_v49 = vld [vmem:[#allocation2 + $0x18] sm:$0xff] }
0x50e4   :  { %v3519_v50 = vpack.c.bf16 %v3513_v49, %v3512_v35 }
0x50e6   :  { %5686 = vmatmul.mubr.msk.bf16.vlgmr.msra.gmra.mrb[88].mxu0 %vm165_vm0, %v3519_v50 }
0x514a   :  { %v3430_v40 = vpop.permute.xlu0 %3429 }
0x514b   :  { %5680 = vmatmul.mubr.msk.bf16.vlgmr.msra.gmra.mrb[84].mxu1 %vm165_vm0, %v3430_v40 }
0x514c   :  { %5694 = vmatpush3.bf16.msra.mxu1 %v5832_v51  ;;  %5695 = vmatprep.mubr.msk.bf16.mxu1 %vm6396_vm2, %v6395_v6 }
0x514d   :  { %5699 = vmatprep.subr.bf16.mxu1 %v6395_v6 }
0x5153   :  { %5696 = vmatmul.mubr.bf16.vlgmr.msra.gmra.mrb[88].mxu1 %v6397_v9 }
0x5154   :  { %5701 = vmatprep.mubr.msk.bf16.mxu1 %vm6396_vm2, %v6395_v6  ;;  %5700 = vmatpush3.bf16.msra.mxu1 %v5833_v38 }
0x5155   :  { %5711 = vmatprep.subr.bf16.mxu1 %v6395_v6 }
0x51b9   :  { %v5687_v22 = vpop.f32.mrb[88].mxu0 }
0x51ba   :  { %v3592_v56 = vadd.f32 %v5687_v22, %v7288_v10  ;;  %v3583_v58 = vpop.f32.mrb[89].mxu0 }
0x51bb   :  { %v3584_v60 = vadd.f32 %v7288_v10, %v3583_v58  ;;  %v5688_v62 = vpop.f32.mrb[90].mxu0 }
0x51bc   :  { %3616 = vst.msk [vmem:[#allocation3 + $0x10] sm:$0xff] %vm2818_vm5, %v3592_v56  ;;  %v3595_v61 = vadd.f32 %v5688_v62, %v7288_v10  ;;  %v3586_v41 = vpop.f32.mrb[91].mxu0 }
0x51bd   :  { %3614 = vst.msk [vmem:[#allocation3] sm:$0xff] %vm2818_vm5, %v3584_v60  ;;  %v3587_v63 = vadd.f32 %v7288_v10, %v3586_v41 }
0x51be   :  { %3617 = vst.msk [vmem:[#allocation3 + $0x18] sm:$0xff] %vm2818_vm5, %v3595_v61 }
0x51bf   :  { %3615 = vst.msk [vmem:[#allocation3 + $0x8] sm:$0xff] %vm2818_vm5, %v3587_v63  ;;  %v5834_v63 = vld [vmem:[%s7657_s18] sm:$0xff]  }
0x51c0   :  { %5706 = vmatpush3.bf16.msra.mxu0 %v5834_v63 }
0x51c1   :  { %5717 = vmatprep.subr.bf16.mxu0 %v6395_v6 }
0x51c4   :  { %v3622_v4 = vld [vmem:[#allocation3] sm:$0xff] }
0x51c6   :  { %v3701_v26 = vld [vmem:[#allocation3 + $0x8] sm:$0xff] }
0x521e   :  { %v3474_v0 = vpop.f32.mrb[84].mxu1 }
0x521f   :  { %v5681_v1 = vpop.f32.mrb[85].mxu1  ;;  %v3480_v32 = vadd.f32 %v3474_v0, %v3424_v25  ;;  %v3787_v25 = vld [vmem:[#allocation3 + $0x10] sm:$0xff] }
0x5220   :  { %v3477_v2 = vpop.f32.mrb[86].mxu1 }
0x5221   :  { %v5682_v11 = vpop.f32.mrb[87].mxu1  ;;  %v5229_v29 = vmul.f32 -1.442695, %v3480_v32 }
0x5226   :  { %v3665_v5 = vpop.f32.mrb[88].mxu1 }
0x5227   :  { %v3671_v8 = vadd.f32 %v3665_v5, %v3622_v4  ;;  %v5697_v7 = vpop.f32.mrb[89].mxu1 }
0x5228   :  { %v3668_v12 = vpop.f32.mrb[90].mxu1 }
0x5229   :  { %6161 = vtanh.f32 %v3671_v8  ;;  %v5698_v14 = vpop.f32.mrb[91].mxu1  ;;  %v5237_v16 = vmul.f32 -1.442695, %v3671_v8 }
0x522b   :  { %6163 = vpow2.f32 %v5237_v16 }
0x5233   :  { %v6162_v15 = vpop.eup %6161 }
0x5234   :  { %3681 = vrot.lane.b32.xlu1 %v6162_v15, %s6402_s30 }
0x5235   :  { %v6164_v18 = vpop.eup %6163 }
0x5236   :  { %v3675_v19 = vadd.f32 1.0, %v6164_v18 }
0x5238   :  { %6165 = vrcp.f32 %v3675_v19 }
0x5242   :  { %v6166_v34 = vpop.eup %6165 }
0x5243   :  { %v3679_v20 = vmul.f32 0.0, %v6166_v34 }
0x52a6   :  { %v3682_v17 = vpop.permute.xlu1 %3681 }
0x52a7   :  { %v3684_v31 = vmul.f32 %v6166_v34, %v3682_v17 }
0x52a9   :  { %3686 = vrot.lane.b32.xlu0 %v3684_v31, %s6400_s26 }
0x531b   :  { %v3687_v21 = vpop.permute.xlu0 %3686 }
0x531c   :  { %v3689_v23 = vadd.f32 %v3687_v21, %v3679_v20 }
0x531e   :  { %6167 = vtanh.f32 %v3689_v23 }
0x531f   :  { %6169 = vtanh.f32 %v3480_v32 }
0x5320   :  { %6171 = vpow2.f32 %v5229_v29 }
0x5328   :  { %v6168_v27 = vpop.eup %6167 }
0x5329   :  { %3692 = vrot.lane.b32.xlu1 %v6168_v27, %s6403_s6  ;;  %v6170_v30 = vpop.eup %6169 }
0x532a   :  { %v6172_v46 = vpop.eup %6171 }
0x532b   :  { %v3484_v3 = vadd.f32 1.0, %v6172_v46 }
0x532d   :  { %3490 = vrot.lane.b32.xlu1 %v6170_v30, %s6402_s30  ;;  %6173 = vrcp.f32 %v3484_v3 }
0x5337   :  { %v6174_v52 = vpop.eup %6173 }
0x5338   :  { %v3488_v28 = vmul.f32 %v6174_v52, %v7248_v36 }
0x539b   :  { %v3693_v33 = vpop.permute.xlu1 %3692 }
0x539c   :  { %v7306_v54 = vmul.f32 %v6166_v34, %v3693_v33 }
0x539e   :  { %v3702_v55 = vpack.c.bf16 %v7306_v54, %v7306_v54 }
0x539f   :  { %v3491_v37 = vpop.permute.xlu1 %3490 }
0x53a0   :  { %v3493_v39 = vmul.f32 %v6174_v52, %v3491_v37  ;;  %3706 = vrot.lane.b32.xlu0 %v3702_v55, %s6404_s11 }
0x53a2   :  { %3495 = vrot.lane.b32.xlu1 %v3493_v39, %s6400_s26 }
0x5412   :  { %v3707_v42 = vpop.permute.xlu0 %3706 }
0x5413   :  { %5702 = vmatmul.mubr.msk.bf16.vlgmr.msra.gmra.mrb[92].mxu1 %vm165_vm0, %v3707_v42 }
0x5414   :  { %v3496_v13 = vpop.permute.xlu1 %3495  ;;  %5713 = vmatprep.mubr.msk.bf16.mxu1 %vm6396_vm2, %v6395_v6 }
0x5415   :  { %v3498_v24 = vadd.f32 %v3496_v13, %v3488_v28  ;;  %v5835_v13 = vld [vmem:[%s7657_s18] sm:$0xff]  }
0x5416   :  { %5712 = vmatpush3.bf16.msra.mxu1 %v5835_v13 }
0x5417   :  { %6175 = vtanh.f32 %v3498_v24  ;;  %5723 = vmatprep.subr.bf16.mxu1 %v6395_v6 }
0x5421   :  { %v6176_v44 = vpop.eup %6175 }
0x5422   :  { %3501 = vrot.lane.b32.xlu1 %v6176_v44, %s6403_s6 }
0x5426   :  { %3248 = vrot.lane.b32.xlu1 %v7222_v57, %s6404_s11 }
0x542a   :  { %3420 = vrot.lane.b32.xlu1 %v7266_v43, %s6404_s11 }
0x5494   :  { %v3502_v45 = vpop.permute.xlu1 %3501 }
0x5495   :  { %v3504_v0 = vmul.f32 %v6174_v52, %v3502_v45 }
0x5498   :  { %v3249_v53 = vpop.permute.xlu1 %3248 }
0x5499   :  { %3251 = vst.msk [vmem:[#allocation2 + $0x20] sm:$0xff] %vm165_vm0, %v3249_v53 }
0x549c   :  { %v3421_v36 = vpop.permute.xlu1 %3420 }
0x549d   :  { %3423 = vst.msk [vmem:[#allocation2 + $0x30] sm:$0xff] %vm165_vm0, %v3421_v36 }
0x54a0   :  { %v3514_v5 = vld [vmem:[#allocation2 + $0x20] sm:$0xff] }
0x54a4   :  { %v3516_v12 = vld [vmem:[#allocation2 + $0x30] sm:$0xff] }
0x54e6   :  { %v3751_v47 = vpop.f32.mrb[92].mxu1 }
0x54e7   :  { %v3757_v48 = vadd.f32 %v3751_v47, %v3701_v26  ;;  %v5703_v35 = vpop.f32.mrb[93].mxu1  ;;  %v3873_v26 = vld [vmem:[#allocation3 + $0x18] sm:$0xff] }
0x54e8   :  { %v3754_v49 = vpop.f32.mrb[94].mxu1 }
0x54e9   :  { %6177 = vtanh.f32 %v3757_v48  ;;  %v5704_v50 = vpop.f32.mrb[95].mxu1  ;;  %v5240_v57 = vmul.f32 -1.442695, %v3757_v48 }
0x54eb   :  { %6179 = vpow2.f32 %v5240_v57 }
0x54f3   :  { %v6178_v51 = vpop.eup %6177 }
0x54f4   :  { %3767 = vrot.lane.b32.xlu0 %v6178_v51, %s6402_s30 }
0x54f5   :  { %v6180_v43 = vpop.eup %6179 }
0x54f6   :  { %v3761_v40 = vadd.f32 1.0, %v6180_v43 }
0x54f8   :  { %6181 = vrcp.f32 %v3761_v40 }
0x5502   :  { %v6182_v22 = vpop.eup %6181 }
0x5503   :  { %v3765_v60 = vmul.f32 %v6182_v22, %v3689_v23 }
0x5566   :  { %v3768_v56 = vpop.permute.xlu0 %3767 }
0x5567   :  { %v3770_v58 = vmul.f32 %v6182_v22, %v3768_v56 }
0x5569   :  { %3772 = vrot.lane.b32.xlu0 %v3770_v58, %s6400_s26 }
0x55db   :  { %v3773_v62 = vpop.permute.xlu0 %3772 }
0x55dc   :  { %v3775_v61 = vadd.f32 %v3773_v62, %v3765_v60 }
0x55de   :  { %6183 = vtanh.f32 %v3775_v61 }
0x55e8   :  { %v6184_v41 = vpop.eup %6183 }
0x55e9   :  { %3778 = vrot.lane.b32.xlu0 %v6184_v41, %s6403_s6  ;;  %v5836_v41 = vld [vmem:[%s7657_s18] sm:$0xff]  }
0x55ed   :  { %3334 = vrot.lane.b32.xlu0 %v7236_v59, %s6404_s11 }
0x55f1   :  { %3506 = vrot.lane.b32.xlu0 %v3504_v0, %s6404_s11 }
0x565b   :  { %v3779_v1 = vpop.permute.xlu0 %3778 }
0x565c   :  { %v7333_v2 = vmul.f32 %v6182_v22, %v3779_v1 }
0x565e   :  { %v3788_v11 = vpack.c.bf16 %v7333_v2, %v7333_v2 }
0x565f   :  { %v3335_v4 = vpop.permute.xlu0 %3334 }
0x5660   :  { %3337 = vst.msk [vmem:[#allocation2 + $0x28] sm:$0xff] %vm165_vm0, %v3335_v4  ;;  %3792 = vrot.lane.b32.xlu1 %v3788_v11, %s6404_s11 }
0x5663   :  { %v3507_v59 = vpop.permute.xlu0 %3506 }
0x5664   :  { %3509 = vst.msk [vmem:[#allocation2 + $0x38] sm:$0xff] %vm165_vm0, %v3507_v59 }
0x5667   :  { %v3515_v8 = vld [vmem:[#allocation2 + $0x28] sm:$0xff] }
0x5668   :  { %v3520_v7 = vpack.c.bf16 %v3515_v8, %v3514_v5 }
0x566a   :  { %5689 = vmatprep.mubr.msk.bf16.mxu0 %vm165_vm0, %v3520_v7 }
0x566b   :  { %v3517_v14 = vld [vmem:[#allocation2 + $0x38] sm:$0xff] }
0x566c   :  { %v3521_v15 = vpack.c.bf16 %v3517_v14, %v3516_v12 }
0x566e   :  { %5690 = vmatmul.mubr.msk.bf16.gmra.mrb[92].mxu0 %vm165_vm0, %v3521_v15 }
0x566f   :  { %5707 = vmatprep.mubr.msk.bf16.mxu0 %vm6396_vm2, %v6395_v6 }
0x56d2   :  { %v3793_v16 = vpop.permute.xlu1 %3792 }
0x56d3   :  { %5708 = vmatmul.mubr.msk.bf16.vlgmr.msra.gmra.mrb[96].mxu0 %vm165_vm0, %v3793_v16 }
0x56d4   :  { %5719 = vmatprep.mubr.msk.bf16.mxu0 %vm6396_vm2, %v6395_v6  ;;  %5718 = vmatpush3.bf16.msra.mxu0 %v5836_v41 }
0x56d5   :  { %5729 = vmatprep.subr.bf16.mxu0 %v6395_v6 }
0x5741   :  { %v5691_v18 = vpop.f32.mrb[92].mxu0 }
0x5742   :  { %v3608_v19 = vadd.f32 %v5691_v18, %v7288_v10  ;;  %v3599_v34 = vpop.f32.mrb[93].mxu0 }
0x5743   :  { %v3600_v17 = vadd.f32 %v7288_v10, %v3599_v34  ;;  %v5692_v31 = vpop.f32.mrb[94].mxu0 }
0x5744   :  { %3620 = vst.msk [vmem:[#allocation3 + $0x30] sm:$0xff] %vm2818_vm5, %v3608_v19  ;;  %v3611_v20 = vadd.f32 %v5692_v31, %v7288_v10  ;;  %v3602_v21 = vpop.f32.mrb[95].mxu0 }
0x5745   :  { %3618 = vst.msk [vmem:[#allocation3 + $0x20] sm:$0xff] %vm2818_vm5, %v3600_v17  ;;  %v3603_v23 = vadd.f32 %v7288_v10, %v3602_v21 }
0x5746   :  { %3621 = vst.msk [vmem:[#allocation3 + $0x38] sm:$0xff] %vm2818_vm5, %v3611_v20 }
0x5747   :  { %3619 = vst.msk [vmem:[#allocation3 + $0x28] sm:$0xff] %vm2818_vm5, %v3603_v23 }
0x574c   :  { %v3959_v59 = vld [vmem:[#allocation3 + $0x20] sm:$0xff] }
0x57a6   :  { %v3837_v32 = vpop.f32.mrb[96].mxu0 }
0x57a7   :  { %v3843_v38 = vadd.f32 %v3837_v32, %v3787_v25  ;;  %v5709_v27 = vpop.f32.mrb[97].mxu0  ;;  %v5837_v25 = vld [vmem:[%s7657_s18] sm:$0xff]  }
0x57a8   :  { %v3840_v30 = vpop.f32.mrb[98].mxu0 }
0x57a9   :  { %6185 = vtanh.f32 %v3843_v38  ;;  %v5710_v29 = vpop.f32.mrb[99].mxu0  ;;  %v5243_v3 = vmul.f32 -1.442695, %v3843_v38 }
0x57ab   :  { %6187 = vpow2.f32 %v5243_v3 }
0x57b3   :  { %v6186_v46 = vpop.eup %6185 }
0x57b4   :  { %3853 = vrot.lane.b32.xlu0 %v6186_v46, %s6402_s30  ;;  %v4045_v46 = vld [vmem:[#allocation3 + $0x28] sm:$0xff] }
0x57b5   :  { %v6188_v33 = vpop.eup %6187 }
0x57b6   :  { %v3847_v55 = vadd.f32 1.0, %v6188_v33 }
0x57b8   :  { %6189 = vrcp.f32 %v3847_v55 }
0x57c2   :  { %v6190_v10 = vpop.eup %6189 }
0x57c3   :  { %v3851_v39 = vmul.f32 %v6190_v10, %v3775_v61 }
0x5826   :  { %v3854_v52 = vpop.permute.xlu0 %3853 }
0x5827   :  { %v3856_v37 = vmul.f32 %v6190_v10, %v3854_v52 }
0x5829   :  { %3858 = vrot.lane.b32.xlu1 %v3856_v37, %s6400_s26 }
0x589b   :  { %v3859_v42 = vpop.permute.xlu1 %3858 }
0x589c   :  { %v3861_v28 = vadd.f32 %v3859_v42, %v3851_v39 }
0x589e   :  { %6191 = vtanh.f32 %v3861_v28 }
0x58a8   :  { %v6192_v24 = vpop.eup %6191 }
0x58a9   :  { %3864 = vrot.lane.b32.xlu0 %v6192_v24, %s6403_s6 }
0x591b   :  { %v3865_v44 = vpop.permute.xlu0 %3864 }
0x591c   :  { %v7362_v45 = vmul.f32 %v6190_v10, %v3865_v44 }
0x591e   :  { %v3874_v53 = vpack.c.bf16 %v7362_v45, %v7362_v45 }
0x5920   :  { %3878 = vrot.lane.b32.xlu1 %v3874_v53, %s6404_s11 }
0x5992   :  { %v3879_v36 = vpop.permute.xlu1 %3878 }
0x5993   :  { %5714 = vmatmul.mubr.msk.bf16.vlgmr.msra.gmra.mrb[96].mxu1 %vm165_vm0, %v3879_v36 }
0x5994   :  { %5725 = vmatprep.mubr.msk.bf16.mxu1 %vm6396_vm2, %v6395_v6  ;;  %5724 = vmatpush3.bf16.msra.mxu1 %v5837_v25  ;;  %v7458_v25 = vld [vmem:[%s7661_s22] ss:$0 sm:$0xff] }
0x5995   :  { %5735 = vmatprep.subr.bf16.mxu1 %v6395_v6 }
0x5a66   :  { %v3923_v47 = vpop.f32.mrb[96].mxu1 }
0x5a67   :  { %v3929_v48 = vadd.f32 %v3923_v47, %v3873_v26  ;;  %v5715_v35 = vpop.f32.mrb[97].mxu1  ;;  %v5838_v47 = vld [vmem:[%s7657_s18] sm:$0xff]  }
0x5a68   :  { %v3926_v49 = vpop.f32.mrb[98].mxu1 }
0x5a69   :  { %6193 = vtanh.f32 %v3929_v48  ;;  %v5716_v50 = vpop.f32.mrb[99].mxu1  ;;  %v5246_v57 = vmul.f32 -1.442695, %v3929_v48 }
0x5a6b   :  { %6195 = vpow2.f32 %v5246_v57  ;;  %v4131_v57 = vld [vmem:[#allocation3 + $0x30] sm:$0xff] }
0x5a73   :  { %v6194_v51 = vpop.eup %6193 }
0x5a74   :  { %3939 = vrot.lane.b32.xlu0 %v6194_v51, %s6402_s30 }
0x5a75   :  { %v6196_v43 = vpop.eup %6195 }
0x5a76   :  { %v3933_v40 = vadd.f32 1.0, %v6196_v43 }
0x5a78   :  { %6197 = vrcp.f32 %v3933_v40 }
0x5a82   :  { %v6198_v22 = vpop.eup %6197 }
0x5a83   :  { %v3937_v60 = vmul.f32 %v6198_v22, %v3861_v28 }
0x5ae6   :  { %v3940_v56 = vpop.permute.xlu0 %3939 }
0x5ae7   :  { %v3942_v58 = vmul.f32 %v6198_v22, %v3940_v56 }
0x5ae9   :  { %3944 = vrot.lane.b32.xlu1 %v3942_v58, %s6400_s26 }
0x5b5b   :  { %v3945_v62 = vpop.permute.xlu1 %3944 }
0x5b5c   :  { %v3947_v61 = vadd.f32 %v3945_v62, %v3937_v60 }
0x5b5e   :  { %6199 = vtanh.f32 %v3947_v61 }
0x5b68   :  { %v6200_v63 = vpop.eup %6199 }
0x5b69   :  { %3950 = vrot.lane.b32.xlu0 %v6200_v63, %s6403_s6 }
0x5bdb   :  { %v3951_v0 = vpop.permute.xlu0 %3950 }
0x5bdc   :  { %v7377_v1 = vmul.f32 %v6198_v22, %v3951_v0 }
0x5bde   :  { %v3960_v11 = vpack.c.bf16 %v7377_v1, %v7377_v1 }
0x5be0   :  { %3964 = vrot.lane.b32.xlu1 %v3960_v11, %s6404_s11 }
0x5c52   :  { %v3965_v4 = vpop.permute.xlu1 %3964 }
0x5c53   :  { %5720 = vmatmul.mubr.msk.bf16.vlgmr.msra.gmra.mrb[100].mxu0 %vm165_vm0, %v3965_v4 }
0x5c54   :  { %5731 = vmatprep.mubr.msk.bf16.mxu0 %vm6396_vm2, %v6395_v6  ;;  %5730 = vmatpush3.bf16.msra.mxu0 %v5838_v47 }
0x5d26   :  { %v4009_v5 = vpop.f32.mrb[100].mxu0 }
0x5d27   :  { %v4015_v8 = vadd.f32 %v4009_v5, %v3959_v59  ;;  %v5721_v7 = vpop.f32.mrb[101].mxu0 }
0x5d28   :  { %v4012_v12 = vpop.f32.mrb[102].mxu0 }
0x5d29   :  { %6201 = vtanh.f32 %v4015_v8  ;;  %v5722_v14 = vpop.f32.mrb[103].mxu0  ;;  %v5249_v16 = vmul.f32 -1.442695, %v4015_v8  ;;  %v5839_v12 = vld [vmem:[%s7659_s20] sm:$0xff]  }
0x5d2a   :  { %5741 = vmatprep.subr.bf16.mxu0 %v5839_v12 }
0x5d2b   :  { %6203 = vpow2.f32 %v5249_v16 }
0x5d33   :  { %v6202_v15 = vpop.eup %6201 }
0x5d34   :  { %4025 = vrot.lane.b32.xlu0 %v6202_v15, %s6402_s30 }
0x5d35   :  { %v6204_v18 = vpop.eup %6203 }
0x5d36   :  { %v4019_v19 = vadd.f32 1.0, %v6204_v18 }
0x5d38   :  { %6205 = vrcp.f32 %v4019_v19 }
0x5d42   :  { %v6206_v34 = vpop.eup %6205 }
0x5d43   :  { %v4023_v20 = vmul.f32 %v6206_v34, %v3947_v61 }
0x5da6   :  { %v4026_v17 = vpop.permute.xlu0 %4025 }
0x5da7   :  { %v4028_v31 = vmul.f32 %v6206_v34, %v4026_v17 }
0x5da9   :  { %4030 = vrot.lane.b32.xlu1 %v4028_v31, %s6400_s26 }
0x5e1b   :  { %v4031_v21 = vpop.permute.xlu1 %4030 }
0x5e1c   :  { %v4033_v23 = vadd.f32 %v4031_v21, %v4023_v20  ;;  %v5841_v21 = vld [vmem:[%s7660_s21] sm:$0xff]  }
0x5e1e   :  { %6207 = vtanh.f32 %v4033_v23 }
0x5e28   :  { %v6208_v32 = vpop.eup %6207 }
0x5e29   :  { %4036 = vrot.lane.b32.xlu0 %v6208_v32, %s6403_s6 }
0x5e9b   :  { %v4037_v38 = vpop.permute.xlu0 %4036 }
0x5e9c   :  { %v7392_v27 = vmul.f32 %v6206_v34, %v4037_v38 }
0x5e9e   :  { %v4046_v30 = vpack.c.bf16 %v7392_v27, %v7392_v27 }
0x5ea0   :  { %4050 = vrot.lane.b32.xlu1 %v4046_v30, %s6404_s11 }
0x5f12   :  { %v4051_v29 = vpop.permute.xlu1 %4050 }
0x5f13   :  { %5726 = vmatmul.mubr.msk.bf16.vlgmr.msra.gmra.mrb[100].mxu1 %vm165_vm0, %v4051_v29 }
0x5f14   :  { %5737 = vmatprep.mubr.msk.bf16.mxu1 %vm6396_vm2, %v6395_v6 }
0x5fe6   :  { %v4095_v3 = vpop.f32.mrb[100].mxu1 }
0x5fe7   :  { %v4101_v33 = vadd.f32 %v4095_v3, %v4045_v46  ;;  %v5727_v55 = vpop.f32.mrb[101].mxu1 }
0x5fe8   :  { %v4098_v10 = vpop.f32.mrb[102].mxu1 }
0x5fe9   :  { %6209 = vtanh.f32 %v4101_v33  ;;  %v5728_v52 = vpop.f32.mrb[103].mxu1  ;;  %v5252_v39 = vmul.f32 -1.442695, %v4101_v33 }
0x5feb   :  { %6211 = vpow2.f32 %v5252_v39 }
0x5ff3   :  { %v6210_v37 = vpop.eup %6209 }
0x5ff4   :  { %4111 = vrot.lane.b32.xlu0 %v6210_v37, %s6402_s30 }
0x5ff5   :  { %v6212_v42 = vpop.eup %6211 }
0x5ff6   :  { %v4105_v28 = vadd.f32 1.0, %v6212_v42 }
0x5ff8   :  { %6213 = vrcp.f32 %v4105_v28 }
0x6002   :  { %v6214_v13 = vpop.eup %6213 }
0x6003   :  { %v4109_v53 = vmul.f32 %v6214_v13, %v4033_v23 }
0x6066   :  { %v4112_v24 = vpop.permute.xlu0 %4111 }
0x6067   :  { %v4114_v44 = vmul.f32 %v6214_v13, %v4112_v24 }
0x6069   :  { %4116 = vrot.lane.b32.xlu1 %v4114_v44, %s6400_s26 }
0x60db   :  { %v4117_v36 = vpop.permute.xlu1 %4116 }
0x60dc   :  { %v4119_v26 = vadd.f32 %v4117_v36, %v4109_v53 }
0x60de   :  { %6215 = vtanh.f32 %v4119_v26 }
0x60e8   :  { %v6216_v48 = vpop.eup %6215 }
0x60e9   :  { %4122 = vrot.lane.b32.xlu0 %v6216_v48, %s6403_s6 }
0x615b   :  { %v4123_v35 = vpop.permute.xlu0 %4122 }
0x615c   :  { %v7406_v49 = vmul.f32 %v6214_v13, %v4123_v35 }
0x615e   :  { %v4132_v50 = vpack.c.bf16 %v7406_v49, %v7406_v49 }
0x6160   :  { %4136 = vrot.lane.b32.xlu1 %v4132_v50, %s6404_s11 }
0x61d2   :  { %v4137_v51 = vpop.permute.xlu1 %4136 }
0x61d3   :  { %5732 = vmatmul.mubr.msk.bf16.vlgmr.msra.gmra.mrb[104].mxu0 %vm165_vm0, %v4137_v51 }
0x61d4   :  { %5742 = vmatpush3.bf16.msra.mxu0 %v5839_v12 }
0x61d5   :  { %5763 = vmatprep.subr.bf16.mxu0 %v6395_v6 }
0x62a6   :  { %v4181_v43 = vpop.f32.mrb[104].mxu0 }
0x62a7   :  { %v4187_v40 = vadd.f32 %v4181_v43, %v4131_v57  ;;  %v5733_v22 = vpop.f32.mrb[105].mxu0 }
0x62a8   :  { %v4184_v56 = vpop.f32.mrb[106].mxu0 }
0x62a9   :  { %6217 = vtanh.f32 %v4187_v40  ;;  %v5734_v58 = vpop.f32.mrb[107].mxu0  ;;  %v5255_v62 = vmul.f32 -1.442695, %v4187_v40  ;;  %v4217_v40 = vld [vmem:[#allocation3 + $0x38] sm:$0xff]  ;;  %v5842_v56 = vld [vmem:[%s7660_s21] sm:$0xff]  }
0x62ab   :  { %6219 = vpow2.f32 %v5255_v62 }
0x62b3   :  { %v6218_v60 = vpop.eup %6217 }
0x62b4   :  { %4197 = vrot.lane.b32.xlu0 %v6218_v60, %s6402_s30 }
0x62b5   :  { %v6220_v61 = vpop.eup %6219 }
0x62b6   :  { %v4191_v41 = vadd.f32 1.0, %v6220_v61 }
0x62b8   :  { %6221 = vrcp.f32 %v4191_v41 }
0x62c2   :  { %v6222_v63 = vpop.eup %6221 }
0x62c3   :  { %v4195_v4 = vmul.f32 %v6222_v63, %v4119_v26 }
0x6326   :  { %v4198_v0 = vpop.permute.xlu0 %4197 }
0x6327   :  { %v4200_v11 = vmul.f32 %v6222_v63, %v4198_v0 }
0x6329   :  { %4202 = vrot.lane.b32.xlu1 %v4200_v11, %s6400_s26 }
0x632d   :  { %3697 = vrot.lane.b32.xlu1 %v7306_v54, %s6404_s11 }
0x6331   :  { %3869 = vrot.lane.b32.xlu1 %v7362_v45, %s6404_s11  ;;  %v5840_v45 = vld [vmem:[%s7657_s18] sm:$0xff]  }
0x6332   :  { %5736 = vmatpush3.bf16.msra.mxu1 %v5840_v45 }
0x6333   :  { %5751 = vmatprep.subr.bf16.mxu1 %v6395_v6 }
0x639b   :  { %v4203_v59 = vpop.permute.xlu1 %4202 }
0x639c   :  { %v7418_v5 = vadd.f32 %v4203_v59, %v4195_v4 }
0x639e   :  { %6223 = vtanh.f32 %v7418_v5 }
0x639f   :  { %v3698_v8 = vpop.permute.xlu1 %3697 }
0x63a0   :  { %3700 = vst.msk [vmem:[#allocation2] sm:$0xff] %vm165_vm0, %v3698_v8 }
0x63a3   :  { %v3870_v7 = vpop.permute.xlu1 %3869 }
0x63a4   :  { %3872 = vst.msk [vmem:[#allocation2 + $0x10] sm:$0xff] %vm165_vm0, %v3870_v7 }
0x63a7   :  { %v4303_v19 = vld [vmem:[#allocation2] sm:$0xff] }
0x63a8   :  { %v6224_v54 = vpop.eup %6223 }
0x63a9   :  { %4208 = vrot.lane.b32.xlu0 %v6224_v54, %s6403_s6 }
0x63ad   :  { %3783 = vrot.lane.b32.xlu0 %v7333_v2, %s6404_s11 }
0x63b1   :  { %3955 = vrot.lane.b32.xlu0 %v7377_v1, %s6404_s11  ;;  %v4305_v1 = vld [vmem:[#allocation2 + $0x10] sm:$0xff] }
0x641b   :  { %v4209_v14 = vpop.permute.xlu0 %4208 }
0x641c   :  { %v7436_v15 = vmul.f32 %v6222_v63, %v4209_v14 }
0x641e   :  { %v4218_v16 = vpack.c.bf16 %v7436_v15, %v7436_v15 }
0x641f   :  { %v3784_v18 = vpop.permute.xlu0 %3783 }
0x6420   :  { %3786 = vst.msk [vmem:[#allocation2 + $0x8] sm:$0xff] %vm165_vm0, %v3784_v18  ;;  %4222 = vrot.lane.b32.xlu1 %v4218_v16, %s6404_s11 }
0x6423   :  { %v3956_v2 = vpop.permute.xlu0 %3955 }
0x6424   :  { %3958 = vst.msk [vmem:[#allocation2 + $0x18] sm:$0xff] %vm165_vm0, %v3956_v2 }
0x6427   :  { %v4304_v34 = vld [vmem:[#allocation2 + $0x8] sm:$0xff] }
0x6428   :  { %v4311_v17 = vpack.c.bf16 %v4304_v34, %v4303_v19 }
0x642a   :  { %5743 = vmatprep.mubr.msk.bf16.mxu0 %vm165_vm0, %v4311_v17 }
0x642b   :  { %v4306_v31 = vld [vmem:[#allocation2 + $0x18] sm:$0xff] }
0x642c   :  { %v4312_v20 = vpack.c.bf16 %v4306_v31, %v4305_v1 }
0x642e   :  { %5744 = vmatmul.mubr.msk.bf16.vlgmr.msra.gmra.mrb[108].mxu0 %vm165_vm0, %v4312_v20 }
0x6492   :  { %v4223_v23 = vpop.permute.xlu1 %4222 }
0x6493   :  { %5738 = vmatmul.mubr.msk.bf16.vlgmr.msra.gmra.mrb[104].mxu1 %vm165_vm0, %v4223_v23 }
0x6494   :  { %5752 = vmatpush3.bf16.msra.mxu1 %v5841_v21  ;;  %5753 = vmatprep.mubr.msk.bf16.mxu1 %vm6396_vm2, %v6395_v6 }
0x6495   :  { %5757 = vmatprep.subr.bf16.mxu1 %v6395_v6 }
0x649b   :  { %5754 = vmatmul.mubr.bf16.vlgmr.msra.gmra.mrb[108].mxu1 %v6397_v9 }
0x649c   :  { %5759 = vmatprep.mubr.msk.bf16.mxu1 %vm6396_vm2, %v6395_v6  ;;  %5758 = vmatpush3.bf16.msra.mxu1 %v5842_v56 }
0x649d   :  { %5769 = vmatprep.subr.bf16.mxu1 %v6395_v6 }
0x6501   :  { %v5745_v32 = vpop.f32.mrb[108].mxu0 }
0x6502   :  { %v4385_v38 = vadd.f32 %v5745_v32, %v7458_v25  ;;  %v4376_v30 = vpop.f32.mrb[109].mxu0 }
0x6503   :  { %v4377_v29 = vadd.f32 %v7458_v25, %v4376_v30  ;;  %v5746_v46 = vpop.f32.mrb[110].mxu0 }
0x6504   :  { %4409 = vst.msk [vmem:[#allocation3 + $0x10] sm:$0xff] %vm2818_vm5, %v4385_v38  ;;  %v4388_v3 = vadd.f32 %v5746_v46, %v7458_v25  ;;  %v4379_v9 = vpop.f32.mrb[111].mxu0 }
0x6505   :  { %4407 = vst.msk [vmem:[#allocation3] sm:$0xff] %vm2818_vm5, %v4377_v29  ;;  %v4380_v33 = vadd.f32 %v7458_v25, %v4379_v9  ;;  %v5843_v9 = vld [vmem:[%s7660_s21] sm:$0xff]  }
0x6506   :  { %4410 = vst.msk [vmem:[#allocation3 + $0x18] sm:$0xff] %vm2818_vm5, %v4388_v3  ;;  %5764 = vmatpush3.bf16.msra.mxu0 %v5843_v9 }
0x6507   :  { %4408 = vst.msk [vmem:[#allocation3 + $0x8] sm:$0xff] %vm2818_vm5, %v4380_v33  ;;  %5775 = vmatprep.subr.bf16.mxu0 %v6395_v6 }
0x650c   :  { %v4415_v39 = vld [vmem:[#allocation3] sm:$0xff] }
0x650e   :  { %v4494_v2 = vld [vmem:[#allocation3 + $0x8] sm:$0xff] }
0x6566   :  { %v4267_v55 = vpop.f32.mrb[104].mxu1 }
0x6567   :  { %v5739_v10 = vpop.f32.mrb[105].mxu1  ;;  %v4273_v22 = vadd.f32 %v4267_v55, %v4217_v40 }
0x6568   :  { %v4270_v52 = vpop.f32.mrb[106].mxu1 }
0x6569   :  { %v5740_v37 = vpop.f32.mrb[107].mxu1  ;;  %v5258_v62 = vmul.f32 -1.442695, %v4273_v22 }
0x656e   :  { %v4458_v42 = vpop.f32.mrb[108].mxu1 }
0x656f   :  { %v4464_v28 = vadd.f32 %v4458_v42, %v4415_v39  ;;  %v5755_v13 = vpop.f32.mrb[109].mxu1 }
0x6570   :  { %v4461_v24 = vpop.f32.mrb[110].mxu1 }
0x6571   :  { %6225 = vtanh.f32 %v4464_v28  ;;  %v5756_v44 = vpop.f32.mrb[111].mxu1  ;;  %v5266_v36 = vmul.f32 -1.442695, %v4464_v28 }
0x6573   :  { %6227 = vpow2.f32 %v5266_v36 }
0x657b   :  { %v6226_v53 = vpop.eup %6225 }
0x657c   :  { %4474 = vrot.lane.b32.xlu0 %v6226_v53, %s6402_s30 }
0x657d   :  { %v6228_v26 = vpop.eup %6227 }
0x657e   :  { %v4468_v47 = vadd.f32 1.0, %v6228_v26 }
0x6580   :  { %6229 = vrcp.f32 %v4468_v47 }
0x658a   :  { %v6230_v48 = vpop.eup %6229 }
0x658b   :  { %v4472_v51 = vmul.f32 0.0, %v6230_v48 }
0x65ee   :  { %v4475_v35 = vpop.permute.xlu0 %4474 }
0x65ef   :  { %v4477_v50 = vmul.f32 %v6230_v48, %v4475_v35 }
0x65f1   :  { %4479 = vrot.lane.b32.xlu1 %v4477_v50, %s6400_s26 }
0x6663   :  { %v4480_v57 = vpop.permute.xlu1 %4479 }
0x6664   :  { %v4482_v43 = vadd.f32 %v4480_v57, %v4472_v51 }
0x6666   :  { %6231 = vtanh.f32 %v4482_v43 }
0x6667   :  { %6233 = vtanh.f32 %v4273_v22 }
0x6668   :  { %6235 = vpow2.f32 %v5258_v62 }
0x6670   :  { %v6232_v58 = vpop.eup %6231 }
0x6671   :  { %4485 = vrot.lane.b32.xlu0 %v6232_v58, %s6403_s6  ;;  %v6234_v60 = vpop.eup %6233 }
0x6672   :  { %v6236_v61 = vpop.eup %6235 }
0x6673   :  { %v4277_v41 = vadd.f32 1.0, %v6236_v61 }
0x6675   :  { %4283 = vrot.lane.b32.xlu0 %v6234_v60, %s6402_s30  ;;  %6237 = vrcp.f32 %v4277_v41 }
0x667f   :  { %v6238_v4 = vpop.eup %6237 }
0x6680   :  { %v4281_v12 = vmul.f32 %v6238_v4, %v7418_v5 }
0x66e3   :  { %v4486_v63 = vpop.permute.xlu0 %4485 }
0x66e4   :  { %v7476_v0 = vmul.f32 %v6230_v48, %v4486_v63 }
0x66e6   :  { %v4495_v11 = vpack.c.bf16 %v7476_v0, %v7476_v0 }
0x66e7   :  { %v4284_v59 = vpop.permute.xlu0 %4283 }
0x66e8   :  { %v4286_v8 = vmul.f32 %v6238_v4, %v4284_v59  ;;  %4499 = vrot.lane.b32.xlu1 %v4495_v11, %s6404_s11 }
0x66ea   :  { %4288 = vrot.lane.b32.xlu0 %v4286_v8, %s6400_s26 }
0x675a   :  { %v4500_v7 = vpop.permute.xlu1 %4499 }
0x675b   :  { %5760 = vmatmul.mubr.msk.bf16.vlgmr.msra.gmra.mrb[112].mxu1 %vm165_vm0, %v4500_v7 }
0x675c   :  { %v4289_v54 = vpop.permute.xlu0 %4288  ;;  %5771 = vmatprep.mubr.msk.bf16.mxu1 %vm6396_vm2, %v6395_v6 }
0x675d   :  { %v4291_v45 = vadd.f32 %v4289_v54, %v4281_v12  ;;  %v5844_v12 = vld [vmem:[%s7660_s21] sm:$0xff]  }
0x675e   :  { %5770 = vmatpush3.bf16.msra.mxu1 %v5844_v12 }
0x675f   :  { %6239 = vtanh.f32 %v4291_v45  ;;  %5781 = vmatprep.subr.bf16.mxu1 %v6395_v6 }
0x6769   :  { %v6240_v14 = vpop.eup %6239 }
0x676a   :  { %4294 = vrot.lane.b32.xlu0 %v6240_v14, %s6403_s6 }
0x676e   :  { %4041 = vrot.lane.b32.xlu0 %v7392_v27, %s6404_s11 }
0x6772   :  { %4213 = vrot.lane.b32.xlu0 %v7436_v15, %s6404_s11 }
0x67dc   :  { %v4295_v16 = vpop.permute.xlu0 %4294 }
0x67dd   :  { %v4297_v33 = vmul.f32 %v6238_v4, %v4295_v16 }
0x67e0   :  { %v4042_v18 = vpop.permute.xlu0 %4041 }
0x67e1   :  { %4044 = vst.msk [vmem:[#allocation2 + $0x20] sm:$0xff] %vm165_vm0, %v4042_v18 }
0x67e4   :  { %v4214_v5 = vpop.permute.xlu0 %4213 }
0x67e5   :  { %4216 = vst.msk [vmem:[#allocation2 + $0x30] sm:$0xff] %vm165_vm0, %v4214_v5  ;;  %v4668_v5 = vld [vmem:[#allocation3 + $0x18] sm:$0xff] }
0x67e8   :  { %v4307_v39 = vld [vmem:[#allocation2 + $0x20] sm:$0xff] }
0x67ec   :  { %v4309_v13 = vld [vmem:[#allocation2 + $0x30] sm:$0xff] }
0x682e   :  { %v4544_v19 = vpop.f32.mrb[112].mxu1 }
0x682f   :  { %v4550_v34 = vadd.f32 %v4544_v19, %v4494_v2  ;;  %v5761_v17 = vpop.f32.mrb[113].mxu1 }
0x6830   :  { %v4547_v1 = vpop.f32.mrb[114].mxu1 }
0x6831   :  { %6241 = vtanh.f32 %v4550_v34  ;;  %v5762_v31 = vpop.f32.mrb[115].mxu1  ;;  %v5269_v27 = vmul.f32 -1.442695, %v4550_v34 }
0x6833   :  { %6243 = vpow2.f32 %v5269_v27 }
0x683b   :  { %v6242_v20 = vpop.eup %6241 }
0x683c   :  { %4560 = vrot.lane.b32.xlu1 %v6242_v20, %s6402_s30 }
0x683d   :  { %v6244_v15 = vpop.eup %6243 }
0x683e   :  { %v4554_v21 = vadd.f32 1.0, %v6244_v15 }
0x6840   :  { %6245 = vrcp.f32 %v4554_v21 }
0x684a   :  { %v6246_v23 = vpop.eup %6245 }
0x684b   :  { %v4558_v30 = vmul.f32 %v6246_v23, %v4482_v43  ;;  %v4581_v43 = vld [vmem:[#allocation3 + $0x10] sm:$0xff] }
0x68ae   :  { %v4561_v32 = vpop.permute.xlu1 %4560 }
0x68af   :  { %v4563_v38 = vmul.f32 %v6246_v23, %v4561_v32 }
0x68b1   :  { %4565 = vrot.lane.b32.xlu1 %v4563_v38, %s6400_s26 }
0x6923   :  { %v4566_v29 = vpop.permute.xlu1 %4565 }
0x6924   :  { %v4568_v46 = vadd.f32 %v4566_v29, %v4558_v30 }
0x6926   :  { %6247 = vtanh.f32 %v4568_v46 }
0x6930   :  { %v6248_v3 = vpop.eup %6247 }
0x6931   :  { %4571 = vrot.lane.b32.xlu1 %v6248_v3, %s6403_s6 }
0x6935   :  { %4127 = vrot.lane.b32.xlu1 %v7406_v49, %s6404_s11 }
0x6939   :  { %4299 = vrot.lane.b32.xlu1 %v4297_v33, %s6404_s11 }
0x69a3   :  { %v4572_v55 = vpop.permute.xlu1 %4571 }
0x69a4   :  { %v7503_v10 = vmul.f32 %v6246_v23, %v4572_v55 }
0x69a6   :  { %v4582_v52 = vpack.c.bf16 %v7503_v10, %v7503_v10 }
0x69a7   :  { %v4128_v37 = vpop.permute.xlu1 %4127 }
0x69a8   :  { %4130 = vst.msk [vmem:[#allocation2 + $0x28] sm:$0xff] %vm165_vm0, %v4128_v37  ;;  %4586 = vrot.lane.b32.xlu0 %v4582_v52, %s6404_s11 }
0x69ab   :  { %v4300_v49 = vpop.permute.xlu1 %4299 }
0x69ac   :  { %4302 = vst.msk [vmem:[#allocation2 + $0x38] sm:$0xff] %vm165_vm0, %v4300_v49 }
0x69af   :  { %v4308_v42 = vld [vmem:[#allocation2 + $0x28] sm:$0xff] }
0x69b0   :  { %v4313_v28 = vpack.c.bf16 %v4308_v42, %v4307_v39 }
0x69b2   :  { %5747 = vmatprep.mubr.msk.bf16.mxu0 %vm165_vm0, %v4313_v28 }
0x69b3   :  { %v4310_v24 = vld [vmem:[#allocation2 + $0x38] sm:$0xff] }
0x69b4   :  { %v4314_v44 = vpack.c.bf16 %v4310_v24, %v4309_v13 }
0x69b6   :  { %5748 = vmatmul.mubr.msk.bf16.gmra.mrb[112].mxu0 %vm165_vm0, %v4314_v44 }
0x69b7   :  { %5765 = vmatprep.mubr.msk.bf16.mxu0 %vm6396_vm2, %v6395_v6 }
0x6a1a   :  { %v4587_v53 = vpop.permute.xlu0 %4586 }
0x6a1b   :  { %5766 = vmatmul.mubr.msk.bf16.vlgmr.msra.gmra.mrb[116].mxu0 %vm165_vm0, %v4587_v53 }
0x6a1c   :  { %5777 = vmatprep.mubr.msk.bf16.mxu0 %vm6396_vm2, %v6395_v6 }
0x6a89   :  { %v5749_v36 = vpop.f32.mrb[112].mxu0 }
0x6a8a   :  { %v4401_v26 = vadd.f32 %v5749_v36, %v7458_v25  ;;  %v4392_v47 = vpop.f32.mrb[113].mxu0 }
0x6a8b   :  { %v4393_v48 = vadd.f32 %v7458_v25, %v4392_v47  ;;  %v5750_v35 = vpop.f32.mrb[114].mxu0 }
0x6a8c   :  { %4413 = vst.msk [vmem:[#allocation3 + $0x30] sm:$0xff] %vm2818_vm5, %v4401_v26  ;;  %v4404_v50 = vadd.f32 %v5750_v35, %v7458_v25  ;;  %v4395_v51 = vpop.f32.mrb[115].mxu0 }
0x6a8d   :  { %4411 = vst.msk [vmem:[#allocation3 + $0x20] sm:$0xff] %vm2818_vm5, %v4393_v48  ;;  %v4396_v57 = vadd.f32 %v7458_v25, %v4395_v51 }
0x6a8e   :  { %4414 = vst.msk [vmem:[#allocation3 + $0x38] sm:$0xff] %vm2818_vm5, %v4404_v50 }
0x6a8f   :  { %4412 = vst.msk [vmem:[#allocation3 + $0x28] sm:$0xff] %vm2818_vm5, %v4396_v57  ;;  %v5846_v57 = vld [vmem:[%s7660_s21] sm:$0xff]  }
0x6a94   :  { %v4755_v37 = vld [vmem:[#allocation3 + $0x20] sm:$0xff] }
0x6aee   :  { %v4631_v40 = vpop.f32.mrb[116].mxu0 }
0x6aef   :  { %v4637_v22 = vadd.f32 %v4631_v40, %v4581_v43  ;;  %v5767_v56 = vpop.f32.mrb[117].mxu0 }
0x6af0   :  { %v4634_v58 = vpop.f32.mrb[118].mxu0 }
0x6af1   :  { %6249 = vtanh.f32 %v4637_v22  ;;  %v5768_v60 = vpop.f32.mrb[119].mxu0  ;;  %v5273_v61 = vmul.f32 -1.442695, %v4637_v22 }
0x6af2   :  { %v4842_v60 = vld [vmem:[#allocation3 + $0x28] sm:$0xff] }
0x6af3   :  { %6251 = vpow2.f32 %v5273_v61 }
0x6afb   :  { %v6250_v62 = vpop.eup %6249 }
0x6afc   :  { %4647 = vrot.lane.b32.xlu1 %v6250_v62, %s6402_s30 }
0x6afd   :  { %v6252_v41 = vpop.eup %6251 }
0x6afe   :  { %v4641_v63 = vadd.f32 1.0, %v6252_v41 }
0x6b00   :  { %6253 = vrcp.f32 %v4641_v63 }
0x6b0a   :  { %v6254_v25 = vpop.eup %6253 }
0x6b0b   :  { %v4645_v59 = vmul.f32 %v6254_v25, %v4568_v46  ;;  %v5845_v46 = vld [vmem:[%s7660_s21] sm:$0xff]  }
0x6b0c   :  { %5776 = vmatpush3.bf16.msra.mxu0 %v5845_v46 }
0x6b0d   :  { %5787 = vmatprep.subr.bf16.mxu0 %v6395_v6 }
0x6b6e   :  { %v4648_v11 = vpop.permute.xlu1 %4647 }
0x6b6f   :  { %v4650_v4 = vmul.f32 %v6254_v25, %v4648_v11 }
0x6b71   :  { %4652 = vrot.lane.b32.xlu0 %v4650_v4, %s6400_s26 }
0x6be3   :  { %v4653_v8 = vpop.permute.xlu0 %4652 }
0x6be4   :  { %v4655_v7 = vadd.f32 %v4653_v8, %v4645_v59 }
0x6be6   :  { %6255 = vtanh.f32 %v4655_v7 }
0x6bf0   :  { %v6256_v54 = vpop.eup %6255 }
0x6bf1   :  { %4658 = vrot.lane.b32.xlu1 %v6256_v54, %s6403_s6 }
0x6c63   :  { %v4659_v45 = vpop.permute.xlu1 %4658 }
0x6c64   :  { %v7532_v14 = vmul.f32 %v6254_v25, %v4659_v45 }
0x6c66   :  { %v4669_v16 = vpack.c.bf16 %v7532_v14, %v7532_v14 }
0x6c68   :  { %4673 = vrot.lane.b32.xlu0 %v4669_v16, %s6404_s11 }
0x6cda   :  { %v4674_v18 = vpop.permute.xlu0 %4673 }
0x6cdb   :  { %5772 = vmatmul.mubr.msk.bf16.vlgmr.msra.gmra.mrb[116].mxu1 %vm165_vm0, %v4674_v18  ;;  %v5847_v18 = vld [vmem:[%s7660_s21] sm:$0xff]  }
0x6cdc   :  { %5783 = vmatprep.mubr.msk.bf16.mxu1 %vm6396_vm2, %v6395_v6  ;;  %5782 = vmatpush3.bf16.msra.mxu1 %v5846_v57 }
0x6cdd   :  { %5793 = vmatprep.subr.bf16.mxu1 %v6395_v6 }
0x6dae   :  { %v4718_v2 = vpop.f32.mrb[116].mxu1 }
0x6daf   :  { %v4724_v19 = vadd.f32 %v4718_v2, %v4668_v5  ;;  %v5773_v34 = vpop.f32.mrb[117].mxu1 }
0x6db0   :  { %v4721_v17 = vpop.f32.mrb[118].mxu1 }
0x6db1   :  { %6257 = vtanh.f32 %v4724_v19  ;;  %v5774_v1 = vpop.f32.mrb[119].mxu1  ;;  %v5277_v20 = vmul.f32 -1.442695, %v4724_v19 }
0x6db2   :  { %v4929_v1 = vld [vmem:[#allocation3 + $0x30] sm:$0xff] }
0x6db3   :  { %6259 = vpow2.f32 %v5277_v20 }
0x6dbb   :  { %v6258_v31 = vpop.eup %6257 }
0x6dbc   :  { %4734 = vrot.lane.b32.xlu1 %v6258_v31, %s6402_s30 }
0x6dbd   :  { %v6260_v27 = vpop.eup %6259 }
0x6dbe   :  { %v4728_v15 = vadd.f32 1.0, %v6260_v27 }
0x6dc0   :  { %6261 = vrcp.f32 %v4728_v15 }
0x6dca   :  { %v6262_v21 = vpop.eup %6261 }
0x6dcb   :  { %v4732_v38 = vmul.f32 %v6262_v21, %v4655_v7 }
0x6e2e   :  { %v4735_v23 = vpop.permute.xlu1 %4734 }
0x6e2f   :  { %v4737_v32 = vmul.f32 %v6262_v21, %v4735_v23 }
0x6e31   :  { %4739 = vrot.lane.b32.xlu0 %v4737_v32, %s6400_s26 }
0x6ea3   :  { %v4740_v30 = vpop.permute.xlu0 %4739 }
0x6ea4   :  { %v4742_v29 = vadd.f32 %v4740_v30, %v4732_v38 }
0x6ea6   :  { %6263 = vtanh.f32 %v4742_v29 }
0x6eb0   :  { %v6264_v3 = vpop.eup %6263 }
0x6eb1   :  { %4745 = vrot.lane.b32.xlu1 %v6264_v3, %s6403_s6 }
0x6f23   :  { %v4746_v9 = vpop.permute.xlu1 %4745 }
0x6f24   :  { %v7547_v33 = vmul.f32 %v6262_v21, %v4746_v9 }
0x6f26   :  { %v4756_v55 = vpack.c.bf16 %v7547_v33, %v7547_v33 }
0x6f28   :  { %4760 = vrot.lane.b32.xlu0 %v4756_v55, %s6404_s11 }
0x6f9a   :  { %v4761_v52 = vpop.permute.xlu0 %4760 }
0x6f9b   :  { %5778 = vmatmul.mubr.msk.bf16.vlgmr.msra.gmra.mrb[120].mxu0 %vm165_vm0, %v4761_v52 }
0x6f9c   :  { %5789 = vmatprep.mubr.msk.bf16.mxu0 %vm6396_vm2, %v6395_v6  ;;  %5788 = vmatpush3.bf16.msra.mxu0 %v5847_v18 }
0x706e   :  { %v4805_v49 = vpop.f32.mrb[120].mxu0 }
0x706f   :  { %v4811_v39 = vadd.f32 %v4805_v49, %v4755_v37  ;;  %v5779_v42 = vpop.f32.mrb[121].mxu0  ;;  %v5848_v37 = vld [vmem:[%s7660_s21] sm:$0xff]  }
0x7070   :  { %v4808_v28 = vpop.f32.mrb[122].mxu0 }
0x7071   :  { %6265 = vtanh.f32 %v4811_v39  ;;  %v5780_v13 = vpop.f32.mrb[123].mxu0  ;;  %v5281_v44 = vmul.f32 -1.442695, %v4811_v39 }
0x7073   :  { %6267 = vpow2.f32 %v5281_v44 }
0x707b   :  { %v6266_v24 = vpop.eup %6265 }
0x707c   :  { %4821 = vrot.lane.b32.xlu1 %v6266_v24, %s6402_s30  ;;  %v5016_v24 = vld [vmem:[#allocation3 + $0x38] sm:$0xff] }
0x707d   :  { %v6268_v53 = vpop.eup %6267 }
0x707e   :  { %v4815_v36 = vadd.f32 1.0, %v6268_v53 }
0x7080   :  { %6269 = vrcp.f32 %v4815_v36 }
0x708a   :  { %v6270_v26 = vpop.eup %6269 }
0x708b   :  { %v4819_v35 = vmul.f32 %v6270_v26, %v4742_v29 }
0x70ee   :  { %v4822_v47 = vpop.permute.xlu1 %4821 }
0x70ef   :  { %v4824_v48 = vmul.f32 %v6270_v26, %v4822_v47 }
0x70f1   :  { %4826 = vrot.lane.b32.xlu0 %v4824_v48, %s6400_s26 }
0x7163   :  { %v4827_v50 = vpop.permute.xlu0 %4826 }
0x7164   :  { %v4829_v51 = vadd.f32 %v4827_v50, %v4819_v35 }
0x7166   :  { %6271 = vtanh.f32 %v4829_v51 }
0x7170   :  { %v6272_v43 = vpop.eup %6271 }
0x7171   :  { %4832 = vrot.lane.b32.xlu1 %v6272_v43, %s6403_s6 }
0x71e3   :  { %v4833_v40 = vpop.permute.xlu1 %4832 }
0x71e4   :  { %v7562_v22 = vmul.f32 %v6270_v26, %v4833_v40 }
0x71e6   :  { %v4843_v56 = vpack.c.bf16 %v7562_v22, %v7562_v22 }
0x71e8   :  { %4847 = vrot.lane.b32.xlu0 %v4843_v56, %s6404_s11 }
0x725a   :  { %v4848_v58 = vpop.permute.xlu0 %4847 }
0x725b   :  { %5784 = vmatmul.mubr.msk.bf16.vlgmr.msra.gmra.mrb[120].mxu1 %vm165_vm0, %v4848_v58 }
0x725c   :  { %5795 = vmatprep.mubr.msk.bf16.mxu1 %vm6396_vm2, %v6395_v6  ;;  %5794 = vmatpush3.bf16.msra.mxu1 %v5848_v37 }
0x732e   :  { %v4892_v62 = vpop.f32.mrb[120].mxu1 }
0x732f   :  { %v4898_v61 = vadd.f32 %v4892_v62, %v4842_v60  ;;  %v5785_v41 = vpop.f32.mrb[121].mxu1 }
0x7330   :  { %v4895_v63 = vpop.f32.mrb[122].mxu1 }
0x7331   :  { %6273 = vtanh.f32 %v4898_v61  ;;  %v5786_v25 = vpop.f32.mrb[123].mxu1  ;;  %v5285_v4 = vmul.f32 -1.442695, %v4898_v61 }
0x7333   :  { %6275 = vpow2.f32 %v5285_v4 }
0x733b   :  { %v6274_v11 = vpop.eup %6273 }
0x733c   :  { %4908 = vrot.lane.b32.xlu1 %v6274_v11, %s6402_s30 }
0x733d   :  { %v6276_v59 = vpop.eup %6275 }
0x733e   :  { %v4902_v8 = vadd.f32 1.0, %v6276_v59 }
0x7340   :  { %6277 = vrcp.f32 %v4902_v8 }
0x734a   :  { %v6278_v7 = vpop.eup %6277 }
0x734b   :  { %v4906_v6 = vmul.f32 %v6278_v7, %v4829_v51 }
0x73ae   :  { %v4909_v12 = vpop.permute.xlu1 %4908 }
0x73af   :  { %v4911_v54 = vmul.f32 %v6278_v7, %v4909_v12 }
0x73b1   :  { %4913 = vrot.lane.b32.xlu0 %v4911_v54, %s6400_s26 }
0x7423   :  { %v4914_v45 = vpop.permute.xlu0 %4913 }
0x7424   :  { %v4916_v16 = vadd.f32 %v4914_v45, %v4906_v6 }
0x7426   :  { %6279 = vtanh.f32 %v4916_v16 }
0x7430   :  { %v6280_v5 = vpop.eup %6279 }
0x7431   :  { %4919 = vrot.lane.b32.xlu1 %v6280_v5, %s6403_s6 }
0x74a3   :  { %v4920_v2 = vpop.permute.xlu1 %4919 }
0x74a4   :  { %v7576_v19 = vmul.f32 %v6278_v7, %v4920_v2 }
0x74a6   :  { %v4930_v34 = vpack.c.bf16 %v7576_v19, %v7576_v19 }
0x74a8   :  { %4934 = vrot.lane.b32.xlu0 %v4930_v34, %s6404_s11 }
0x751a   :  { %v4935_v17 = vpop.permute.xlu0 %4934 }
0x751b   :  { %5790 = vmatmul.mubr.msk.bf16.vlgmr.msra.gmra.mrb[124].mxu0 %vm165_vm0, %v4935_v17 }
0x75ee   :  { %v4979_v31 = vpop.f32.mrb[124].mxu0 }
0x75ef   :  { %v4985_v20 = vadd.f32 %v4979_v31, %v4929_v1  ;;  %v5791_v27 = vpop.f32.mrb[125].mxu0 }
0x75f0   :  { %v4982_v15 = vpop.f32.mrb[126].mxu0 }
0x75f1   :  { %6281 = vtanh.f32 %v4985_v20  ;;  %v5792_v21 = vpop.f32.mrb[127].mxu0  ;;  %v5289_v32 = vmul.f32 -1.442695, %v4985_v20 }
0x75f3   :  { %6283 = vpow2.f32 %v5289_v32 }
0x75fb   :  { %v6282_v23 = vpop.eup %6281 }
0x75fc   :  { %4995 = vrot.lane.b32.xlu1 %v6282_v23, %s6402_s30 }
0x75fd   :  { %v6284_v38 = vpop.eup %6283 }
0x75fe   :  { %v4989_v30 = vadd.f32 1.0, %v6284_v38 }
0x7600   :  { %6285 = vrcp.f32 %v4989_v30 }
0x760a   :  { %v6286_v29 = vpop.eup %6285 }
0x760b   :  { %v4993_v9 = vmul.f32 %v6286_v29, %v4916_v16 }
0x766e   :  { %v4996_v46 = vpop.permute.xlu1 %4995 }
0x766f   :  { %v4998_v3 = vmul.f32 %v6286_v29, %v4996_v46 }
0x7671   :  { %5000 = vrot.lane.b32.xlu0 %v4998_v3, %s6400_s26 }
0x76e3   :  { %v5001_v55 = vpop.permute.xlu0 %5000 }
0x76e4   :  { %v5003_v52 = vadd.f32 %v5001_v55, %v4993_v9 }
0x76e6   :  { %6287 = vtanh.f32 %v5003_v52 }
0x76f0   :  { %v6288_v49 = vpop.eup %6287 }
0x76f1   :  { %5006 = vrot.lane.b32.xlu1 %v6288_v49, %s6403_s6 }
0x7763   :  { %v5007_v39 = vpop.permute.xlu1 %5006 }
0x7764   :  { %v5009_v42 = vmul.f32 %v6286_v29, %v5007_v39 }
0x7766   :  { %v5017_v28 = vpack.c.bf16 %v5009_v42, %v5009_v42 }
0x7768   :  { %5021 = vrot.lane.b32.xlu0 %v5017_v28, %s6404_s11 }
0x77da   :  { %v5022_v13 = vpop.permute.xlu0 %5021 }
0x77db   :  { %5796 = vmatmul.mubr.msk.bf16.vlgmr.msra.gmra.mrb[124].mxu1 %vm165_vm0, %v5022_v13 }
0x78ae   :  { %v5066_v44 = vpop.f32.mrb[124].mxu1 }
0x78af   :  { %v5072_v53 = vadd.f32 %v5066_v44, %v5016_v24  ;;  %v5797_v36 = vpop.f32.mrb[125].mxu1 }
0x78b0   :  { %v5069_v26 = vpop.f32.mrb[126].mxu1 }
0x78b1   :  { %6289 = vtanh.f32 %v5072_v53  ;;  %v5798_v47 = vpop.f32.mrb[127].mxu1  ;;  %v5293_v35 = vmul.f32 -1.442695, %v5072_v53 }
0x78b3   :  { %6291 = vpow2.f32 %v5293_v35 }
0x78bb   :  { %v6290_v48 = vpop.eup %6289 }
0x78bc   :  { %5082 = vrot.lane.b32.xlu1 %v6290_v48, %s6402_s30 }
0x78bd   :  { %v6292_v50 = vpop.eup %6291 }
0x78be   :  { %v5076_v51 = vadd.f32 1.0, %v6292_v50 }
0x78c0   :  { %6293 = vrcp.f32 %v5076_v51 }
0x78ca   :  { %v6294_v57 = vpop.eup %6293 }
0x78cb   :  { %v5080_v56 = vmul.f32 %v6294_v57, %v5003_v52 }
0x792e   :  { %v5083_v43 = vpop.permute.xlu1 %5082 }
0x792f   :  { %v5085_v40 = vmul.f32 %v6294_v57, %v5083_v43 }
0x7931   :  { %5087 = vrot.lane.b32.xlu0 %v5085_v40, %s6400_s26 }
0x7935   :  { %4490 = vrot.lane.b32.xlu0 %v7476_v0, %s6404_s11 }
0x7939   :  { %4663 = vrot.lane.b32.xlu0 %v7532_v14, %s6404_s11 }
0x793d   :  { %4837 = vrot.lane.b32.xlu0 %v7562_v22, %s6404_s11 }
0x7941   :  { %5011 = vrot.lane.b32.xlu0 %v5009_v42, %s6404_s11 }
0x79a3   :  { %v5088_v58 = vpop.permute.xlu0 %5087 }
0x79a4   :  { %v5090_v60 = vadd.f32 %v5088_v58, %v5080_v56 }
0x79a6   :  { %6295 = vtanh.f32 %v5090_v60 }
0x79a7   :  { %v4491_v62 = vpop.permute.xlu0 %4490 }
0x79a8   :  { %4493 = vst.msk [vmem:[%s7662_s23] sm:$0xff] %vm165_vm0, %v4491_v62 }
0x79ab   :  { %v4664_v61 = vpop.permute.xlu0 %4663 }
0x79ac   :  { %5274 = vst.msk [vmem:[%s7662_s23 + $0x10] sm:$0xff] %vm165_vm0, %v4664_v61 }
0x79af   :  { %v4838_v0 = vpop.permute.xlu0 %4837 }
0x79b0   :  { %v6296_v14 = vpop.eup %6295  ;;  %5282 = vst.msk [vmem:[%s7662_s23 + $0x20] sm:$0xff] %vm165_vm0, %v4838_v0 }
0x79b1   :  { %5093 = vrot.lane.b32.xlu1 %v6296_v14, %s6403_s6 }
0x79b3   :  { %v5012_v22 = vpop.permute.xlu0 %5011 }
0x79b4   :  { %5290 = vst.msk [vmem:[%s7662_s23 + $0x30] sm:$0xff] %vm165_vm0, %v5012_v22 }
0x79b5   :  { %4576 = vrot.lane.b32.xlu1 %v7503_v10, %s6404_s11 }
0x79b9   :  { %4750 = vrot.lane.b32.xlu1 %v7547_v33, %s6404_s11 }
0x79bd   :  { %4924 = vrot.lane.b32.xlu1 %v7576_v19, %s6404_s11 }
0x7a23   :  { %v5094_v41 = vpop.permute.xlu1 %5093 }
0x7a24   :  { %v5096_v63 = vmul.f32 %v6294_v57, %v5094_v41 }
0x7a26   :  { %5098 = vrot.lane.b32.xlu1 %v5096_v63, %s6404_s11 }
0x7a27   :  { %v4577_v25 = vpop.permute.xlu1 %4576 }
0x7a28   :  { %5270 = vst.msk [vmem:[%s7662_s23 + $0x8] sm:$0xff] %vm165_vm0, %v4577_v25 }
0x7a2b   :  { %v4751_v11 = vpop.permute.xlu1 %4750 }
0x7a2c   :  { %5278 = vst.msk [vmem:[%s7662_s23 + $0x18] sm:$0xff] %vm165_vm0, %v4751_v11 }
0x7a2f   :  { %v4925_v10 = vpop.permute.xlu1 %4924 }
0x7a30   :  { %5286 = vst.msk [vmem:[%s7662_s23 + $0x28] sm:$0xff] %vm165_vm0, %v4925_v10 }
0x7a98   :  { %v5099_v33 = vpop.permute.xlu1 %5098 }
0x7a99   :  { %5294 = vst.msk [vmem:[%s7662_s23 + $0x38] sm:$0xff] %vm165_vm0, %v5099_v33 }
0x7a9a   :  { %5107 = vsyncpa [#allocation5], 1 }
0x7a9b   :  { %5108 = vsyncpa [#allocation7], 1 }
0x7a9c   :  { %5109 = vsyncpa [#allocation10], 1 }

</bundles_post_ra>
